<compile_context>
chip_gen: v7x
topology: tpu7x:2x2x1
jax: 0.10.0
libtpu: 0.0.40
codegen_flags: <defaults>
</compile_context>

<pallas_src>
import functools
import math

import jax
import jax.numpy as jnp
from jax.experimental import pallas as pl
from jax.experimental.pallas import tpu as pltpu


_TM_MAX = 2048   # max GEMM rows per block (multiple of 8)
_BN_EPS = 1e-5


def _pick_rows(m, unit):
    """Rows per block: full array for small shapes, else the largest multiple
    of `unit` under _TM_MAX while keeping >= 2 grid steps so both v7x
    TensorCores get work (the M axis is marked "parallel")."""
    if m <= _TM_MAX:
        return m
    n_units = max(1, m // unit)
    per = max(1, min(_TM_MAX // unit, n_units // 2))
    return per * unit


# ---------------------------------------------------------------------------
# Head kernel: (im2col-GEMM) -> *scale + shift -> PReLU    (stride-2 layers)
# ---------------------------------------------------------------------------
def _head_kernel(p_ref, w_ref, scale_ref, shift_ref, alpha_ref, o_ref):
    y = jnp.dot(p_ref[...], w_ref[...], preferred_element_type=jnp.float32)
    y = y * scale_ref[...] + shift_ref[...]        # conv bias + inference BN
    a = alpha_ref[0]                               # PReLU alpha (SMEM scalar)
    o_ref[...] = jnp.where(y >= 0.0, y, a * y).astype(o_ref.dtype)


def _head_layer(patches, w2d, scale, shift, alpha):
    m, k = patches.shape
    _, n = w2d.shape
    tm = _pick_rows(m, 8)
    grid = (pl.cdiv(m, tm),)
    return pl.pallas_call(
        _head_kernel,
        out_shape=jax.ShapeDtypeStruct((m, n), jnp.bfloat16),
        grid=grid,
        in_specs=[
            pl.BlockSpec((tm, k), lambda i: (i, 0)),
            pl.BlockSpec((k, n), lambda i: (0, 0)),
            pl.BlockSpec((1, n), lambda i: (0, 0)),
            pl.BlockSpec((1, n), lambda i: (0, 0)),
            pl.BlockSpec(memory_space=pltpu.MemorySpace.SMEM),
        ],
        out_specs=pl.BlockSpec((tm, n), lambda i: (i, 0)),
        compiler_params=pltpu.CompilerParams(
            dimension_semantics=("parallel",)),
    )(patches, w2d, scale, shift, alpha)


# ---------------------------------------------------------------------------
# Fused stride-1 tail: conv3 -> BN -> PReLU -> conv4 -> BN -> PReLU -> conv5
# -> Sigmoid -> round(x*3), all VMEM-resident in one kernel.
# Each 3x3 / stride-1 / pad-1 conv is computed on the row-flattened (b,h,w)
# activation as 9 shifted (pltpu.roll) + border-masked MXU matmuls.
# ---------------------------------------------------------------------------
def _tail_kernel(x_ref, m_ref, w3_ref, s3_ref, h3_ref, w4_ref, s4_ref, h4_ref,
                 w5_ref, b5_ref, alpha_ref, o_ref, *, img_w):
    rows = x_ref.shape[0]
    masks = m_ref[...]                            # (rows, 4) f32 border masks
    m_top, m_bot = masks[:, 0:1], masks[:, 1:2]   # h-1 valid / h+1 valid
    m_lft, m_rgt = masks[:, 2:3], masks[:, 3:4]   # w-1 valid / w+1 valid

    def conv3x3(act, w_ref):
        cin = act.shape[1]
        cout = w_ref.shape[1]
        acc = jnp.zeros((rows, cout), jnp.float32)
        for kh in range(3):
            for kw in range(3):
                dh, dw = kh - 1, kw - 1
                off = dh * img_w + dw             # want shifted[r] = act[r+off]
                if off == 0:
                    s = act
                else:
                    s = pltpu.roll(act, shift=(-off) % rows, axis=0)
                m = None
                if dh < 0:
                    m = m_top
                elif dh > 0:
                    m = m_bot
                if dw < 0:
                    m = m_lft if m is None else m * m_lft
                elif dw > 0:
                    m = m_rgt if m is None else m * m_rgt
                if m is not None:
                    s = s * m                     # zero out-of-image taps
                k = kh * 3 + kw
                wk = w_ref[k * cin:(k + 1) * cin, :]
                acc = acc + jnp.dot(s.astype(jnp.bfloat16), wk,
                                    preferred_element_type=jnp.float32)
        return acc

    x = x_ref[...].astype(jnp.float32)

    y = conv3x3(x, w3_ref)                                  # conv3 + BN + PReLU
    y = y * s3_ref[...] + h3_ref[...]
    y = jnp.where(y >= 0.0, y, alpha_ref[0] * y)

    y = conv3x3(y, w4_ref)                                  # conv4 + BN + PReLU
    y = y * s4_ref[...] + h4_ref[...]
    y = jnp.where(y >= 0.0, y, alpha_ref[1] * y)

    y = conv3x3(y, w5_ref) + b5_ref[...]                    # conv5
    sig = 1.0 / (1.0 + jnp.exp(-y))                         # Sigmoid
    o_ref[...] = jnp.round(sig * 3.0).astype(o_ref.dtype)   # Tooligo / Myround


def _tail_layers(x2, masks, l3, l4, l5, alphas, img_w, tm):
    m, cin = x2.shape
    cout = l5["w2d"].shape[1]
    grid = (pl.cdiv(m, tm),)
    kernel = functools.partial(_tail_kernel, img_w=img_w)

    def _full(shape):
        return pl.BlockSpec(tuple(shape), lambda i: (0, 0))

    return pl.pallas_call(
        kernel,
        out_shape=jax.ShapeDtypeStruct((m, cout), jnp.float32),
        grid=grid,
        in_specs=[
            pl.BlockSpec((tm, cin), lambda i: (i, 0)),     # activation rows
            _full((tm, 4)),                                # per-block border mask
            _full(l3["w2d"].shape), _full(l3["scale"].shape), _full(l3["shift"].shape),
            _full(l4["w2d"].shape), _full(l4["scale"].shape), _full(l4["shift"].shape),
            _full(l5["w2d"].shape), _full(l5["shift"].shape),
            pl.BlockSpec(memory_space=pltpu.MemorySpace.SMEM),   # PReLU alphas
        ],
        out_specs=pl.BlockSpec((tm, cout), lambda i: (i, 0)),
        compiler_params=pltpu.CompilerParams(
            dimension_semantics=("parallel",)),
    )(x2, masks, l3["w2d"], l3["scale"], l3["shift"],
      l4["w2d"], l4["scale"], l4["shift"], l5["w2d"], l5["shift"], alphas)


# ---------------------------------------------------------------------------
# Wrapper-side layout helpers (zero FLOPs)
# ---------------------------------------------------------------------------
def _im2col(x_pad, stride):
    """x_pad: (B, Hp, Wp, C) zero-padded NHWC -> ((B*Ho*Wo, 9*C), Ho, Wo)."""
    b, hp, wp, c = x_pad.shape
    ho = (hp - 3) // stride + 1
    wo = (wp - 3) // stride + 1
    cols = []
    for kh in range(3):
        for kw in range(3):
            patch = jax.lax.slice(
                x_pad, (0, kh, kw, 0),
                (b, kh + stride * (ho - 1) + 1, kw + stride * (wo - 1) + 1, c),
                (1, stride, stride, 1))
            cols.append(patch.reshape(b * ho * wo, c))
    return jnp.concatenate(cols, axis=1), ho, wo


def _border_masks(n_imgs, h, w):
    """(n_imgs*h*w, 4) f32: per row-flattened pixel, validity of the
    h-1 / h+1 / w-1 / w+1 neighbour inside the image."""
    hi = jnp.arange(h, dtype=jnp.int32)
    wi = jnp.arange(w, dtype=jnp.int32)
    top = jnp.repeat((hi > 0).astype(jnp.float32), w)
    bot = jnp.repeat((hi < h - 1).astype(jnp.float32), w)
    lft = jnp.tile((wi > 0).astype(jnp.float32), h)
    rgt = jnp.tile((wi < w - 1).astype(jnp.float32), h)
    per_img = jnp.stack([top, bot, lft, rgt], axis=1)       # (h*w, 4)
    return jnp.tile(per_img, (n_imgs, 1))


# ---------------------------------------------------------------------------
# Parameters (deterministic init; PyTorch default-ish scales)
# ---------------------------------------------------------------------------
def init_encoder_params(key, c):
    """BatchNorm is folded for inference-mode default stats (gamma=1, beta=0,
    mean=0, var=1).
    TODO(synk): training-mode BN (batch statistics) is not implemented; with
    trained stats use scale = gamma/sqrt(var+eps), shift = (b-mean)*scale+beta.
    """
    cfgs = (
        (3, 16, 2, False),    # conv1 -> PReLU
        (16, 32, 2, True),    # conv2 -> BN -> PReLU
        (32, 32, 1, True),    # conv3 -> BN -> PReLU
        (32, 32, 1, True),    # conv4 -> BN -> PReLU
        (32, c, 1, False),    # conv5 -> Sigmoid
    )
    params = []
    for idx, (cin, cout, stride, has_bn) in enumerate(cfgs):
        key, kw_, kb_ = jax.random.split(key, 3)
        bound = 1.0 / math.sqrt(cin * 9)
        if idx == len(cfgs) - 1:
            # Demo-only: widen the last layer's init so the quantized codes
            # span 0..3 instead of all sitting at sigmoid(0)*3 = 1.5 (exactly
            # a rounding boundary).  Kernel semantics are unaffected.
            bound *= 8.0
        w = jax.random.uniform(kw_, (cout, cin, 3, 3), jnp.float32, -bound, bound)
        b = jax.random.uniform(kb_, (cout,), jnp.float32, -bound, bound)
        if has_bn:
            scale = jnp.ones((cout,), jnp.float32) / jnp.sqrt(1.0 + _BN_EPS)
            shift = b * scale
        else:
            scale = jnp.ones((cout,), jnp.float32)
            shift = b
        # (Cout,Cin,3,3) -> (kh,kw,Cin,Cout) -> (9*Cin,Cout): K index
        # k = (kh*3 + kw)*Cin + cin, matching both the wrapper im2col and the
        # in-kernel shifted-matmul decomposition.
        w2d = jnp.transpose(w, (2, 3, 1, 0)).reshape(9 * cin, cout)
        if idx == 0:
            w2d = w2d / 255.0          # fold the x/255 input scaling into conv1
        params.append(dict(
            stride=stride, has_bn=has_bn,
            w2d=w2d.astype(jnp.bfloat16),             # bf16 on the HBM wire
            scale=scale.reshape(1, cout),
            shift=shift.reshape(1, cout),
            alpha=jnp.full((1,), 0.25, jnp.float32),  # PReLU default init
            w_oihw=w, bias=b,                         # f32 copies for the reference
        ))
    return params


# ---------------------------------------------------------------------------
# Encoder_M forward (Pallas path)
# ---------------------------------------------------------------------------
def encoder_m_forward(enc_input, params, unit_num, seg_length):
    """enc_input: (B, 3, H, W) float32 pixel values (0..255), NCHW like PyTorch."""
    l1, l2, l3, l4, l5 = params
    batch = enc_input.shape[0]
    # Pixel values 0..255 are exactly representable in bf16.
    x = jnp.transpose(enc_input, (0, 2, 3, 1)).astype(jnp.bfloat16)    # NHWC

    # --- stride-2 head: one conv-as-GEMM pallas_call per layer ------------
    for layer in (l1, l2):
        x_pad = jnp.pad(x, ((0, 0), (1, 1), (1, 1), (0, 0)))
        patches, ho, wo = _im2col(x_pad, layer["stride"])
        y2d = _head_layer(patches, layer["w2d"], layer["scale"],
                          layer["shift"], layer["alpha"])
        x = y2d.reshape(batch, ho, wo, layer["w2d"].shape[1])

    # --- fused stride-1 tail: conv3/4/5 + sigmoid + round in ONE kernel ---
    img_h, img_w, cmid = x.shape[1], x.shape[2], x.shape[3]
    x2 = x.reshape(batch * img_h * img_w, cmid)        # NHWC-flat rows (bf16)
    rows_per_img = img_h * img_w
    tm = _pick_rows(x2.shape[0], rows_per_img)
    masks = _border_masks(tm // rows_per_img, img_h, img_w)
    alphas = jnp.concatenate([l3["alpha"], l4["alpha"]])
    codes = _tail_layers(x2, masks, l3, l4, l5, alphas, img_w, tm)

    # Reproduce PyTorch's NCHW-contiguous reshape semantics for the outputs.
    # TODO(synk): emit the codes lane-dense in the (-1, unit_num) layout
    # straight from the kernel (in-VMEM transpose) instead of this tiny
    # wrapper transpose over the final (B*c*H*W) element tensor.
    c_out = l5["w2d"].shape[1]
    en_flat = jnp.transpose(
        codes.reshape(batch, img_h, img_w, c_out), (0, 3, 1, 2)).reshape(-1)
    en = en_flat.reshape(-1, unit_num)
    segment_x = en_flat.reshape(-1, seg_length)
    return en, segment_x
    # TODO(synk): Myround's straight-through-estimator backward is a gradient
    # rule only; this forward path is not wrapped in jax.custom_vjp.


# ---------------------------------------------------------------------------
# Pure-XLA f32 reference (mirrors the PyTorch module directly)
# ---------------------------------------------------------------------------
def _reference_forward(enc_input, params, unit_num, seg_length):
    x = enc_input.astype(jnp.float32) / 255.0
    n = len(params)
    for idx, layer in enumerate(params):
        s = layer["stride"]
        y = jax.lax.conv_general_dilated(
            x, layer["w_oihw"], window_strides=(s, s),
            padding=((1, 1), (1, 1)),
            dimension_numbers=("NCHW", "OIHW", "NCHW"))
        y = y + layer["bias"][None, :, None, None]
        if layer["has_bn"]:
            y = y / jnp.sqrt(1.0 + _BN_EPS)            # default-init inference BN
        if idx < n - 1:
            y = jnp.where(y >= 0.0, y, layer["alpha"][0] * y)   # PReLU
        else:
            y = 1.0 / (1.0 + jnp.exp(-y))                       # Sigmoid
        x = y
    pre = x.reshape(-1, unit_num) * 3.0
    en = jnp.round(pre)
    segment_x = en.reshape(-1, seg_length)
    return en, segment_x, pre


if __name__ == "__main__":
    key = jax.random.PRNGKey(0)
    k_img, k_par = jax.random.split(key)

    batch, height, width, c = 2, 32, 32, 4
    unit_num, seg_length = 128, 64           # 2*4*8*8 = 512 = 4*128 = 8*64

    enc_input = jnp.round(
        jax.random.uniform(k_img, (batch, 3, height, width), jnp.float32,
                           0.0, 255.0))
    params = init_encoder_params(k_par, c)

    fwd = jax.jit(lambda xin: encoder_m_forward(xin, params, unit_num,
                                                seg_length))
    en, segment_x = jax.block_until_ready(fwd(enc_input))

    en_ref, seg_ref, pre_ref = _reference_forward(enc_input, params,
                                                  unit_num, seg_length)

    assert en.shape == en_ref.shape and segment_x.shape == seg_ref.shape
    # Outputs are integer codes in {0..3}.  The bf16-transit Pallas path may
    # flip a code only where the f32 reference's pre-round value sits right at
    # an x.5 rounding boundary; everywhere else it must match exactly.
    diff = en != en_ref
    near_boundary = jnp.abs(pre_ref - jnp.round(pre_ref)) > 0.4
    assert bool(jnp.all(~diff | near_boundary)), "non-boundary code mismatch"
    assert bool(jnp.all(jnp.abs(en - en_ref) <= 1.0)), "code off by more than 1"
    frac = float(jnp.mean(diff))
    assert frac < 0.15, f"boundary-flip fraction too large: {frac}"
    assert bool(jnp.all(segment_x.reshape(-1) == en.reshape(-1)))
    print("KERNEL_OK")
</pallas_src>

<mosaic_0001>
module attributes {stable_mosaic.version = 11 : i64} {
  func.func @_head_kernel(%arg0: i32, %arg1: memref<512x27xbf16, #tpu.memory_space<vmem>>, %arg2: memref<27x16xbf16, #tpu.memory_space<vmem>>, %arg3: memref<1x16xf32, #tpu.memory_space<vmem>>, %arg4: memref<1x16xf32, #tpu.memory_space<vmem>>, %arg5: memref<1xf32, #tpu.memory_space<smem>>, %arg6: memref<512x16xbf16, #tpu.memory_space<vmem>>) attributes {dimension_semantics = [#tpu.dimension_semantics<parallel>], iteration_bounds = array<i64: 1>, scalar_prefetch = 0 : i64, scratch_operands = 0 : i64, tpu.core_type = #tpu.core_type<tc>, window_params = [{transform_indices = @transform_0, window_bounds = array<i64: 512, 27>}, {pipeline_mode = #tpu.pipeline_mode<synchronous>, transform_indices = @transform_1, window_bounds = array<i64: 27, 16>}, {pipeline_mode = #tpu.pipeline_mode<synchronous>, transform_indices = @transform_2, window_bounds = array<i64: 1, 16>}, {pipeline_mode = #tpu.pipeline_mode<synchronous>, transform_indices = @transform_3, window_bounds = array<i64: 1, 16>}, {transform_indices = @transform_4, window_bounds = array<i64: 1>}, {transform_indices = @transform_5, window_bounds = array<i64: 512, 16>}]} {
    %c0 = arith.constant 0 : index
    %c0_0 = arith.constant 0 : index
    %0 = vector.load %arg1[%c0, %c0_0] : memref<512x27xbf16, #tpu.memory_space<vmem>>, vector<512x27xbf16>
    %c0_1 = arith.constant 0 : index
    %c0_2 = arith.constant 0 : index
    %1 = vector.load %arg2[%c0_1, %c0_2] : memref<27x16xbf16, #tpu.memory_space<vmem>>, vector<27x16xbf16>
    %cst = arith.constant dense<0.000000e+00> : vector<512x16xf32>
    %2 = tpu.matmul %0, %1, %cst {dimension_numbers = #tpu.dot_dimension_numbers<[1], [0], [0], [1], [0, 0, 1, 1], [], []>} : vector<512x27xbf16>, vector<27x16xbf16>, vector<512x16xf32> -> vector<512x16xf32>
    %c0_3 = arith.constant 0 : index
    %c0_4 = arith.constant 0 : index
    %3 = vector.load %arg3[%c0_3, %c0_4] : memref<1x16xf32, #tpu.memory_space<vmem>>, vector<1x16xf32>
    %4 = vector.broadcast %3 : vector<1x16xf32> to vector<512x16xf32>
    %5 = arith.mulf %2, %4 : vector<512x16xf32>
    %c0_5 = arith.constant 0 : index
    %c0_6 = arith.constant 0 : index
    %6 = vector.load %arg4[%c0_5, %c0_6] : memref<1x16xf32, #tpu.memory_space<vmem>>, vector<1x16xf32>
    %7 = vector.broadcast %6 : vector<1x16xf32> to vector<512x16xf32>
    %8 = arith.addf %5, %7 : vector<512x16xf32>
    %c0_7 = arith.constant 0 : index
    %9 = memref.load %arg5[%c0_7] : memref<1xf32, #tpu.memory_space<smem>>
    %cst_8 = arith.constant 0.000000e+00 : f32
    %10 = vector.broadcast %cst_8 : f32 to vector<512x16xf32>
    %11 = arith.cmpf oge, %8, %10 : vector<512x16xf32>
    %12 = vector.broadcast %9 : f32 to vector<512x16xf32>
    %13 = arith.mulf %12, %8 : vector<512x16xf32>
    %14 = arith.select %11, %8, %13 : vector<512x16xi1>, vector<512x16xf32>
    %15 = arith.truncf %14 : vector<512x16xf32> to vector<512x16xbf16>
    %c0_9 = arith.constant 0 : index
    %c0_10 = arith.constant 0 : index
    %16 = vector.load %arg6[%c0_9, %c0_10] : memref<512x16xbf16, #tpu.memory_space<vmem>>, vector<512x16xbf16>
    tpu.vector_store %arg6[%c0_9, %c0_10], %15 {strides = array<i32>} : memref<512x16xbf16, #tpu.memory_space<vmem>>, vector<512x16xbf16>,
    return
  }
  func.func @transform_0(%arg0: i32) -> (i32, i32) {
    %c0_i32 = arith.constant 0 : i32
    %c0_i32_0 = arith.constant 0 : i32
    return %arg0, %c0_i32 : i32, i32
  }
  func.func @transform_1(%arg0: i32) -> (i32, i32) {
    %c0_i32 = arith.constant 0 : i32
    %c0_i32_0 = arith.constant 0 : i32
    %c0_i32_1 = arith.constant 0 : i32
    return %c0_i32, %c0_i32_0 : i32, i32
  }
  func.func @transform_2(%arg0: i32) -> (i32, i32) {
    %c0_i32 = arith.constant 0 : i32
    %c0_i32_0 = arith.constant 0 : i32
    %c0_i32_1 = arith.constant 0 : i32
    return %c0_i32, %c0_i32_0 : i32, i32
  }
  func.func @transform_3(%arg0: i32) -> (i32, i32) {
    %c0_i32 = arith.constant 0 : i32
    %c0_i32_0 = arith.constant 0 : i32
    %c0_i32_1 = arith.constant 0 : i32
    return %c0_i32, %c0_i32_0 : i32, i32
  }
  func.func @transform_4(%arg0: i32) -> i32 {
    %c0_i32 = arith.constant 0 : i32
    %c0_i32_0 = arith.constant 0 : i32
    return %c0_i32 : i32
  }
  func.func @transform_5(%arg0: i32) -> (i32, i32) {
    %c0_i32 = arith.constant 0 : i32
    %c0_i32_0 = arith.constant 0 : i32
    return %arg0, %c0_i32 : i32, i32
  }
}

module attributes {stable_mosaic.version = 11 : i64} {
  func.func @_head_kernel(%arg0: i32, %arg1: memref<128x144xbf16, #tpu.memory_space<vmem>>, %arg2: memref<144x32xbf16, #tpu.memory_space<vmem>>, %arg3: memref<1x32xf32, #tpu.memory_space<vmem>>, %arg4: memref<1x32xf32, #tpu.memory_space<vmem>>, %arg5: memref<1xf32, #tpu.memory_space<smem>>, %arg6: memref<128x32xbf16, #tpu.memory_space<vmem>>) attributes {dimension_semantics = [#tpu.dimension_semantics<parallel>], iteration_bounds = array<i64: 1>, scalar_prefetch = 0 : i64, scratch_operands = 0 : i64, tpu.core_type = #tpu.core_type<tc>, window_params = [{transform_indices = @transform_0, window_bounds = array<i64: 128, 144>}, {pipeline_mode = #tpu.pipeline_mode<synchronous>, transform_indices = @transform_1, window_bounds = array<i64: 144, 32>}, {pipeline_mode = #tpu.pipeline_mode<synchronous>, transform_indices = @transform_2, window_bounds = array<i64: 1, 32>}, {pipeline_mode = #tpu.pipeline_mode<synchronous>, transform_indices = @transform_3, window_bounds = array<i64: 1, 32>}, {transform_indices = @transform_4, window_bounds = array<i64: 1>}, {transform_indices = @transform_5, window_bounds = array<i64: 128, 32>}]} {
    %c0 = arith.constant 0 : index
    %c0_0 = arith.constant 0 : index
    %0 = vector.load %arg1[%c0, %c0_0] : memref<128x144xbf16, #tpu.memory_space<vmem>>, vector<128x144xbf16>
    %c0_1 = arith.constant 0 : index
    %c0_2 = arith.constant 0 : index
    %1 = vector.load %arg2[%c0_1, %c0_2] : memref<144x32xbf16, #tpu.memory_space<vmem>>, vector<144x32xbf16>
    %cst = arith.constant dense<0.000000e+00> : vector<128x32xf32>
    %2 = tpu.matmul %0, %1, %cst {dimension_numbers = #tpu.dot_dimension_numbers<[1], [0], [0], [1], [0, 0, 1, 1], [], []>} : vector<128x144xbf16>, vector<144x32xbf16>, vector<128x32xf32> -> vector<128x32xf32>
    %c0_3 = arith.constant 0 : index
    %c0_4 = arith.constant 0 : index
    %3 = vector.load %arg3[%c0_3, %c0_4] : memref<1x32xf32, #tpu.memory_space<vmem>>, vector<1x32xf32>
    %4 = vector.broadcast %3 : vector<1x32xf32> to vector<128x32xf32>
    %5 = arith.mulf %2, %4 : vector<128x32xf32>
    %c0_5 = arith.constant 0 : index
    %c0_6 = arith.constant 0 : index
    %6 = vector.load %arg4[%c0_5, %c0_6] : memref<1x32xf32, #tpu.memory_space<vmem>>, vector<1x32xf32>
    %7 = vector.broadcast %6 : vector<1x32xf32> to vector<128x32xf32>
    %8 = arith.addf %5, %7 : vector<128x32xf32>
    %c0_7 = arith.constant 0 : index
    %9 = memref.load %arg5[%c0_7] : memref<1xf32, #tpu.memory_space<smem>>
    %cst_8 = arith.constant 0.000000e+00 : f32
    %10 = vector.broadcast %cst_8 : f32 to vector<128x32xf32>
    %11 = arith.cmpf oge, %8, %10 : vector<128x32xf32>
    %12 = vector.broadcast %9 : f32 to vector<128x32xf32>
    %13 = arith.mulf %12, %8 : vector<128x32xf32>
    %14 = arith.select %11, %8, %13 : vector<128x32xi1>, vector<128x32xf32>
    %15 = arith.truncf %14 : vector<128x32xf32> to vector<128x32xbf16>
    %c0_9 = arith.constant 0 : index
    %c0_10 = arith.constant 0 : index
    %16 = vector.load %arg6[%c0_9, %c0_10] : memref<128x32xbf16, #tpu.memory_space<vmem>>, vector<128x32xbf16>
    tpu.vector_store %arg6[%c0_9, %c0_10], %15 {strides = array<i32>} : memref<128x32xbf16, #tpu.memory_space<vmem>>, vector<128x32xbf16>,
    return
  }
  func.func @transform_0(%arg0: i32) -> (i32, i32) {
    %c0_i32 = arith.constant 0 : i32
    %c0_i32_0 = arith.constant 0 : i32
    return %arg0, %c0_i32 : i32, i32
  }
  func.func @transform_1(%arg0: i32) -> (i32, i32) {
    %c0_i32 = arith.constant 0 : i32
    %c0_i32_0 = arith.constant 0 : i32
    %c0_i32_1 = arith.constant 0 : i32
    return %c0_i32, %c0_i32_0 : i32, i32
  }
  func.func @transform_2(%arg0: i32) -> (i32, i32) {
    %c0_i32 = arith.constant 0 : i32
    %c0_i32_0 = arith.constant 0 : i32
    %c0_i32_1 = arith.constant 0 : i32
    return %c0_i32, %c0_i32_0 : i32, i32
  }
  func.func @transform_3(%arg0: i32) -> (i32, i32) {
    %c0_i32 = arith.constant 0 : i32
    %c0_i32_0 = arith.constant 0 : i32
    %c0_i32_1 = arith.constant 0 : i32
    return %c0_i32, %c0_i32_0 : i32, i32
  }
  func.func @transform_4(%arg0: i32) -> i32 {
    %c0_i32 = arith.constant 0 : i32
    %c0_i32_0 = arith.constant 0 : i32
    return %c0_i32 : i32
  }
  func.func @transform_5(%arg0: i32) -> (i32, i32) {
    %c0_i32 = arith.constant 0 : i32
    %c0_i32_0 = arith.constant 0 : i32
    return %arg0, %c0_i32 : i32, i32
  }
}

module attributes {stable_mosaic.version = 11 : i64} {
  func.func @_tail_kernel(%arg0: i32, %arg1: memref<128x32xbf16, #tpu.memory_space<vmem>>, %arg2: memref<128x4xf32, #tpu.memory_space<vmem>>, %arg3: memref<288x32xbf16, #tpu.memory_space<vmem>>, %arg4: memref<1x32xf32, #tpu.memory_space<vmem>>, %arg5: memref<1x32xf32, #tpu.memory_space<vmem>>, %arg6: memref<288x32xbf16, #tpu.memory_space<vmem>>, %arg7: memref<1x32xf32, #tpu.memory_space<vmem>>, %arg8: memref<1x32xf32, #tpu.memory_space<vmem>>, %arg9: memref<288x4xbf16, #tpu.memory_space<vmem>>, %arg10: memref<1x4xf32, #tpu.memory_space<vmem>>, %arg11: memref<2xf32, #tpu.memory_space<smem>>, %arg12: memref<128x4xf32, #tpu.memory_space<vmem>>) attributes {dimension_semantics = [#tpu.dimension_semantics<parallel>], iteration_bounds = array<i64: 1>, scalar_prefetch = 0 : i64, scratch_operands = 0 : i64, tpu.core_type = #tpu.core_type<tc>, window_params = [{transform_indices = @transform_0, window_bounds = array<i64: 128, 32>}, {pipeline_mode = #tpu.pipeline_mode<synchronous>, transform_indices = @transform_1, window_bounds = array<i64: 128, 4>}, {pipeline_mode = #tpu.pipeline_mode<synchronous>, transform_indices = @transform_2, window_bounds = array<i64: 288, 32>}, {pipeline_mode = #tpu.pipeline_mode<synchronous>, transform_indices = @transform_3, window_bounds = array<i64: 1, 32>}, {pipeline_mode = #tpu.pipeline_mode<synchronous>, transform_indices = @transform_4, window_bounds = array<i64: 1, 32>}, {pipeline_mode = #tpu.pipeline_mode<synchronous>, transform_indices = @transform_5, window_bounds = array<i64: 288, 32>}, {pipeline_mode = #tpu.pipeline_mode<synchronous>, transform_indices = @transform_6, window_bounds = array<i64: 1, 32>}, {pipeline_mode = #tpu.pipeline_mode<synchronous>, transform_indices = @transform_7, window_bounds = array<i64: 1, 32>}, {pipeline_mode = #tpu.pipeline_mode<synchronous>, transform_indices = @transform_8, window_bounds = array<i64: 288, 4>}, {pipeline_mode = #tpu.pipeline_mode<synchronous>, transform_indices = @transform_9, window_bounds = array<i64: 1, 4>}, {transform_indices = @transform_10, window_bounds = array<i64: 2>}, {transform_indices = @transform_11, window_bounds = array<i64: 128, 4>}]} {
    %c0 = arith.constant 0 : index
    %c0_0 = arith.constant 0 : index
    %0 = vector.load %arg2[%c0, %c0_0] : memref<128x4xf32, #tpu.memory_space<vmem>>, vector<128x4xf32>
    %1 = vector.extract_strided_slice %0 {offsets = [0, 0], sizes = [128, 1], strides = [1, 1]} : vector<128x4xf32> to vector<128x1xf32>
    %2 = vector.extract_strided_slice %0 {offsets = [0, 1], sizes = [128, 1], strides = [1, 1]} : vector<128x4xf32> to vector<128x1xf32>
    %3 = vector.extract_strided_slice %0 {offsets = [0, 2], sizes = [128, 1], strides = [1, 1]} : vector<128x4xf32> to vector<128x1xf32>
    %4 = vector.extract_strided_slice %0 {offsets = [0, 3], sizes = [128, 1], strides = [1, 1]} : vector<128x4xf32> to vector<128x1xf32>
    %c0_1 = arith.constant 0 : index
    %c0_2 = arith.constant 0 : index
    %5 = vector.load %arg1[%c0_1, %c0_2] : memref<128x32xbf16, #tpu.memory_space<vmem>>, vector<128x32xbf16>
    %6 = arith.extf %5 : vector<128x32xbf16> to vector<128x32xf32>
    %cst = arith.constant 0.000000e+00 : f32
    %7 = vector.broadcast %cst : f32 to vector<128x32xf32>
    %c9_i32 = arith.constant 9 : i32
    %8 = tpu.dynamic_rotate %6 by %c9_i32 dim 0 : vector<128x32xf32>, i32 -> vector<128x32xf32>
    %9 = arith.mulf %1, %3 : vector<128x1xf32>
    %10 = vector.broadcast %9 : vector<128x1xf32> to vector<128x32xf32>
    %11 = arith.mulf %8, %10 : vector<128x32xf32>
    %c0_3 = arith.constant 0 : index
    %c0_4 = arith.constant 0 : index
    %12 = vector.load %arg3[%c0_3, %c0_4] : memref<288x32xbf16, #tpu.memory_space<vmem>>, vector<32x32xbf16>
    %13 = arith.truncf %11 : vector<128x32xf32> to vector<128x32xbf16>
    %cst_5 = arith.constant dense<0.000000e+00> : vector<128x32xf32>
    %14 = tpu.matmul %13, %12, %cst_5 {dimension_numbers = #tpu.dot_dimension_numbers<[1], [0], [0], [1], [0, 0, 1, 1], [], []>} : vector<128x32xbf16>, vector<32x32xbf16>, vector<128x32xf32> -> vector<128x32xf32>
    %15 = arith.addf %7, %14 : vector<128x32xf32>
    %c8_i32 = arith.constant 8 : i32
    %16 = tpu.dynamic_rotate %6 by %c8_i32 dim 0 : vector<128x32xf32>, i32 -> vector<128x32xf32>
    %17 = vector.broadcast %1 : vector<128x1xf32> to vector<128x32xf32>
    %18 = arith.mulf %16, %17 : vector<128x32xf32>
    %c32 = arith.constant 32 : index
    %c0_6 = arith.constant 0 : index
    %19 = vector.load %arg3[%c32, %c0_6] : memref<288x32xbf16, #tpu.memory_space<vmem>>, vector<32x32xbf16>
    %20 = arith.truncf %18 : vector<128x32xf32> to vector<128x32xbf16>
    %cst_7 = arith.constant dense<0.000000e+00> : vector<128x32xf32>
    %21 = tpu.matmul %20, %19, %cst_7 {dimension_numbers = #tpu.dot_dimension_numbers<[1], [0], [0], [1], [0, 0, 1, 1], [], []>} : vector<128x32xbf16>, vector<32x32xbf16>, vector<128x32xf32> -> vector<128x32xf32>
    %22 = arith.addf %15, %21 : vector<128x32xf32>
    %c7_i32 = arith.constant 7 : i32
    %23 = tpu.dynamic_rotate %6 by %c7_i32 dim 0 : vector<128x32xf32>, i32 -> vector<128x32xf32>
    %24 = arith.mulf %1, %4 : vector<128x1xf32>
    %25 = vector.broadcast %24 : vector<128x1xf32> to vector<128x32xf32>
    %26 = arith.mulf %23, %25 : vector<128x32xf32>
    %c64 = arith.constant 64 : index
    %c0_8 = arith.constant 0 : index
    %27 = vector.load %arg3[%c64, %c0_8] : memref<288x32xbf16, #tpu.memory_space<vmem>>, vector<32x32xbf16>
    %28 = arith.truncf %26 : vector<128x32xf32> to vector<128x32xbf16>
    %cst_9 = arith.constant dense<0.000000e+00> : vector<128x32xf32>
    %29 = tpu.matmul %28, %27, %cst_9 {dimension_numbers = #tpu.dot_dimension_numbers<[1], [0], [0], [1], [0, 0, 1, 1], [], []>} : vector<128x32xbf16>, vector<32x32xbf16>, vector<128x32xf32> -> vector<128x32xf32>
    %30 = arith.addf %22, %29 : vector<128x32xf32>
    %c1_i32 = arith.constant 1 : i32
    %31 = tpu.dynamic_rotate %6 by %c1_i32 dim 0 : vector<128x32xf32>, i32 -> vector<128x32xf32>
    %32 = vector.broadcast %3 : vector<128x1xf32> to vector<128x32xf32>
    %33 = arith.mulf %31, %32 : vector<128x32xf32>
    %c96 = arith.constant 96 : index
    %c0_10 = arith.constant 0 : index
    %34 = vector.load %arg3[%c96, %c0_10] : memref<288x32xbf16, #tpu.memory_space<vmem>>, vector<32x32xbf16>
    %35 = arith.truncf %33 : vector<128x32xf32> to vector<128x32xbf16>
    %cst_11 = arith.constant dense<0.000000e+00> : vector<128x32xf32>
    %36 = tpu.matmul %35, %34, %cst_11 {dimension_numbers = #tpu.dot_dimension_numbers<[1], [0], [0], [1], [0, 0, 1, 1], [], []>} : vector<128x32xbf16>, vector<32x32xbf16>, vector<128x32xf32> -> vector<128x32xf32>
    %37 = arith.addf %30, %36 : vector<128x32xf32>
    %c128 = arith.constant 128 : index
    %c0_12 = arith.constant 0 : index
    %38 = vector.load %arg3[%c128, %c0_12] : memref<288x32xbf16, #tpu.memory_space<vmem>>, vector<32x32xbf16>
    %39 = arith.truncf %6 : vector<128x32xf32> to vector<128x32xbf16>
    %cst_13 = arith.constant dense<0.000000e+00> : vector<128x32xf32>
    %40 = tpu.matmul %39, %38, %cst_13 {dimension_numbers = #tpu.dot_dimension_numbers<[1], [0], [0], [1], [0, 0, 1, 1], [], []>} : vector<128x32xbf16>, vector<32x32xbf16>, vector<128x32xf32> -> vector<128x32xf32>
    %41 = arith.addf %37, %40 : vector<128x32xf32>
    %c127_i32 = arith.constant 127 : i32
    %42 = tpu.dynamic_rotate %6 by %c127_i32 dim 0 : vector<128x32xf32>, i32 -> vector<128x32xf32>
    %43 = vector.broadcast %4 : vector<128x1xf32> to vector<128x32xf32>
    %44 = arith.mulf %42, %43 : vector<128x32xf32>
    %c160 = arith.constant 160 : index
    %c0_14 = arith.constant 0 : index
    %45 = vector.load %arg3[%c160, %c0_14] : memref<288x32xbf16, #tpu.memory_space<vmem>>, vector<32x32xbf16>
    %46 = arith.truncf %44 : vector<128x32xf32> to vector<128x32xbf16>
    %cst_15 = arith.constant dense<0.000000e+00> : vector<128x32xf32>
    %47 = tpu.matmul %46, %45, %cst_15 {dimension_numbers = #tpu.dot_dimension_numbers<[1], [0], [0], [1], [0, 0, 1, 1], [], []>} : vector<128x32xbf16>, vector<32x32xbf16>, vector<128x32xf32> -> vector<128x32xf32>
    %48 = arith.addf %41, %47 : vector<128x32xf32>
    %c121_i32 = arith.constant 121 : i32
    %49 = tpu.dynamic_rotate %6 by %c121_i32 dim 0 : vector<128x32xf32>, i32 -> vector<128x32xf32>
    %50 = arith.mulf %2, %3 : vector<128x1xf32>
    %51 = vector.broadcast %50 : vector<128x1xf32> to vector<128x32xf32>
    %52 = arith.mulf %49, %51 : vector<128x32xf32>
    %c192 = arith.constant 192 : index
    %c0_16 = arith.constant 0 : index
    %53 = vector.load %arg3[%c192, %c0_16] : memref<288x32xbf16, #tpu.memory_space<vmem>>, vector<32x32xbf16>
    %54 = arith.truncf %52 : vector<128x32xf32> to vector<128x32xbf16>
    %cst_17 = arith.constant dense<0.000000e+00> : vector<128x32xf32>
    %55 = tpu.matmul %54, %53, %cst_17 {dimension_numbers = #tpu.dot_dimension_numbers<[1], [0], [0], [1], [0, 0, 1, 1], [], []>} : vector<128x32xbf16>, vector<32x32xbf16>, vector<128x32xf32> -> vector<128x32xf32>
    %56 = arith.addf %48, %55 : vector<128x32xf32>
    %c120_i32 = arith.constant 120 : i32
    %57 = tpu.dynamic_rotate %6 by %c120_i32 dim 0 : vector<128x32xf32>, i32 -> vector<128x32xf32>
    %58 = vector.broadcast %2 : vector<128x1xf32> to vector<128x32xf32>
    %59 = arith.mulf %57, %58 : vector<128x32xf32>
    %c224 = arith.constant 224 : index
    %c0_18 = arith.constant 0 : index
    %60 = vector.load %arg3[%c224, %c0_18] : memref<288x32xbf16, #tpu.memory_space<vmem>>, vector<32x32xbf16>
    %61 = arith.truncf %59 : vector<128x32xf32> to vector<128x32xbf16>
    %cst_19 = arith.constant dense<0.000000e+00> : vector<128x32xf32>
    %62 = tpu.matmul %61, %60, %cst_19 {dimension_numbers = #tpu.dot_dimension_numbers<[1], [0], [0], [1], [0, 0, 1, 1], [], []>} : vector<128x32xbf16>, vector<32x32xbf16>, vector<128x32xf32> -> vector<128x32xf32>
    %63 = arith.addf %56, %62 : vector<128x32xf32>
    %c119_i32 = arith.constant 119 : i32
    %64 = tpu.dynamic_rotate %6 by %c119_i32 dim 0 : vector<128x32xf32>, i32 -> vector<128x32xf32>
    %65 = arith.mulf %2, %4 : vector<128x1xf32>
    %66 = vector.broadcast %65 : vector<128x1xf32> to vector<128x32xf32>
    %67 = arith.mulf %64, %66 : vector<128x32xf32>
    %c256 = arith.constant 256 : index
    %c0_20 = arith.constant 0 : index
    %68 = vector.load %arg3[%c256, %c0_20] : memref<288x32xbf16, #tpu.memory_space<vmem>>, vector<32x32xbf16>
    %69 = arith.truncf %67 : vector<128x32xf32> to vector<128x32xbf16>
    %cst_21 = arith.constant dense<0.000000e+00> : vector<128x32xf32>
    %70 = tpu.matmul %69, %68, %cst_21 {dimension_numbers = #tpu.dot_dimension_numbers<[1], [0], [0], [1], [0, 0, 1, 1], [], []>} : vector<128x32xbf16>, vector<32x32xbf16>, vector<128x32xf32> -> vector<128x32xf32>
    %71 = arith.addf %63, %70 : vector<128x32xf32>
    %c0_22 = arith.constant 0 : index
    %c0_23 = arith.constant 0 : index
    %72 = vector.load %arg4[%c0_22, %c0_23] : memref<1x32xf32, #tpu.memory_space<vmem>>, vector<1x32xf32>
    %73 = vector.broadcast %72 : vector<1x32xf32> to vector<128x32xf32>
    %74 = arith.mulf %71, %73 : vector<128x32xf32>
    %c0_24 = arith.constant 0 : index
    %c0_25 = arith.constant 0 : index
    %75 = vector.load %arg5[%c0_24, %c0_25] : memref<1x32xf32, #tpu.memory_space<vmem>>, vector<1x32xf32>
    %76 = vector.broadcast %75 : vector<1x32xf32> to vector<128x32xf32>
    %77 = arith.addf %74, %76 : vector<128x32xf32>
    %cst_26 = arith.constant 0.000000e+00 : f32
    %78 = vector.broadcast %cst_26 : f32 to vector<128x32xf32>
    %79 = arith.cmpf oge, %77, %78 : vector<128x32xf32>
    %c0_27 = arith.constant 0 : index
    %80 = memref.load %arg11[%c0_27] : memref<2xf32, #tpu.memory_space<smem>>
    %81 = vector.broadcast %80 : f32 to vector<128x32xf32>
    %82 = arith.mulf %81, %77 : vector<128x32xf32>
    %83 = arith.select %79, %77, %82 : vector<128x32xi1>, vector<128x32xf32>
    %cst_28 = arith.constant 0.000000e+00 : f32
    %84 = vector.broadcast %cst_28 : f32 to vector<128x32xf32>
    %c9_i32_29 = arith.constant 9 : i32
    %85 = tpu.dynamic_rotate %83 by %c9_i32_29 dim 0 : vector<128x32xf32>, i32 -> vector<128x32xf32>
    %86 = arith.mulf %1, %3 : vector<128x1xf32>
    %87 = vector.broadcast %86 : vector<128x1xf32> to vector<128x32xf32>
    %88 = arith.mulf %85, %87 : vector<128x32xf32>
    %c0_30 = arith.constant 0 : index
    %c0_31 = arith.constant 0 : index
    %89 = vector.load %arg6[%c0_30, %c0_31] : memref<288x32xbf16, #tpu.memory_space<vmem>>, vector<32x32xbf16>
    %90 = arith.truncf %88 : vector<128x32xf32> to vector<128x32xbf16>
    %cst_32 = arith.constant dense<0.000000e+00> : vector<128x32xf32>
    %91 = tpu.matmul %90, %89, %cst_32 {dimension_numbers = #tpu.dot_dimension_numbers<[1], [0], [0], [1], [0, 0, 1, 1], [], []>} : vector<128x32xbf16>, vector<32x32xbf16>, vector<128x32xf32> -> vector<128x32xf32>
    %92 = arith.addf %84, %91 : vector<128x32xf32>
    %c8_i32_33 = arith.constant 8 : i32
    %93 = tpu.dynamic_rotate %83 by %c8_i32_33 dim 0 : vector<128x32xf32>, i32 -> vector<128x32xf32>
    %94 = vector.broadcast %1 : vector<128x1xf32> to vector<128x32xf32>
    %95 = arith.mulf %93, %94 : vector<128x32xf32>
    %c32_34 = arith.constant 32 : index
    %c0_35 = arith.constant 0 : index
    %96 = vector.load %arg6[%c32_34, %c0_35] : memref<288x32xbf16, #tpu.memory_space<vmem>>, vector<32x32xbf16>
    %97 = arith.truncf %95 : vector<128x32xf32> to vector<128x32xbf16>
    %cst_36 = arith.constant dense<0.000000e+00> : vector<128x32xf32>
    %98 = tpu.matmul %97, %96, %cst_36 {dimension_numbers = #tpu.dot_dimension_numbers<[1], [0], [0], [1], [0, 0, 1, 1], [], []>} : vector<128x32xbf16>, vector<32x32xbf16>, vector<128x32xf32> -> vector<128x32xf32>
    %99 = arith.addf %92, %98 : vector<128x32xf32>
    %c7_i32_37 = arith.constant 7 : i32
    %100 = tpu.dynamic_rotate %83 by %c7_i32_37 dim 0 : vector<128x32xf32>, i32 -> vector<128x32xf32>
    %101 = arith.mulf %1, %4 : vector<128x1xf32>
    %102 = vector.broadcast %101 : vector<128x1xf32> to vector<128x32xf32>
    %103 = arith.mulf %100, %102 : vector<128x32xf32>
    %c64_38 = arith.constant 64 : index
    %c0_39 = arith.constant 0 : index
    %104 = vector.load %arg6[%c64_38, %c0_39] : memref<288x32xbf16, #tpu.memory_space<vmem>>, vector<32x32xbf16>
    %105 = arith.truncf %103 : vector<128x32xf32> to vector<128x32xbf16>
    %cst_40 = arith.constant dense<0.000000e+00> : vector<128x32xf32>
    %106 = tpu.matmul %105, %104, %cst_40 {dimension_numbers = #tpu.dot_dimension_numbers<[1], [0], [0], [1], [0, 0, 1, 1], [], []>} : vector<128x32xbf16>, vector<32x32xbf16>, vector<128x32xf32> -> vector<128x32xf32>
    %107 = arith.addf %99, %106 : vector<128x32xf32>
    %c1_i32_41 = arith.constant 1 : i32
    %108 = tpu.dynamic_rotate %83 by %c1_i32_41 dim 0 : vector<128x32xf32>, i32 -> vector<128x32xf32>
    %109 = vector.broadcast %3 : vector<128x1xf32> to vector<128x32xf32>
    %110 = arith.mulf %108, %109 : vector<128x32xf32>
    %c96_42 = arith.constant 96 : index
    %c0_43 = arith.constant 0 : index
    %111 = vector.load %arg6[%c96_42, %c0_43] : memref<288x32xbf16, #tpu.memory_space<vmem>>, vector<32x32xbf16>
    %112 = arith.truncf %110 : vector<128x32xf32> to vector<128x32xbf16>
    %cst_44 = arith.constant dense<0.000000e+00> : vector<128x32xf32>
    %113 = tpu.matmul %112, %111, %cst_44 {dimension_numbers = #tpu.dot_dimension_numbers<[1], [0], [0], [1], [0, 0, 1, 1], [], []>} : vector<128x32xbf16>, vector<32x32xbf16>, vector<128x32xf32> -> vector<128x32xf32>
    %114 = arith.addf %107, %113 : vector<128x32xf32>
    %c128_45 = arith.constant 128 : index
    %c0_46 = arith.constant 0 : index
    %115 = vector.load %arg6[%c128_45, %c0_46] : memref<288x32xbf16, #tpu.memory_space<vmem>>, vector<32x32xbf16>
    %116 = arith.truncf %83 : vector<128x32xf32> to vector<128x32xbf16>
    %cst_47 = arith.constant dense<0.000000e+00> : vector<128x32xf32>
    %117 = tpu.matmul %116, %115, %cst_47 {dimension_numbers = #tpu.dot_dimension_numbers<[1], [0], [0], [1], [0, 0, 1, 1], [], []>} : vector<128x32xbf16>, vector<32x32xbf16>, vector<128x32xf32> -> vector<128x32xf32>
    %118 = arith.addf %114, %117 : vector<128x32xf32>
    %c127_i32_48 = arith.constant 127 : i32
    %119 = tpu.dynamic_rotate %83 by %c127_i32_48 dim 0 : vector<128x32xf32>, i32 -> vector<128x32xf32>
    %120 = vector.broadcast %4 : vector<128x1xf32> to vector<128x32xf32>
    %121 = arith.mulf %119, %120 : vector<128x32xf32>
    %c160_49 = arith.constant 160 : index
    %c0_50 = arith.constant 0 : index
    %122 = vector.load %arg6[%c160_49, %c0_50] : memref<288x32xbf16, #tpu.memory_space<vmem>>, vector<32x32xbf16>
    %123 = arith.truncf %121 : vector<128x32xf32> to vector<128x32xbf16>
    %cst_51 = arith.constant dense<0.000000e+00> : vector<128x32xf32>
    %124 = tpu.matmul %123, %122, %cst_51 {dimension_numbers = #tpu.dot_dimension_numbers<[1], [0], [0], [1], [0, 0, 1, 1], [], []>} : vector<128x32xbf16>, vector<32x32xbf16>, vector<128x32xf32> -> vector<128x32xf32>
    %125 = arith.addf %118, %124 : vector<128x32xf32>
    %c121_i32_52 = arith.constant 121 : i32
    %126 = tpu.dynamic_rotate %83 by %c121_i32_52 dim 0 : vector<128x32xf32>, i32 -> vector<128x32xf32>
    %127 = arith.mulf %2, %3 : vector<128x1xf32>
    %128 = vector.broadcast %127 : vector<128x1xf32> to vector<128x32xf32>
    %129 = arith.mulf %126, %128 : vector<128x32xf32>
    %c192_53 = arith.constant 192 : index
    %c0_54 = arith.constant 0 : index
    %130 = vector.load %arg6[%c192_53, %c0_54] : memref<288x32xbf16, #tpu.memory_space<vmem>>, vector<32x32xbf16>
    %131 = arith.truncf %129 : vector<128x32xf32> to vector<128x32xbf16>
    %cst_55 = arith.constant dense<0.000000e+00> : vector<128x32xf32>
    %132 = tpu.matmul %131, %130, %cst_55 {dimension_numbers = #tpu.dot_dimension_numbers<[1], [0], [0], [1], [0, 0, 1, 1], [], []>} : vector<128x32xbf16>, vector<32x32xbf16>, vector<128x32xf32> -> vector<128x32xf32>
    %133 = arith.addf %125, %132 : vector<128x32xf32>
    %c120_i32_56 = arith.constant 120 : i32
    %134 = tpu.dynamic_rotate %83 by %c120_i32_56 dim 0 : vector<128x32xf32>, i32 -> vector<128x32xf32>
    %135 = vector.broadcast %2 : vector<128x1xf32> to vector<128x32xf32>
    %136 = arith.mulf %134, %135 : vector<128x32xf32>
    %c224_57 = arith.constant 224 : index
    %c0_58 = arith.constant 0 : index
    %137 = vector.load %arg6[%c224_57, %c0_58] : memref<288x32xbf16, #tpu.memory_space<vmem>>, vector<32x32xbf16>
    %138 = arith.truncf %136 : vector<128x32xf32> to vector<128x32xbf16>
    %cst_59 = arith.constant dense<0.000000e+00> : vector<128x32xf32>
    %139 = tpu.matmul %138, %137, %cst_59 {dimension_numbers = #tpu.dot_dimension_numbers<[1], [0], [0], [1], [0, 0, 1, 1], [], []>} : vector<128x32xbf16>, vector<32x32xbf16>, vector<128x32xf32> -> vector<128x32xf32>
    %140 = arith.addf %133, %139 : vector<128x32xf32>
    %c119_i32_60 = arith.constant 119 : i32
    %141 = tpu.dynamic_rotate %83 by %c119_i32_60 dim 0 : vector<128x32xf32>, i32 -> vector<128x32xf32>
    %142 = arith.mulf %2, %4 : vector<128x1xf32>
    %143 = vector.broadcast %142 : vector<128x1xf32> to vector<128x32xf32>
    %144 = arith.mulf %141, %143 : vector<128x32xf32>
    %c256_61 = arith.constant 256 : index
    %c0_62 = arith.constant 0 : index
    %145 = vector.load %arg6[%c256_61, %c0_62] : memref<288x32xbf16, #tpu.memory_space<vmem>>, vector<32x32xbf16>
    %146 = arith.truncf %144 : vector<128x32xf32> to vector<128x32xbf16>
    %cst_63 = arith.constant dense<0.000000e+00> : vector<128x32xf32>
    %147 = tpu.matmul %146, %145, %cst_63 {dimension_numbers = #tpu.dot_dimension_numbers<[1], [0], [0], [1], [0, 0, 1, 1], [], []>} : vector<128x32xbf16>, vector<32x32xbf16>, vector<128x32xf32> -> vector<128x32xf32>
    %148 = arith.addf %140, %147 : vector<128x32xf32>
    %c0_64 = arith.constant 0 : index
    %c0_65 = arith.constant 0 : index
    %149 = vector.load %arg7[%c0_64, %c0_65] : memref<1x32xf32, #tpu.memory_space<vmem>>, vector<1x32xf32>
    %150 = vector.broadcast %149 : vector<1x32xf32> to vector<128x32xf32>
    %151 = arith.mulf %148, %150 : vector<128x32xf32>
    %c0_66 = arith.constant 0 : index
    %c0_67 = arith.constant 0 : index
    %152 = vector.load %arg8[%c0_66, %c0_67] : memref<1x32xf32, #tpu.memory_space<vmem>>, vector<1x32xf32>
    %153 = vector.broadcast %152 : vector<1x32xf32> to vector<128x32xf32>
    %154 = arith.addf %151, %153 : vector<128x32xf32>
    %cst_68 = arith.constant 0.000000e+00 : f32
    %155 = vector.broadcast %cst_68 : f32 to vector<128x32xf32>
    %156 = arith.cmpf oge, %154, %155 : vector<128x32xf32>
    %c1 = arith.constant 1 : index
    %157 = memref.load %arg11[%c1] : memref<2xf32, #tpu.memory_space<smem>>
    %158 = vector.broadcast %157 : f32 to vector<128x32xf32>
    %159 = arith.mulf %158, %154 : vector<128x32xf32>
    %160 = arith.select %156, %154, %159 : vector<128x32xi1>, vector<128x32xf32>
    %cst_69 = arith.constant 0.000000e+00 : f32
    %161 = vector.broadcast %cst_69 : f32 to vector<128x4xf32>
    %c9_i32_70 = arith.constant 9 : i32
    %162 = tpu.dynamic_rotate %160 by %c9_i32_70 dim 0 : vector<128x32xf32>, i32 -> vector<128x32xf32>
    %163 = arith.mulf %1, %3 : vector<128x1xf32>
    %164 = vector.broadcast %163 : vector<128x1xf32> to vector<128x32xf32>
    %165 = arith.mulf %162, %164 : vector<128x32xf32>
    %c0_71 = arith.constant 0 : index
    %c0_72 = arith.constant 0 : index
    %166 = vector.load %arg9[%c0_71, %c0_72] : memref<288x4xbf16, #tpu.memory_space<vmem>>, vector<32x4xbf16>
    %167 = arith.truncf %165 : vector<128x32xf32> to vector<128x32xbf16>
    %cst_73 = arith.constant dense<0.000000e+00> : vector<128x4xf32>
    %168 = tpu.matmul %167, %166, %cst_73 {dimension_numbers = #tpu.dot_dimension_numbers<[1], [0], [0], [1], [0, 0, 1, 1], [], []>} : vector<128x32xbf16>, vector<32x4xbf16>, vector<128x4xf32> -> vector<128x4xf32>
    %169 = arith.addf %161, %168 : vector<128x4xf32>
    %c8_i32_74 = arith.constant 8 : i32
    %170 = tpu.dynamic_rotate %160 by %c8_i32_74 dim 0 : vector<128x32xf32>, i32 -> vector<128x32xf32>
    %171 = vector.broadcast %1 : vector<128x1xf32> to vector<128x32xf32>
    %172 = arith.mulf %170, %171 : vector<128x32xf32>
    %c32_75 = arith.constant 32 : index
    %c0_76 = arith.constant 0 : index
    %173 = vector.load %arg9[%c32_75, %c0_76] : memref<288x4xbf16, #tpu.memory_space<vmem>>, vector<32x4xbf16>
    %174 = arith.truncf %172 : vector<128x32xf32> to vector<128x32xbf16>
    %cst_77 = arith.constant dense<0.000000e+00> : vector<128x4xf32>
    %175 = tpu.matmul %174, %173, %cst_77 {dimension_numbers = #tpu.dot_dimension_numbers<[1], [0], [0], [1], [0, 0, 1, 1], [], []>} : vector<128x32xbf16>, vector<32x4xbf16>, vector<128x4xf32> -> vector<128x4xf32>
    %176 = arith.addf %169, %175 : vector<128x4xf32>
    %c7_i32_78 = arith.constant 7 : i32
    %177 = tpu.dynamic_rotate %160 by %c7_i32_78 dim 0 : vector<128x32xf32>, i32 -> vector<128x32xf32>
    %178 = arith.mulf %1, %4 : vector<128x1xf32>
    %179 = vector.broadcast %178 : vector<128x1xf32> to vector<128x32xf32>
    %180 = arith.mulf %177, %179 : vector<128x32xf32>
    %c64_79 = arith.constant 64 : index
    %c0_80 = arith.constant 0 : index
    %181 = vector.load %arg9[%c64_79, %c0_80] : memref<288x4xbf16, #tpu.memory_space<vmem>>, vector<32x4xbf16>
    %182 = arith.truncf %180 : vector<128x32xf32> to vector<128x32xbf16>
    %cst_81 = arith.constant dense<0.000000e+00> : vector<128x4xf32>
    %183 = tpu.matmul %182, %181, %cst_81 {dimension_numbers = #tpu.dot_dimension_numbers<[1], [0], [0], [1], [0, 0, 1, 1], [], []>} : vector<128x32xbf16>, vector<32x4xbf16>, vector<128x4xf32> -> vector<128x4xf32>
    %184 = arith.addf %176, %183 : vector<128x4xf32>
    %c1_i32_82 = arith.constant 1 : i32
    %185 = tpu.dynamic_rotate %160 by %c1_i32_82 dim 0 : vector<128x32xf32>, i32 -> vector<128x32xf32>
    %186 = vector.broadcast %3 : vector<128x1xf32> to vector<128x32xf32>
    %187 = arith.mulf %185, %186 : vector<128x32xf32>
    %c96_83 = arith.constant 96 : index
    %c0_84 = arith.constant 0 : index
    %188 = vector.load %arg9[%c96_83, %c0_84] : memref<288x4xbf16, #tpu.memory_space<vmem>>, vector<32x4xbf16>
    %189 = arith.truncf %187 : vector<128x32xf32> to vector<128x32xbf16>
    %cst_85 = arith.constant dense<0.000000e+00> : vector<128x4xf32>
    %190 = tpu.matmul %189, %188, %cst_85 {dimension_numbers = #tpu.dot_dimension_numbers<[1], [0], [0], [1], [0, 0, 1, 1], [], []>} : vector<128x32xbf16>, vector<32x4xbf16>, vector<128x4xf32> -> vector<128x4xf32>
    %191 = arith.addf %184, %190 : vector<128x4xf32>
    %c128_86 = arith.constant 128 : index
    %c0_87 = arith.constant 0 : index
    %192 = vector.load %arg9[%c128_86, %c0_87] : memref<288x4xbf16, #tpu.memory_space<vmem>>, vector<32x4xbf16>
    %193 = arith.truncf %160 : vector<128x32xf32> to vector<128x32xbf16>
    %cst_88 = arith.constant dense<0.000000e+00> : vector<128x4xf32>
    %194 = tpu.matmul %193, %192, %cst_88 {dimension_numbers = #tpu.dot_dimension_numbers<[1], [0], [0], [1], [0, 0, 1, 1], [], []>} : vector<128x32xbf16>, vector<32x4xbf16>, vector<128x4xf32> -> vector<128x4xf32>
    %195 = arith.addf %191, %194 : vector<128x4xf32>
    %c127_i32_89 = arith.constant 127 : i32
    %196 = tpu.dynamic_rotate %160 by %c127_i32_89 dim 0 : vector<128x32xf32>, i32 -> vector<128x32xf32>
    %197 = vector.broadcast %4 : vector<128x1xf32> to vector<128x32xf32>
    %198 = arith.mulf %196, %197 : vector<128x32xf32>
    %c160_90 = arith.constant 160 : index
    %c0_91 = arith.constant 0 : index
    %199 = vector.load %arg9[%c160_90, %c0_91] : memref<288x4xbf16, #tpu.memory_space<vmem>>, vector<32x4xbf16>
    %200 = arith.truncf %198 : vector<128x32xf32> to vector<128x32xbf16>
    %cst_92 = arith.constant dense<0.000000e+00> : vector<128x4xf32>
    %201 = tpu.matmul %200, %199, %cst_92 {dimension_numbers = #tpu.dot_dimension_numbers<[1], [0], [0], [1], [0, 0, 1, 1], [], []>} : vector<128x32xbf16>, vector<32x4xbf16>, vector<128x4xf32> -> vector<128x4xf32>
    %202 = arith.addf %195, %201 : vector<128x4xf32>
    %c121_i32_93 = arith.constant 121 : i32
    %203 = tpu.dynamic_rotate %160 by %c121_i32_93 dim 0 : vector<128x32xf32>, i32 -> vector<128x32xf32>
    %204 = arith.mulf %2, %3 : vector<128x1xf32>
    %205 = vector.broadcast %204 : vector<128x1xf32> to vector<128x32xf32>
    %206 = arith.mulf %203, %205 : vector<128x32xf32>
    %c192_94 = arith.constant 192 : index
    %c0_95 = arith.constant 0 : index
    %207 = vector.load %arg9[%c192_94, %c0_95] : memref<288x4xbf16, #tpu.memory_space<vmem>>, vector<32x4xbf16>
    %208 = arith.truncf %206 : vector<128x32xf32> to vector<128x32xbf16>
    %cst_96 = arith.constant dense<0.000000e+00> : vector<128x4xf32>
    %209 = tpu.matmul %208, %207, %cst_96 {dimension_numbers = #tpu.dot_dimension_numbers<[1], [0], [0], [1], [0, 0, 1, 1], [], []>} : vector<128x32xbf16>, vector<32x4xbf16>, vector<128x4xf32> -> vector<128x4xf32>
    %210 = arith.addf %202, %209 : vector<128x4xf32>
    %c120_i32_97 = arith.constant 120 : i32
    %211 = tpu.dynamic_rotate %160 by %c120_i32_97 dim 0 : vector<128x32xf32>, i32 -> vector<128x32xf32>
    %212 = vector.broadcast %2 : vector<128x1xf32> to vector<128x32xf32>
    %213 = arith.mulf %211, %212 : vector<128x32xf32>
    %c224_98 = arith.constant 224 : index
    %c0_99 = arith.constant 0 : index
    %214 = vector.load %arg9[%c224_98, %c0_99] : memref<288x4xbf16, #tpu.memory_space<vmem>>, vector<32x4xbf16>
    %215 = arith.truncf %213 : vector<128x32xf32> to vector<128x32xbf16>
    %cst_100 = arith.constant dense<0.000000e+00> : vector<128x4xf32>
    %216 = tpu.matmul %215, %214, %cst_100 {dimension_numbers = #tpu.dot_dimension_numbers<[1], [0], [0], [1], [0, 0, 1, 1], [], []>} : vector<128x32xbf16>, vector<32x4xbf16>, vector<128x4xf32> -> vector<128x4xf32>
    %217 = arith.addf %210, %216 : vector<128x4xf32>
    %c119_i32_101 = arith.constant 119 : i32
    %218 = tpu.dynamic_rotate %160 by %c119_i32_101 dim 0 : vector<128x32xf32>, i32 -> vector<128x32xf32>
    %219 = arith.mulf %2, %4 : vector<128x1xf32>
    %220 = vector.broadcast %219 : vector<128x1xf32> to vector<128x32xf32>
    %221 = arith.mulf %218, %220 : vector<128x32xf32>
    %c256_102 = arith.constant 256 : index
    %c0_103 = arith.constant 0 : index
    %222 = vector.load %arg9[%c256_102, %c0_103] : memref<288x4xbf16, #tpu.memory_space<vmem>>, vector<32x4xbf16>
    %223 = arith.truncf %221 : vector<128x32xf32> to vector<128x32xbf16>
    %cst_104 = arith.constant dense<0.000000e+00> : vector<128x4xf32>
    %224 = tpu.matmul %223, %222, %cst_104 {dimension_numbers = #tpu.dot_dimension_numbers<[1], [0], [0], [1], [0, 0, 1, 1], [], []>} : vector<128x32xbf16>, vector<32x4xbf16>, vector<128x4xf32> -> vector<128x4xf32>
    %225 = arith.addf %217, %224 : vector<128x4xf32>
    %c0_105 = arith.constant 0 : index
    %c0_106 = arith.constant 0 : index
    %226 = vector.load %arg10[%c0_105, %c0_106] : memref<1x4xf32, #tpu.memory_space<vmem>>, vector<1x4xf32>
    %227 = vector.broadcast %226 : vector<1x4xf32> to vector<128x4xf32>
    %228 = arith.addf %225, %227 : vector<128x4xf32>
    %cst_107 = arith.constant 0.000000e+00 : f32
    %229 = vector.broadcast %cst_107 : f32 to vector<128x4xf32>
    %230 = arith.subf %229, %228 : vector<128x4xf32>
    %231 = math.exp %230 : vector<128x4xf32>
    %cst_108 = arith.constant 1.000000e+00 : f32
    %232 = vector.broadcast %cst_108 : f32 to vector<128x4xf32>
    %233 = arith.addf %232, %231 : vector<128x4xf32>
    %cst_109 = arith.constant 1.000000e+00 : f32
    %234 = vector.broadcast %cst_109 : f32 to vector<128x4xf32>
    %235 = arith.divf %234, %233 : vector<128x4xf32>
    %cst_110 = arith.constant 3.000000e+00 : f32
    %236 = vector.broadcast %cst_110 : f32 to vector<128x4xf32>
    %237 = arith.mulf %235, %236 : vector<128x4xf32>
    %238 = math.roundeven %237 : vector<128x4xf32>
    %c0_111 = arith.constant 0 : index
    %c0_112 = arith.constant 0 : index
    %239 = vector.load %arg12[%c0_111, %c0_112] : memref<128x4xf32, #tpu.memory_space<vmem>>, vector<128x4xf32>
    tpu.vector_store %arg12[%c0_111, %c0_112], %238 {strides = array<i32>} : memref<128x4xf32, #tpu.memory_space<vmem>>, vector<128x4xf32>,
    return
  }
  func.func @transform_0(%arg0: i32) -> (i32, i32) {
    %c0_i32 = arith.constant 0 : i32
    %c0_i32_0 = arith.constant 0 : i32
    return %arg0, %c0_i32 : i32, i32
  }
  func.func @transform_1(%arg0: i32) -> (i32, i32) {
    %c0_i32 = arith.constant 0 : i32
    %c0_i32_0 = arith.constant 0 : i32
    %c0_i32_1 = arith.constant 0 : i32
    return %c0_i32, %c0_i32_0 : i32, i32
  }
  func.func @transform_2(%arg0: i32) -> (i32, i32) {
    %c0_i32 = arith.constant 0 : i32
    %c0_i32_0 = arith.constant 0 : i32
    %c0_i32_1 = arith.constant 0 : i32
    return %c0_i32, %c0_i32_0 : i32, i32
  }
  func.func @transform_3(%arg0: i32) -> (i32, i32) {
    %c0_i32 = arith.constant 0 : i32
    %c0_i32_0 = arith.constant 0 : i32
    %c0_i32_1 = arith.constant 0 : i32
    return %c0_i32, %c0_i32_0 : i32, i32
  }
  func.func @transform_4(%arg0: i32) -> (i32, i32) {
    %c0_i32 = arith.constant 0 : i32
    %c0_i32_0 = arith.constant 0 : i32
    %c0_i32_1 = arith.constant 0 : i32
    return %c0_i32, %c0_i32_0 : i32, i32
  }
  func.func @transform_5(%arg0: i32) -> (i32, i32) {
    %c0_i32 = arith.constant 0 : i32
    %c0_i32_0 = arith.constant 0 : i32
    %c0_i32_1 = arith.constant 0 : i32
    return %c0_i32, %c0_i32_0 : i32, i32
  }
  func.func @transform_6(%arg0: i32) -> (i32, i32) {
    %c0_i32 = arith.constant 0 : i32
    %c0_i32_0 = arith.constant 0 : i32
    %c0_i32_1 = arith.constant 0 : i32
    return %c0_i32, %c0_i32_0 : i32, i32
  }
  func.func @transform_7(%arg0: i32) -> (i32, i32) {
    %c0_i32 = arith.constant 0 : i32
    %c0_i32_0 = arith.constant 0 : i32
    %c0_i32_1 = arith.constant 0 : i32
    return %c0_i32, %c0_i32_0 : i32, i32
  }
  func.func @transform_8(%arg0: i32) -> (i32, i32) {
    %c0_i32 = arith.constant 0 : i32
    %c0_i32_0 = arith.constant 0 : i32
    %c0_i32_1 = arith.constant 0 : i32
    return %c0_i32, %c0_i32_0 : i32, i32
  }
  func.func @transform_9(%arg0: i32) -> (i32, i32) {
    %c0_i32 = arith.constant 0 : i32
    %c0_i32_0 = arith.constant 0 : i32
    %c0_i32_1 = arith.constant 0 : i32
    return %c0_i32, %c0_i32_0 : i32, i32
  }
  func.func @transform_10(%arg0: i32) -> i32 {
    %c0_i32 = arith.constant 0 : i32
    %c0_i32_0 = arith.constant 0 : i32
    return %c0_i32 : i32
  }
  func.func @transform_11(%arg0: i32) -> (i32, i32) {
    %c0_i32 = arith.constant 0 : i32
    %c0_i32_0 = arith.constant 0 : i32
    return %arg0, %c0_i32 : i32, i32
  }
}

</mosaic_0001>

<bundles_post_ra>
// kernel: tile.18
= control target key start
LH: loop header
LB: loop body
LE: loop exit
PB: predicated region body
PF: predicated region fallthrough
CT: control target
= control target key end

     0   :  { %s22_s0 = inlined_call_operand.vmem [shape: f32[8], index: 0, kind: input, shape index: {}]   ;;  %s23_s1 = inlined_call_operand.vmem [shape: f32[8,8], index: 1, kind: output, shape index: {}]  }
   0x1   :  { %v4_v0 = vld [vmem:[%s22_s0] ss:$0 sm:$0xff] }
   0x2   :  { %5 = vst [vmem:[%s23_s1] sm:$0xff] %v4_v0 }

// kernel: _lambda_.4
= control target key start
LH: loop header
LB: loop body
LE: loop exit
PB: predicated region body
PF: predicated region fallthrough
CT: control target
= control target key end

     0   :  { %v604_v0 = vmov 0   ;;  %vm182_vm0 = vcmask 130048   ;;  %vm464_vm3 = vcmask 257024   ;;  %s845_s1 = inlined_call_operand.vmem [shape: bf16[144,32], index: 1, kind: input, shape index: {}]   ;;  %s846_s0 = inlined_call_operand.vmem [shape: bf16[128,144], index: 0, kind: input, shape index: {}]   ;;  %s847_s2 = inlined_call_operand.vmem [shape: f32[1,32], index: 2, kind: input, shape index: {}]   ;;  %s848_s3 = inlined_call_operand.vmem [shape: f32[1,32], index: 3, kind: input, shape index: {}]   ;;  %s849_s4 = inlined_call_operand.<no memory space> [shape: f32[1], index: 4, kind: input, shape index: {}]   ;;  %s850_s5 = inlined_call_operand.vmem [shape: bf16[128,32], index: 5, kind: output, shape index: {}]  }
   0x1   :  { %207 = vmatprep.subr.bf16.mxu0 %v604_v0  ;;  %552 = vmatprep.subr.bf16.mxu1 %v604_v0  ;;  %v571_v1 = vld [vmem:[%s845_s1] sm:$0xff]   ;;  %v572_v2 = vld [vmem:[%s845_s1 + $0x8] sm:$0xff]   ;;  %v573_v3 = vld [vmem:[%s845_s1 + $0x10] sm:$0xff]   ;;  %v733_v34 = vstv %s849_s4 }
   0x2   :  { %208 = vmatpush1.bf16.msra.mxu0 %v571_v1  ;;  %561 = vmatpush1.bf16.msra.mxu1 %v571_v1  ;;  %v574_v4 = vld [vmem:[%s845_s1 + $0x18] sm:$0xff]   ;;  %v582_v5 = vld [vmem:[%s846_s0 + $0x4] ss:$8 sps:$4 sm:$0xff]   ;;  %v577_v9 = vld [vmem:[%s845_s1 + $0x30] sm:$0xff]  }
   0x3   :  { %209 = vmatprep.subr.bf16.mxu0 %v604_v0  ;;  %553 = vmatprep.subr.bf16.mxu1 %v604_v0  ;;  %v585_v6 = vld [vmem:[%s846_s0 + $0x44] ss:$8 sps:$4 sm:$0xff]   ;;  %v578_v10 = vld [vmem:[%s845_s1 + $0x38] sm:$0xff]   ;;  %v580_v12 = vld [vmem:[%s846_s0] ss:$8 sps:$4 sm:$0xff]  }
   0x4   :  { %510 = vmatprep.mubr.msk.bf16.mxu0 %vm182_vm0, %v582_v5  ;;  %514 = vmatprep.mubr.msk.bf16.mxu1 %vm182_vm0, %v585_v6  ;;  %v575_v7 = vld [vmem:[%s845_s1 + $0x20] sm:$0xff]   ;;  %v576_v8 = vld [vmem:[%s845_s1 + $0x28] sm:$0xff]   ;;  %v586_v14 = vld [vmem:[%s846_s0 + $0x14] ss:$8 sps:$4 sm:$0xff]  }
   0x5   :  { %v579_v11 = vld [vmem:[%s845_s1 + $0x40] sm:$0xff]   ;;  %v588_v15 = vld [vmem:[%s846_s0 + $0x54] ss:$8 sps:$4 sm:$0xff]   ;;  %v590_v16 = vld [vmem:[%s846_s0 + $0x10] ss:$8 sps:$4 sm:$0xff]  }
   0x6   :  { %210 = vmatpush1.bf16.msra.mxu0 %v572_v2  ;;  %562 = vmatpush1.bf16.msra.mxu1 %v572_v2  ;;  %v583_v13 = vld [vmem:[%s846_s0 + $0x40] ss:$8 sps:$4 sm:$0xff]   ;;  %v591_v17 = vld [vmem:[%s846_s0 + $0x50] ss:$8 sps:$4 sm:$0xff]   ;;  %v592_v18 = vld [vmem:[%s846_s0 + $0x24] ss:$8 sps:$4 sm:$0xff]  }
   0x7   :  { %211 = vmatprep.subr.bf16.mxu0 %v604_v0  ;;  %554 = vmatprep.subr.bf16.mxu1 %v604_v0  ;;  %v594_v19 = vld [vmem:[%s846_s0 + $0x64] ss:$8 sps:$4 sm:$0xff]   ;;  %v596_v20 = vld [vmem:[%s846_s0 + $0x20] ss:$8 sps:$4 sm:$0xff]   ;;  %v598_v22 = vld [vmem:[%s846_s0 + $0x34] ss:$8 sps:$4 sm:$0xff]  }
   0x8   :  { %v597_v21 = vld [vmem:[%s846_s0 + $0x60] ss:$8 sps:$4 sm:$0xff]   ;;  %v600_v23 = vld [vmem:[%s846_s0 + $0x74] ss:$8 sps:$4 sm:$0xff]   ;;  %v602_v24 = vld [vmem:[%s846_s0 + $0x30] ss:$8 sps:$4 sm:$0xff]  }
   0x9   :  { %v603_v25 = vld [vmem:[%s846_s0 + $0x70] ss:$8 sps:$4 sm:$0xff]   ;;  %v721_v26 = vld [vmem:[%s847_s2] ss:$0 sm:$0xff] }
   0xa   :  { %212 = vmatpush1.bf16.msra.mxu0 %v573_v3  ;;  %563 = vmatpush1.bf16.msra.mxu1 %v573_v3  ;;  %v726_v28 = vld [vmem:[%s848_s3] ss:$0 sm:$0xff] }
   0xb   :  { %213 = vmatprep.subr.bf16.mxu0 %v604_v0  ;;  %555 = vmatprep.subr.bf16.mxu1 %v604_v0 }
   0xe   :  { %214 = vmatpush1.bf16.msra.mxu0 %v574_v4  ;;  %564 = vmatpush1.bf16.msra.mxu1 %v574_v4 }
   0xf   :  { %215 = vmatprep.subr.bf16.mxu0 %v604_v0  ;;  %556 = vmatprep.subr.bf16.mxu1 %v604_v0 }
  0x12   :  { %216 = vmatpush1.bf16.msra.mxu0 %v575_v7  ;;  %565 = vmatpush1.bf16.msra.mxu1 %v575_v7 }
  0x13   :  { %217 = vmatprep.subr.bf16.mxu0 %v604_v0  ;;  %557 = vmatprep.subr.bf16.mxu1 %v604_v0 }
  0x16   :  { %218 = vmatpush1.bf16.msra.mxu0 %v576_v8  ;;  %566 = vmatpush1.bf16.msra.mxu1 %v576_v8 }
  0x17   :  { %219 = vmatprep.subr.bf16.mxu0 %v604_v0  ;;  %558 = vmatprep.subr.bf16.mxu1 %v604_v0 }
  0x1a   :  { %220 = vmatpush1.bf16.msra.mxu0 %v577_v9  ;;  %567 = vmatpush1.bf16.msra.mxu1 %v577_v9 }
  0x1b   :  { %221 = vmatprep.subr.bf16.mxu0 %v604_v0  ;;  %559 = vmatprep.subr.bf16.mxu1 %v604_v0 }
  0x1e   :  { %222 = vmatpush1.bf16.msra.mxu0 %v578_v10  ;;  %568 = vmatpush1.bf16.msra.mxu1 %v578_v10 }
  0x1f   :  { %223 = vmatprep.subr.bf16.mxu0 %v604_v0  ;;  %560 = vmatprep.subr.bf16.mxu1 %v604_v0 }
  0x22   :  { %224 = vmatpush1.bf16.msra.mxu0 %v579_v11  ;;  %569 = vmatpush1.bf16.msra.mxu1 %v579_v11 }
  0x25   :  { %240 = vmatmul.mubr.bf16.vlgmr.msra.gmra.mrb[0].mxu0 %v580_v12  ;;  %272 = vmatmul.mubr.bf16.vlgmr.msra.gmra.mrb[0].mxu1 %v583_v13 }
  0x26   :  { %511 = vmatprep.mubr.msk.bf16.mxu0 %vm182_vm0, %v586_v14  ;;  %515 = vmatprep.mubr.msk.bf16.mxu1 %vm182_vm0, %v588_v15 }
  0x2d   :  { %248 = vmatmul.mubr.bf16.gmra.mrb[4].mxu0 %v590_v16  ;;  %280 = vmatmul.mubr.bf16.gmra.mrb[4].mxu1 %v591_v17 }
  0x2e   :  { %512 = vmatprep.mubr.msk.bf16.mxu0 %vm182_vm0, %v592_v18  ;;  %516 = vmatprep.mubr.msk.bf16.mxu1 %vm182_vm0, %v594_v19 }
  0x35   :  { %256 = vmatmul.mubr.bf16.gmra.mrb[8].mxu0 %v596_v20  ;;  %288 = vmatmul.mubr.bf16.gmra.mrb[8].mxu1 %v597_v21 }
  0x36   :  { %513 = vmatprep.mubr.msk.bf16.mxu0 %vm182_vm0, %v598_v22  ;;  %517 = vmatprep.mubr.msk.bf16.mxu1 %vm182_vm0, %v600_v23 }
  0x3d   :  { %264 = vmatmul.mubr.bf16.gmra.mrb[12].mxu0 %v602_v24  ;;  %296 = vmatmul.mubr.bf16.gmra.mrb[12].mxu1 %v603_v25 }
  0xf8   :  { %v241_v27 = vpop.f32.mrb[0].mxu0  ;;  %v273_v29 = vpop.f32.mrb[0].mxu1 }
  0xf9   :  { %v311_v30 = vmul.f32 %v721_v26, %v241_v27  ;;  %v319_v31 = vmul.f32 %v721_v26, %v273_v29  ;;  %v243_v32 = vpop.f32.mrb[1].mxu0  ;;  %v275_v33 = vpop.f32.mrb[1].mxu1 }
  0xfa   :  { %v244_v35 = vpop.f32.mrb[2].mxu0  ;;  %v276_v36 = vpop.f32.mrb[2].mxu1 }
  0xfb   :  { %v334_v37 = vadd.f32 %v726_v28, %v311_v30  ;;  %v342_v38 = vadd.f32 %v726_v28, %v319_v31  ;;  %v312_v39 = vmul.f32 %v721_v26, %v244_v35  ;;  %v320_v40 = vmul.f32 %v721_v26, %v276_v36  ;;  %v246_v41 = vpop.f32.mrb[3].mxu0  ;;  %v278_v42 = vpop.f32.mrb[3].mxu1 }
  0xfd   :  { %vm351_vm1 = vcmp.ge.f32.partialorder %v334_v37, 0.0  ;;  %v368_v43 = vmul.f32 %v733_v34, %v334_v37  ;;  %vm359_vm2 = vcmp.ge.f32.partialorder %v342_v38, 0.0  ;;  %v376_v44 = vmul.f32 %v733_v34, %v342_v38 }
  0xfe   :  { %v335_v45 = vadd.f32 %v726_v28, %v312_v39  ;;  %v343_v46 = vadd.f32 %v726_v28, %v320_v40 }
  0xff   :  { %v384_v47 = vsel %vm351_vm1, %v334_v37, %v368_v43  ;;  %v392_v48 = vsel %vm359_vm2, %v342_v38, %v376_v44 }
 0x100   :  { %v536_v49 = vpack.c.bf16 %v384_v47, %v384_v47  ;;  %v544_v50 = vpack.c.bf16 %v392_v48, %v392_v48  ;;  %vm352_vm4 = vcmp.ge.f32.partialorder %v335_v45, 0.0  ;;  %v369_v51 = vmul.f32 %v733_v34, %v335_v45  ;;  %v249_v52 = vpop.f32.mrb[4].mxu0  ;;  %v281_v53 = vpop.f32.mrb[4].mxu1 }
 0x101   :  { %vm360_vm5 = vcmp.ge.f32.partialorder %v343_v46, 0.0  ;;  %v377_v54 = vmul.f32 %v733_v34, %v343_v46  ;;  %v313_v55 = vmul.f32 %v721_v26, %v249_v52  ;;  %v321_v56 = vmul.f32 %v721_v26, %v281_v53  ;;  %v251_v57 = vpop.f32.mrb[5].mxu0  ;;  %v283_v58 = vpop.f32.mrb[5].mxu1 }
 0x102   :  { %465 = vst.msk [vmem:[%s850_s5] sm:$0xf] %vm464_vm3, %v536_v49  ;;  %473 = vst.msk [vmem:[%s850_s5 + $0x20] sm:$0xf] %vm464_vm3, %v544_v50  ;;  %v385_v59 = vsel %vm352_vm4, %v335_v45, %v369_v51  ;;  %v252_v60 = vpop.f32.mrb[6].mxu0  ;;  %v284_v61 = vpop.f32.mrb[6].mxu1 }
 0x103   :  { %v537_v62 = vpack.c.bf16 %v385_v59, %v385_v59  ;;  %v393_v63 = vsel %vm360_vm5, %v343_v46, %v377_v54  ;;  %v336_v0 = vadd.f32 %v726_v28, %v313_v55  ;;  %v344_v1 = vadd.f32 %v726_v28, %v321_v56  ;;  %v254_v2 = vpop.f32.mrb[7].mxu0  ;;  %v286_v3 = vpop.f32.mrb[7].mxu1 }
 0x104   :  { %v545_v4 = vpack.c.bf16 %v393_v63, %v393_v63  ;;  %v314_v5 = vmul.f32 %v721_v26, %v252_v60  ;;  %v322_v6 = vmul.f32 %v721_v26, %v284_v61 }
 0x105   :  { %466 = vst.msk [vmem:[%s850_s5 + $0x4] sm:$0xf] %vm464_vm3, %v537_v62  ;;  %vm353_vm6 = vcmp.ge.f32.partialorder %v336_v0, 0.0  ;;  %v370_v7 = vmul.f32 %v733_v34, %v336_v0  ;;  %vm361_vm7 = vcmp.ge.f32.partialorder %v344_v1, 0.0  ;;  %v378_v8 = vmul.f32 %v733_v34, %v344_v1 }
 0x106   :  { %474 = vst.msk [vmem:[%s850_s5 + $0x24] sm:$0xf] %vm464_vm3, %v545_v4  ;;  %v337_v9 = vadd.f32 %v726_v28, %v314_v5  ;;  %v345_v10 = vadd.f32 %v726_v28, %v322_v6 }
 0x107   :  { %v386_v11 = vsel %vm353_vm6, %v336_v0, %v370_v7  ;;  %v394_v12 = vsel %vm361_vm7, %v344_v1, %v378_v8 }
 0x108   :  { %v538_v13 = vpack.c.bf16 %v386_v11, %v386_v11  ;;  %v546_v14 = vpack.c.bf16 %v394_v12, %v394_v12  ;;  %vm354_vm8 = vcmp.ge.f32.partialorder %v337_v9, 0.0  ;;  %v371_v15 = vmul.f32 %v733_v34, %v337_v9  ;;  %v257_v16 = vpop.f32.mrb[8].mxu0  ;;  %v289_v17 = vpop.f32.mrb[8].mxu1 }
 0x109   :  { %vm362_vm9 = vcmp.ge.f32.partialorder %v345_v10, 0.0  ;;  %v379_v18 = vmul.f32 %v733_v34, %v345_v10  ;;  %v315_v19 = vmul.f32 %v721_v26, %v257_v16  ;;  %v323_v20 = vmul.f32 %v721_v26, %v289_v17  ;;  %v259_v21 = vpop.f32.mrb[9].mxu0  ;;  %v291_v22 = vpop.f32.mrb[9].mxu1 }
 0x10a   :  { %467 = vst.msk [vmem:[%s850_s5 + $0x8] sm:$0xf] %vm464_vm3, %v538_v13  ;;  %475 = vst.msk [vmem:[%s850_s5 + $0x28] sm:$0xf] %vm464_vm3, %v546_v14  ;;  %v387_v23 = vsel %vm354_vm8, %v337_v9, %v371_v15  ;;  %v260_v24 = vpop.f32.mrb[10].mxu0  ;;  %v292_v25 = vpop.f32.mrb[10].mxu1 }
 0x10b   :  { %v539_v27 = vpack.c.bf16 %v387_v23, %v387_v23  ;;  %v395_v29 = vsel %vm362_vm9, %v345_v10, %v379_v18  ;;  %v338_v30 = vadd.f32 %v726_v28, %v315_v19  ;;  %v346_v31 = vadd.f32 %v726_v28, %v323_v20  ;;  %v262_v32 = vpop.f32.mrb[11].mxu0  ;;  %v294_v33 = vpop.f32.mrb[11].mxu1 }
 0x10c   :  { %v547_v35 = vpack.c.bf16 %v395_v29, %v395_v29  ;;  %v316_v36 = vmul.f32 %v721_v26, %v260_v24  ;;  %v324_v37 = vmul.f32 %v721_v26, %v292_v25 }
 0x10d   :  { %468 = vst.msk [vmem:[%s850_s5 + $0xc] sm:$0xf] %vm464_vm3, %v539_v27  ;;  %vm355_vm10 = vcmp.ge.f32.partialorder %v338_v30, 0.0  ;;  %v372_v38 = vmul.f32 %v733_v34, %v338_v30  ;;  %vm363_vm11 = vcmp.ge.f32.partialorder %v346_v31, 0.0  ;;  %v380_v39 = vmul.f32 %v733_v34, %v346_v31 }
 0x10e   :  { %476 = vst.msk [vmem:[%s850_s5 + $0x2c] sm:$0xf] %vm464_vm3, %v547_v35  ;;  %v339_v40 = vadd.f32 %v726_v28, %v316_v36  ;;  %v347_v41 = vadd.f32 %v726_v28, %v324_v37 }
 0x10f   :  { %v388_v42 = vsel %vm355_vm10, %v338_v30, %v372_v38  ;;  %v396_v43 = vsel %vm363_vm11, %v346_v31, %v380_v39 }
 0x110   :  { %v540_v44 = vpack.c.bf16 %v388_v42, %v388_v42  ;;  %v548_v45 = vpack.c.bf16 %v396_v43, %v396_v43  ;;  %vm356_vm12 = vcmp.ge.f32.partialorder %v339_v40, 0.0  ;;  %v373_v46 = vmul.f32 %v733_v34, %v339_v40  ;;  %v265_v47 = vpop.f32.mrb[12].mxu0  ;;  %v297_v48 = vpop.f32.mrb[12].mxu1 }
 0x111   :  { %vm364_vm13 = vcmp.ge.f32.partialorder %v347_v41, 0.0  ;;  %v381_v49 = vmul.f32 %v733_v34, %v347_v41  ;;  %v317_v50 = vmul.f32 %v721_v26, %v265_v47  ;;  %v325_v51 = vmul.f32 %v721_v26, %v297_v48  ;;  %v267_v52 = vpop.f32.mrb[13].mxu0  ;;  %v299_v53 = vpop.f32.mrb[13].mxu1 }
 0x112   :  { %469 = vst.msk [vmem:[%s850_s5 + $0x10] sm:$0xf] %vm464_vm3, %v540_v44  ;;  %477 = vst.msk [vmem:[%s850_s5 + $0x30] sm:$0xf] %vm464_vm3, %v548_v45  ;;  %v389_v54 = vsel %vm356_vm12, %v339_v40, %v373_v46  ;;  %v268_v55 = vpop.f32.mrb[14].mxu0  ;;  %v300_v56 = vpop.f32.mrb[14].mxu1 }
 0x113   :  { %v541_v57 = vpack.c.bf16 %v389_v54, %v389_v54  ;;  %v397_v58 = vsel %vm364_vm13, %v347_v41, %v381_v49  ;;  %v340_v59 = vadd.f32 %v726_v28, %v317_v50  ;;  %v348_v60 = vadd.f32 %v726_v28, %v325_v51  ;;  %v270_v61 = vpop.f32.mrb[15].mxu0  ;;  %v302_v62 = vpop.f32.mrb[15].mxu1 }
 0x114   :  { %v549_v63 = vpack.c.bf16 %v397_v58, %v397_v58  ;;  %v318_v0 = vmul.f32 %v721_v26, %v268_v55  ;;  %v326_v1 = vmul.f32 %v721_v26, %v300_v56 }
 0x115   :  { %470 = vst.msk [vmem:[%s850_s5 + $0x14] sm:$0xf] %vm464_vm3, %v541_v57  ;;  %vm357_vm14 = vcmp.ge.f32.partialorder %v340_v59, 0.0  ;;  %v374_v2 = vmul.f32 %v733_v34, %v340_v59  ;;  %vm365_vm15 = vcmp.ge.f32.partialorder %v348_v60, 0.0  ;;  %v382_v3 = vmul.f32 %v733_v34, %v348_v60 }
 0x116   :  { %478 = vst.msk [vmem:[%s850_s5 + $0x34] sm:$0xf] %vm464_vm3, %v549_v63  ;;  %v341_v4 = vadd.f32 %v726_v28, %v318_v0  ;;  %v349_v26 = vadd.f32 %v726_v28, %v326_v1 }
 0x117   :  { %v390_v5 = vsel %vm357_vm14, %v340_v59, %v374_v2  ;;  %v398_v6 = vsel %vm365_vm15, %v348_v60, %v382_v3 }
 0x118   :  { %v542_v7 = vpack.c.bf16 %v390_v5, %v390_v5  ;;  %v550_v8 = vpack.c.bf16 %v398_v6, %v398_v6  ;;  %vm358_vm0 = vcmp.ge.f32.partialorder %v341_v4, 0.0  ;;  %v375_v9 = vmul.f32 %v733_v34, %v341_v4 }
 0x119   :  { %vm366_vm1 = vcmp.ge.f32.partialorder %v349_v26, 0.0  ;;  %v383_v10 = vmul.f32 %v733_v34, %v349_v26 }
 0x11a   :  { %471 = vst.msk [vmem:[%s850_s5 + $0x18] sm:$0xf] %vm464_vm3, %v542_v7  ;;  %479 = vst.msk [vmem:[%s850_s5 + $0x38] sm:$0xf] %vm464_vm3, %v550_v8  ;;  %v391_v28 = vsel %vm358_vm0, %v341_v4, %v375_v9 }
 0x11b   :  { %v543_v11 = vpack.c.bf16 %v391_v28, %v391_v28  ;;  %v399_v12 = vsel %vm366_vm1, %v349_v26, %v383_v10 }
 0x11c   :  { %v551_v13 = vpack.c.bf16 %v399_v12, %v399_v12 }
 0x11d   :  { %472 = vst.msk [vmem:[%s850_s5 + $0x1c] sm:$0xf] %vm464_vm3, %v543_v11 }
 0x11e   :  { %480 = vst.msk [vmem:[%s850_s5 + $0x3c] sm:$0xf] %vm464_vm3, %v551_v13 }

// kernel: _lambda_.3
= control target key start
LH: loop header
LB: loop body
LE: loop exit
PB: predicated region body
PF: predicated region fallthrough
CT: control target
= control target key end

     0   :  { %vm358_vm0 = vcmask 1044480   ;;  %vm359_vm1 = vcmask 1045504   ;;  %vm261_vm2 = vcmask 220160   ;;  %v1652_v1 = vmov 65535   ;;  %s2413_s1 = inlined_call_operand.vmem [shape: bf16[27,16], index: 1, kind: input, shape index: {}]   ;;  %s2414_s0 = inlined_call_operand.vmem [shape: bf16[512,27], index: 0, kind: input, shape index: {}]   ;;  %s2415_s2 = inlined_call_operand.vmem [shape: f32[1,16], index: 2, kind: input, shape index: {}]   ;;  %s2416_s3 = inlined_call_operand.vmem [shape: f32[1,16], index: 3, kind: input, shape index: {}]   ;;  %s2417_s4 = inlined_call_operand.<no memory space> [shape: f32[1], index: 4, kind: input, shape index: {}]   ;;  %s2418_s5 = inlined_call_operand.vmem [shape: bf16[512,16], index: 5, kind: output, shape index: {}]  }
   0x1   :  { %v1618_v0 = vld [vmem:[%s2413_s1] sm:$0xff]   ;;  %v360_v2 = vsel %vm358_vm0, 4294967295, %v1652_v1  ;;  %v1619_v3 = vld [vmem:[%s2413_s1 + $0x8] sm:$0x3f]   ;;  %v1624_v10 = vld [vmem:[%s2414_s0 + $0x10] sm:$0xff]   ;;  %v1832_v46 = vstv %s2417_s4  ;;  %vm1246_vm3 = vcmask 125952  }
   0x2   :  { %1545 = vmatprep.subr.bf16.mxu0 %v1618_v0  ;;  %1613 = vmatprep.subr.bf16.mxu1 %v1618_v0  ;;  %v361_v4 = vsel %vm359_vm1, %v360_v2, 0  ;;  %v1620_v5 = vld [vmem:[%s2414_s0] sm:$0xff]   ;;  %v1622_v8 = vld [vmem:[%s2414_s0 + $0x8] sm:$0xff]   ;;  %v1625_v11 = vld [vmem:[%s2414_s0 + $0x90] sm:$0xff]  }
   0x3   :  { %1546 = vmatpush3.bf16.msra.mxu0 %v1618_v0  ;;  %1615 = vmatpush3.bf16.msra.mxu1 %v1618_v0  ;;  %v363_v6 = vand.u32 %v1619_v3, %v361_v4  ;;  %v1621_v7 = vld [vmem:[%s2414_s0 + $0x80] sm:$0xff]   ;;  %v1623_v9 = vld [vmem:[%s2414_s0 + $0x88] sm:$0xff]   ;;  %v1626_v12 = vld [vmem:[%s2414_s0 + $0x18] sm:$0xff]  }
   0x4   :  { %1549 = vmatprep.mubr.msk.bf16.mxu0 %vm261_vm2, %v1620_v5  ;;  %1581 = vmatprep.mubr.msk.bf16.mxu1 %vm261_vm2, %v1621_v7  ;;  %v1627_v13 = vld [vmem:[%s2414_s0 + $0x98] sm:$0xff]   ;;  %v1628_v14 = vld [vmem:[%s2414_s0 + $0x20] sm:$0xff]   ;;  %v1630_v16 = vld [vmem:[%s2414_s0 + $0x28] sm:$0xff]  }
   0x5   :  { %1547 = vmatprep.subr.bf16.mxu0 %v363_v6  ;;  %1614 = vmatprep.subr.bf16.mxu1 %v363_v6  ;;  %v1629_v15 = vld [vmem:[%s2414_s0 + $0xa0] sm:$0xff]   ;;  %v1631_v17 = vld [vmem:[%s2414_s0 + $0xa8] sm:$0xff]   ;;  %v1632_v18 = vld [vmem:[%s2414_s0 + $0x30] sm:$0xff]  }
   0x6   :  { %v1633_v19 = vld [vmem:[%s2414_s0 + $0xb0] sm:$0xff]   ;;  %v1634_v20 = vld [vmem:[%s2414_s0 + $0x38] sm:$0xff]   ;;  %v1636_v22 = vld [vmem:[%s2414_s0 + $0x40] sm:$0xff]  }
   0x7   :  { %1548 = vmatpush3.bf16.msra.mxu0 %v363_v6  ;;  %1616 = vmatpush3.bf16.msra.mxu1 %v363_v6  ;;  %v1635_v21 = vld [vmem:[%s2414_s0 + $0xb8] sm:$0xff]   ;;  %v1637_v23 = vld [vmem:[%s2414_s0 + $0xc0] sm:$0xff]   ;;  %v1638_v24 = vld [vmem:[%s2414_s0 + $0x48] sm:$0xff]  }
   0x8   :  { %v1639_v25 = vld [vmem:[%s2414_s0 + $0xc8] sm:$0xff]   ;;  %v1640_v26 = vld [vmem:[%s2414_s0 + $0x50] sm:$0xff]   ;;  %v1642_v28 = vld [vmem:[%s2414_s0 + $0x58] sm:$0xff]  }
   0x9   :  { %v1641_v27 = vld [vmem:[%s2414_s0 + $0xd0] sm:$0xff]   ;;  %v1643_v29 = vld [vmem:[%s2414_s0 + $0xd8] sm:$0xff]   ;;  %v1644_v30 = vld [vmem:[%s2414_s0 + $0x60] sm:$0xff]  }
   0xa   :  { %1550 = vmatmul.mubr.msk.bf16.vlgmr.msra.gmra.mrb[0].mxu0 %vm261_vm2, %v1622_v8  ;;  %1582 = vmatmul.mubr.msk.bf16.vlgmr.msra.gmra.mrb[0].mxu1 %vm261_vm2, %v1623_v9  ;;  %v1645_v31 = vld [vmem:[%s2414_s0 + $0xe0] sm:$0xff]   ;;  %v1646_v32 = vld [vmem:[%s2414_s0 + $0x68] sm:$0xff]   ;;  %v1648_v34 = vld [vmem:[%s2414_s0 + $0x70] sm:$0xff]  }
   0xb   :  { %1553 = vmatprep.mubr.msk.bf16.mxu0 %vm261_vm2, %v1624_v10  ;;  %1585 = vmatprep.mubr.msk.bf16.mxu1 %vm261_vm2, %v1625_v11  ;;  %v1647_v33 = vld [vmem:[%s2414_s0 + $0xe8] sm:$0xff]   ;;  %v1649_v35 = vld [vmem:[%s2414_s0 + $0xf0] sm:$0xff]   ;;  %v1650_v36 = vld [vmem:[%s2414_s0 + $0x78] sm:$0xff]  }
   0xc   :  { %v1651_v37 = vld [vmem:[%s2414_s0 + $0xf8] sm:$0xff]   ;;  %v1820_v38 = vld [vmem:[%s2415_s2] ss:$0 sm:$0xff] }
   0xd   :  { %v1825_v40 = vld [vmem:[%s2416_s3] ss:$0 sm:$0xff] }
  0x12   :  { %1554 = vmatmul.mubr.msk.bf16.gmra.mrb[4].mxu0 %vm261_vm2, %v1626_v12  ;;  %1586 = vmatmul.mubr.msk.bf16.gmra.mrb[4].mxu1 %vm261_vm2, %v1627_v13 }
  0x13   :  { %1557 = vmatprep.mubr.msk.bf16.mxu0 %vm261_vm2, %v1628_v14  ;;  %1589 = vmatprep.mubr.msk.bf16.mxu1 %vm261_vm2, %v1629_v15 }
  0x1a   :  { %1558 = vmatmul.mubr.msk.bf16.gmra.mrb[8].mxu0 %vm261_vm2, %v1630_v16  ;;  %1590 = vmatmul.mubr.msk.bf16.gmra.mrb[8].mxu1 %vm261_vm2, %v1631_v17 }
  0x1b   :  { %1561 = vmatprep.mubr.msk.bf16.mxu0 %vm261_vm2, %v1632_v18  ;;  %1593 = vmatprep.mubr.msk.bf16.mxu1 %vm261_vm2, %v1633_v19 }
  0x22   :  { %1562 = vmatmul.mubr.msk.bf16.gmra.mrb[12].mxu0 %vm261_vm2, %v1634_v20  ;;  %1594 = vmatmul.mubr.msk.bf16.gmra.mrb[12].mxu1 %vm261_vm2, %v1635_v21 }
  0x23   :  { %1565 = vmatprep.mubr.msk.bf16.mxu0 %vm261_vm2, %v1636_v22  ;;  %1597 = vmatprep.mubr.msk.bf16.mxu1 %vm261_vm2, %v1637_v23 }
  0x2a   :  { %1566 = vmatmul.mubr.msk.bf16.gmra.mrb[16].mxu0 %vm261_vm2, %v1638_v24  ;;  %1598 = vmatmul.mubr.msk.bf16.gmra.mrb[16].mxu1 %vm261_vm2, %v1639_v25 }
  0x2b   :  { %1569 = vmatprep.mubr.msk.bf16.mxu0 %vm261_vm2, %v1640_v26  ;;  %1601 = vmatprep.mubr.msk.bf16.mxu1 %vm261_vm2, %v1641_v27 }
  0x32   :  { %1570 = vmatmul.mubr.msk.bf16.gmra.mrb[20].mxu0 %vm261_vm2, %v1642_v28  ;;  %1602 = vmatmul.mubr.msk.bf16.gmra.mrb[20].mxu1 %vm261_vm2, %v1643_v29 }
  0x33   :  { %1573 = vmatprep.mubr.msk.bf16.mxu0 %vm261_vm2, %v1644_v30  ;;  %1605 = vmatprep.mubr.msk.bf16.mxu1 %vm261_vm2, %v1645_v31 }
  0x3a   :  { %1574 = vmatmul.mubr.msk.bf16.gmra.mrb[24].mxu0 %vm261_vm2, %v1646_v32  ;;  %1606 = vmatmul.mubr.msk.bf16.gmra.mrb[24].mxu1 %vm261_vm2, %v1647_v33 }
  0x3b   :  { %1577 = vmatprep.mubr.msk.bf16.mxu0 %vm261_vm2, %v1648_v34  ;;  %1609 = vmatprep.mubr.msk.bf16.mxu1 %vm261_vm2, %v1649_v35 }
  0x42   :  { %1578 = vmatmul.mubr.msk.bf16.gmra.mrb[28].mxu0 %vm261_vm2, %v1650_v36  ;;  %1610 = vmatmul.mubr.msk.bf16.gmra.mrb[28].mxu1 %vm261_vm2, %v1651_v37 }
  0xdd   :  { %v1551_v39 = vpop.f32.mrb[0].mxu0  ;;  %v1583_v41 = vpop.f32.mrb[0].mxu1 }
  0xde   :  { %v663_v42 = vmul.f32 %v1551_v39, %v1820_v38  ;;  %v695_v43 = vmul.f32 %v1583_v41, %v1820_v38  ;;  %v399_v44 = vpop.f32.mrb[1].mxu0  ;;  %v527_v45 = vpop.f32.mrb[1].mxu1 }
  0xdf   :  { %v661_v47 = vmul.f32 %v1820_v38, %v399_v44  ;;  %v693_v48 = vmul.f32 %v1820_v38, %v527_v45  ;;  %v1552_v49 = vpop.f32.mrb[2].mxu0  ;;  %v1584_v50 = vpop.f32.mrb[2].mxu1 }
  0xe0   :  { %v734_v51 = vadd.f32 %v1825_v40, %v663_v42  ;;  %v766_v52 = vadd.f32 %v1825_v40, %v695_v43  ;;  %v664_v53 = vmul.f32 %v1552_v49, %v1820_v38  ;;  %v696_v54 = vmul.f32 %v1584_v50, %v1820_v38  ;;  %v402_v55 = vpop.f32.mrb[3].mxu0  ;;  %v530_v56 = vpop.f32.mrb[3].mxu1 }
  0xe1   :  { %v732_v57 = vadd.f32 %v1825_v40, %v661_v47  ;;  %v764_v58 = vadd.f32 %v1825_v40, %v693_v48  ;;  %v662_v59 = vmul.f32 %v1820_v38, %v402_v55  ;;  %v694_v60 = vmul.f32 %v1820_v38, %v530_v56 }
  0xe2   :  { %vm799_vm4 = vcmp.ge.f32.partialorder %v734_v51, 0.0  ;;  %v864_v61 = vmul.f32 %v1832_v46, %v734_v51  ;;  %vm831_vm5 = vcmp.ge.f32.partialorder %v766_v52, 0.0  ;;  %v896_v62 = vmul.f32 %v1832_v46, %v766_v52 }
  0xe3   :  { %vm797_vm6 = vcmp.ge.f32.partialorder %v732_v57, 0.0  ;;  %v862_v63 = vmul.f32 %v1832_v46, %v732_v57  ;;  %vm829_vm7 = vcmp.ge.f32.partialorder %v764_v58, 0.0  ;;  %v894_v0 = vmul.f32 %v1832_v46, %v764_v58 }
  0xe4   :  { %v928_v1 = vsel %vm799_vm4, %v734_v51, %v864_v61  ;;  %v960_v2 = vsel %vm831_vm5, %v766_v52, %v896_v62  ;;  %v735_v3 = vadd.f32 %v1825_v40, %v664_v53  ;;  %v767_v4 = vadd.f32 %v1825_v40, %v696_v54 }
  0xe5   :  { %v1449_v5 = vpack.c.bf16 %v928_v1, %v928_v1  ;;  %v1481_v6 = vpack.c.bf16 %v960_v2, %v960_v2  ;;  %v926_v7 = vsel %vm797_vm6, %v732_v57, %v862_v63  ;;  %v958_v8 = vsel %vm829_vm7, %v764_v58, %v894_v0  ;;  %v1555_v9 = vpop.f32.mrb[4].mxu0  ;;  %v1587_v10 = vpop.f32.mrb[4].mxu1 }
  0xe6   :  { %v1447_v11 = vpack.c.bf16 %v926_v7, %v926_v7  ;;  %v1479_v12 = vpack.c.bf16 %v958_v8, %v958_v8  ;;  %vm800_vm8 = vcmp.ge.f32.partialorder %v735_v3, 0.0  ;;  %v865_v13 = vmul.f32 %v1832_v46, %v735_v3  ;;  %v415_v14 = vpop.f32.mrb[5].mxu0  ;;  %v543_v15 = vpop.f32.mrb[5].mxu1 }
  0xe7   :  { %1249 = vst.msk [vmem:[%s2418_s5 + $0x8] sm:$0xf] %vm1246_vm3, %v1449_v5  ;;  %1281 = vst.msk [vmem:[%s2418_s5 + $0x88] sm:$0xf] %vm1246_vm3, %v1481_v6  ;;  %vm832_vm9 = vcmp.ge.f32.partialorder %v767_v4, 0.0  ;;  %v897_v16 = vmul.f32 %v1832_v46, %v767_v4  ;;  %v733_v17 = vadd.f32 %v1825_v40, %v662_v59  ;;  %v765_v18 = vadd.f32 %v1825_v40, %v694_v60  ;;  %v1556_v19 = vpop.f32.mrb[6].mxu0 }
  0xe8   :  { %v1588_v20 = vpop.f32.mrb[6].mxu1  ;;  %1247 = vst.msk [vmem:[%s2418_s5] sm:$0xf] %vm1246_vm3, %v1447_v11  ;;  %1279 = vst.msk [vmem:[%s2418_s5 + $0x80] sm:$0xf] %vm1246_vm3, %v1479_v12  ;;  %v929_v21 = vsel %vm800_vm8, %v735_v3, %v865_v13  ;;  %v667_v22 = vmul.f32 %v1555_v9, %v1820_v38  ;;  %v699_v23 = vmul.f32 %v1587_v10, %v1820_v38  ;;  %v418_v25 = vpop.f32.mrb[7].mxu0 }
  0xe9   :  { %v665_v24 = vmul.f32 %v1820_v38, %v415_v14  ;;  %v546_v26 = vpop.f32.mrb[7].mxu1  ;;  %v1450_v27 = vpack.c.bf16 %v929_v21, %v929_v21  ;;  %v961_v28 = vsel %vm832_vm9, %v767_v4, %v897_v16  ;;  %vm798_vm10 = vcmp.ge.f32.partialorder %v733_v17, 0.0 }
  0xea   :  { %v863_v29 = vmul.f32 %v1832_v46, %v733_v17  ;;  %v1482_v30 = vpack.c.bf16 %v961_v28, %v961_v28  ;;  %vm830_vm11 = vcmp.ge.f32.partialorder %v765_v18, 0.0  ;;  %v895_v31 = vmul.f32 %v1832_v46, %v765_v18 }
  0xeb   :  { %v738_v32 = vadd.f32 %v1825_v40, %v667_v22  ;;  %1250 = vst.msk [vmem:[%s2418_s5 + $0xc] sm:$0xf] %vm1246_vm3, %v1450_v27  ;;  %v770_v34 = vadd.f32 %v1825_v40, %v699_v23  ;;  %v736_v35 = vadd.f32 %v1825_v40, %v665_v24  ;;  %v697_v36 = vmul.f32 %v1820_v38, %v543_v15 }
  0xec   :  { %v927_v33 = vsel %vm798_vm10, %v733_v17, %v863_v29  ;;  %1282 = vst.msk [vmem:[%s2418_s5 + $0x8c] sm:$0xf] %vm1246_vm3, %v1482_v30  ;;  %v959_v39 = vsel %vm830_vm11, %v765_v18, %v895_v31  ;;  %v668_v50 = vmul.f32 %v1556_v19, %v1820_v38  ;;  %v700_v55 = vmul.f32 %v1588_v20, %v1820_v38 }
  0xed   :  { %v1448_v37 = vpack.c.bf16 %v927_v33, %v927_v33  ;;  %vm803_vm12 = vcmp.ge.f32.partialorder %v738_v32, 0.0  ;;  %v868_v41 = vmul.f32 %v1832_v46, %v738_v32  ;;  %v1480_v42 = vpack.c.bf16 %v959_v39, %v959_v39  ;;  %v1559_v44 = vpop.f32.mrb[8].mxu0  ;;  %v1591_v45 = vpop.f32.mrb[8].mxu1 }
  0xee   :  { %vm835_vm13 = vcmp.ge.f32.partialorder %v770_v34, 0.0  ;;  %v900_v43 = vmul.f32 %v1832_v46, %v770_v34  ;;  %vm801_vm14 = vcmp.ge.f32.partialorder %v736_v35, 0.0  ;;  %v866_v48 = vmul.f32 %v1832_v46, %v736_v35  ;;  %v431_v51 = vpop.f32.mrb[9].mxu0  ;;  %v1896_v52 = vpop.f32.mrb[9].mxu1 }
  0xef   :  { %1248 = vst.msk [vmem:[%s2418_s5 + $0x4] sm:$0xf] %vm1246_vm3, %v1448_v37  ;;  %v932_v47 = vsel %vm803_vm12, %v738_v32, %v868_v41  ;;  %v768_v49 = vadd.f32 %v1825_v40, %v697_v36  ;;  %1280 = vst.msk [vmem:[%s2418_s5 + $0x84] sm:$0xf] %vm1246_vm3, %v1480_v42  ;;  %v666_v56 = vmul.f32 %v1820_v38, %v418_v25  ;;  %v1560_v57 = vpop.f32.mrb[10].mxu0  ;;  %v1592_v58 = vpop.f32.mrb[10].mxu1 }
  0xf0   :  { %v1453_v53 = vpack.c.bf16 %v932_v47, %v932_v47  ;;  %v964_v54 = vsel %vm835_vm13, %v770_v34, %v900_v43  ;;  %v930_v60 = vsel %vm801_vm14, %v736_v35, %v866_v48  ;;  %v1906_v62 = vpop.f32.mrb[11].mxu0  ;;  %v1908_v63 = vpop.f32.mrb[11].mxu1  ;;  %v739_v1 = vadd.f32 %v1825_v40, %v668_v50 }
  0xf1   :  { %v1485_v59 = vpack.c.bf16 %v964_v54, %v964_v54  ;;  %vm833_vm15 = vcmp.ge.f32.partialorder %v768_v49, 0.0  ;;  %v898_v61 = vmul.f32 %v1832_v46, %v768_v49  ;;  %v1451_v0 = vpack.c.bf16 %v930_v60, %v930_v60 }
  0xf2   :  { %1253 = vst.msk [vmem:[%s2418_s5 + $0x18] sm:$0xf] %vm1246_vm3, %v1453_v53  ;;  %v771_v2 = vadd.f32 %v1825_v40, %v700_v55  ;;  %v737_v3 = vadd.f32 %v1825_v40, %v666_v56  ;;  %v698_v5 = vmul.f32 %v1820_v38, %v546_v26  ;;  %v671_v6 = vmul.f32 %v1559_v44, %v1820_v38 }
  0xf3   :  { %1285 = vst.msk [vmem:[%s2418_s5 + $0x98] sm:$0xf] %vm1246_vm3, %v1485_v59  ;;  %v962_v4 = vsel %vm833_vm15, %v768_v49, %v898_v61  ;;  %v703_v7 = vmul.f32 %v1591_v45, %v1820_v38  ;;  %1251 = vst.msk [vmem:[%s2418_s5 + $0x10] sm:$0xf] %vm1246_vm3, %v1451_v0  ;;  %vm804_vm0 = vcmp.ge.f32.partialorder %v739_v1, 0.0  ;;  %v869_v9 = vmul.f32 %v1832_v46, %v739_v1 }
  0xf4   :  { %v1483_v8 = vpack.c.bf16 %v962_v4, %v962_v4  ;;  %vm836_vm1 = vcmp.ge.f32.partialorder %v771_v2, 0.0  ;;  %v901_v10 = vmul.f32 %v1832_v46, %v771_v2  ;;  %vm802_vm2 = vcmp.ge.f32.partialorder %v737_v3, 0.0 }
  0xf5   :  { %v867_v11 = vmul.f32 %v1832_v46, %v737_v3  ;;  %v769_v12 = vadd.f32 %v1825_v40, %v698_v5  ;;  %v933_v13 = vsel %vm804_vm0, %v739_v1, %v869_v9  ;;  %v742_v14 = vadd.f32 %v1825_v40, %v671_v6  ;;  %v1563_v17 = vpop.f32.mrb[12].mxu0  ;;  %v1939_v18 = vpop.f32.mrb[12].mxu1 }
  0xf6   :  { %1283 = vst.msk [vmem:[%s2418_s5 + $0x90] sm:$0xf] %vm1246_vm3, %v1483_v8  ;;  %v774_v15 = vadd.f32 %v1825_v40, %v703_v7  ;;  %v669_v16 = vmul.f32 %v1820_v38, %v431_v51  ;;  %v1454_v19 = vpack.c.bf16 %v933_v13, %v933_v13  ;;  %v965_v20 = vsel %vm836_vm1, %v771_v2, %v901_v10  ;;  %v1941_v22 = vpop.f32.mrb[13].mxu0  ;;  %v1943_v23 = vpop.f32.mrb[13].mxu1 }
  0xf7   :  { %v931_v21 = vsel %vm802_vm2, %v737_v3, %v867_v11  ;;  %vm834_vm4 = vcmp.ge.f32.partialorder %v769_v12, 0.0  ;;  %v1486_v24 = vpack.c.bf16 %v965_v20, %v965_v20  ;;  %v899_v26 = vmul.f32 %v1832_v46, %v769_v12  ;;  %v1946_v27 = vpop.f32.mrb[14].mxu0  ;;  %v1948_v28 = vpop.f32.mrb[14].mxu1 }
  0xf8   :  { %v1452_v25 = vpack.c.bf16 %v931_v21, %v931_v21  ;;  %vm807_vm5 = vcmp.ge.f32.partialorder %v742_v14, 0.0  ;;  %1254 = vst.msk [vmem:[%s2418_s5 + $0x1c] sm:$0xf] %vm1246_vm3, %v1454_v19  ;;  %v872_v29 = vmul.f32 %v1832_v46, %v742_v14  ;;  %vm839_vm6 = vcmp.ge.f32.partialorder %v774_v15, 0.0  ;;  %v1957_v32 = vpop.f32.mrb[15].mxu0  ;;  %v1959_v33 = vpop.f32.mrb[15].mxu1 }
  0xf9   :  { %v904_v30 = vmul.f32 %v1832_v46, %v774_v15  ;;  %v740_v31 = vadd.f32 %v1825_v40, %v669_v16  ;;  %1286 = vst.msk [vmem:[%s2418_s5 + $0x9c] sm:$0xf] %vm1246_vm3, %v1486_v24  ;;  %v963_v34 = vsel %vm834_vm4, %v769_v12, %v899_v26  ;;  %v701_v35 = vmul.f32 %v1820_v38, %v1896_v52 }
  0xfa   :  { %1252 = vst.msk [vmem:[%s2418_s5 + $0x14] sm:$0xf] %vm1246_vm3, %v1452_v25  ;;  %v672_v36 = vmul.f32 %v1560_v57, %v1820_v38  ;;  %v704_v37 = vmul.f32 %v1592_v58, %v1820_v38  ;;  %v1484_v39 = vpack.c.bf16 %v963_v34, %v963_v34  ;;  %v936_v41 = vsel %vm807_vm5, %v742_v14, %v872_v29 }
  0xfb   :  { %v968_v42 = vsel %vm839_vm6, %v774_v15, %v904_v30  ;;  %vm805_vm7 = vcmp.ge.f32.partialorder %v740_v31, 0.0  ;;  %v1457_v43 = vpack.c.bf16 %v936_v41, %v936_v41  ;;  %v870_v45 = vmul.f32 %v1832_v46, %v740_v31 }
  0xfc   :  { %v1489_v44 = vpack.c.bf16 %v968_v42, %v968_v42  ;;  %v772_v47 = vadd.f32 %v1825_v40, %v701_v35  ;;  %1284 = vst.msk [vmem:[%s2418_s5 + $0x94] sm:$0xf] %vm1246_vm3, %v1484_v39  ;;  %v743_v48 = vadd.f32 %v1825_v40, %v672_v36  ;;  %v775_v49 = vadd.f32 %v1825_v40, %v704_v37 }
  0xfd   :  { %v670_v50 = vmul.f32 %v1820_v38, %v1906_v62  ;;  %v702_v51 = vmul.f32 %v1820_v38, %v1908_v63  ;;  %1257 = vst.msk [vmem:[%s2418_s5 + $0x28] sm:$0xf] %vm1246_vm3, %v1457_v43  ;;  %v934_v52 = vsel %vm805_vm7, %v740_v31, %v870_v45  ;;  %v675_v54 = vmul.f32 %v1563_v17, %v1820_v38  ;;  %v1997_v55 = vpop.f32.mrb[16].mxu0  ;;  %v1999_v56 = vpop.f32.mrb[16].mxu1 }
  0xfe   :  { %1289 = vst.msk [vmem:[%s2418_s5 + $0xa8] sm:$0xf] %vm1246_vm3, %v1489_v44  ;;  %vm837_vm8 = vcmp.ge.f32.partialorder %v772_v47, 0.0  ;;  %v902_v53 = vmul.f32 %v1832_v46, %v772_v47  ;;  %v1455_v57 = vpack.c.bf16 %v934_v52, %v934_v52  ;;  %vm808_vm9 = vcmp.ge.f32.partialorder %v743_v48, 0.0  ;;  %v2002_v59 = vpop.f32.mrb[17].mxu0  ;;  %v2004_v60 = vpop.f32.mrb[17].mxu1 }
  0xff   :  { %v873_v58 = vmul.f32 %v1832_v46, %v743_v48  ;;  %vm840_vm10 = vcmp.ge.f32.partialorder %v775_v49, 0.0  ;;  %v905_v62 = vmul.f32 %v1832_v46, %v775_v49  ;;  %v741_v63 = vadd.f32 %v1825_v40, %v670_v50  ;;  %v2009_v1 = vpop.f32.mrb[18].mxu0  ;;  %v2011_v2 = vpop.f32.mrb[18].mxu1 }
 0x100   :  { %v966_v61 = vsel %vm837_vm8, %v772_v47, %v902_v53  ;;  %v773_v0 = vadd.f32 %v1825_v40, %v702_v51  ;;  %1255 = vst.msk [vmem:[%s2418_s5 + $0x20] sm:$0xf] %vm1246_vm3, %v1455_v57  ;;  %v746_v5 = vadd.f32 %v1825_v40, %v675_v54  ;;  %v707_v6 = vmul.f32 %v1939_v18, %v1820_v38  ;;  %v2020_v7 = vpop.f32.mrb[19].mxu0  ;;  %v2022_v8 = vpop.f32.mrb[19].mxu1 }
 0x101   :  { %v1487_v3 = vpack.c.bf16 %v966_v61, %v966_v61  ;;  %v937_v4 = vsel %vm808_vm9, %v743_v48, %v873_v58  ;;  %v969_v10 = vsel %vm840_vm10, %v775_v49, %v905_v62  ;;  %vm806_vm11 = vcmp.ge.f32.partialorder %v741_v63, 0.0 }
 0x102   :  { %v1458_v9 = vpack.c.bf16 %v937_v4, %v937_v4  ;;  %v871_v11 = vmul.f32 %v1832_v46, %v741_v63  ;;  %v1490_v12 = vpack.c.bf16 %v969_v10, %v969_v10  ;;  %vm838_vm12 = vcmp.ge.f32.partialorder %v773_v0, 0.0 }
 0x103   :  { %1287 = vst.msk [vmem:[%s2418_s5 + $0xa0] sm:$0xf] %vm1246_vm3, %v1487_v3  ;;  %v903_v13 = vmul.f32 %v1832_v46, %v773_v0  ;;  %vm811_vm13 = vcmp.ge.f32.partialorder %v746_v5, 0.0  ;;  %v876_v15 = vmul.f32 %v1832_v46, %v746_v5  ;;  %v778_v16 = vadd.f32 %v1825_v40, %v707_v6 }
 0x104   :  { %1258 = vst.msk [vmem:[%s2418_s5 + $0x2c] sm:$0xf] %vm1246_vm3, %v1458_v9  ;;  %v935_v14 = vsel %vm806_vm11, %v741_v63, %v871_v11  ;;  %v673_v17 = vmul.f32 %v1820_v38, %v1941_v22  ;;  %1290 = vst.msk [vmem:[%s2418_s5 + $0xac] sm:$0xf] %vm1246_vm3, %v1490_v12  ;;  %v705_v20 = vmul.f32 %v1820_v38, %v1943_v23 }
 0x105   :  { %v1456_v18 = vpack.c.bf16 %v935_v14, %v935_v14  ;;  %v967_v19 = vsel %vm838_vm12, %v773_v0, %v903_v13  ;;  %v676_v21 = vmul.f32 %v1946_v27, %v1820_v38  ;;  %v940_v25 = vsel %vm811_vm13, %v746_v5, %v876_v15  ;;  %v2048_v29 = vpop.f32.mrb[20].mxu0  ;;  %v2050_v22 = vpop.f32.mrb[20].mxu1 }
 0x106   :  { %v1488_v24 = vpack.c.bf16 %v967_v19, %v967_v19  ;;  %vm843_vm14 = vcmp.ge.f32.partialorder %v778_v16, 0.0  ;;  %v908_v26 = vmul.f32 %v1832_v46, %v778_v16  ;;  %v1461_v30 = vpack.c.bf16 %v940_v25, %v940_v25  ;;  %v2059_v34 = vpop.f32.mrb[21].mxu0  ;;  %v2061_v35 = vpop.f32.mrb[21].mxu1 }
 0x107   :  { %1256 = vst.msk [vmem:[%s2418_s5 + $0x24] sm:$0xf] %vm1246_vm3, %v1456_v18  ;;  %v744_v23 = vadd.f32 %v1825_v40, %v673_v17  ;;  %v776_v31 = vadd.f32 %v1825_v40, %v705_v20  ;;  %v747_v27 = vadd.f32 %v1825_v40, %v676_v21  ;;  %v708_v37 = vmul.f32 %v1948_v28, %v1820_v38  ;;  %v2073_v42 = vpop.f32.mrb[22].mxu0  ;;  %v2075_v43 = vpop.f32.mrb[22].mxu1 }
 0x108   :  { %1288 = vst.msk [vmem:[%s2418_s5 + $0xa4] sm:$0xf] %vm1246_vm3, %v1488_v24  ;;  %v972_v36 = vsel %vm843_vm14, %v778_v16, %v908_v26  ;;  %v674_v39 = vmul.f32 %v1820_v38, %v1957_v32  ;;  %v706_v41 = vmul.f32 %v1820_v38, %v1959_v33  ;;  %1261 = vst.msk [vmem:[%s2418_s5 + $0x38] sm:$0xf] %vm1246_vm3, %v1461_v30  ;;  %v2082_v28 = vpop.f32.mrb[23].mxu0  ;;  %v2084_v32 = vpop.f32.mrb[23].mxu1 }
 0x109   :  { %v1493_v44 = vpack.c.bf16 %v972_v36, %v972_v36  ;;  %vm809_vm15 = vcmp.ge.f32.partialorder %v744_v23, 0.0  ;;  %v874_v45 = vmul.f32 %v1832_v46, %v744_v23  ;;  %vm841_vm0 = vcmp.ge.f32.partialorder %v776_v31, 0.0 }
 0x10a   :  { %v906_v33 = vmul.f32 %v1832_v46, %v776_v31  ;;  %vm812_vm1 = vcmp.ge.f32.partialorder %v747_v27, 0.0  ;;  %v877_v47 = vmul.f32 %v1832_v46, %v747_v27  ;;  %v779_v48 = vadd.f32 %v1825_v40, %v708_v37 }
 0x10b   :  { %1293 = vst.msk [vmem:[%s2418_s5 + $0xb8] sm:$0xf] %vm1246_vm3, %v1493_v44  ;;  %v938_v49 = vsel %vm809_vm15, %v744_v23, %v874_v45  ;;  %v745_v50 = vadd.f32 %v1825_v40, %v674_v39  ;;  %v777_v51 = vadd.f32 %v1825_v40, %v706_v41  ;;  %v679_v52 = vmul.f32 %v1997_v55, %v1820_v38 }
 0x10c   :  { %v1459_v53 = vpack.c.bf16 %v938_v49, %v938_v49  ;;  %v970_v54 = vsel %vm841_vm0, %v776_v31, %v906_v33  ;;  %v941_v57 = vsel %vm812_vm1, %v747_v27, %v877_v47  ;;  %vm844_vm2 = vcmp.ge.f32.partialorder %v779_v48, 0.0 }
 0x10d   :  { %v1491_v58 = vpack.c.bf16 %v970_v54, %v970_v54  ;;  %v1462_v61 = vpack.c.bf16 %v941_v57, %v941_v57  ;;  %v909_v62 = vmul.f32 %v1832_v46, %v779_v48  ;;  %vm810_vm4 = vcmp.ge.f32.partialorder %v745_v50, 0.0  ;;  %v2105_v3 = vpop.f32.mrb[24].mxu0  ;;  %v2107_v4 = vpop.f32.mrb[24].mxu1 }
 0x10e   :  { %1259 = vst.msk [vmem:[%s2418_s5 + $0x30] sm:$0xf] %vm1246_vm3, %v1459_v53  ;;  %v875_v63 = vmul.f32 %v1832_v46, %v745_v50  ;;  %vm842_vm5 = vcmp.ge.f32.partialorder %v777_v51, 0.0  ;;  %v907_v0 = vmul.f32 %v1832_v46, %v777_v51  ;;  %v750_v55 = vadd.f32 %v1825_v40, %v679_v52  ;;  %v2123_v11 = vpop.f32.mrb[25].mxu0  ;;  %v2125_v12 = vpop.f32.mrb[25].mxu1 }
 0x10f   :  { %1291 = vst.msk [vmem:[%s2418_s5 + $0xb0] sm:$0xf] %vm1246_vm3, %v1491_v58  ;;  %1262 = vst.msk [vmem:[%s2418_s5 + $0x3c] sm:$0xf] %vm1246_vm3, %v1462_v61  ;;  %v973_v5 = vsel %vm844_vm2, %v779_v48, %v909_v62  ;;  %v711_v6 = vmul.f32 %v1999_v56, %v1820_v38  ;;  %v677_v9 = vmul.f32 %v1820_v38, %v2002_v59  ;;  %v2128_v16 = vpop.f32.mrb[26].mxu0  ;;  %v2130_v17 = vpop.f32.mrb[26].mxu1 }
 0x110   :  { %v709_v10 = vmul.f32 %v1820_v38, %v2004_v60  ;;  %v1494_v13 = vpack.c.bf16 %v973_v5, %v973_v5  ;;  %v939_v14 = vsel %vm810_vm4, %v745_v50, %v875_v63  ;;  %v971_v15 = vsel %vm842_vm5, %v777_v51, %v907_v0  ;;  %v2134_v60 = vpop.f32.mrb[27].mxu0  ;;  %v2136_v20 = vpop.f32.mrb[27].mxu1 }
 0x111   :  { %vm815_vm6 = vcmp.ge.f32.partialorder %v750_v55, 0.0  ;;  %v1460_v56 = vpack.c.bf16 %v939_v14, %v939_v14  ;;  %v1492_v18 = vpack.c.bf16 %v971_v15, %v971_v15  ;;  %v880_v59 = vmul.f32 %v1832_v46, %v750_v55 }
 0x112   :  { %v782_v19 = vadd.f32 %v1825_v40, %v711_v6  ;;  %1294 = vst.msk [vmem:[%s2418_s5 + $0xbc] sm:$0xf] %vm1246_vm3, %v1494_v13  ;;  %v748_v21 = vadd.f32 %v1825_v40, %v677_v9  ;;  %v780_v24 = vadd.f32 %v1825_v40, %v709_v10  ;;  %v680_v25 = vmul.f32 %v2009_v1, %v1820_v38 }
 0x113   :  { %v712_v26 = vmul.f32 %v2011_v2, %v1820_v38  ;;  %1260 = vst.msk [vmem:[%s2418_s5 + $0x34] sm:$0xf] %vm1246_vm3, %v1460_v56  ;;  %1292 = vst.msk [vmem:[%s2418_s5 + $0xb4] sm:$0xf] %vm1246_vm3, %v1492_v18  ;;  %v944_v30 = vsel %vm815_vm6, %v750_v55, %v880_v59  ;;  %v678_v1 = vmul.f32 %v1820_v38, %v2020_v7 }
 0x114   :  { %vm847_vm7 = vcmp.ge.f32.partialorder %v782_v19, 0.0  ;;  %v912_v23 = vmul.f32 %v1832_v46, %v782_v19  ;;  %v1465_v31 = vpack.c.bf16 %v944_v30, %v944_v30  ;;  %vm813_vm8 = vcmp.ge.f32.partialorder %v748_v21, 0.0 }
 0x115   :  { %v878_v2 = vmul.f32 %v1832_v46, %v748_v21  ;;  %vm845_vm9 = vcmp.ge.f32.partialorder %v780_v24, 0.0  ;;  %v910_v36 = vmul.f32 %v1832_v46, %v780_v24  ;;  %v751_v37 = vadd.f32 %v1825_v40, %v680_v25  ;;  %v2171_v33 = vpop.f32.mrb[28].mxu0  ;;  %v2173_v47 = vpop.f32.mrb[28].mxu1 }
 0x116   :  { %v976_v27 = vsel %vm847_vm7, %v782_v19, %v912_v23  ;;  %v783_v39 = vadd.f32 %v1825_v40, %v712_v26  ;;  %1265 = vst.msk [vmem:[%s2418_s5 + $0x48] sm:$0xf] %vm1246_vm3, %v1465_v31  ;;  %v749_v7 = vadd.f32 %v1825_v40, %v678_v1  ;;  %v710_v45 = vmul.f32 %v1820_v38, %v2022_v8  ;;  %v2176_v51 = vpop.f32.mrb[29].mxu0  ;;  %v2178_v52 = vpop.f32.mrb[29].mxu1 }
 0x117   :  { %v1497_v41 = vpack.c.bf16 %v976_v27, %v976_v27  ;;  %v942_v44 = vsel %vm813_vm8, %v748_v21, %v878_v2  ;;  %v974_v49 = vsel %vm845_vm9, %v780_v24, %v910_v36  ;;  %vm816_vm10 = vcmp.ge.f32.partialorder %v751_v37, 0.0  ;;  %v2185_v54 = vpop.f32.mrb[30].mxu0  ;;  %v2187_v57 = vpop.f32.mrb[30].mxu1 }
 0x118   :  { %v1463_v48 = vpack.c.bf16 %v942_v44, %v942_v44  ;;  %v881_v50 = vmul.f32 %v1832_v46, %v751_v37  ;;  %v1495_v53 = vpack.c.bf16 %v974_v49, %v974_v49  ;;  %vm848_vm11 = vcmp.ge.f32.partialorder %v783_v39, 0.0  ;;  %v2197_v0 = vpop.f32.mrb[31].mxu0  ;;  %v2199_v55 = vpop.f32.mrb[31].mxu1 }
 0x119   :  { %1297 = vst.msk [vmem:[%s2418_s5 + $0xc8] sm:$0xf] %vm1246_vm3, %v1497_v41  ;;  %v913_v8 = vmul.f32 %v1832_v46, %v783_v39  ;;  %vm814_vm12 = vcmp.ge.f32.partialorder %v749_v7, 0.0  ;;  %v879_v61 = vmul.f32 %v1832_v46, %v749_v7  ;;  %v781_v62 = vadd.f32 %v1825_v40, %v710_v45 }
 0x11a   :  { %1263 = vst.msk [vmem:[%s2418_s5 + $0x40] sm:$0xf] %vm1246_vm3, %v1463_v48  ;;  %v945_v58 = vsel %vm816_vm10, %v751_v37, %v881_v50  ;;  %v683_v63 = vmul.f32 %v2048_v29, %v1820_v38  ;;  %1295 = vst.msk [vmem:[%s2418_s5 + $0xc0] sm:$0xf] %vm1246_vm3, %v1495_v53  ;;  %v715_v9 = vmul.f32 %v2050_v22, %v1820_v38 }
 0x11b   :  { %v1466_v5 = vpack.c.bf16 %v945_v58, %v945_v58  ;;  %v977_v6 = vsel %vm848_vm11, %v783_v39, %v913_v8  ;;  %v681_v10 = vmul.f32 %v1820_v38, %v2059_v34  ;;  %v943_v29 = vsel %vm814_vm12, %v749_v7, %v879_v61 }
 0x11c   :  { %v1498_v13 = vpack.c.bf16 %v977_v6, %v977_v6  ;;  %vm846_vm13 = vcmp.ge.f32.partialorder %v781_v62, 0.0  ;;  %v911_v14 = vmul.f32 %v1832_v46, %v781_v62  ;;  %v1464_v15 = vpack.c.bf16 %v943_v29, %v943_v29 }
 0x11d   :  { %1266 = vst.msk [vmem:[%s2418_s5 + $0x4c] sm:$0xf] %vm1246_vm3, %v1466_v5  ;;  %v754_v56 = vadd.f32 %v1825_v40, %v683_v63  ;;  %v786_v18 = vadd.f32 %v1825_v40, %v715_v9  ;;  %v752_v22 = vadd.f32 %v1825_v40, %v681_v10  ;;  %v713_v59 = vmul.f32 %v1820_v38, %v2061_v35 }
 0x11e   :  { %1298 = vst.msk [vmem:[%s2418_s5 + $0xcc] sm:$0xf] %vm1246_vm3, %v1498_v13  ;;  %v975_v34 = vsel %vm846_vm13, %v781_v62, %v911_v14  ;;  %v684_v19 = vmul.f32 %v2073_v42, %v1820_v38  ;;  %v716_v21 = vmul.f32 %v2075_v43, %v1820_v38  ;;  %1264 = vst.msk [vmem:[%s2418_s5 + $0x44] sm:$0xf] %vm1246_vm3, %v1464_v15 }
 0x11f   :  { %v1496_v24 = vpack.c.bf16 %v975_v34, %v975_v34  ;;  %vm819_vm14 = vcmp.ge.f32.partialorder %v754_v56, 0.0  ;;  %v884_v25 = vmul.f32 %v1832_v46, %v754_v56  ;;  %vm851_vm15 = vcmp.ge.f32.partialorder %v786_v18, 0.0 }
 0x120   :  { %v916_v26 = vmul.f32 %v1832_v46, %v786_v18  ;;  %vm817_vm0 = vcmp.ge.f32.partialorder %v752_v22, 0.0  ;;  %v882_v35 = vmul.f32 %v1832_v46, %v752_v22  ;;  %v784_v42 = vadd.f32 %v1825_v40, %v713_v59 }
 0x121   :  { %1296 = vst.msk [vmem:[%s2418_s5 + $0xc4] sm:$0xf] %vm1246_vm3, %v1496_v24  ;;  %v948_v43 = vsel %vm819_vm14, %v754_v56, %v884_v25  ;;  %v755_v30 = vadd.f32 %v1825_v40, %v684_v19  ;;  %v787_v23 = vadd.f32 %v1825_v40, %v716_v21  ;;  %v682_v1 = vmul.f32 %v1820_v38, %v2082_v28 }
 0x122   :  { %v1469_v31 = vpack.c.bf16 %v948_v43, %v948_v43  ;;  %v980_v2 = vsel %vm851_vm15, %v786_v18, %v916_v26  ;;  %v946_v27 = vsel %vm817_vm0, %v752_v22, %v882_v35  ;;  %vm849_vm1 = vcmp.ge.f32.partialorder %v784_v42, 0.0 }
 0x123   :  { %v1501_v36 = vpack.c.bf16 %v980_v2, %v980_v2  ;;  %v1467_v37 = vpack.c.bf16 %v946_v27, %v946_v27  ;;  %v914_v39 = vmul.f32 %v1832_v46, %v784_v42  ;;  %vm820_vm2 = vcmp.ge.f32.partialorder %v755_v30, 0.0 }
 0x124   :  { %1269 = vst.msk [vmem:[%s2418_s5 + $0x58] sm:$0xf] %vm1246_vm3, %v1469_v31  ;;  %v885_v41 = vmul.f32 %v1832_v46, %v755_v30  ;;  %vm852_vm4 = vcmp.ge.f32.partialorder %v787_v23, 0.0  ;;  %v917_v44 = vmul.f32 %v1832_v46, %v787_v23  ;;  %v753_v28 = vadd.f32 %v1825_v40, %v682_v1 }
 0x125   :  { %1301 = vst.msk [vmem:[%s2418_s5 + $0xd8] sm:$0xf] %vm1246_vm3, %v1501_v36  ;;  %1267 = vst.msk [vmem:[%s2418_s5 + $0x50] sm:$0xf] %vm1246_vm3, %v1467_v37  ;;  %v978_v7 = vsel %vm849_vm1, %v784_v42, %v914_v39  ;;  %v714_v45 = vmul.f32 %v1820_v38, %v2084_v32  ;;  %v687_v48 = vmul.f32 %v2105_v3, %v1820_v38 }
 0x126   :  { %v719_v49 = vmul.f32 %v2107_v4, %v1820_v38  ;;  %v1499_v50 = vpack.c.bf16 %v978_v7, %v978_v7  ;;  %v949_v53 = vsel %vm820_vm2, %v755_v30, %v885_v41  ;;  %v981_v8 = vsel %vm852_vm4, %v787_v23, %v917_v44 }
 0x127   :  { %vm818_vm5 = vcmp.ge.f32.partialorder %v753_v28, 0.0  ;;  %v1470_v58 = vpack.c.bf16 %v949_v53, %v949_v53  ;;  %v1502_v61 = vpack.c.bf16 %v981_v8, %v981_v8  ;;  %v883_v62 = vmul.f32 %v1832_v46, %v753_v28 }
 0x128   :  { %v785_v63 = vadd.f32 %v1825_v40, %v714_v45  ;;  %1299 = vst.msk [vmem:[%s2418_s5 + $0xd0] sm:$0xf] %vm1246_vm3, %v1499_v50  ;;  %v758_v32 = vadd.f32 %v1825_v40, %v687_v48  ;;  %v790_v3 = vadd.f32 %v1825_v40, %v719_v49  ;;  %v685_v4 = vmul.f32 %v1820_v38, %v2123_v11 }
 0x129   :  { %v717_v5 = vmul.f32 %v1820_v38, %v2125_v12  ;;  %1270 = vst.msk [vmem:[%s2418_s5 + $0x5c] sm:$0xf] %vm1246_vm3, %v1470_v58  ;;  %1302 = vst.msk [vmem:[%s2418_s5 + $0xdc] sm:$0xf] %vm1246_vm3, %v1502_v61  ;;  %v947_v6 = vsel %vm818_vm5, %v753_v28, %v883_v62  ;;  %v688_v11 = vmul.f32 %v2128_v16, %v1820_v38 }
 0x12a   :  { %vm850_vm6 = vcmp.ge.f32.partialorder %v785_v63, 0.0  ;;  %v915_v9 = vmul.f32 %v1832_v46, %v785_v63  ;;  %v1468_v10 = vpack.c.bf16 %v947_v6, %v947_v6  ;;  %vm823_vm7 = vcmp.ge.f32.partialorder %v758_v32, 0.0 }
 0x12b   :  { %v888_v12 = vmul.f32 %v1832_v46, %v758_v32  ;;  %vm855_vm8 = vcmp.ge.f32.partialorder %v790_v3, 0.0  ;;  %v920_v29 = vmul.f32 %v1832_v46, %v790_v3  ;;  %v756_v14 = vadd.f32 %v1825_v40, %v685_v4 }
 0x12c   :  { %v979_v13 = vsel %vm850_vm6, %v785_v63, %v915_v9  ;;  %v788_v15 = vadd.f32 %v1825_v40, %v717_v5  ;;  %1268 = vst.msk [vmem:[%s2418_s5 + $0x54] sm:$0xf] %vm1246_vm3, %v1468_v10  ;;  %v759_v16 = vadd.f32 %v1825_v40, %v688_v11  ;;  %v720_v22 = vmul.f32 %v2130_v17, %v1820_v38 }
 0x12d   :  { %v1500_v56 = vpack.c.bf16 %v979_v13, %v979_v13  ;;  %v952_v18 = vsel %vm823_vm7, %v758_v32, %v888_v12  ;;  %v984_v59 = vsel %vm855_vm8, %v790_v3, %v920_v29  ;;  %vm821_vm9 = vcmp.ge.f32.partialorder %v756_v14, 0.0 }
 0x12e   :  { %v1473_v34 = vpack.c.bf16 %v952_v18, %v952_v18  ;;  %v886_v19 = vmul.f32 %v1832_v46, %v756_v14  ;;  %v1505_v21 = vpack.c.bf16 %v984_v59, %v984_v59  ;;  %vm853_vm10 = vcmp.ge.f32.partialorder %v788_v15, 0.0 }
 0x12f   :  { %1300 = vst.msk [vmem:[%s2418_s5 + $0xd4] sm:$0xf] %vm1246_vm3, %v1500_v56  ;;  %v918_v24 = vmul.f32 %v1832_v46, %v788_v15  ;;  %vm824_vm11 = vcmp.ge.f32.partialorder %v759_v16, 0.0  ;;  %v889_v25 = vmul.f32 %v1832_v46, %v759_v16  ;;  %v791_v26 = vadd.f32 %v1825_v40, %v720_v22 }
 0x130   :  { %1273 = vst.msk [vmem:[%s2418_s5 + $0x68] sm:$0xf] %vm1246_vm3, %v1473_v34  ;;  %v950_v17 = vsel %vm821_vm9, %v756_v14, %v886_v19  ;;  %v686_v35 = vmul.f32 %v1820_v38, %v2134_v60  ;;  %1305 = vst.msk [vmem:[%s2418_s5 + $0xe8] sm:$0xf] %vm1246_vm3, %v1505_v21  ;;  %v718_v30 = vmul.f32 %v1820_v38, %v2136_v20 }
 0x131   :  { %v1471_v42 = vpack.c.bf16 %v950_v17, %v950_v17  ;;  %v982_v43 = vsel %vm853_vm10, %v788_v15, %v918_v24  ;;  %v691_v23 = vmul.f32 %v2171_v33, %v1820_v38  ;;  %v953_v31 = vsel %vm824_vm11, %v759_v16, %v889_v25 }
 0x132   :  { %v1503_v1 = vpack.c.bf16 %v982_v43, %v982_v43  ;;  %vm856_vm12 = vcmp.ge.f32.partialorder %v791_v26, 0.0  ;;  %v921_v2 = vmul.f32 %v1832_v46, %v791_v26  ;;  %v1474_v60 = vpack.c.bf16 %v953_v31, %v953_v31 }
 0x133   :  { %1271 = vst.msk [vmem:[%s2418_s5 + $0x60] sm:$0xf] %vm1246_vm3, %v1471_v42  ;;  %v757_v27 = vadd.f32 %v1825_v40, %v686_v35  ;;  %v789_v36 = vadd.f32 %v1825_v40, %v718_v30  ;;  %v762_v20 = vadd.f32 %v1825_v40, %v691_v23  ;;  %v723_v37 = vmul.f32 %v2173_v47, %v1820_v38 }
 0x134   :  { %1303 = vst.msk [vmem:[%s2418_s5 + $0xe0] sm:$0xf] %vm1246_vm3, %v1503_v1  ;;  %v985_v33 = vsel %vm856_vm12, %v791_v26, %v921_v2  ;;  %v689_v39 = vmul.f32 %v1820_v38, %v2176_v51  ;;  %v721_v41 = vmul.f32 %v1820_v38, %v2178_v52  ;;  %1274 = vst.msk [vmem:[%s2418_s5 + $0x6c] sm:$0xf] %vm1246_vm3, %v1474_v60 }
 0x135   :  { %v1506_v44 = vpack.c.bf16 %v985_v33, %v985_v33  ;;  %vm822_vm13 = vcmp.ge.f32.partialorder %v757_v27, 0.0  ;;  %v887_v28 = vmul.f32 %v1832_v46, %v757_v27  ;;  %vm854_vm14 = vcmp.ge.f32.partialorder %v789_v36, 0.0 }
 0x136   :  { %v919_v7 = vmul.f32 %v1832_v46, %v789_v36  ;;  %vm827_vm15 = vcmp.ge.f32.partialorder %v762_v20, 0.0  ;;  %v892_v47 = vmul.f32 %v1832_v46, %v762_v20  ;;  %v794_v51 = vadd.f32 %v1825_v40, %v723_v37 }
 0x137   :  { %1306 = vst.msk [vmem:[%s2418_s5 + $0xec] sm:$0xf] %vm1246_vm3, %v1506_v44  ;;  %v951_v52 = vsel %vm822_vm13, %v757_v27, %v887_v28  ;;  %v760_v45 = vadd.f32 %v1825_v40, %v689_v39  ;;  %v792_v48 = vadd.f32 %v1825_v40, %v721_v41  ;;  %v692_v49 = vmul.f32 %v2185_v54, %v1820_v38 }
 0x138   :  { %v1472_v50 = vpack.c.bf16 %v951_v52, %v951_v52  ;;  %v983_v53 = vsel %vm854_vm14, %v789_v36, %v919_v7  ;;  %v956_v8 = vsel %vm827_vm15, %v762_v20, %v892_v47  ;;  %vm859_vm0 = vcmp.ge.f32.partialorder %v794_v51, 0.0 }
 0x139   :  { %v1504_v58 = vpack.c.bf16 %v983_v53, %v983_v53  ;;  %v1477_v61 = vpack.c.bf16 %v956_v8, %v956_v8  ;;  %v924_v62 = vmul.f32 %v1832_v46, %v794_v51  ;;  %vm825_vm1 = vcmp.ge.f32.partialorder %v760_v45, 0.0 }
 0x13a   :  { %1272 = vst.msk [vmem:[%s2418_s5 + $0x64] sm:$0xf] %vm1246_vm3, %v1472_v50  ;;  %v890_v63 = vmul.f32 %v1832_v46, %v760_v45  ;;  %vm857_vm2 = vcmp.ge.f32.partialorder %v792_v48, 0.0  ;;  %v922_v32 = vmul.f32 %v1832_v46, %v792_v48  ;;  %v763_v54 = vadd.f32 %v1825_v40, %v692_v49 }
 0x13b   :  { %1304 = vst.msk [vmem:[%s2418_s5 + $0xe4] sm:$0xf] %vm1246_vm3, %v1504_v58  ;;  %1277 = vst.msk [vmem:[%s2418_s5 + $0x78] sm:$0xf] %vm1246_vm3, %v1477_v61  ;;  %v988_v3 = vsel %vm859_vm0, %v794_v51, %v924_v62  ;;  %v724_v4 = vmul.f32 %v2187_v57, %v1820_v38  ;;  %v690_v5 = vmul.f32 %v1820_v38, %v2197_v0 }
 0x13c   :  { %v722_v6 = vmul.f32 %v1820_v38, %v2199_v55  ;;  %v1509_v9 = vpack.c.bf16 %v988_v3, %v988_v3  ;;  %v954_v11 = vsel %vm825_vm1, %v760_v45, %v890_v63  ;;  %v986_v10 = vsel %vm857_vm2, %v792_v48, %v922_v32 }
 0x13d   :  { %vm828_vm4 = vcmp.ge.f32.partialorder %v763_v54, 0.0  ;;  %v1475_v12 = vpack.c.bf16 %v954_v11, %v954_v11  ;;  %v1507_v13 = vpack.c.bf16 %v986_v10, %v986_v10  ;;  %v893_v29 = vmul.f32 %v1832_v46, %v763_v54 }
 0x13e   :  { %v795_v14 = vadd.f32 %v1825_v40, %v724_v4  ;;  %1309 = vst.msk [vmem:[%s2418_s5 + $0xf8] sm:$0xf] %vm1246_vm3, %v1509_v9  ;;  %v761_v57 = vadd.f32 %v1825_v40, %v690_v5  ;;  %v793_v0 = vadd.f32 %v1825_v40, %v722_v6 }
 0x13f   :  { %1275 = vst.msk [vmem:[%s2418_s5 + $0x70] sm:$0xf] %vm1246_vm3, %v1475_v12  ;;  %1307 = vst.msk [vmem:[%s2418_s5 + $0xf0] sm:$0xf] %vm1246_vm3, %v1507_v13  ;;  %v957_v38 = vsel %vm828_vm4, %v763_v54, %v893_v29 }
 0x140   :  { %vm860_vm5 = vcmp.ge.f32.partialorder %v795_v14, 0.0  ;;  %v925_v55 = vmul.f32 %v1832_v46, %v795_v14  ;;  %v1478_v15 = vpack.c.bf16 %v957_v38, %v957_v38  ;;  %vm826_vm6 = vcmp.ge.f32.partialorder %v761_v57, 0.0 }
 0x141   :  { %v891_v56 = vmul.f32 %v1832_v46, %v761_v57  ;;  %vm858_vm7 = vcmp.ge.f32.partialorder %v793_v0, 0.0  ;;  %v923_v18 = vmul.f32 %v1832_v46, %v793_v0 }
 0x142   :  { %v989_v40 = vsel %vm860_vm5, %v795_v14, %v925_v55  ;;  %1278 = vst.msk [vmem:[%s2418_s5 + $0x7c] sm:$0xf] %vm1246_vm3, %v1478_v15 }
 0x143   :  { %v1510_v16 = vpack.c.bf16 %v989_v40, %v989_v40  ;;  %v955_v22 = vsel %vm826_vm6, %v761_v57, %v891_v56  ;;  %v987_v59 = vsel %vm858_vm7, %v793_v0, %v923_v18 }
 0x144   :  { %v1476_v34 = vpack.c.bf16 %v955_v22, %v955_v22  ;;  %v1508_v19 = vpack.c.bf16 %v987_v59, %v987_v59 }
 0x145   :  { %1310 = vst.msk [vmem:[%s2418_s5 + $0xfc] sm:$0xf] %vm1246_vm3, %v1510_v16 }
 0x146   :  { %1276 = vst.msk [vmem:[%s2418_s5 + $0x74] sm:$0xf] %vm1246_vm3, %v1476_v34  ;;  %1308 = vst.msk [vmem:[%s2418_s5 + $0xf4] sm:$0xf] %vm1246_vm3, %v1508_v19 }

// kernel: _lambda_.5
= control target key start
LH: loop header
LB: loop body
LE: loop exit
PB: predicated region body
PF: predicated region fallthrough
CT: control target
= control target key end

     0   :  { %16 = vsyncpa [#allocation3], 0  ;;  %s12107_s0 = inlined_call_operand.vmem [shape: bf16[128,32], index: 0, kind: input, shape index: {}]   ;;  %s12108_s1 = inlined_call_operand.vmem [shape: f32[128,4], index: 1, kind: input, shape index: {}]   ;;  %s12109_s2 = inlined_call_operand.vmem [shape: bf16[288,32], index: 2, kind: input, shape index: {}]   ;;  %s12110_s3 = inlined_call_operand.vmem [shape: f32[1,32], index: 3, kind: input, shape index: {}, may-alias: {3,6}]   ;;  %s12111_s4 = inlined_call_operand.vmem [shape: f32[1,32], index: 4, kind: input, shape index: {}]   ;;  %s12112_s5 = inlined_call_operand.vmem [shape: bf16[288,32], index: 5, kind: input, shape index: {}]   ;;  %s12113_s6 = inlined_call_operand.vmem [shape: f32[1,32], index: 6, kind: input, shape index: {}, may-alias: {3,6}]   ;;  %s12114_s7 = inlined_call_operand.vmem [shape: f32[1,32], index: 7, kind: input, shape index: {}]   ;;  %s12115_s8 = inlined_call_operand.vmem [shape: bf16[288,4], index: 8, kind: input, shape index: {}]   ;;  %s12116_s9 = inlined_call_operand.vmem [shape: f32[1,4], index: 9, kind: input, shape index: {}]   ;;  %s12117_s10 = inlined_call_operand.vmem [shape: f32[2], index: 10, kind: input, shape index: {}]   ;;  %s12118_s11 = inlined_call_operand.vmem [shape: f32[128,4], index: 11, kind: output, shape index: {}]  }
   0x1   :  { %s43_s19 = sshll.u32 %s12117_s10, 4  ;;  %s44_s19 = int_to_ptr.vmem [resolvable:$true] %s43_s19 }
   0x2   :  { %s7817_s20 = scalar_lea.vmem %s44_s19, 16  ;;  %p7822_p1 = scmp.lt.s32.totalorder %s44_s19, %s44_s19 }
   0x3   :  { %p7818_p0 = scmp.ne.s32.totalorder %s44_s19, %s7817_s20  ;;  %p7823_p2 = scmp.lt.s32.totalorder %s7817_s20, %s7817_s20 }
   0x5   :  { %p7824_p3 = por %p7823_p2, %p7822_p1 }
   0x7   :  { %p7825_p4 = pnand %p7824_p3, %p7818_p0 }
   0x9   :  { %7828 = shalt.err (!%p7825_p4)
}
   0xa   :  { %s7831_s21 = smov [#allocation2]  }
   0xb   :  { %46 = dma.vmem_to_smem %s44_s19, 16, %s7831_s21, [#allocation3]  }
   0xc   :  { %7829 = dma.done.wait [#allocation3], 16  }
   0xd   :  { %7830 = vsyncadd [#allocation3], 4294967280 }
   0xe   :  { %50 = sfence }
   0xf   :  { %v7905_v0 = vld [vmem:[%s12108_s1 + $0x10] sm:$0xff]  ;;  %v7910_v1 = vld [vmem:[%s12108_s1] sm:$0xff]  ;;  %s7832_s25 = smov 126   ;;  %v7919_v2 = vld [vmem:[%s12108_s1 + $0x18] sm:$0xff]  ;;  %v12123_v4 = vmov 0   ;;  %v7834_v5 = vmov 3  }
  0x10   :  { %155 = vrot.lane.b32.xlu1 %v7905_v0, %s7832_s25  ;;  %151 = vrot.lane.b32.xlu0 %v7910_v1, %s7832_s25  ;;  %v7924_v3 = vld [vmem:[%s12108_s1 + $0x8] sm:$0xff]  ;;  %v7940_v7 = vld [vmem:[%s12108_s1 + $0x20] sm:$0xff]  ;;  %s7835_s27 = smov 127   ;;  %s7836_s17 = smov 125   ;;  %vm427_vm0 = vcmask 261120  }
  0x11   :  { %7603 = vset.pattern.permute.xlu1 %v12123_v4  ;;  %7605 = vset.pattern.permute.xlu0 %v7834_v5  ;;  %v7935_v6 = vld [vmem:[%s12108_s1 + $0x28] sm:$0xff]  ;;  %v7945_v8 = vld [vmem:[%s12108_s1 + $0x38] sm:$0xff]  ;;  %v7950_v9 = vld [vmem:[%s12108_s1 + $0x30] sm:$0xff]  ;;  %s2576_s13 = sld [smem:[#allocation2]] }
  0x12   :  { %v7959_v10 = vld [vmem:[%s12108_s1 + $0x48] sm:$0xff]  ;;  %v7964_v11 = vld [vmem:[%s12108_s1 + $0x40] sm:$0xff]  ;;  %v7977_v12 = vld [vmem:[%s12108_s1 + $0x58] sm:$0xff] }
  0x13   :  { %v7982_v13 = vld [vmem:[%s12108_s1 + $0x50] sm:$0xff]  ;;  %v7995_v14 = vld [vmem:[%s12108_s1 + $0x68] sm:$0xff]  ;;  %v8000_v15 = vld [vmem:[%s12108_s1 + $0x60] sm:$0xff] }
  0x14   :  { %157 = vrot.lane.b32.xlu1 %v7919_v2, %s7832_s25  ;;  %153 = vrot.lane.b32.xlu0 %v7924_v3, %s7832_s25  ;;  %v8013_v16 = vld [vmem:[%s12108_s1 + $0x78] sm:$0xff]  ;;  %v8018_v17 = vld [vmem:[%s12108_s1 + $0x70] sm:$0xff] }
  0x15   :  { %v7663_v18 = vld [vmem:[%s12109_s2 + $0x40] sm:$0xff]   ;;  %v7664_v19 = vld [vmem:[%s12109_s2 + $0x48] sm:$0xff]   ;;  %v8101_v22 = vld [vmem:[%s12107_s0 + $0x10] sm:$0xff]  }
  0x16   :  { %6731 = vmatprep.subr.bf16.mxu0 %v7663_v18  ;;  %v8083_v20 = vld [vmem:[%s12107_s0] sm:$0xff]   ;;  %v8088_v21 = vld [vmem:[%s12107_s0 + $0x8] sm:$0xff]   ;;  %v8107_v23 = vld [vmem:[%s12107_s0 + $0x18] sm:$0xff]  }
  0x17   :  { %6732 = vmatpush3.bf16.msra.mxu0 %v7663_v18  ;;  %6735 = vmatprep.mubr.msk.bf16.mxu0 %vm427_vm0, %v8083_v20  ;;  %v7670_v24 = vld [vmem:[%s12109_s2 + $0x50] sm:$0xff]   ;;  %v7671_v25 = vld [vmem:[%s12109_s2 + $0x58] sm:$0xff]   ;;  %v8233_v59 = vld [vmem:[%s12109_s2] sm:$0xff]  }
  0x18   :  { %161 = vrot.lane.b32.xlu1 %v7935_v6, %s7832_s25  ;;  %159 = vrot.lane.b32.xlu0 %v7940_v7, %s7832_s25  ;;  %v7672_v34 = vld [vmem:[%s12109_s2 + $0x10] sm:$0xff]   ;;  %v7673_v37 = vld [vmem:[%s12109_s2 + $0x18] sm:$0xff]  }
  0x19   :  { %6733 = vmatprep.subr.bf16.mxu0 %v7664_v19  ;;  %6651 = vmatprep.subr.bf16.mxu1 %v7672_v34 }
  0x1a   :  { %6652 = vmatpush3.bf16.msra.mxu1 %v7672_v34 }
  0x1b   :  { %6734 = vmatpush3.bf16.msra.mxu0 %v7664_v19  ;;  %6653 = vmatprep.subr.bf16.mxu1 %v7673_v37 }
  0x1c   :  { %165 = vrot.lane.b32.xlu1 %v7945_v8, %s7832_s25  ;;  %163 = vrot.lane.b32.xlu0 %v7950_v9, %s7832_s25 }
  0x1d   :  { %6751 = vmatprep.subr.bf16.mxu0 %v7670_v24 }
  0x1e   :  { %6736 = vmatmul.mubr.msk.bf16.vlgmr.msra.gmra.mrb[0].mxu0 %vm427_vm0, %v8088_v21  ;;  %6654 = vmatpush3.bf16.msra.mxu1 %v7673_v37 }
  0x1f   :  { %6739 = vmatprep.mubr.msk.bf16.mxu0 %vm427_vm0, %v8101_v22  ;;  %6752 = vmatpush3.bf16.msra.mxu0 %v7670_v24 }
  0x20   :  { %169 = vrot.lane.b32.xlu1 %v7959_v10, %s7832_s25  ;;  %167 = vrot.lane.b32.xlu0 %v7964_v11, %s7832_s25 }
  0x21   :  { %6753 = vmatprep.subr.bf16.mxu0 %v7671_v25  ;;  %6671 = vmatprep.subr.bf16.mxu1 %v8233_v59 }
  0x23   :  { %6754 = vmatpush3.bf16.msra.mxu0 %v7671_v25 }
  0x24   :  { %1713 = vrot.lane.b32.xlu1 %v7924_v3, %s7835_s27  ;;  %1711 = vrot.lane.b32.xlu0 %v7910_v1, %s7835_s27 }
  0x26   :  { %6740 = vmatmul.mubr.msk.bf16.gmra.mrb[4].mxu0 %vm427_vm0, %v8107_v23 }
  0x28   :  { %173 = vrot.lane.b32.xlu1 %v7977_v12, %s7832_s25  ;;  %171 = vrot.lane.b32.xlu0 %v7982_v13, %s7832_s25 }
  0x2c   :  { %1717 = vrot.lane.b32.xlu1 %v7919_v2, %s7835_s27  ;;  %1715 = vrot.lane.b32.xlu0 %v7905_v0, %s7835_s27 }
  0x30   :  { %177 = vrot.lane.b32.xlu1 %v7995_v14, %s7832_s25  ;;  %175 = vrot.lane.b32.xlu0 %v8000_v15, %s7832_s25 }
  0x34   :  { %1721 = vrot.lane.b32.xlu1 %v7935_v6, %s7835_s27  ;;  %1719 = vrot.lane.b32.xlu0 %v7940_v7, %s7835_s27 }
  0x38   :  { %181 = vrot.lane.b32.xlu1 %v8013_v16, %s7832_s25  ;;  %179 = vrot.lane.b32.xlu0 %v8018_v17, %s7832_s25 }
  0x3c   :  { %1725 = vrot.lane.b32.xlu1 %v7945_v8, %s7835_s27  ;;  %1723 = vrot.lane.b32.xlu0 %v7950_v9, %s7835_s27 }
  0x40   :  { %328 = vperm.xlu1 %7603, %v7924_v3   ;;  %717 = vrot.lane.b32.xlu0 %v7924_v3, %s7836_s17 }
  0x44   :  { %332 = vperm.xlu1 %7603, %v7905_v0   ;;  %1729 = vrot.lane.b32.xlu0 %v7959_v10, %s7835_s27 }
  0x48   :  { %715 = vrot.lane.b32.xlu1 %v7910_v1, %s7836_s17  ;;  %721 = vrot.lane.b32.xlu0 %v7919_v2, %s7836_s17 }
  0x4c   :  { %1727 = vrot.lane.b32.xlu1 %v7964_v11, %s7835_s27  ;;  %1733 = vrot.lane.b32.xlu0 %v7977_v12, %s7835_s27 }
  0x50   :  { %719 = vrot.lane.b32.xlu1 %v7905_v0, %s7836_s17  ;;  %725 = vrot.lane.b32.xlu0 %v7935_v6, %s7836_s17 }
  0x54   :  { %1731 = vrot.lane.b32.xlu1 %v7982_v13, %s7835_s27  ;;  %1737 = vrot.lane.b32.xlu0 %v7995_v14, %s7835_s27 }
  0x58   :  { %340 = vperm.xlu1 %7603, %v7940_v7   ;;  %729 = vrot.lane.b32.xlu0 %v7945_v8, %s7836_s17 }
  0x5c   :  { %348 = vperm.xlu1 %7603, %v7950_v9   ;;  %1741 = vrot.lane.b32.xlu0 %v8013_v16, %s7835_s27 }
  0x60   :  { %723 = vrot.lane.b32.xlu1 %v7940_v7, %s7836_s17  ;;  %1475 = vperm.xlu0 %7605, %v7924_v3  }
  0x64   :  { %1735 = vrot.lane.b32.xlu1 %v8000_v15, %s7835_s27  ;;  %1479 = vperm.xlu0 %7605, %v7905_v0  }
  0x68   :  { %727 = vrot.lane.b32.xlu1 %v7950_v9, %s7836_s17  ;;  %731 = vrot.lane.b32.xlu0 %v7964_v11, %s7836_s17 }
  0x6c   :  { %1739 = vrot.lane.b32.xlu1 %v8018_v17, %s7835_s27  ;;  %735 = vrot.lane.b32.xlu0 %v7982_v13, %s7836_s17 }
  0x70   :  { %356 = vperm.xlu1 %7603, %v7964_v11   ;;  %1491 = vperm.xlu0 %7605, %v7935_v6  }
  0x74   :  { %7604 = vset.pattern.permute.xlu1 %v7834_v5  ;;  %1495 = vperm.xlu0 %7605, %v7950_v9  }
  0x75   :  { %1471 = vperm.xlu1 %7604, %v7910_v1  }
  0x78   :  { %739 = vrot.lane.b32.xlu0 %v8000_v15, %s7836_s17 }
  0x79   :  { %7606 = vset.pattern.permute.xlu1 %v12123_v4 }
  0x7a   :  { %364 = vperm.xlu1 %7606, %v7982_v13  }
  0x7c   :  { %743 = vrot.lane.b32.xlu0 %v8018_v17, %s7836_s17 }
  0x7e   :  { %368 = vperm.xlu1 %7606, %v7977_v12  }
  0x80   :  { %1507 = vperm.xlu0 %7605, %v7959_v10  }
  0x82   :  { %v8127_v26 = vpop.permute.xlu1 %155  ;;  %7607 = vset.pattern.permute.xlu1 %v7834_v5  ;;  %v152_v27 = vpop.permute.xlu0 %151 }
  0x83   :  { %1483 = vperm.xlu1 %7607, %v7919_v2   ;;  %v8182_v45 = vmul.f32 %v152_v27, %v7910_v1  ;;  %v8225_v57 = vmul.f32 %v8127_v26, %v7905_v0 }
  0x84   :  { %1511 = vperm.xlu0 %7605, %v7982_v13  }
  0x85   :  { %12571 = vst [vmem:[#allocation5_spill] sm:$0xff] %v8182_v45  ;;  %12576 = vst [vmem:[#allocation10_spill] sm:$0xff] %v8225_v57 }
  0x86   :  { %v8132_v28 = vpop.permute.xlu1 %157  ;;  %v154_v29 = vpop.permute.xlu0 %153 }
  0x87   :  { %733 = vrot.lane.b32.xlu1 %v7959_v10, %s7836_s17  ;;  %v8197_v49 = vmul.f32 %v154_v29, %v7924_v3  ;;  %v8239_v60 = vmul.f32 %v8132_v28, %v7919_v2 }
  0x88   :  { %1523 = vperm.xlu0 %7605, %v7995_v14   ;;  %7608 = vset.pattern.permute.xlu1 %v12123_v4 }
  0x89   :  { %12573 = vst [vmem:[#allocation7_spill] sm:$0xff] %v8197_v49  ;;  %12577 = vst [vmem:[#allocation11_spill] sm:$0xff] %v8239_v60 }
  0x8a   :  { %v8138_v30 = vpop.permute.xlu1 %161  ;;  %v160_v31 = vpop.permute.xlu0 %159 }
  0x8b   :  { %737 = vrot.lane.b32.xlu1 %v7977_v12, %s7836_s17  ;;  %v8191_v47 = vmul.f32 %v160_v31, %v7940_v7  ;;  %v8256_v24 = vmul.f32 %v8138_v30, %v7935_v6 }
  0x8c   :  { %1527 = vperm.xlu0 %7605, %v8018_v17  }
  0x8d   :  { %12572 = vst [vmem:[#allocation6_spill] sm:$0xff] %v8191_v47  ;;  %12580 = vst [vmem:[#allocation14_spill] sm:$0xff] %v8256_v24 }
  0x8e   :  { %v8143_v32 = vpop.permute.xlu1 %165  ;;  %v8145_v33 = vpop.permute.xlu0 %163 }
  0x8f   :  { %376 = vperm.xlu1 %7608, %v7995_v14   ;;  %v8269_v29 = vmul.f32 %v8145_v33, %v7950_v9  ;;  %v8279_v34 = vmul.f32 %v8143_v32, %v7945_v8 }
  0x90   :  { %7619 = vset.pattern.permute.xlu0 %v12123_v4 }
  0x91   :  { %324 = vperm.xlu0 %7619, %v7910_v1   ;;  %12581 = vst [vmem:[#allocation15_spill] sm:$0xff] %v8269_v29  ;;  %12582 = vst [vmem:[#allocation16_spill] sm:$0xff] %v8279_v34 }
  0x92   :  { %v8153_v35 = vpop.permute.xlu1 %169  ;;  %v168_v36 = vpop.permute.xlu0 %167 }
  0x93   :  { %7609 = vset.pattern.permute.xlu1 %v7834_v5  ;;  %v8204_v51 = vmul.f32 %v168_v36, %v7964_v11  ;;  %v8296_v32 = vmul.f32 %v8153_v35, %v7959_v10 }
  0x94   :  { %1487 = vperm.xlu1 %7609, %v7940_v7  }
  0x95   :  { %336 = vperm.xlu0 %7619, %v7919_v2   ;;  %12574 = vst [vmem:[#allocation8_spill] sm:$0xff] %v8204_v51  ;;  %12587 = vst [vmem:[#allocation21_spill] sm:$0xff] %v8296_v32 }
  0x96   :  { %v8161_v38 = vpop.permute.xlu0 %1711  ;;  %v8163_v39 = vpop.permute.xlu1 %1713 }
  0x98   :  { %7610 = vset.pattern.permute.xlu1 %v12123_v4 }
  0x99   :  { %380 = vperm.xlu1 %7610, %v8018_v17   ;;  %344 = vperm.xlu0 %7619, %v7935_v6  }
  0x9a   :  { %v8168_v40 = vpop.permute.xlu0 %171  ;;  %v8170_v41 = vpop.permute.xlu1 %173 }
  0x9d   :  { %384 = vperm.xlu1 %7610, %v8013_v16   ;;  %352 = vperm.xlu0 %7619, %v7945_v8  }
  0x9e   :  { %v8174_v42 = vpop.permute.xlu0 %1715  ;;  %v8179_v44 = vpop.permute.xlu1 %1717 }
  0xa1   :  { %7611 = vset.pattern.permute.xlu1 %v7834_v5  ;;  %360 = vperm.xlu0 %7619, %v7959_v10  }
  0xa2   :  { %1499 = vperm.xlu1 %7611, %v7945_v8   ;;  %v176_v43 = vpop.permute.xlu0 %175  ;;  %v8193_v48 = vpop.permute.xlu1 %177 }
  0xa3   :  { %v8213_v54 = vmul.f32 %v176_v43, %v8000_v15 }
  0xa5   :  { %372 = vperm.xlu0 %7619, %v8000_v15   ;;  %12575 = vst [vmem:[#allocation9_spill] sm:$0xff] %v8213_v54 }
  0xa6   :  { %741 = vrot.lane.b32.xlu1 %v7995_v14, %s7836_s17  ;;  %v8187_v46 = vpop.permute.xlu0 %1719  ;;  %v8210_v53 = vpop.permute.xlu1 %1721 }
  0xa7   :  { %7612 = vset.pattern.permute.xlu1 %v12123_v4 }
  0xa9   :  { %217 = vperm.xlu0 %7619, %v8182_v45  }
  0xaa   :  { %745 = vrot.lane.b32.xlu1 %v8013_v16, %s7836_s17  ;;  %v8201_v50 = vpop.permute.xlu0 %179  ;;  %v8220_v56 = vpop.permute.xlu1 %181 }
  0xad   :  { %237 = vperm.xlu0 %7619, %v8191_v47  }
  0xae   :  { %222 = vperm.xlu1 %7612, %v8197_v49   ;;  %v8208_v52 = vpop.permute.xlu0 %1723  ;;  %v8241_v61 = vpop.permute.xlu1 %1725 }
  0xb1   :  { %257 = vperm.xlu0 %7619, %v8204_v51  }
  0xb2   :  { %7613 = vset.pattern.permute.xlu1 %v7834_v5  ;;  %v8217_v55 = vpop.permute.xlu0 %717 }
  0xb3   :  { %1503 = vperm.xlu1 %7613, %v7964_v11  }
  0xb5   :  { %277 = vperm.xlu0 %7619, %v8213_v54   ;;  %v12593_v54 = vmov 0  }
  0xb6   :  { %v8227_v58 = vpop.permute.xlu0 %1729 }
  0xb7   :  { %7614 = vset.pattern.permute.xlu1 %v12123_v4 }
  0xb8   :  { %227 = vperm.xlu1 %7614, %v8225_v57  }
  0xba   :  { %v8243_v62 = vpop.permute.xlu0 %721 }
  0xbc   :  { %232 = vperm.xlu1 %7614, %v8239_v60   ;;  %v12128_v60 = vmov 1  }
  0xbe   :  { %v8250_v18 = vpop.permute.xlu0 %1733 }
  0xbf   :  { %v8246_v63 = vpop.permute.xlu1 %328 }
  0xc0   :  { %12578 = vst [vmem:[#allocation12_spill] sm:$0xff] %v8246_v63  ;;  %7615 = vset.pattern.permute.xlu1 %v7834_v5 }
  0xc1   :  { %1515 = vperm.xlu1 %7615, %v7977_v12  }
  0xc2   :  { %v8260_v26 = vpop.permute.xlu0 %725 }
  0xc3   :  { %v8252_v19 = vpop.permute.xlu1 %332 }
  0xc4   :  { %12579 = vst [vmem:[#allocation13_spill] sm:$0xff] %v8252_v19 }
  0xc5   :  { %7616 = vset.pattern.permute.xlu1 %v12123_v4 }
  0xc6   :  { %242 = vperm.xlu1 %7616, %v8256_v24   ;;  %v8271_v30 = vpop.permute.xlu0 %1737 }
  0xc7   :  { %v716_v25 = vpop.permute.xlu1 %715 }
  0xc8   :  { %v763_v27 = vmul.f32 %v716_v25, %v7910_v1 }
  0xca   :  { %7617 = vset.pattern.permute.xlu1 %v7834_v5  ;;  %781 = vperm.xlu0 %7619, %v763_v27   ;;  %v8283_v37 = vpop.permute.xlu0 %729  ;;  %v1759_v27 = vmul.f32 %v8161_v38, %v7910_v1 }
  0xcb   :  { %v8264_v28 = vpop.permute.xlu1 %1727  ;;  %1519 = vperm.xlu1 %7617, %v8000_v15   ;;  %12583 = vst [vmem:[#allocation17_spill] sm:$0xff] %v8283_v37  ;;  %v8366_v37 = vmul.f32 %v8193_v48, %v7995_v14  ;;  %v8380_v48 = vunpack.c.l.bf16 %v8101_v22 }
  0xcd   :  { %12605 = vst [vmem:[#allocation37_spill] sm:$0xff] %v8366_v37 }
  0xce   :  { %v8290_v43 = vpop.permute.xlu0 %1741 }
  0xcf   :  { %v8273_v31 = vpop.permute.xlu1 %719  ;;  %7618 = vset.pattern.permute.xlu1 %v12123_v4  ;;  %12585 = vst [vmem:[#allocation19_spill] sm:$0xff] %v8290_v43 }
  0xd0   :  { %247 = vperm.xlu1 %7618, %v8269_v29  }
  0xd3   :  { %v8281_v36 = vpop.permute.xlu1 %1731 }
  0xd4   :  { %252 = vperm.xlu1 %7618, %v8279_v34  }
  0xd7   :  { %v8286_v33 = vpop.permute.xlu1 %340 }
  0xd8   :  { %12584 = vst [vmem:[#allocation18_spill] sm:$0xff] %v8286_v33  ;;  %7620 = vset.pattern.permute.xlu1 %v7834_v5 }
  0xd9   :  { %1531 = vperm.xlu1 %7620, %v8013_v16  }
  0xdb   :  { %v8292_v25 = vpop.permute.xlu1 %348 }
  0xdc   :  { %12586 = vst [vmem:[#allocation20_spill] sm:$0xff] %v8292_v25 }
  0xdd   :  { %7621 = vset.pattern.permute.xlu1 %v12123_v4  ;;  %v8312_v4 = vmul.f32 %v8168_v40, %v7982_v13  ;;  %v8329_v40 = vunpack.c.h.bf16 %v8083_v20 }
  0xde   :  { %262 = vperm.xlu1 %7621, %v8296_v32   ;;  %v116_v32 = vlaneseq }
  0xdf   :  { %v724_v34 = vpop.permute.xlu1 %723  ;;  %v8302_v47 = vpop.permute.xlu0 %1475  ;;  %12591 = vst [vmem:[#allocation25_spill] sm:$0xff] %v8312_v4 }
  0xe0   :  { %12588 = vst [vmem:[#allocation22_spill] sm:$0xff] %v8302_v47  ;;  %v767_v5 = vmul.f32 %v724_v34, %v7940_v7  ;;  %v8318_v34 = vunpack.c.l.bf16 %v8088_v21 }
  0xe2   :  { %7622 = vset.pattern.permute.xlu1 %v12128_v60  ;;  %801 = vperm.xlu0 %7619, %v767_v5   ;;  %v8326_v60 = vmul.f32 %v8170_v41, %v7977_v12  ;;  %v684_v57 = vrot.slane %v8318_v34, 1 }
  0xe3   :  { %v8306_v45 = vpop.permute.xlu1 %1735  ;;  %1777 = vperm.xlu1 %7622, %v1759_v27   ;;  %v8308_v35 = vpop.permute.xlu0 %1479  ;;  %v8322_v27 = vshrl.u32 %v116_v32, 7  ;;  %v683_v32 = vrot.slane %v8329_v40, 1 }
  0xe4   :  { %12589 = vst [vmem:[#allocation23_spill] sm:$0xff] %v8306_v45  ;;  %12590 = vst [vmem:[#allocation24_spill] sm:$0xff] %v8308_v35 }
  0xe5   :  { %12594 = vst [vmem:[#allocation27_spill] sm:$0xff] %v8322_v27  ;;  %12595 = vst [vmem:[#allocation28_spill] sm:$0xff] %v8326_v60  ;;  %vm698_vm1 = vcmp.lt.s32.totalorder %v8322_v27, 7  ;;  %vm118_vm2 = vcmp.lt.s32.totalorder %v8322_v27, 1 }
  0xe7   :  { %v8314_v38 = vpop.permute.xlu1 %727  ;;  %7623 = vset.pattern.permute.xlu1 %v12593_v54  ;;  %v732_v51 = vpop.permute.xlu0 %731 }
  0xe8   :  { %12592 = vst [vmem:[#allocation26_spill] sm:$0xff] %v8314_v38  ;;  %v771_v5 = vmul.f32 %v732_v51, %v7964_v11  ;;  %267 = vperm.xlu1 %7623, %v8312_v4   ;;  %v8338_v51 = vunpack.c.l.bf16 %v8083_v20 }
  0xea   :  { %821 = vperm.xlu0 %7619, %v771_v5   ;;  %12598 = vst [vmem:[#allocation31_spill] sm:$0xff] %v8338_v51  ;;  %v12136_v41 = vrot.slane %v8338_v51, 1  ;;  %v1762_v5 = vmul.f32 %v8179_v44, %v7919_v2 }
  0xeb   :  { %v8331_v29 = vpop.permute.xlu1 %1739  ;;  %v8333_v24 = vpop.permute.xlu0 %735 }
  0xec   :  { %12596 = vst [vmem:[#allocation29_spill] sm:$0xff] %v8331_v29  ;;  %12597 = vst [vmem:[#allocation30_spill] sm:$0xff] %v8333_v24  ;;  %272 = vperm.xlu1 %7623, %v8326_v60   ;;  %v12601_v24 = vmov 1   ;;  %v8352_v60 = vsel %vm698_vm1, %v683_v32, %v684_v57  ;;  %v8358_v20 = vsel %vm698_vm1, %v12136_v41, %v683_v32  ;;  %v1763_v32 = vmul.f32 %v8187_v46, %v7940_v7 }
  0xed   :  { %12602 = vst [vmem:[#allocation34_spill] sm:$0xff] %v8352_v60  ;;  %12603 = vst [vmem:[#allocation35_spill] sm:$0xff] %v8358_v20  ;;  %v1535_v44 = vmul.f32 %v8302_v47, %v8352_v60  ;;  %v8377_v47 = vunpack.c.h.bf16 %v8088_v21  ;;  %v8392_v21 = vmul.f32 %v8201_v50, %v8018_v17 }
  0xef   :  { %v8345_v4 = vpop.permute.xlu1 %356  ;;  %v8347_v49 = vpop.permute.xlu0 %1491  ;;  %12609 = vst [vmem:[#allocation41_spill] sm:$0xff] %v8392_v21 }
  0xf0   :  { %12599 = vst [vmem:[#allocation32_spill] sm:$0xff] %v8345_v4  ;;  %12600 = vst [vmem:[#allocation33_spill] sm:$0xff] %v8347_v49  ;;  %7624 = vset.pattern.permute.xlu1 %v12601_v24 }
  0xf1   :  { %1792 = vperm.xlu1 %7624, %v1762_v5  }
  0xf3   :  { %v8360_v43 = vpop.permute.xlu0 %1495 }
  0xf4   :  { %12604 = vst [vmem:[#allocation36_spill] sm:$0xff] %v8360_v43  ;;  %v8368_v38 = vpop.permute.xlu1 %1471 }
  0xf5   :  { %12606 = vst [vmem:[#allocation38_spill] sm:$0xff] %v8368_v38  ;;  %v1534_v5 = vmul.f32 %v8368_v38, %v8358_v20  ;;  %7625 = vset.pattern.permute.xlu1 %v12593_v54  ;;  %v685_v38 = vrot.slane %v8377_v47, 1 }
  0xf6   :  { %282 = vperm.xlu1 %7625, %v8366_v37  }
  0xf7   :  { %v740_v41 = vpop.permute.xlu0 %739  ;;  %v1554_v29 = vpack.c.bf16 %v1535_v44, %v1534_v5  ;;  %v686_v44 = vrot.slane %v8380_v48, 1 }
  0xf8   :  { %v775_v60 = vmul.f32 %v740_v41, %v8000_v15  ;;  %v8399_v41 = vsel %vm698_vm1, %v684_v57, %v685_v38  ;;  %v8415_v57 = vmul.f32 %v8220_v56, %v8013_v16  ;;  %v8430_v56 = vunpack.c.l.bf16 %v8107_v23 }
  0xf9   :  { %v8383_v45 = vpop.permute.xlu1 %364  ;;  %6755 = vmatprep.mubr.msk.bf16.mxu0 %vm427_vm0, %v1554_v29  ;;  %12611 = vst [vmem:[#allocation43_spill] sm:$0xff] %v8399_v41  ;;  %v12143_v29 = vmov 2   ;;  %v8409_v50 = vsel %vm698_vm1, %v685_v38, %v686_v44 }
  0xfa   :  { %12607 = vst [vmem:[#allocation39_spill] sm:$0xff] %v8383_v45  ;;  %7626 = vset.pattern.permute.xlu1 %v12601_v24  ;;  %841 = vperm.xlu0 %7619, %v775_v60   ;;  %12613 = vst [vmem:[#allocation45_spill] sm:$0xff] %v8409_v50 }
  0xfb   :  { %1797 = vperm.xlu1 %7626, %v1763_v32   ;;  %v8388_v46 = vpop.permute.xlu0 %743  ;;  %v1536_v32 = vmul.f32 %v8308_v35, %v8399_v41  ;;  %12614 = vst [vmem:[#allocation46_spill] sm:$0xff] %v8415_v57  ;;  %v1766_v35 = vmul.f32 %v8241_v61, %v7945_v8  ;;  %v8445_v8 = vld [vmem:[%s12107_s0 + $0x38] sm:$0xff]   ;;  %v7676_v41 = vld [vmem:[%s12109_s2 + $0x60] sm:$0xff]  }
  0xfc   :  { %12608 = vst [vmem:[#allocation40_spill] sm:$0xff] %v8388_v46  ;;  %6771 = vmatprep.subr.bf16.mxu0 %v7676_v41  ;;  %v1761_v46 = vmul.f32 %v8174_v42, %v7905_v0  ;;  %v389_v42 = vmul.f32 %v8252_v19, %v8329_v40 }
  0xfd   :  { %v8395_v5 = vpop.permute.xlu1 %368 }
  0xfe   :  { %12610 = vst [vmem:[#allocation42_spill] sm:$0xff] %v8395_v5  ;;  %7645 = vset.pattern.permute.xlu0 %v12143_v29 }
  0xff   :  { %7627 = vset.pattern.permute.xlu1 %v12593_v54  ;;  %1037 = vperm.xlu0 %7645, %v7910_v1   ;;  %v8404_v60 = vpop.permute.xlu0 %1507 }
 0x100   :  { %12612 = vst [vmem:[#allocation44_spill] sm:$0xff] %v8404_v60  ;;  %287 = vperm.xlu1 %7627, %v8392_v21  }
 0x102   :  { %v8417_v29 = vpop.permute.xlu1 %1483 }
 0x103   :  { %12615 = vst [vmem:[#allocation47_spill] sm:$0xff] %v8417_v29  ;;  %v1537_v1 = vmul.f32 %v8417_v29, %v8409_v50  ;;  %1053 = vperm.xlu0 %7645, %v7940_v7   ;;  %v8422_v37 = vpop.permute.xlu0 %1511  ;;  %v8438_v7 = vunpack.c.h.bf16 %v8101_v22  ;;  %v8455_v22 = vunpack.c.h.bf16 %v8445_v8 }
 0x104   :  { %12616 = vst [vmem:[#allocation48_spill] sm:$0xff] %v8422_v37  ;;  %292 = vperm.xlu1 %7627, %v8415_v57  }
 0x105   :  { %v1555_v38 = vpack.c.bf16 %v1537_v1, %v1536_v32  ;;  %v764_v32 = vmul.f32 %v8217_v55, %v7924_v3  ;;  %v687_v1 = vrot.slane %v8438_v7, 1  ;;  %12619 = vst [vmem:[#allocation51_spill] sm:$0xff] %v8455_v22  ;;  %v1760_v55 = vmul.f32 %v8163_v39, %v7924_v3 }
 0x106   :  { %v8425_v20 = vpop.permute.xlu1 %733  ;;  %v1767_v3 = vmul.f32 %v8264_v28, %v7964_v11 }
 0x107   :  { %6756 = vmatmul.mubr.msk.bf16.vlgmr.msra.gmra.mrb[0].mxu0 %vm427_vm0, %v1555_v38  ;;  %1069 = vperm.xlu0 %7645, %v7964_v11   ;;  %v8434_v29 = vpop.permute.xlu0 %1523  ;;  %v12158_v38 = vrot.slane %v8430_v56, 1  ;;  %v8478_v39 = vsel %vm698_vm1, %v686_v44, %v687_v1  ;;  %v7677_v44 = vld [vmem:[%s12109_s2 + $0x68] sm:$0xff]  }
 0x108   :  { %12617 = vst [vmem:[#allocation49_spill] sm:$0xff] %v8434_v29  ;;  %7628 = vset.pattern.permute.xlu1 %v12601_v24  ;;  %6772 = vmatpush3.bf16.msra.mxu0 %v7676_v41 }
 0x109   :  { %1812 = vperm.xlu1 %7628, %v1766_v35   ;;  %v8466_v50 = vsel %vm698_vm1, %v687_v1, %v12158_v38  ;;  %v388_v38 = vmul.f32 %v8246_v63, %v8338_v51  ;;  %6773 = vmatprep.subr.bf16.mxu0 %v7677_v44  ;;  %v8793_v63 = vld [vmem:[%s12108_s1 + $0x50] sm:$0xff] }
 0x10a   :  { %v8447_v61 = vpop.permute.xlu1 %737 }
 0x10b   :  { %1085 = vperm.xlu0 %7645, %v8000_v15   ;;  %v8452_v57 = vpop.permute.xlu0 %1527 }
 0x10c   :  { %12618 = vst [vmem:[#allocation50_spill] sm:$0xff] %v8452_v57  ;;  %6774 = vmatpush3.bf16.msra.mxu0 %v7677_v44 }
 0x10d   :  { %7629 = vset.pattern.permute.xlu1 %v12593_v54 }
 0x10e   :  { %v8460_v35 = vpop.permute.xlu1 %376  ;;  %786 = vperm.xlu1 %7629, %v764_v32  }
 0x10f   :  { %12620 = vst [vmem:[#allocation52_spill] sm:$0xff] %v8460_v35  ;;  %7658 = vset.pattern.permute.xlu0 %v12601_v24 }
 0x110   :  { %1782 = vperm.xlu0 %7658, %v1760_v55   ;;  %v8472_v21 = vpop.permute.xlu0 %324  ;;  %v1539_v55 = vmul.f32 %v8347_v49, %v8466_v50  ;;  %v8511_v49 = vunpack.c.h.bf16 %v8107_v23  ;;  %v391_v23 = vmul.f32 %v8286_v33, %v8377_v47 }
 0x111   :  { %12621 = vst [vmem:[#allocation53_spill] sm:$0xff] %v8472_v21  ;;  %v387_v32 = vmul.f32 %v8472_v21, %v8455_v22 }
 0x112   :  { %7630 = vset.pattern.permute.xlu1 %v12601_v24  ;;  %12624 = vst [vmem:[#allocation56_spill] sm:$0xff] %v8511_v49  ;;  %v107_v19 = vrot.slane %v8511_v49, 7 }
 0x113   :  { %v8489_v11 = vpop.permute.xlu1 %1487  ;;  %1817 = vperm.xlu1 %7630, %v1767_v3   ;;  %v407_v28 = vpack.c.bf16 %v388_v38, %v387_v32  ;;  %v765_v38 = vmul.f32 %v8273_v31, %v7905_v0  ;;  %v77_v3 = vld [vmem:[%s12107_s0 + $0x20] sm:$0xff]   ;;  %v7675_v0 = vld [vmem:[%s12109_s2 + $0x8] sm:$0xff]  }
 0x114   :  { %12622 = vst [vmem:[#allocation54_spill] sm:$0xff] %v8489_v11  ;;  %v1538_v1 = vmul.f32 %v8489_v11, %v8478_v39  ;;  %1787 = vperm.xlu0 %7658, %v1761_v46   ;;  %v8496_v21 = vpop.permute.xlu0 %336  ;;  %v1764_v46 = vmul.f32 %v8210_v53, %v7935_v6  ;;  %v689_v53 = vrot.slane %v8511_v49, 1 }
 0x115   :  { %12623 = vst [vmem:[#allocation55_spill] sm:$0xff] %v8496_v21  ;;  %v390_v41 = vmul.f32 %v8496_v21, %v8318_v34  ;;  %6655 = vmatprep.mubr.msk.bf16.mxu1 %vm427_vm0, %v407_v28  ;;  %v8514_v28 = vunpack.c.l.bf16 %v77_v3  ;;  %v12661_v21 = vld [vmem:[#allocation10_spill] sm:$0xff] }
 0x116   :  { %v1556_v32 = vpack.c.bf16 %v1539_v55, %v1538_v1  ;;  %v766_v1 = vmul.f32 %v8243_v62, %v7919_v2  ;;  %v393_v2 = vmul.f32 %v8292_v25, %v8438_v7 }
 0x117   :  { %v408_v11 = vpack.c.bf16 %v390_v41, %v389_v42  ;;  %7631 = vset.pattern.permute.xlu1 %v12593_v54  ;;  %12625 = vst [vmem:[#allocation57_spill] sm:$0xff] %v8514_v28  ;;  %v1765_v42 = vmul.f32 %v8208_v52, %v7950_v9  ;;  %v8556_v52 = vld [vmem:[%s12107_s0 + $0x28] sm:$0xff]  }
 0x118   :  { %v8519_v31 = vpop.permute.xlu1 %380  ;;  %791 = vperm.xlu1 %7631, %v765_v38   ;;  %6759 = vmatprep.mubr.msk.bf16.mxu0 %vm427_vm0, %v1556_v32  ;;  %v8522_v55 = vpop.permute.xlu0 %344  ;;  %v12165_v38 = vrot.slane %v8514_v28, 1  ;;  %v8539_v32 = vld [vmem:[%s12109_s2 + $0x20] sm:$0xff]   ;;  %12631 = vst [vmem:[#allocation62_spill] sm:$0xff] %v8556_v52 }
 0x119   :  { %12626 = vst [vmem:[#allocation58_spill] sm:$0xff] %v8519_v31  ;;  %12627 = vst [vmem:[#allocation59_spill] sm:$0xff] %v8522_v55  ;;  %1802 = vperm.xlu0 %7658, %v1764_v46   ;;  %v392_v44 = vmul.f32 %v8522_v55, %v8380_v48  ;;  %6656 = vmatmul.mubr.msk.bf16.vlgmr.msra.gmra.mrb[0].mxu1 %vm427_vm0, %v408_v11  ;;  %v104_v55 = vrot.slane %v8380_v48, 7 }
 0x11a   :  { %6672 = vmatpush3.bf16.msra.mxu1 %v8233_v59  ;;  %v12630_v59 = vrot.slane %v8430_v56, 1 }
 0x11b   :  { %v409_v41 = vpack.c.bf16 %v392_v44, %v391_v23  ;;  %6673 = vmatprep.subr.bf16.mxu1 %v7675_v0  ;;  %v8564_v23 = vld [vmem:[%s12107_s0 + $0x30] sm:$0xff]   ;;  %v1768_v44 = vmul.f32 %v8227_v58, %v7959_v10  ;;  %v8588_v58 = vunpack.c.h.bf16 %v8556_v52 }
 0x11c   :  { %v8541_v46 = vpop.permute.xlu1 %384  ;;  %796 = vperm.xlu1 %7631, %v766_v1   ;;  %v8543_v11 = vpop.permute.xlu0 %352  ;;  %v8551_v9 = vsel %vm698_vm1, %v12630_v59, %v689_v53  ;;  %12632 = vst [vmem:[#allocation63_spill] sm:$0xff] %v8564_v23  ;;  %v1770_v1 = vmul.f32 %v8250_v18, %v7977_v12  ;;  %v395_v12 = vmul.f32 %v8345_v4, %v8511_v49  ;;  %v8591_v18 = vunpack.c.l.bf16 %v8564_v23 }
 0x11d   :  { %12628 = vst [vmem:[#allocation60_spill] sm:$0xff] %v8541_v46  ;;  %12629 = vst [vmem:[#allocation61_spill] sm:$0xff] %v8543_v11  ;;  %1807 = vperm.xlu0 %7658, %v1765_v42   ;;  %v394_v62 = vmul.f32 %v8543_v11, %v8430_v56  ;;  %6659 = vmatprep.mubr.msk.bf16.mxu1 %vm427_vm0, %v409_v41  ;;  %v8574_v42 = vsel %vm698_vm1, %v689_v53, %v12165_v38  ;;  %v7679_v11 = vld [vmem:[%s12109_s2 + $0x28] sm:$0xff]  }
 0x11e   :  { %6674 = vmatpush3.bf16.msra.mxu1 %v7675_v0  ;;  %v1540_v41 = vmul.f32 %v8360_v43, %v8551_v9  ;;  %v8580_v0 = vunpack.c.l.bf16 %v8556_v52  ;;  %12635 = vst [vmem:[#allocation66_spill] sm:$0xff] %v8588_v58  ;;  %12636 = vst [vmem:[#allocation67_spill] sm:$0xff] %v8591_v18  ;;  %v1769_v43 = vmul.f32 %v8281_v36, %v7982_v13  ;;  %v12662_v52 = vrot.slane %v8338_v51, 1 }
 0x11f   :  { %v410_v59 = vpack.c.bf16 %v394_v62, %v393_v2  ;;  %6691 = vmatprep.subr.bf16.mxu1 %v8539_v32  ;;  %v8597_v62 = vunpack.c.h.bf16 %v77_v3  ;;  %v8611_v3 = vunpack.c.l.bf16 %v8445_v8  ;;  %v1772_v8 = vmul.f32 %v8271_v30, %v7995_v14  ;;  %v12643_v30 = vld [vmem:[#allocation29_spill] sm:$0xff] }
 0x120   :  { %12633 = vst [vmem:[#allocation64_spill] sm:$0xff] %v8580_v0  ;;  %7632 = vset.pattern.permute.xlu1 %v12601_v24  ;;  %v8583_v10 = vpop.permute.xlu0 %360  ;;  %v8637_v14 = vunpack.c.h.bf16 %v8564_v23 }
 0x121   :  { %12634 = vst [vmem:[#allocation65_spill] sm:$0xff] %v8583_v10  ;;  %1822 = vperm.xlu0 %7658, %v1768_v44   ;;  %v396_v53 = vmul.f32 %v8583_v10, %v8514_v28  ;;  %v8595_v2 = vpop.permute.xlu1 %1499  ;;  %1832 = vperm.xlu1 %7632, %v1770_v1   ;;  %12638 = vst [vmem:[#allocation69_spill] sm:$0xff] %v8597_v62  ;;  %v768_v44 = vmul.f32 %v8260_v26, %v7935_v6  ;;  %v100_v6 = vrot.slane %v8338_v51, 7  ;;  %v12667_v51 = vld [vmem:[#allocation15_spill] sm:$0xff] }
 0x122   :  { %12637 = vst [vmem:[#allocation68_spill] sm:$0xff] %v8595_v2  ;;  %v1541_v38 = vmul.f32 %v8595_v2, %v8574_v42  ;;  %6660 = vmatmul.mubr.msk.bf16.gmra.mrb[4].mxu1 %vm427_vm0, %v410_v59  ;;  %v398_v10 = vmul.f32 %v8395_v5, %v8580_v0  ;;  %12640 = vst [vmem:[#allocation71_spill] sm:$0xff] %v8611_v3  ;;  %v400_v2 = vmul.f32 %v8460_v35, %v8591_v18 }
 0x123   :  { %v411_v4 = vpack.c.bf16 %v396_v53, %v395_v12  ;;  %v397_v26 = vmul.f32 %v8383_v45, %v8597_v62  ;;  %v115_v59 = vrot.slane %v8455_v22, 7  ;;  %v12641_v12 = vld [vmem:[#allocation23_spill] sm:$0xff]  ;;  %v691_v35 = vrot.slane %v8597_v62, 1 }
 0x124   :  { %v8608_v25 = vpop.permute.xlu0 %372  ;;  %v1557_v1 = vpack.c.bf16 %v1541_v38, %v1540_v41  ;;  %v1771_v53 = vmul.f32 %v12641_v12, %v8000_v15  ;;  %12642 = vst [vmem:[#allocation23_spill] sm:$0xff] %v8637_v14 }
 0x125   :  { %12639 = vst [vmem:[#allocation70_spill] sm:$0xff] %v8608_v25  ;;  %1827 = vperm.xlu0 %7658, %v1769_v43   ;;  %v399_v13 = vmul.f32 %v8608_v25, %v8588_v58  ;;  %v8617_v36 = vpop.permute.xlu1 %741  ;;  %7633 = vset.pattern.permute.xlu1 %v12593_v54  ;;  %v12178_v43 = vrot.slane %v8611_v3, 7  ;;  %v412_v41 = vpack.c.bf16 %v398_v10, %v397_v26 }
 0x126   :  { %6663 = vmatprep.mubr.msk.bf16.mxu1 %vm427_vm0, %v411_v4  ;;  %806 = vperm.xlu1 %7633, %v768_v44   ;;  %v692_v4 = vrot.slane %v8580_v0, 1  ;;  %v1773_v10 = vmul.f32 %v12643_v30, %v8018_v17 }
 0x127   :  { %v413_v38 = vpack.c.bf16 %v400_v2, %v399_v13  ;;  %6760 = vmatmul.mubr.msk.bf16.gmra.mrb[4].mxu0 %vm427_vm0, %v1557_v1  ;;  %v8647_v15 = vsel %vm118_vm2, %v12178_v43, %v115_v59  ;;  %v8654_v1 = vsel %vm118_vm2, %v115_v59, %v100_v6  ;;  %v402_v13 = vmul.f32 %v8541_v46, %v8611_v3 }
 0x128   :  { %v8649_v2 = vpop.permute.xlu0 %217  ;;  %v8660_v26 = vsel %vm698_vm1, %v691_v35, %v692_v4  ;;  %v401_v59 = vmul.f32 %v8519_v31, %v8637_v14  ;;  %v12647_v43 = vrot.slane %v8514_v28, 1 }
 0x129   :  { %1842 = vperm.xlu0 %7658, %v1772_v8   ;;  %v8634_v44 = vpop.permute.xlu1 %745  ;;  %12644 = vst [vmem:[#allocation29_spill] sm:$0xff] %v8649_v2  ;;  %v1543_v31 = vmul.f32 %v8404_v60, %v8660_v26  ;;  %v12650_v60 = vld [vmem:[#allocation19_spill] sm:$0xff] }
 0x12a   :  { %6664 = vmatmul.mubr.msk.bf16.gmra.mrb[8].mxu1 %vm427_vm0, %v412_v41  ;;  %7634 = vset.pattern.permute.xlu1 %v12601_v24  ;;  %v8667_v41 = vld [vmem:[%s12108_s1 + $0x30] sm:$0xff]  ;;  %v8682_v46 = vsel %vm698_vm1, %v12647_v43, %v691_v35 }
 0x12b   :  { %6667 = vmatprep.mubr.msk.bf16.mxu1 %vm427_vm0, %v413_v38  ;;  %1837 = vperm.xlu1 %7634, %v1771_v53   ;;  %v12646_v38 = vld [vmem:[#allocation26_spill] sm:$0xff]  ;;  %v295_v53 = vmul.f32 %v8649_v2, %v8647_v15 }
 0x12c   :  { %v769_v12 = vmul.f32 %v8667_v41, %v12646_v38  ;;  %v8689_v2 = vld [vmem:[%s12108_s1 + $0x8] sm:$0xff] }
 0x12d   :  { %1847 = vperm.xlu0 %7658, %v1773_v10   ;;  %v8662_v8 = vpop.permute.xlu1 %222  ;;  %v414_v10 = vpack.c.bf16 %v402_v13, %v401_v59  ;;  %v8695_v13 = vld [vmem:[%s12108_s1 + $0x38] sm:$0xff] }
 0x12e   :  { %12645 = vst [vmem:[#allocation72_spill] sm:$0xff] %v8662_v8  ;;  %v296_v30 = vmul.f32 %v8662_v8, %v8654_v1  ;;  %v1774_v8 = vmul.f32 %v12650_v60, %v8013_v16  ;;  %v693_v60 = vrot.slane %v8588_v58, 1 }
 0x12f   :  { %7635 = vset.pattern.permute.xlu1 %v12593_v54 }
 0x130   :  { %811 = vperm.xlu1 %7635, %v769_v12   ;;  %v315_v38 = vpack.c.bf16 %v296_v30, %v295_v53  ;;  %v12648_v12 = vld [vmem:[#allocation17_spill] sm:$0xff]  ;;  %v101_v53 = vrot.slane %v8329_v40, 7  ;;  %v8709_v30 = vld [vmem:[%s12108_s1 + $0x10] sm:$0xff]  ;;  %v8753_v5 = vsel %vm698_vm1, %v692_v4, %v693_v60 }
 0x131   :  { %2037 = vperm.xlu0 %7658, %v8689_v2   ;;  %v770_v35 = vmul.f32 %v8695_v13, %v12648_v12  ;;  %v1544_v4 = vmul.f32 %v8422_v37, %v8753_v5  ;;  %v696_v37 = vrot.slane %v8611_v3, 1 }
 0x132   :  { %6668 = vmatmul.mubr.msk.bf16.gmra.mrb[12].mxu1 %vm427_vm0, %v414_v10  ;;  %v8700_v43 = vpop.permute.xlu1 %1503  ;;  %v102_v10 = vrot.slane %v8318_v34, 7 }
 0x133   :  { %12649 = vst [vmem:[#allocation26_spill] sm:$0xff] %v8700_v43  ;;  %v1542_v59 = vmul.f32 %v8700_v43, %v8682_v46  ;;  %6675 = vmatprep.mubr.msk.bf16.mxu1 %vm427_vm0, %v315_v38  ;;  %v8721_v38 = vsel %vm118_vm2, %v100_v6, %v101_v53  ;;  %v8740_v6 = vld [vmem:[%s12108_s1 + $0x48] sm:$0xff]  ;;  %v103_v43 = vrot.slane %v8377_v47, 7 }
 0x134   :  { %816 = vperm.xlu1 %7635, %v770_v35   ;;  %v8726_v35 = vld [vmem:[%s12108_s1 + $0x28] sm:$0xff]  ;;  %v8731_v16 = vsel %vm118_vm2, %v101_v53, %v102_v10 }
 0x135   :  { %2041 = vperm.xlu0 %7658, %v8709_v30   ;;  %v1558_v12 = vpack.c.bf16 %v1543_v31, %v1542_v59  ;;  %v694_v31 = vrot.slane %v8591_v18, 1 }
 0x137   :  { %v8715_v25 = vpop.permute.xlu1 %227  ;;  %6763 = vmatprep.mubr.msk.bf16.mxu0 %vm427_vm0, %v1558_v12  ;;  %v772_v12 = vmul.f32 %v8740_v6, %v8425_v20  ;;  %v8757_v20 = vsel %vm698_vm1, %v693_v60, %v694_v31 }
 0x138   :  { %12651 = vst [vmem:[#allocation17_spill] sm:$0xff] %v8715_v25  ;;  %7636 = vset.pattern.permute.xlu1 %v12601_v24 }
 0x139   :  { %2053 = vperm.xlu0 %7658, %v8726_v35   ;;  %1852 = vperm.xlu1 %7636, %v1774_v8   ;;  %v297_v8 = vmul.f32 %v8715_v25, %v8721_v38 }
 0x13b   :  { %v8735_v59 = vpop.permute.xlu1 %232 }
 0x13c   :  { %12652 = vst [vmem:[#allocation19_spill] sm:$0xff] %v8735_v59  ;;  %v298_v53 = vmul.f32 %v8735_v59, %v8731_v16 }
 0x13d   :  { %2057 = vperm.xlu0 %7658, %v8667_v41   ;;  %7637 = vset.pattern.permute.xlu1 %v12593_v54 }
 0x13e   :  { %v316_v45 = vpack.c.bf16 %v298_v53, %v297_v8  ;;  %826 = vperm.xlu1 %7637, %v772_v12   ;;  %v8770_v12 = vsel %vm118_vm2, %v102_v10, %v103_v43  ;;  %v8777_v8 = vpop.permute.xlu0 %237  ;;  %v8784_v10 = vsel %vm118_vm2, %v103_v43, %v104_v55  ;;  %v12656_v43 = vld [vmem:[#allocation30_spill] sm:$0xff] }
 0x13f   :  { %12654 = vst [vmem:[#allocation74_spill] sm:$0xff] %v8777_v8 }
 0x140   :  { %v8763_v33 = vpop.permute.xlu1 %1515  ;;  %6676 = vmatmul.mubr.msk.bf16.vlgmr.msra.gmra.mrb[0].mxu1 %vm427_vm0, %v316_v45  ;;  %v7803_v45 = vld [vmem:[%s12108_s1] sm:$0xff] }
 0x141   :  { %12653 = vst [vmem:[#allocation73_spill] sm:$0xff] %v8763_v33  ;;  %v1545_v60 = vmul.f32 %v8763_v33, %v8757_v20  ;;  %2069 = vperm.xlu0 %7658, %v8740_v6   ;;  %6692 = vmatpush3.bf16.msra.mxu1 %v8539_v32  ;;  %v695_v33 = vrot.slane %v8637_v14, 1  ;;  %v299_v32 = vmul.f32 %v8777_v8, %v8770_v12 }
 0x142   :  { %7638 = vset.pattern.permute.xlu1 %v12601_v24  ;;  %6693 = vmatprep.subr.bf16.mxu1 %v7679_v11 }
 0x143   :  { %2033 = vperm.xlu1 %7638, %v7803_v45   ;;  %v1559_v53 = vpack.c.bf16 %v1545_v60, %v1544_v4  ;;  %v773_v4 = vmul.f32 %v8793_v63, %v12656_v43  ;;  %v8806_v8 = vsel %vm698_vm1, %v695_v33, %v696_v37  ;;  %v8810_v59 = vsel %vm698_vm1, %v694_v31, %v695_v33 }
 0x144   :  { %v1547_v33 = vmul.f32 %v8434_v29, %v8806_v8  ;;  %v12659_v29 = vld [vmem:[#allocation7_spill] sm:$0xff] }
 0x145   :  { %2073 = vperm.xlu0 %7658, %v8793_v63   ;;  %v8796_v45 = vpop.permute.xlu1 %242  ;;  %6764 = vmatmul.mubr.msk.bf16.gmra.mrb[8].mxu0 %vm427_vm0, %v1559_v53  ;;  %v8815_v53 = vld [vmem:[%s12108_s1 + $0x68] sm:$0xff] }
 0x146   :  { %12655 = vst [vmem:[#allocation75_spill] sm:$0xff] %v8796_v45  ;;  %v300_v60 = vmul.f32 %v8796_v45, %v8784_v10  ;;  %6694 = vmatpush3.bf16.msra.mxu1 %v7679_v11  ;;  %v8821_v11 = vld [vmem:[%s12108_s1 + $0x58] sm:$0xff] }
 0x147   :  { %7639 = vset.pattern.permute.xlu1 %v12593_v54  ;;  %v774_v43 = vmul.f32 %v8821_v11, %v8447_v61  ;;  %v105_v61 = vrot.slane %v8438_v7, 7 }
 0x148   :  { %831 = vperm.xlu1 %7639, %v773_v4   ;;  %v317_v25 = vpack.c.bf16 %v300_v60, %v299_v32  ;;  %v8835_v32 = vld [vmem:[%s12109_s2 + $0x70] sm:$0xff]   ;;  %v106_v60 = vrot.slane %v8430_v56, 7 }
 0x149   :  { %2085 = vperm.xlu0 %7658, %v8815_v53   ;;  %6791 = vmatprep.subr.bf16.mxu0 %v8835_v32 }
 0x14a   :  { %v8825_v4 = vpop.permute.xlu1 %1519  ;;  %6679 = vmatprep.mubr.msk.bf16.mxu1 %vm427_vm0, %v317_v25 }
 0x14b   :  { %12657 = vst [vmem:[#allocation30_spill] sm:$0xff] %v8825_v4  ;;  %v1546_v31 = vmul.f32 %v8825_v4, %v8810_v59 }
 0x14c   :  { %836 = vperm.xlu1 %7639, %v774_v43   ;;  %v8847_v43 = vsel %vm118_vm2, %v104_v55, %v105_v61  ;;  %v776_v55 = vmul.f32 %v8815_v53, %v8617_v36  ;;  %v108_v36 = vrot.slane %v8514_v28, 7  ;;  %v112_v28 = vrot.slane %v8591_v18, 7 }
 0x14d   :  { %2089 = vperm.xlu0 %7658, %v8018_v17   ;;  %v1560_v45 = vpack.c.bf16 %v1547_v33, %v1546_v31  ;;  %v8853_v17 = vld [vmem:[%s12108_s1 + $0x18] sm:$0xff]  ;;  %v8858_v33 = vsel %vm118_vm2, %v105_v61, %v106_v60 }
 0x14f   :  { %v8841_v25 = vpop.permute.xlu1 %247  ;;  %6767 = vmatprep.mubr.msk.bf16.mxu0 %vm427_vm0, %v1560_v45  ;;  %v697_v45 = vrot.slane %v8455_v22, 1 }
 0x150   :  { %12658 = vst [vmem:[#allocation76_spill] sm:$0xff] %v8841_v25  ;;  %7640 = vset.pattern.permute.xlu1 %v12601_v24 }
 0x151   :  { %2278 = vperm.xlu0 %7658, %v12659_v29   ;;  %2045 = vperm.xlu1 %7640, %v8853_v17   ;;  %v301_v29 = vmul.f32 %v8841_v25, %v8847_v43  ;;  %v8874_v61 = vsel %vm698_vm1, %v696_v37, %v697_v45  ;;  %v8881_v25 = vsel %vm698_vm1, %v697_v45, %v12662_v52  ;;  %v8896_v52 = vpop.permute.xlu0 %257 }
 0x152   :  { %v8890_v37 = vsel %vm118_vm2, %v106_v60, %v107_v19  ;;  %v8903_v45 = vsel %vm118_vm2, %v107_v19, %v108_v36 }
 0x153   :  { %v8861_v31 = vpop.permute.xlu1 %252 }
 0x154   :  { %12660 = vst [vmem:[#allocation7_spill] sm:$0xff] %v8861_v31  ;;  %v302_v4 = vmul.f32 %v8861_v31, %v8858_v33 }
 0x155   :  { %2282 = vperm.xlu0 %7658, %v12661_v21   ;;  %7641 = vset.pattern.permute.xlu1 %v12593_v54  ;;  %v1548_v21 = vmul.f32 %v8452_v57, %v8874_v61  ;;  %v303_v57 = vmul.f32 %v8896_v52, %v8890_v37 }
 0x156   :  { %846 = vperm.xlu1 %7641, %v776_v55   ;;  %v318_v23 = vpack.c.bf16 %v302_v4, %v301_v29  ;;  %v12664_v55 = vld [vmem:[#allocation14_spill] sm:$0xff]  ;;  %v8908_v29 = vld [vmem:[%s12108_s1 + $0x70] sm:$0xff] }
 0x157   :  { %12665 = vst [vmem:[#allocation14_spill] sm:$0xff] %v8896_v52 }
 0x158   :  { %v8883_v31 = vpop.permute.xlu1 %1531  ;;  %6680 = vmatmul.mubr.msk.bf16.gmra.mrb[4].mxu1 %vm427_vm0, %v318_v23  ;;  %v7808_v23 = vld [vmem:[%s12108_s1 + $0x20] sm:$0xff] }
 0x159   :  { %12663 = vst [vmem:[#allocation10_spill] sm:$0xff] %v8883_v31  ;;  %v1549_v4 = vmul.f32 %v8883_v31, %v8881_v25  ;;  %2294 = vperm.xlu0 %7658, %v12664_v55   ;;  %v12666_v55 = vld [vmem:[#allocation40_spill] sm:$0xff] }
 0x15a   :  { %7642 = vset.pattern.permute.xlu1 %v12601_v24  ;;  %v777_v31 = vmul.f32 %v8908_v29, %v12666_v55 }
 0x15b   :  { %2049 = vperm.xlu1 %7642, %v7808_v23   ;;  %v1561_v60 = vpack.c.bf16 %v1549_v4, %v1548_v21  ;;  %v12669_v4 = vld [vmem:[#allocation8_spill] sm:$0xff] }
 0x15c   :  { %v8925_v23 = vld [vmem:[%s12108_s1 + $0x78] sm:$0xff] }
 0x15d   :  { %2298 = vperm.xlu0 %7658, %v12667_v51   ;;  %v8915_v22 = vpop.permute.xlu1 %262  ;;  %6768 = vmatmul.mubr.msk.bf16.gmra.mrb[12].mxu0 %vm427_vm0, %v1561_v60  ;;  %v778_v51 = vmul.f32 %v8925_v23, %v8634_v44  ;;  %v110_v60 = vrot.slane %v8580_v0, 7 }
 0x15e   :  { %12668 = vst [vmem:[#allocation40_spill] sm:$0xff] %v8915_v22  ;;  %v304_v19 = vmul.f32 %v8915_v22, %v8903_v45 }
 0x15f   :  { %7643 = vset.pattern.permute.xlu1 %v12593_v54  ;;  %v8933_v54 = vpop.permute.xlu0 %277 }
 0x160   :  { %851 = vperm.xlu1 %7643, %v777_v31   ;;  %v319_v21 = vpack.c.bf16 %v304_v19, %v303_v57  ;;  %12671 = vst [vmem:[#allocation8_spill] sm:$0xff] %v8933_v54  ;;  %v12672_v57 = vld [vmem:[#allocation25_spill] sm:$0xff]  ;;  %v109_v31 = vrot.slane %v8597_v62, 7 }
 0x161   :  { %2306 = vperm.xlu0 %7658, %v12669_v4   ;;  %v12674_v4 = vld [vmem:[#allocation9_spill] sm:$0xff] }
 0x162   :  { %v8929_v55 = vpop.permute.xlu1 %1777  ;;  %6683 = vmatprep.mubr.msk.bf16.mxu1 %vm427_vm0, %v319_v21  ;;  %v8942_v44 = vsel %vm118_vm2, %v108_v36, %v109_v31  ;;  %v8948_v21 = vsel %vm118_vm2, %v109_v31, %v110_v60  ;;  %v111_v36 = vrot.slane %v8588_v58, 7  ;;  %v12677_v62 = vld [vmem:[#allocation41_spill] sm:$0xff] }
 0x163   :  { %12670 = vst [vmem:[#allocation15_spill] sm:$0xff] %v8929_v55 }
 0x164   :  { %856 = vperm.xlu1 %7643, %v778_v51   ;;  %v8950_v51 = vpop.permute.xlu0 %781 }
 0x165   :  { %2314 = vperm.xlu0 %7658, %v12672_v57   ;;  %12675 = vst [vmem:[#allocation9_spill] sm:$0xff] %v8950_v51 }
 0x167   :  { %v8937_v19 = vpop.permute.xlu1 %267 }
 0x168   :  { %12673 = vst [vmem:[#allocation25_spill] sm:$0xff] %v8937_v19  ;;  %7644 = vset.pattern.permute.xlu1 %v12601_v24  ;;  %v305_v22 = vmul.f32 %v8937_v19, %v8942_v44  ;;  %v8962_v0 = vpop.permute.xlu0 %801  ;;  %v8970_v19 = vsel %vm118_vm2, %v110_v60, %v111_v36 }
 0x169   :  { %2322 = vperm.xlu0 %7658, %v12674_v4   ;;  %2061 = vperm.xlu1 %7644, %v8695_v13   ;;  %v12678_v4 = vmov 2   ;;  %12679 = vst [vmem:[#allocation41_spill] sm:$0xff] %v8962_v0 }
 0x16b   :  { %v8952_v57 = vpop.permute.xlu1 %272 }
 0x16c   :  { %12676 = vst [vmem:[#allocation77_spill] sm:$0xff] %v8952_v57  ;;  %v306_v52 = vmul.f32 %v8952_v57, %v8948_v21 }
 0x16d   :  { %2330 = vperm.xlu0 %7658, %v12677_v62   ;;  %7646 = vset.pattern.permute.xlu1 %v12678_v4  ;;  %v7811_v62 = vld [vmem:[%s12108_s1 + $0x40] sm:$0xff] }
 0x16e   :  { %1041 = vperm.xlu1 %7646, %v8689_v2   ;;  %v320_v31 = vpack.c.bf16 %v306_v52, %v305_v22  ;;  %v8978_v22 = vsel %vm118_vm2, %v111_v36, %v112_v28  ;;  %v8980_v2 = vpop.permute.xlu0 %821  ;;  %v307_v52 = vmul.f32 %v8933_v54, %v8970_v19 }
 0x16f   :  { %12681 = vst [vmem:[#allocation79_spill] sm:$0xff] %v8980_v2 }
 0x170   :  { %v8965_v49 = vpop.permute.xlu1 %1792  ;;  %6684 = vmatmul.mubr.msk.bf16.gmra.mrb[8].mxu1 %vm427_vm0, %v320_v31 }
 0x171   :  { %12680 = vst [vmem:[#allocation78_spill] sm:$0xff] %v8965_v49 }
 0x172   :  { %7647 = vset.pattern.permute.xlu1 %v12601_v24 }
 0x173   :  { %2065 = vperm.xlu1 %7647, %v7811_v62   ;;  %v8992_v62 = vld [vmem:[%s12109_s2 + $0x30] sm:$0xff]  }
 0x174   :  { %6711 = vmatprep.subr.bf16.mxu1 %v8992_v62 }
 0x175   :  { %v8984_v31 = vpop.permute.xlu1 %282 }
 0x176   :  { %12682 = vst [vmem:[#allocation80_spill] sm:$0xff] %v8984_v31  ;;  %v308_v60 = vmul.f32 %v8984_v31, %v8978_v22  ;;  %v113_v31 = vrot.slane %v8637_v14, 7 }
 0x177   :  { %7648 = vset.pattern.permute.xlu1 %v12678_v4 }
 0x178   :  { %v321_v57 = vpack.c.bf16 %v308_v60, %v307_v52  ;;  %1045 = vperm.xlu1 %7648, %v8709_v30   ;;  %v9010_v30 = vsel %vm118_vm2, %v112_v28, %v113_v31  ;;  %v12687_v52 = vrot.slane %v8611_v3, 7 }
 0x179   :  { %v8995_v36 = vpop.permute.xlu0 %841 }
 0x17a   :  { %12683 = vst [vmem:[#allocation81_spill] sm:$0xff] %v8995_v36  ;;  %v8998_v54 = vpop.permute.xlu1 %1797  ;;  %6687 = vmatprep.mubr.msk.bf16.mxu1 %vm427_vm0, %v321_v57  ;;  %v9017_v57 = vsel %vm118_vm2, %v113_v31, %v12687_v52  ;;  %v7812_v52 = vld [vmem:[%s12108_s1 + $0x60] sm:$0xff] }
 0x17b   :  { %12684 = vst [vmem:[#allocation82_spill] sm:$0xff] %v8998_v54 }
 0x17c   :  { %1049 = vperm.xlu1 %7648, %v8853_v17  }
 0x17e   :  { %v9003_v18 = vpop.permute.xlu0 %1037 }
 0x17f   :  { %12685 = vst [vmem:[#allocation83_spill] sm:$0xff] %v9003_v18  ;;  %v9005_v58 = vpop.permute.xlu1 %287 }
 0x180   :  { %12686 = vst [vmem:[#allocation84_spill] sm:$0xff] %v9005_v58  ;;  %7649 = vset.pattern.permute.xlu1 %v12601_v24  ;;  %v309_v14 = vmul.f32 %v9005_v58, %v9010_v30  ;;  %v1855_v58 = vmul.f32 %v8929_v55, %v8721_v38 }
 0x181   :  { %2077 = vperm.xlu1 %7649, %v8821_v11  }
 0x182   :  { %v9019_v17 = vpop.permute.xlu0 %1053 }
 0x183   :  { %12688 = vst [vmem:[#allocation85_spill] sm:$0xff] %v9019_v17  ;;  %v9021_v60 = vpop.permute.xlu1 %292 }
 0x184   :  { %12689 = vst [vmem:[#allocation86_spill] sm:$0xff] %v9021_v60  ;;  %v310_v18 = vmul.f32 %v9021_v60, %v9017_v57 }
 0x185   :  { %7650 = vset.pattern.permute.xlu1 %v12678_v4 }
 0x186   :  { %v322_v28 = vpack.c.bf16 %v310_v18, %v309_v14  ;;  %1057 = vperm.xlu1 %7650, %v8726_v35   ;;  %v9029_v3 = vpop.permute.xlu0 %1069  ;;  %v859_v18 = vmul.f32 %v8950_v51, %v8881_v25  ;;  %v12694_v14 = vld [vmem:[#allocation35_spill] sm:$0xff] }
 0x187   :  { %12690 = vst [vmem:[#allocation87_spill] sm:$0xff] %v9029_v3 }
 0x188   :  { %v9031_v27 = vpop.permute.xlu1 %1812  ;;  %6688 = vmatmul.mubr.msk.bf16.gmra.mrb[12].mxu1 %vm427_vm0, %v322_v28 }
 0x189   :  { %12691 = vst [vmem:[#allocation88_spill] sm:$0xff] %v9031_v27 }
 0x18a   :  { %7651 = vset.pattern.permute.xlu1 %v12601_v24  ;;  %v9035_v31 = vpop.permute.xlu0 %1085 }
 0x18b   :  { %12692 = vst [vmem:[#allocation89_spill] sm:$0xff] %v9035_v31  ;;  %2081 = vperm.xlu1 %7651, %v7812_v52  }
 0x18d   :  { %v9040_v60 = vpop.permute.xlu1 %786 }
 0x18e   :  { %12693 = vst [vmem:[#allocation90_spill] sm:$0xff] %v9040_v60  ;;  %v860_v35 = vmul.f32 %v9040_v60, %v12694_v14  ;;  %v1858_v60 = vmul.f32 %v8965_v49, %v8784_v10  ;;  %v12702_v49 = vld [vmem:[#allocation43_spill] sm:$0xff] }
 0x18f   :  { %7652 = vset.pattern.permute.xlu1 %v12678_v4  ;;  %v9047_v28 = vpop.permute.xlu0 %1782 }
 0x190   :  { %12695 = vst [vmem:[#allocation91_spill] sm:$0xff] %v9047_v28  ;;  %v879_v31 = vpack.c.bf16 %v860_v35, %v859_v18  ;;  %v1856_v3 = vmul.f32 %v9047_v28, %v8731_v16  ;;  %1061 = vperm.xlu1 %7652, %v8667_v41   ;;  %v12701_v35 = vld [vmem:[#allocation34_spill] sm:$0xff] }
 0x192   :  { %v1875_v52 = vpack.c.bf16 %v1856_v3, %v1855_v58  ;;  %v9054_v17 = vpop.permute.xlu1 %1817  ;;  %6695 = vmatprep.mubr.msk.bf16.mxu1 %vm427_vm0, %v879_v31  ;;  %v7681_v58 = vld [vmem:[%s12109_s2 + $0x78] sm:$0xff]   ;;  %v1859_v31 = vmul.f32 %v8998_v54, %v8847_v43  ;;  %v1862_v54 = vmul.f32 %v9031_v27, %v8903_v45 }
 0x193   :  { %12696 = vst [vmem:[#allocation92_spill] sm:$0xff] %v9054_v17  ;;  %v9057_v51 = vpop.permute.xlu0 %1787 }
 0x194   :  { %12697 = vst [vmem:[#allocation93_spill] sm:$0xff] %v9057_v51  ;;  %v1857_v14 = vmul.f32 %v9057_v51, %v8770_v12  ;;  %1065 = vperm.xlu1 %7652, %v8695_v13   ;;  %6775 = vmatprep.mubr.msk.bf16.mxu0 %vm427_vm0, %v1875_v52 }
 0x196   :  { %v1876_v18 = vpack.c.bf16 %v1858_v60, %v1857_v14 }
 0x197   :  { %v9068_v3 = vpop.permute.xlu1 %791 }
 0x198   :  { %12698 = vst [vmem:[#allocation94_spill] sm:$0xff] %v9068_v3  ;;  %v9070_v41 = vpop.permute.xlu0 %1802  ;;  %7653 = vset.pattern.permute.xlu1 %v12601_v24  ;;  %6776 = vmatmul.mubr.msk.bf16.vlgmr.msra.gmra.mrb[0].mxu0 %vm427_vm0, %v1876_v18  ;;  %v861_v52 = vmul.f32 %v9068_v3, %v12701_v35 }
 0x199   :  { %12699 = vst [vmem:[#allocation95_spill] sm:$0xff] %v9070_v41  ;;  %v1860_v13 = vmul.f32 %v9070_v41, %v8858_v33  ;;  %2093 = vperm.xlu1 %7653, %v8925_v23   ;;  %6792 = vmatpush3.bf16.msra.mxu0 %v8835_v32 }
 0x19a   :  { %6793 = vmatprep.subr.bf16.mxu0 %v7681_v58 }
 0x19b   :  { %v1877_v60 = vpack.c.bf16 %v1860_v13, %v1859_v31  ;;  %v9080_v14 = vpop.permute.xlu1 %796  ;;  %v7683_v31 = vld [vmem:[%s12109_s2 + $0x38] sm:$0xff]  }
 0x19c   :  { %12700 = vst [vmem:[#allocation96_spill] sm:$0xff] %v9080_v14  ;;  %v862_v18 = vmul.f32 %v9080_v14, %v12702_v49  ;;  %v9086_v51 = vpop.permute.xlu0 %1807 }
 0x19d   :  { %12703 = vst [vmem:[#allocation34_spill] sm:$0xff] %v9086_v51  ;;  %v1861_v41 = vmul.f32 %v9086_v51, %v8890_v37  ;;  %6779 = vmatprep.mubr.msk.bf16.mxu0 %vm427_vm0, %v1877_v60  ;;  %7654 = vset.pattern.permute.xlu1 %v12678_v4  ;;  %v1863_v60 = vmul.f32 %v9054_v17, %v8942_v44 }
 0x19e   :  { %v880_v32 = vpack.c.bf16 %v862_v18, %v861_v52  ;;  %1073 = vperm.xlu1 %7654, %v8740_v6   ;;  %6794 = vmatpush3.bf16.msra.mxu0 %v7681_v58 }
 0x19f   :  { %v1878_v13 = vpack.c.bf16 %v1862_v54, %v1861_v41  ;;  %v12706_v54 = vld [vmem:[#allocation5_spill] sm:$0xff] }
 0x1a0   :  { %v9098_v28 = vpop.permute.xlu0 %1822  ;;  %v9100_v55 = vpop.permute.xlu1 %1832  ;;  %6696 = vmatmul.mubr.msk.bf16.vlgmr.msra.gmra.mrb[0].mxu1 %vm427_vm0, %v880_v32 }
 0x1a1   :  { %12704 = vst [vmem:[#allocation43_spill] sm:$0xff] %v9098_v28  ;;  %12705 = vst [vmem:[#allocation97_spill] sm:$0xff] %v9100_v55  ;;  %v1864_v52 = vmul.f32 %v9098_v28, %v8948_v21  ;;  %6780 = vmatmul.mubr.msk.bf16.gmra.mrb[4].mxu0 %vm427_vm0, %v1878_v13  ;;  %6712 = vmatpush3.bf16.msra.mxu1 %v8992_v62  ;;  %v1866_v41 = vmul.f32 %v9100_v55, %v8978_v22  ;;  %v9123_v62 = vld [vmem:[%s12109_s2 + $0x80] sm:$0xff]  }
 0x1a2   :  { %7655 = vset.pattern.permute.xlu1 %v12601_v24  ;;  %6713 = vmatprep.subr.bf16.mxu1 %v7683_v31  ;;  %v12709_v13 = vld [vmem:[#allocation45_spill] sm:$0xff] }
 0x1a3   :  { %v1879_v6 = vpack.c.bf16 %v1864_v52, %v1863_v60  ;;  %2274 = vperm.xlu1 %7655, %v12706_v54   ;;  %v863_v60 = vmul.f32 %v8962_v0, %v12709_v13  ;;  %v9132_v54 = vld [vmem:[%s12109_s2 + $0x40] sm:$0xff]   ;;  %6811 = vmatprep.subr.bf16.mxu0 %v9123_v62 }
 0x1a4   :  { %v9111_v58 = vpop.permute.xlu0 %1827 }
 0x1a5   :  { %12707 = vst [vmem:[#allocation5_spill] sm:$0xff] %v9111_v58  ;;  %v1865_v18 = vmul.f32 %v9111_v58, %v8970_v19  ;;  %6783 = vmatprep.mubr.msk.bf16.mxu0 %vm427_vm0, %v1879_v6  ;;  %v9118_v32 = vpop.permute.xlu1 %806  ;;  %6714 = vmatpush3.bf16.msra.mxu1 %v7683_v31 }
 0x1a6   :  { %12708 = vst [vmem:[#allocation98_spill] sm:$0xff] %v9118_v32  ;;  %v864_v52 = vmul.f32 %v9118_v32, %v8478_v39  ;;  %7191 = vmatprep.subr.bf16.mxu1 %v9132_v54 }
 0x1a7   :  { %v1880_v6 = vpack.c.bf16 %v1866_v41, %v1865_v18  ;;  %7656 = vset.pattern.permute.xlu1 %v12678_v4 }
 0x1a8   :  { %v881_v31 = vpack.c.bf16 %v864_v52, %v863_v60  ;;  %v9137_v55 = vpop.permute.xlu0 %1842  ;;  %1077 = vperm.xlu1 %7656, %v8793_v63   ;;  %v12713_v63 = vld [vmem:[#allocation11_spill] sm:$0xff] }
 0x1a9   :  { %12710 = vst [vmem:[#allocation45_spill] sm:$0xff] %v9137_v55  ;;  %6784 = vmatmul.mubr.msk.bf16.gmra.mrb[8].mxu0 %vm427_vm0, %v1880_v6  ;;  %v1868_v28 = vmul.f32 %v9137_v55, %v9017_v57 }
 0x1aa   :  { %v9141_v58 = vpop.permute.xlu1 %1837  ;;  %6699 = vmatprep.mubr.msk.bf16.mxu1 %vm427_vm0, %v881_v31 }
 0x1ab   :  { %12711 = vst [vmem:[#allocation99_spill] sm:$0xff] %v9141_v58  ;;  %v1867_v41 = vmul.f32 %v9141_v58, %v9010_v30  ;;  %v12717_v58 = vld [vmem:[#allocation6_spill] sm:$0xff] }
 0x1ac   :  { %1081 = vperm.xlu1 %7656, %v8821_v11   ;;  %v9161_v11 = vpop.permute.xlu0 %1847 }
 0x1ad   :  { %v1881_v18 = vpack.c.bf16 %v1868_v28, %v1867_v41  ;;  %12715 = vst [vmem:[#allocation101_spill] sm:$0xff] %v9161_v11 }
 0x1af   :  { %v9149_v60 = vpop.permute.xlu1 %811  ;;  %6787 = vmatprep.mubr.msk.bf16.mxu0 %vm427_vm0, %v1881_v18  ;;  %v1869_v18 = vmul.f32 %v9161_v11, %v8647_v15 }
 0x1b0   :  { %12712 = vst [vmem:[#allocation100_spill] sm:$0xff] %v9149_v60  ;;  %7657 = vset.pattern.permute.xlu1 %v12601_v24  ;;  %v865_v6 = vmul.f32 %v9149_v60, %v8466_v50 }
 0x1b1   :  { %2286 = vperm.xlu1 %7657, %v12713_v63  }
 0x1b3   :  { %v9154_v52 = vpop.permute.xlu1 %816 }
 0x1b4   :  { %12714 = vst [vmem:[#allocation11_spill] sm:$0xff] %v9154_v52  ;;  %v866_v31 = vmul.f32 %v9154_v52, %v8551_v9 }
 0x1b5   :  { %7659 = vset.pattern.permute.xlu1 %v12678_v4 }
 0x1b6   :  { %v882_v28 = vpack.c.bf16 %v866_v31, %v865_v6  ;;  %1089 = vperm.xlu1 %7659, %v8815_v53   ;;  %v867_v53 = vmul.f32 %v8980_v2, %v8574_v42  ;;  %v9181_v31 = vpop.permute.xlu0 %2037 }
 0x1b7   :  { %12719 = vst [vmem:[#allocation103_spill] sm:$0xff] %v9181_v31 }
 0x1b8   :  { %v9164_v41 = vpop.permute.xlu1 %1852  ;;  %6700 = vmatmul.mubr.msk.bf16.gmra.mrb[4].mxu1 %vm427_vm0, %v882_v28 }
 0x1b9   :  { %12716 = vst [vmem:[#allocation102_spill] sm:$0xff] %v9164_v41  ;;  %v1870_v63 = vmul.f32 %v9164_v41, %v8654_v1 }
 0x1ba   :  { %7660 = vset.pattern.permute.xlu1 %v12601_v24 }
 0x1bb   :  { %v1882_v55 = vpack.c.bf16 %v1870_v63, %v1869_v18  ;;  %2290 = vperm.xlu1 %7660, %v12717_v58   ;;  %v2097_v58 = vmul.f32 %v9181_v31, %v8318_v34 }
 0x1bd   :  { %v9173_v17 = vpop.permute.xlu1 %826  ;;  %6788 = vmatmul.mubr.msk.bf16.gmra.mrb[12].mxu0 %vm427_vm0, %v1882_v55 }
 0x1be   :  { %12718 = vst [vmem:[#allocation6_spill] sm:$0xff] %v9173_v17  ;;  %v868_v6 = vmul.f32 %v9173_v17, %v8682_v46 }
 0x1bf   :  { %7661 = vset.pattern.permute.xlu1 %v12678_v4 }
 0x1c0   :  { %v883_v28 = vpack.c.bf16 %v868_v6, %v867_v53  ;;  %1093 = vperm.xlu1 %7661, %v8908_v29   ;;  %v12722_v29 = vld [vmem:[#allocation16_spill] sm:$0xff] }
 0x1c2   :  { %v9186_v18 = vpop.permute.xlu1 %2033  ;;  %6703 = vmatprep.mubr.msk.bf16.mxu1 %vm427_vm0, %v883_v28 }
 0x1c3   :  { %12720 = vst [vmem:[#allocation104_spill] sm:$0xff] %v9186_v18  ;;  %v2096_v55 = vmul.f32 %v9186_v18, %v8329_v40  ;;  %v12724_v40 = vld [vmem:[#allocation21_spill] sm:$0xff] }
 0x1c4   :  { %1097 = vperm.xlu1 %7661, %v8925_v23   ;;  %v9204_v23 = vpop.permute.xlu0 %2041 }
 0x1c5   :  { %v2116_v63 = vpack.c.bf16 %v2097_v58, %v2096_v55  ;;  %12725 = vst [vmem:[#allocation21_spill] sm:$0xff] %v9204_v23  ;;  %v2098_v28 = vmul.f32 %v9204_v23, %v8377_v47  ;;  %v12727_v55 = vld [vmem:[#allocation28_spill] sm:$0xff]  ;;  %v871_v47 = vmul.f32 %v8995_v36, %v8757_v20 }
 0x1c7   :  { %v9192_v41 = vpop.permute.xlu1 %831  ;;  %6795 = vmatprep.mubr.msk.bf16.mxu0 %vm427_vm0, %v2116_v63 }
 0x1c8   :  { %12721 = vst [vmem:[#allocation105_spill] sm:$0xff] %v9192_v41  ;;  %7662 = vset.pattern.permute.xlu1 %v12601_v24  ;;  %v869_v34 = vmul.f32 %v9192_v41, %v8660_v26 }
 0x1c9   :  { %2302 = vperm.xlu1 %7662, %v12722_v29   ;;  %v7685_v29 = vld [vmem:[%s12109_s2 + $0x88] sm:$0xff]  }
 0x1cb   :  { %v9197_v4 = vpop.permute.xlu1 %836 }
 0x1cc   :  { %12723 = vst [vmem:[#allocation16_spill] sm:$0xff] %v9197_v4  ;;  %v870_v53 = vmul.f32 %v9197_v4, %v8753_v5 }
 0x1cd   :  { %2310 = vperm.xlu1 %7662, %v12724_v40  }
 0x1ce   :  { %v884_v6 = vpack.c.bf16 %v870_v53, %v869_v34  ;;  %v12729_v34 = vld [vmem:[#allocation37_spill] sm:$0xff] }
 0x1d0   :  { %v9208_v58 = vpop.permute.xlu1 %2045  ;;  %6704 = vmatmul.mubr.msk.bf16.gmra.mrb[8].mxu1 %vm427_vm0, %v884_v6 }
 0x1d1   :  { %12726 = vst [vmem:[#allocation106_spill] sm:$0xff] %v9208_v58  ;;  %v2099_v24 = vmul.f32 %v9208_v58, %v8380_v48  ;;  %2318 = vperm.xlu1 %7662, %v12727_v55   ;;  %v9226_v48 = vpop.permute.xlu0 %2053 }
 0x1d2   :  { %12730 = vst [vmem:[#allocation37_spill] sm:$0xff] %v9226_v48 }
 0x1d3   :  { %v2117_v63 = vpack.c.bf16 %v2099_v24, %v2098_v28  ;;  %v2101_v28 = vmul.f32 %v9226_v48, %v8430_v56  ;;  %v12731_v24 = vld [vmem:[#allocation46_spill] sm:$0xff] }
 0x1d5   :  { %v9217_v40 = vpop.permute.xlu1 %846  ;;  %2326 = vperm.xlu1 %7662, %v12729_v34   ;;  %6796 = vmatmul.mubr.msk.bf16.vlgmr.msra.gmra.mrb[0].mxu0 %vm427_vm0, %v2117_v63 }
 0x1d6   :  { %12728 = vst [vmem:[#allocation28_spill] sm:$0xff] %v9217_v40  ;;  %v872_v53 = vmul.f32 %v9217_v40, %v8810_v59  ;;  %6812 = vmatpush3.bf16.msra.mxu0 %v9123_v62 }
 0x1d7   :  { %6813 = vmatprep.subr.bf16.mxu0 %v7685_v29 }
 0x1d8   :  { %v885_v6 = vpack.c.bf16 %v872_v53, %v871_v47  ;;  %v9245_v53 = vpop.permute.xlu0 %2057 }
 0x1d9   :  { %2334 = vperm.xlu1 %7662, %v12731_v24   ;;  %12735 = vst [vmem:[#allocation109_spill] sm:$0xff] %v9245_v53 }
 0x1da   :  { %v9231_v55 = vpop.permute.xlu1 %2049  ;;  %6707 = vmatprep.mubr.msk.bf16.mxu1 %vm427_vm0, %v885_v6  ;;  %6814 = vmatpush3.bf16.msra.mxu0 %v7685_v29  ;;  %v12736_v29 = vld [vmem:[#allocation56_spill] sm:$0xff] }
 0x1db   :  { %12732 = vst [vmem:[#allocation46_spill] sm:$0xff] %v9231_v55  ;;  %v2100_v63 = vmul.f32 %v9231_v55, %v8438_v7  ;;  %v2102_v24 = vmul.f32 %v9245_v53, %v12736_v29  ;;  %v12740_v55 = vld [vmem:[#allocation83_spill] sm:$0xff]  ;;  %v12742_v53 = vld [vmem:[#allocation64_spill] sm:$0xff] }
 0x1dc   :  { %v1100_v27 = vmul.f32 %v12740_v55, %v8654_v1 }
 0x1dd   :  { %v2118_v34 = vpack.c.bf16 %v2101_v28, %v2100_v63  ;;  %v12738_v28 = vld [vmem:[#allocation57_spill] sm:$0xff] }
 0x1df   :  { %v9236_v11 = vpop.permute.xlu1 %851  ;;  %6799 = vmatprep.mubr.msk.bf16.mxu0 %vm427_vm0, %v2118_v34 }
 0x1e0   :  { %12733 = vst [vmem:[#allocation107_spill] sm:$0xff] %v9236_v11  ;;  %v873_v56 = vmul.f32 %v9236_v11, %v8806_v8 }
 0x1e3   :  { %v9239_v62 = vpop.permute.xlu1 %856 }
 0x1e4   :  { %12734 = vst [vmem:[#allocation108_spill] sm:$0xff] %v9239_v62  ;;  %v874_v47 = vmul.f32 %v9239_v62, %v8874_v61 }
 0x1e6   :  { %v886_v6 = vpack.c.bf16 %v874_v47, %v873_v56  ;;  %v9261_v47 = vpop.permute.xlu0 %2069 }
 0x1e7   :  { %12741 = vst [vmem:[#allocation110_spill] sm:$0xff] %v9261_v47 }
 0x1e8   :  { %v9249_v7 = vpop.permute.xlu1 %2061  ;;  %6708 = vmatmul.mubr.msk.bf16.gmra.mrb[12].mxu1 %vm427_vm0, %v886_v6  ;;  %v2105_v6 = vmul.f32 %v9261_v47, %v12742_v53 }
 0x1e9   :  { %12737 = vst [vmem:[#allocation56_spill] sm:$0xff] %v9249_v7  ;;  %v2103_v63 = vmul.f32 %v9249_v7, %v12738_v28 }
 0x1eb   :  { %v2119_v34 = vpack.c.bf16 %v2103_v63, %v2102_v24  ;;  %v12744_v24 = vld [vmem:[#allocation69_spill] sm:$0xff] }
 0x1ed   :  { %v9254_v48 = vpop.permute.xlu1 %1041  ;;  %6800 = vmatmul.mubr.msk.bf16.gmra.mrb[4].mxu0 %vm427_vm0, %v2119_v34 }
 0x1ee   :  { %12739 = vst [vmem:[#allocation57_spill] sm:$0xff] %v9254_v48  ;;  %v1101_v56 = vmul.f32 %v9254_v48, %v8721_v38 }
 0x1f0   :  { %v1120_v29 = vpack.c.bf16 %v1101_v56, %v1100_v27  ;;  %v9279_v56 = vpop.permute.xlu0 %2073 }
 0x1f1   :  { %12747 = vst [vmem:[#allocation112_spill] sm:$0xff] %v9279_v56 }
 0x1f2   :  { %v9265_v51 = vpop.permute.xlu1 %2065  ;;  %6715 = vmatprep.mubr.msk.bf16.mxu1 %vm427_vm0, %v1120_v29 }
 0x1f3   :  { %12743 = vst [vmem:[#allocation64_spill] sm:$0xff] %v9265_v51  ;;  %v2104_v28 = vmul.f32 %v9265_v51, %v12744_v24 }
 0x1f5   :  { %v2120_v63 = vpack.c.bf16 %v2105_v6, %v2104_v28  ;;  %v12749_v6 = vld [vmem:[#allocation66_spill] sm:$0xff]  ;;  %v12750_v28 = vld [vmem:[#allocation67_spill] sm:$0xff] }
 0x1f6   :  { %v2106_v24 = vmul.f32 %v9279_v56, %v12749_v6  ;;  %v12755_v56 = vld [vmem:[#allocation71_spill] sm:$0xff] }
 0x1f7   :  { %v9270_v34 = vpop.permute.xlu1 %1045  ;;  %6803 = vmatprep.mubr.msk.bf16.mxu0 %vm427_vm0, %v2120_v63 }
 0x1f8   :  { %12745 = vst [vmem:[#allocation69_spill] sm:$0xff] %v9270_v34  ;;  %v1102_v27 = vmul.f32 %v9270_v34, %v8731_v16  ;;  %v7814_v16 = vld [vmem:[%s12109_s2 + $0x48] sm:$0xff]   ;;  %s6289_s2 = sld [smem:[#allocation2 + $0x1]] }
 0x1fb   :  { %v9273_v1 = vpop.permute.xlu1 %1049 }
 0x1fc   :  { %12746 = vst [vmem:[#allocation111_spill] sm:$0xff] %v9273_v1  ;;  %v1103_v38 = vmul.f32 %v9273_v1, %v8770_v12 }
 0x1fe   :  { %v1121_v53 = vpack.c.bf16 %v1103_v38, %v1102_v27  ;;  %v12752_v38 = vld [vmem:[#allocation85_spill] sm:$0xff] }
 0x200   :  { %v9281_v29 = vpop.permute.xlu1 %2077  ;;  %6716 = vmatmul.mubr.msk.bf16.vlgmr.msra.gmra.mrb[0].mxu1 %vm427_vm0, %v1121_v53  ;;  %v1104_v53 = vmul.f32 %v12752_v38, %v8784_v10 }
 0x201   :  { %12748 = vst [vmem:[#allocation113_spill] sm:$0xff] %v9281_v29  ;;  %v2107_v63 = vmul.f32 %v9281_v29, %v12750_v28  ;;  %7193 = vmatpush3.bf16.msra.mxu1 %v9132_v54  ;;  %v9299_v29 = vpop.permute.xlu0 %2085 }
 0x202   :  { %7192 = vmatprep.subr.bf16.mxu1 %v7814_v16  ;;  %12753 = vst [vmem:[#allocation67_spill] sm:$0xff] %v9299_v29 }
 0x203   :  { %v2121_v12 = vpack.c.bf16 %v2107_v63, %v2106_v24  ;;  %v2109_v24 = vmul.f32 %v9299_v29, %v12755_v56  ;;  %v12756_v63 = vld [vmem:[#allocation23_spill] sm:$0xff] }
 0x205   :  { %v9292_v27 = vpop.permute.xlu1 %1057  ;;  %6804 = vmatmul.mubr.msk.bf16.gmra.mrb[8].mxu0 %vm427_vm0, %v2121_v12  ;;  %7194 = vmatpush3.bf16.msra.mxu1 %v7814_v16 }
 0x206   :  { %12751 = vst [vmem:[#allocation66_spill] sm:$0xff] %v9292_v27  ;;  %v1105_v6 = vmul.f32 %v9292_v27, %v8847_v43  ;;  %v12857_v27 = vld [vmem:[#allocation60_spill] sm:$0xff] }
 0x208   :  { %v1122_v28 = vpack.c.bf16 %v1105_v6, %v1104_v53 }
 0x20a   :  { %v9301_v54 = vpop.permute.xlu1 %2081  ;;  %6719 = vmatprep.mubr.msk.bf16.mxu1 %vm427_vm0, %v1122_v28  ;;  %v9317_v28 = vpop.permute.xlu0 %2089 }
 0x20b   :  { %12754 = vst [vmem:[#allocation114_spill] sm:$0xff] %v9301_v54  ;;  %v2108_v12 = vmul.f32 %v9301_v54, %v12756_v63  ;;  %12759 = vst [vmem:[#allocation115_spill] sm:$0xff] %v9317_v28 }
 0x20d   :  { %v2122_v16 = vpack.c.bf16 %v2109_v24, %v2108_v12  ;;  %v12761_v24 = vld [vmem:[#allocation51_spill] sm:$0xff] }
 0x20e   :  { %v2110_v63 = vmul.f32 %v9317_v28, %v12761_v24  ;;  %v12762_v12 = vld [vmem:[#allocation31_spill] sm:$0xff] }
 0x20f   :  { %v9308_v47 = vpop.permute.xlu1 %1061  ;;  %6807 = vmatprep.mubr.msk.bf16.mxu0 %vm427_vm0, %v2122_v16 }
 0x210   :  { %12757 = vst [vmem:[#allocation71_spill] sm:$0xff] %v9308_v47  ;;  %v1106_v43 = vmul.f32 %v9308_v47, %v8858_v33  ;;  %v12764_v33 = vld [vmem:[#allocation87_spill] sm:$0xff] }
 0x213   :  { %v9311_v10 = vpop.permute.xlu1 %1065 }
 0x214   :  { %12758 = vst [vmem:[#allocation23_spill] sm:$0xff] %v9311_v10  ;;  %v1107_v53 = vmul.f32 %v9311_v10, %v8890_v37  ;;  %v1108_v37 = vmul.f32 %v12764_v33, %v8903_v45 }
 0x216   :  { %v1123_v6 = vpack.c.bf16 %v1107_v53, %v1106_v43  ;;  %v9333_v53 = vpop.permute.xlu0 %2278 }
 0x217   :  { %12765 = vst [vmem:[#allocation31_spill] sm:$0xff] %v9333_v53  ;;  %v2338_v24 = vmul.f32 %v9333_v53, %v12702_v49 }
 0x218   :  { %v9319_v56 = vpop.permute.xlu1 %2093  ;;  %6720 = vmatmul.mubr.msk.bf16.gmra.mrb[4].mxu1 %vm427_vm0, %v1123_v6 }
 0x219   :  { %12760 = vst [vmem:[#allocation116_spill] sm:$0xff] %v9319_v56  ;;  %v2111_v16 = vmul.f32 %v9319_v56, %v12762_v12 }
 0x21b   :  { %v2123_v29 = vpack.c.bf16 %v2111_v16, %v2110_v63 }
 0x21d   :  { %v9326_v54 = vpop.permute.xlu1 %1073  ;;  %6808 = vmatmul.mubr.msk.bf16.gmra.mrb[12].mxu0 %vm427_vm0, %v2123_v29 }
 0x21e   :  { %12763 = vst [vmem:[#allocation51_spill] sm:$0xff] %v9326_v54  ;;  %v1109_v43 = vmul.f32 %v9326_v54, %v8942_v44 }
 0x220   :  { %v1124_v6 = vpack.c.bf16 %v1109_v43, %v1108_v37  ;;  %v9351_v37 = vpop.permute.xlu0 %2282 }
 0x221   :  { %12769 = vst [vmem:[#allocation120_spill] sm:$0xff] %v9351_v37 }
 0x222   :  { %v9335_v51 = vpop.permute.xlu1 %2274  ;;  %6723 = vmatprep.mubr.msk.bf16.mxu1 %vm427_vm0, %v1124_v6 }
 0x223   :  { %12766 = vst [vmem:[#allocation117_spill] sm:$0xff] %v9335_v51  ;;  %v2337_v63 = vmul.f32 %v9335_v51, %v12701_v35  ;;  %v2339_v35 = vmul.f32 %v9351_v37, %v12709_v13 }
 0x225   :  { %v2357_v29 = vpack.c.bf16 %v2338_v24, %v2337_v63 }
 0x227   :  { %v9342_v12 = vpop.permute.xlu1 %1077  ;;  %6815 = vmatprep.mubr.msk.bf16.mxu0 %vm427_vm0, %v2357_v29 }
 0x228   :  { %12767 = vst [vmem:[#allocation118_spill] sm:$0xff] %v9342_v12  ;;  %v1110_v44 = vmul.f32 %v9342_v12, %v8948_v21  ;;  %v12802_v12 = vld [vmem:[#allocation19_spill] sm:$0xff] }
 0x22b   :  { %v9345_v45 = vpop.permute.xlu1 %1081 }
 0x22c   :  { %12768 = vst [vmem:[#allocation119_spill] sm:$0xff] %v9345_v45  ;;  %v1111_v16 = vmul.f32 %v9345_v45, %v8970_v19  ;;  %v12772_v19 = vld [vmem:[#allocation89_spill] sm:$0xff] }
 0x22d   :  { %v1112_v21 = vmul.f32 %v12772_v19, %v8978_v22  ;;  %v12800_v45 = vld [vmem:[#allocation17_spill] sm:$0xff] }
 0x22e   :  { %v1125_v43 = vpack.c.bf16 %v1111_v16, %v1110_v44  ;;  %v9367_v44 = vpop.permute.xlu0 %2294 }
 0x22f   :  { %12773 = vst [vmem:[#allocation123_spill] sm:$0xff] %v9367_v44 }
 0x230   :  { %v9353_v49 = vpop.permute.xlu1 %2286  ;;  %6724 = vmatmul.mubr.msk.bf16.gmra.mrb[8].mxu1 %vm427_vm0, %v1125_v43 }
 0x231   :  { %12770 = vst [vmem:[#allocation121_spill] sm:$0xff] %v9353_v49  ;;  %v2340_v6 = vmul.f32 %v9353_v49, %v8478_v39  ;;  %v2342_v39 = vmul.f32 %v9367_v44, %v8551_v9 }
 0x233   :  { %v2358_v24 = vpack.c.bf16 %v2340_v6, %v2339_v35  ;;  %v9376_v6 = vpop.permute.xlu0 %2298 }
 0x234   :  { %12775 = vst [vmem:[#allocation125_spill] sm:$0xff] %v9376_v6 }
 0x235   :  { %v9360_v63 = vpop.permute.xlu1 %1089  ;;  %6816 = vmatmul.mubr.msk.bf16.vlgmr.msra.gmra.mrb[0].mxu0 %vm427_vm0, %v2358_v24 }
 0x236   :  { %12771 = vst [vmem:[#allocation122_spill] sm:$0xff] %v9360_v63  ;;  %v1113_v29 = vmul.f32 %v9360_v63, %v9010_v30  ;;  %v12796_v63 = vld [vmem:[#allocation13_spill] sm:$0xff] }
 0x237   :  { %v9383_v24 = vpop.permute.xlu0 %2306 }
 0x238   :  { %v1126_v16 = vpack.c.bf16 %v1113_v29, %v1112_v21  ;;  %12778 = vst [vmem:[#allocation128_spill] sm:$0xff] %v9383_v24 }
 0x23a   :  { %v9369_v43 = vpop.permute.xlu1 %2290  ;;  %6727 = vmatprep.mubr.msk.bf16.mxu1 %vm427_vm0, %v1126_v16 }
 0x23b   :  { %12774 = vst [vmem:[#allocation124_spill] sm:$0xff] %v9369_v43  ;;  %v2341_v13 = vmul.f32 %v9369_v43, %v8466_v50  ;;  %v7815_v50 = vld [vmem:[%s12107_s0 + $0x20] sm:$0xff]  }
 0x23d   :  { %v2359_v35 = vpack.c.bf16 %v2342_v39, %v2341_v13  ;;  %v2343_v39 = vmul.f32 %v9376_v6, %v8574_v42 }
 0x23f   :  { %v9378_v22 = vpop.permute.xlu1 %1093  ;;  %6819 = vmatprep.mubr.msk.bf16.mxu0 %vm427_vm0, %v2359_v35 }
 0x240   :  { %12776 = vst [vmem:[#allocation126_spill] sm:$0xff] %v9378_v22  ;;  %v1114_v21 = vmul.f32 %v9378_v22, %v9017_v57  ;;  %v9400_v57 = vpop.permute.xlu0 %2314 }
 0x241   :  { %12780 = vst [vmem:[#allocation130_spill] sm:$0xff] %v9400_v57 }
 0x243   :  { %v9381_v30 = vpop.permute.xlu1 %1097 }
 0x244   :  { %12777 = vst [vmem:[#allocation127_spill] sm:$0xff] %v9381_v30  ;;  %v1115_v9 = vmul.f32 %v9381_v30, %v8647_v15  ;;  %v9409_v42 = vpop.permute.xlu0 %2322 }
 0x245   :  { %12782 = vst [vmem:[#allocation132_spill] sm:$0xff] %v9409_v42 }
 0x246   :  { %v1127_v29 = vpack.c.bf16 %v1115_v9, %v1114_v21  ;;  %v2345_v21 = vmul.f32 %v9383_v24, %v8660_v26  ;;  %v12785_v26 = vld [vmem:[#allocation63_spill] sm:$0xff] }
 0x248   :  { %v9392_v16 = vpop.permute.xlu1 %2302  ;;  %6728 = vmatmul.mubr.msk.bf16.gmra.mrb[12].mxu1 %vm427_vm0, %v1127_v29 }
 0x249   :  { %12779 = vst [vmem:[#allocation129_spill] sm:$0xff] %v9392_v16  ;;  %v2344_v13 = vmul.f32 %v9392_v16, %v8682_v46  ;;  %6743 = vmatprep.mubr.msk.bf16.mxu1 %vm427_vm0, %v7815_v50  ;;  %v12784_v46 = vld [vmem:[#allocation62_spill] sm:$0xff]  ;;  %v2347_v50 = vmul.f32 %v9400_v57, %v8757_v20  ;;  %v9474_v16 = vstv %s2576_s13 }
 0x24b   :  { %v2360_v15 = vpack.c.bf16 %v2344_v13, %v2343_v39 }
 0x24c   :  { %v9402_v35 = vpop.permute.xlu1 %2310 }
 0x24d   :  { %12781 = vst [vmem:[#allocation131_spill] sm:$0xff] %v9402_v35  ;;  %v2346_v9 = vmul.f32 %v9402_v35, %v8753_v5  ;;  %6820 = vmatmul.mubr.msk.bf16.gmra.mrb[4].mxu0 %vm427_vm0, %v2360_v15  ;;  %v7816_v15 = vld [vmem:[%s12107_s0 + $0x38] sm:$0xff]  }
 0x24f   :  { %v2361_v29 = vpack.c.bf16 %v2346_v9, %v2345_v21  ;;  %v2349_v21 = vmul.f32 %v9409_v42, %v8806_v8 }
 0x250   :  { %v9411_v6 = vpop.permute.xlu1 %2318  ;;  %6744 = vmatmul.mubr.msk.bf16.vlgmr.msra.gmra.mrb[8].mxu1 %vm427_vm0, %v12784_v46 }
 0x251   :  { %12783 = vst [vmem:[#allocation133_spill] sm:$0xff] %v9411_v6  ;;  %v2348_v39 = vmul.f32 %v9411_v6, %v8810_v59  ;;  %6823 = vmatprep.mubr.msk.bf16.mxu0 %vm427_vm0, %v2361_v29  ;;  %6747 = vmatprep.mubr.msk.bf16.mxu1 %vm427_vm0, %v12785_v26  ;;  %v9432_v59 = vpop.permute.xlu0 %2330  ;;  %v7690_v26 = vld [vmem:[%s12112_s5 + $0x18] sm:$0xff]  }
 0x252   :  { %12787 = vst [vmem:[#allocation63_spill] sm:$0xff] %v9432_v59  ;;  %v2351_v46 = vmul.f32 %v9432_v59, %v8881_v25  ;;  %v9452_v25 = vld [vmem:[%s12112_s5] sm:$0xff]  }
 0x253   :  { %v2362_v5 = vpack.c.bf16 %v2348_v39, %v2347_v50  ;;  %v12789_v50 = vld [vmem:[#allocation35_spill] sm:$0xff] }
 0x254   :  { %v9422_v13 = vpop.permute.xlu1 %2326 }
 0x255   :  { %12786 = vst [vmem:[#allocation62_spill] sm:$0xff] %v9422_v13  ;;  %v2350_v20 = vmul.f32 %v9422_v13, %v8874_v61  ;;  %6824 = vmatmul.mubr.msk.bf16.gmra.mrb[8].mxu0 %vm427_vm0, %v2362_v5  ;;  %v7689_v61 = vld [vmem:[%s12112_s5 + $0x10] sm:$0xff]   ;;  %v9471_v13 = vld [vmem:[%s12111_s4] ss:$0 sm:$0xff] }
 0x256   :  { %6831 = vmatprep.subr.bf16.mxu1 %v7689_v61 }
 0x257   :  { %v2363_v9 = vpack.c.bf16 %v2350_v20, %v2349_v21  ;;  %6832 = vmatpush3.bf16.msra.mxu1 %v7689_v61  ;;  %v9466_v61 = vld [vmem:[%s12110_s3] ss:$0 sm:$0xff] }
 0x258   :  { %v9434_v29 = vpop.permute.xlu1 %2334  ;;  %6748 = vmatmul.mubr.msk.bf16.gmra.mrb[12].mxu1 %vm427_vm0, %v7816_v15  ;;  %6833 = vmatprep.subr.bf16.mxu1 %v7690_v26 }
 0x259   :  { %12788 = vst [vmem:[#allocation134_spill] sm:$0xff] %v9434_v29  ;;  %v2352_v39 = vmul.f32 %v9434_v29, %v12789_v50  ;;  %6827 = vmatprep.mubr.msk.bf16.mxu0 %vm427_vm0, %v2363_v9 }
 0x25b   :  { %v2364_v8 = vpack.c.bf16 %v2352_v39, %v2351_v46  ;;  %6834 = vmatpush3.bf16.msra.mxu1 %v7690_v26 }
 0x25c   :  { %6851 = vmatprep.subr.bf16.mxu1 %v9452_v25 }
 0x25d   :  { %6828 = vmatmul.mubr.msk.bf16.gmra.mrb[12].mxu0 %vm427_vm0, %v2364_v8 }
 0x2d3   :  { %v6717_v5 = vpop.f32.mrb[0].mxu1 }
 0x2d4   :  { %v1198_v15 = vpop.f32.mrb[1].mxu1 }
 0x2d5   :  { %v6718_v21 = vpop.f32.mrb[2].mxu1 }
 0x2d6   :  { %v1201_v20 = vpop.f32.mrb[3].mxu1 }
 0x2eb   :  { %v9455_v9 = vpop.f32.mrb[4].mxu1 }
 0x2ec   :  { %v9457_v46 = vpop.f32.mrb[5].mxu1 }
 0x2ed   :  { %v9459_v50 = vpop.f32.mrb[6].mxu1 }
 0x2ee   :  { %v9461_v39 = vpop.f32.mrb[7].mxu1 }
 0x308   :  { %v6817_v8 = vpop.f32.mrb[0].mxu0 }
 0x309   :  { %v7195_v26 = vadd.f32 %v6817_v8, %v6717_v5  ;;  %v2435_v59 = vpop.f32.mrb[1].mxu0 }
 0x30a   :  { %v7196_v42 = vadd.f32 %v2435_v59, %v1198_v15  ;;  %v6818_v6 = vpop.f32.mrb[2].mxu0 }
 0x30b   :  { %v2523_v57 = vmul.f32 %v7195_v26, %v9466_v61  ;;  %v7197_v35 = vadd.f32 %v6818_v6, %v6718_v21  ;;  %v2438_v24 = vpop.f32.mrb[3].mxu0 }
 0x30c   :  { %v2521_v44 = vmul.f32 %v7196_v42, %v9466_v61  ;;  %v7198_v43 = vadd.f32 %v2438_v24, %v1201_v20 }
 0x30d   :  { %v2546_v28 = vadd.f32 %v9471_v13, %v2523_v57  ;;  %v2524_v5 = vmul.f32 %v7197_v35, %v9466_v61 }
 0x30e   :  { %v2544_v8 = vadd.f32 %v9471_v13, %v2521_v44  ;;  %v2522_v7 = vmul.f32 %v7198_v43, %v9466_v61 }
 0x30f   :  { %vm2562_vm3 = vcmp.ge.f32.partialorder %v2546_v28, 0.0  ;;  %v2580_v59 = vmul.f32 %v9474_v16, %v2546_v28  ;;  %v2547_v15 = vadd.f32 %v9471_v13, %v2524_v5 }
 0x310   :  { %vm2560_vm4 = vcmp.ge.f32.partialorder %v2544_v8, 0.0  ;;  %v2578_v6 = vmul.f32 %v9474_v16, %v2544_v8  ;;  %v2545_v21 = vadd.f32 %v9471_v13, %v2522_v7 }
 0x311   :  { %v9485_v42 = vsel %vm2562_vm3, %v2546_v28, %v2580_v59  ;;  %vm2563_vm5 = vcmp.ge.f32.partialorder %v2547_v15, 0.0  ;;  %v2581_v24 = vmul.f32 %v9474_v16, %v2547_v15 }
 0x312   :  { %12790 = vst [vmem:[#allocation35_spill] sm:$0xff] %v9485_v42  ;;  %v2612_v57 = vrot.slane %v9485_v42, 7  ;;  %v2966_v44 = vrot.slane %v9485_v42, 1  ;;  %v9490_v43 = vsel %vm2560_vm4, %v2544_v8, %v2578_v6  ;;  %vm2561_vm6 = vcmp.ge.f32.partialorder %v2545_v21, 0.0 }
 0x313   :  { %12791 = vst [vmem:[#allocation135_spill] sm:$0xff] %v9490_v43  ;;  %v9492_v35 = vsel %vm2563_vm5, %v2547_v15, %v2581_v24  ;;  %v2579_v28 = vmul.f32 %v9474_v16, %v2545_v21  ;;  %v12794_v15 = vld [vmem:[#allocation55_spill] sm:$0xff]  ;;  %v12363_v24 = vrot.slane %v9490_v43, 7 }
 0x314   :  { %12792 = vst [vmem:[#allocation136_spill] sm:$0xff] %v9492_v35  ;;  %v12354_v20 = vrot.slane %v9492_v35, 7  ;;  %v12353_v26 = vrot.slane %v9492_v35, 1  ;;  %v9509_v6 = vmul.f32 %v9485_v42, %v12794_v15 }
 0x315   :  { %v9512_v7 = vsel %vm2561_vm6, %v2545_v21, %v2579_v28 }
 0x316   :  { %v2992_v59 = vsel %vm698_vm1, %v2966_v44, %v12353_v26  ;;  %v2638_v8 = vsel %vm118_vm2, %v2612_v57, %v12354_v20  ;;  %12795 = vst [vmem:[#allocation137_spill] sm:$0xff] %v9512_v7  ;;  %v2611_v22 = vrot.slane %v9512_v7, 7  ;;  %v9518_v26 = vmul.f32 %v9512_v7, %v12796_v63 }
 0x317   :  { %v2965_v19 = vrot.slane %v9512_v7, 1  ;;  %v9522_v20 = vmul.f32 %v2638_v8, %v9273_v1  ;;  %v9525_v15 = vmul.f32 %v2992_v59, %v9080_v14  ;;  %v9531_v28 = vmul.f32 %v9512_v7, %v9186_v18  ;;  %v12807_v1 = vld [vmem:[#allocation38_spill] sm:$0xff] }
 0x318   :  { %v2639_v30 = vsel %vm118_vm2, %v2611_v22, %v2612_v57  ;;  %v2640_v63 = vsel %vm118_vm2, %v12363_v24, %v2611_v22  ;;  %v12805_v57 = vrot.slane %v9490_v43, 1 }
 0x319   :  { %12797 = vst [vmem:[#allocation138_spill] sm:$0xff] %v9522_v20  ;;  %12798 = vst [vmem:[#allocation139_spill] sm:$0xff] %v9525_v15  ;;  %v2993_v14 = vsel %vm698_vm1, %v2965_v19, %v2966_v44  ;;  %v9544_v21 = vmul.f32 %v2640_v63, %v12800_v45  ;;  %v9547_v18 = vmul.f32 %v2639_v30, %v12802_v12 }
 0x31a   :  { %12799 = vst [vmem:[#allocation140_spill] sm:$0xff] %v9531_v28  ;;  %v9550_v7 = vmul.f32 %v2639_v30, %v9270_v34  ;;  %v2994_v22 = vsel %vm698_vm1, %v12805_v57, %v2965_v19  ;;  %v9557_v24 = vmul.f32 %v2993_v14, %v9068_v3  ;;  %v9564_v44 = vmul.f32 %v9485_v42, %v9181_v31  ;;  %v12811_v19 = vld [vmem:[#allocation22_spill] sm:$0xff]  ;;  %v12813_v3 = vld [vmem:[#allocation15_spill] sm:$0xff] }
 0x31b   :  { %12801 = vst [vmem:[#allocation141_spill] sm:$0xff] %v9544_v21  ;;  %12803 = vst [vmem:[#allocation142_spill] sm:$0xff] %v9547_v18  ;;  %v9560_v54 = vmul.f32 %v2994_v22, %v12807_v1  ;;  %v9567_v12 = vmul.f32 %v2992_v59, %v9333_v53  ;;  %v9574_v57 = vmul.f32 %v2993_v14, %v12811_v19  ;;  %v12815_v31 = vld [vmem:[#allocation91_spill] sm:$0xff] }
 0x31c   :  { %12804 = vst [vmem:[#allocation143_spill] sm:$0xff] %v9550_v7  ;;  %12806 = vst [vmem:[#allocation144_spill] sm:$0xff] %v9557_v24  ;;  %v9577_v33 = vmul.f32 %v2640_v63, %v12813_v3  ;;  %v9582_v42 = vmul.f32 %v2639_v30, %v12815_v31  ;;  %v9587_v45 = vmul.f32 %v2993_v14, %v9335_v51 }
 0x31d   :  { %12808 = vst [vmem:[#allocation145_spill] sm:$0xff] %v9560_v54  ;;  %12809 = vst [vmem:[#allocation146_spill] sm:$0xff] %v9564_v44  ;;  %v9599_v14 = vmul.f32 %v9492_v35, %v9204_v23  ;;  %v12824_v44 = vld [vmem:[#allocation93_spill] sm:$0xff] }
 0x31e   :  { %12810 = vst [vmem:[#allocation147_spill] sm:$0xff] %v9567_v12  ;;  %12812 = vst [vmem:[#allocation148_spill] sm:$0xff] %v9574_v57 }
 0x31f   :  { %12814 = vst [vmem:[#allocation149_spill] sm:$0xff] %v9577_v33  ;;  %12816 = vst [vmem:[#allocation150_spill] sm:$0xff] %v9582_v42  ;;  %v12826_v33 = vld [vmem:[#allocation24_spill] sm:$0xff]  ;;  %v12828_v42 = vld [vmem:[#allocation90_spill] sm:$0xff] }
 0x320   :  { %12817 = vst [vmem:[#allocation151_spill] sm:$0xff] %v9587_v45  ;;  %v6821_v19 = vpop.f32.mrb[4].mxu0  ;;  %12818 = vst [vmem:[#allocation152_spill] sm:$0xff] %v9599_v14  ;;  %v9633_v54 = vmul.f32 %v2994_v22, %v12828_v42  ;;  %v12835_v14 = vld [vmem:[#allocation20_spill] sm:$0xff] }
 0x321   :  { %v7199_v1 = vadd.f32 %v6821_v19, %v9455_v9  ;;  %v2451_v30 = vpop.f32.mrb[5].mxu0  ;;  %v12819_v9 = vld [vmem:[#allocation12_spill] sm:$0xff] }
 0x322   :  { %v7200_v31 = vadd.f32 %v2451_v30, %v9457_v46  ;;  %v6822_v20 = vpop.f32.mrb[6].mxu0  ;;  %v9607_v19 = vmul.f32 %v9490_v43, %v12819_v9  ;;  %v12820_v46 = vld [vmem:[#allocation18_spill] sm:$0xff] }
 0x323   :  { %v2527_v53 = vmul.f32 %v7199_v1, %v9466_v61  ;;  %v7201_v34 = vadd.f32 %v6822_v20, %v9459_v50  ;;  %v6745_v51 = vpop.f32.mrb[8].mxu1  ;;  %v2454_v28 = vpop.f32.mrb[7].mxu0  ;;  %v9611_v30 = vmul.f32 %v9492_v35, %v12820_v46  ;;  %v12821_v20 = vld [vmem:[#allocation74_spill] sm:$0xff]  ;;  %v9625_v46 = vmul.f32 %v2638_v8, %v12824_v44 }
 0x324   :  { %v2525_v3 = vmul.f32 %v7200_v31, %v9466_v61  ;;  %v7202_v7 = vadd.f32 %v2454_v28, %v9461_v39  ;;  %v1423_v45 = vpop.f32.mrb[9].mxu1  ;;  %v9616_v12 = vmul.f32 %v2638_v8, %v12821_v20  ;;  %v9620_v31 = vmul.f32 %v9490_v43, %v9319_v56 }
 0x325   :  { %v2550_v23 = vadd.f32 %v9471_v13, %v2527_v53  ;;  %v2528_v1 = vmul.f32 %v7201_v34, %v9466_v61  ;;  %v6746_v50 = vpop.f32.mrb[10].mxu1  ;;  %12825 = vst [vmem:[#allocation155_spill] sm:$0xff] %v9625_v46  ;;  %v9628_v53 = vmul.f32 %v2992_v59, %v12826_v33  ;;  %v9638_v8 = vmul.f32 %v2640_v63, %v9254_v48  ;;  %v7692_v46 = vld [vmem:[%s12112_s5 + $0x8] sm:$0xff]  }
 0x326   :  { %12822 = vst [vmem:[#allocation153_spill] sm:$0xff] %v9616_v12  ;;  %12823 = vst [vmem:[#allocation154_spill] sm:$0xff] %v9620_v31  ;;  %v2548_v39 = vadd.f32 %v9471_v13, %v2525_v3  ;;  %v2526_v28 = vmul.f32 %v7202_v7, %v9466_v61  ;;  %v1426_v9 = vpop.f32.mrb[11].mxu1  ;;  %v12878_v12 = vld [vmem:[#allocation14_spill] sm:$0xff] }
 0x327   :  { %12827 = vst [vmem:[#allocation156_spill] sm:$0xff] %v9628_v53  ;;  %vm2566_vm7 = vcmp.ge.f32.partialorder %v2550_v23, 0.0  ;;  %v2584_v34 = vmul.f32 %v9474_v16, %v2550_v23  ;;  %v2551_v20 = vadd.f32 %v9471_v13, %v2528_v1  ;;  %12829 = vst [vmem:[#allocation157_spill] sm:$0xff] %v9638_v8 }
 0x328   :  { %vm2564_vm8 = vcmp.ge.f32.partialorder %v2548_v39, 0.0  ;;  %v2582_v3 = vmul.f32 %v9474_v16, %v2548_v39  ;;  %v2549_v7 = vadd.f32 %v9471_v13, %v2526_v28  ;;  %v6825_v56 = vpop.f32.mrb[8].mxu0  ;;  %v9648_v28 = vmul.f32 %v2994_v22, %v9434_v29 }
 0x329   :  { %v9640_v44 = vsel %vm2566_vm7, %v2550_v23, %v2584_v34  ;;  %vm2567_vm9 = vcmp.ge.f32.partialorder %v2551_v20, 0.0  ;;  %v2585_v59 = vmul.f32 %v9474_v16, %v2551_v20  ;;  %v7203_v33 = vadd.f32 %v6825_v56, %v6745_v51  ;;  %v2467_v57 = vpop.f32.mrb[9].mxu0 }
 0x32a   :  { %v9645_v24 = vsel %vm2564_vm8, %v2548_v39, %v2582_v3  ;;  %v6826_v15 = vpop.f32.mrb[10].mxu0  ;;  %12831 = vst [vmem:[#allocation159_spill] sm:$0xff] %v9648_v28  ;;  %vm2565_vm10 = vcmp.ge.f32.partialorder %v2549_v7, 0.0  ;;  %v2583_v3 = vmul.f32 %v9474_v16, %v2549_v7  ;;  %v7204_v48 = vadd.f32 %v2467_v57, %v1423_v45  ;;  %v12833_v39 = vld [vmem:[#allocation59_spill] sm:$0xff] }
 0x32b   :  { %12830 = vst [vmem:[#allocation158_spill] sm:$0xff] %v9645_v24  ;;  %v9653_v23 = vmul.f32 %v9645_v24, %v9208_v58  ;;  %v9655_v34 = vsel %vm2567_vm9, %v2551_v20, %v2585_v59  ;;  %v6749_v51 = vpop.f32.mrb[12].mxu1  ;;  %v2470_v56 = vpop.f32.mrb[11].mxu0  ;;  %v2531_v22 = vmul.f32 %v7203_v33, %v9466_v61  ;;  %v7205_v29 = vadd.f32 %v6826_v15, %v6746_v50  ;;  %v12834_v15 = vld [vmem:[#allocation61_spill] sm:$0xff] }
 0x32c   :  { %v1439_v42 = vpop.f32.mrb[13].mxu1  ;;  %v7206_v58 = vadd.f32 %v2470_v56, %v1426_v9  ;;  %v9664_v28 = vsel %vm2565_vm10, %v2549_v7, %v2583_v3  ;;  %v9669_v21 = vmul.f32 %v9645_v24, %v12833_v39  ;;  %v2529_v18 = vmul.f32 %v7204_v48, %v9466_v61 }
 0x32d   :  { %12832 = vst [vmem:[#allocation160_spill] sm:$0xff] %v9653_v23  ;;  %v6750_v20 = vpop.f32.mrb[14].mxu1  ;;  %v2554_v1 = vadd.f32 %v9471_v13, %v2531_v22  ;;  %v2532_v45 = vmul.f32 %v7205_v29, %v9466_v61  ;;  %v9676_v57 = vmul.f32 %v9640_v44, %v12834_v15  ;;  %v12836_v23 = vld [vmem:[#allocation32_spill] sm:$0xff] }
 0x32e   :  { %v1442_v31 = vpop.f32.mrb[15].mxu1  ;;  %v2530_v50 = vmul.f32 %v7206_v58, %v9466_v61  ;;  %v2552_v22 = vadd.f32 %v9471_v13, %v2529_v18  ;;  %v9690_v58 = vmul.f32 %v9664_v28, %v12835_v14 }
 0x32f   :  { %vm2570_vm11 = vcmp.ge.f32.partialorder %v2554_v1, 0.0  ;;  %v2588_v9 = vmul.f32 %v9474_v16, %v2554_v1  ;;  %v2555_v48 = vadd.f32 %v9471_v13, %v2532_v45 }
 0x330   :  { %v6829_v7 = vpop.f32.mrb[12].mxu0  ;;  %v2553_v33 = vadd.f32 %v9471_v13, %v2530_v50  ;;  %vm2568_vm12 = vcmp.ge.f32.partialorder %v2552_v22, 0.0  ;;  %v2586_v3 = vmul.f32 %v9474_v16, %v2552_v22 }
 0x331   :  { %v7207_v29 = vadd.f32 %v6829_v7, %v6749_v51  ;;  %v2483_v63 = vpop.f32.mrb[13].mxu0  ;;  %v9685_v59 = vsel %vm2570_vm11, %v2554_v1, %v2588_v9  ;;  %v9696_v51 = vmul.f32 %v9655_v34, %v12836_v23  ;;  %vm2571_vm13 = vcmp.ge.f32.partialorder %v2555_v48, 0.0 }
 0x332   :  { %v7208_v15 = vadd.f32 %v2483_v63, %v1439_v42  ;;  %v6830_v39 = vpop.f32.mrb[14].mxu0  ;;  %v2589_v1 = vmul.f32 %v9474_v16, %v2555_v48  ;;  %vm2569_vm14 = vcmp.ge.f32.partialorder %v2553_v33, 0.0  ;;  %v2587_v42 = vmul.f32 %v9474_v16, %v2553_v33 }
 0x333   :  { %v2486_v18 = vpop.f32.mrb[15].mxu0  ;;  %v9700_v63 = vsel %vm2568_vm12, %v2552_v22, %v2586_v3  ;;  %v2535_v45 = vmul.f32 %v7207_v29, %v9466_v61  ;;  %v7209_v50 = vadd.f32 %v6830_v39, %v6750_v20  ;;  %v12840_v3 = vld [vmem:[#allocation42_spill] sm:$0xff] }
 0x334   :  { %v2533_v9 = vmul.f32 %v7208_v15, %v9466_v61  ;;  %v9706_v14 = vsel %vm2571_vm13, %v2555_v48, %v2589_v1  ;;  %v9708_v23 = vsel %vm2569_vm14, %v2553_v33, %v2587_v42  ;;  %v7210_v15 = vadd.f32 %v2486_v18, %v1442_v31  ;;  %v12837_v33 = vld [vmem:[#allocation65_spill] sm:$0xff]  ;;  %v12838_v42 = vld [vmem:[#allocation39_spill] sm:$0xff] }
 0x335   :  { %v2558_v29 = vadd.f32 %v9471_v13, %v2535_v45  ;;  %v2536_v20 = vmul.f32 %v7209_v50, %v9466_v61  ;;  %v9721_v1 = vmul.f32 %v9700_v63, %v12837_v33  ;;  %v9725_v7 = vmul.f32 %v9708_v23, %v12838_v42  ;;  %v12845_v50 = vld [vmem:[#allocation70_spill] sm:$0xff] }
 0x336   :  { %v2556_v39 = vadd.f32 %v9471_v13, %v2533_v9  ;;  %v9729_v8 = vmul.f32 %v9685_v59, %v12840_v3  ;;  %v2534_v9 = vmul.f32 %v7210_v15, %v9466_v61  ;;  %v12842_v3 = vrot.slane %v9645_v24, 7  ;;  %v12851_v33 = vld [vmem:[#allocation78_spill] sm:$0xff] }
 0x337   :  { %12839 = vst [vmem:[#allocation161_spill] sm:$0xff] %v9725_v7  ;;  %vm2574_vm15 = vcmp.ge.f32.partialorder %v2558_v29, 0.0  ;;  %v2592_v45 = vmul.f32 %v9474_v16, %v2558_v29  ;;  %v2559_v18 = vadd.f32 %v9471_v13, %v2536_v20  ;;  %v12843_v42 = vrot.slane %v9492_v35, 7 }
 0x338   :  { %12841 = vst [vmem:[#allocation162_spill] sm:$0xff] %v9729_v8  ;;  %vm2572_vm3 = vcmp.ge.f32.partialorder %v2556_v39, 0.0  ;;  %v2590_v31 = vmul.f32 %v9474_v16, %v2556_v39  ;;  %v12854_v8 = vrot.slane %v9664_v28, 7 }
 0x339   :  { %v9740_v22 = vsel %vm2574_vm15, %v2558_v29, %v2592_v45  ;;  %v9750_v20 = vsel %vm118_vm2, %v12843_v42, %v12842_v3  ;;  %v9757_v29 = vmul.f32 %v9706_v14, %v12845_v50  ;;  %vm2575_vm4 = vcmp.ge.f32.partialorder %v2559_v18, 0.0  ;;  %v12849_v42 = vld [vmem:[#allocation75_spill] sm:$0xff] }
 0x33a   :  { %v9742_v56 = vsel %vm2572_vm3, %v2556_v39, %v2590_v31  ;;  %12844 = vst [vmem:[#allocation163_spill] sm:$0xff] %v9750_v20  ;;  %v2624_v61 = vrot.slane %v9740_v22, 7  ;;  %v2593_v39 = vmul.f32 %v9474_v16, %v2559_v18  ;;  %v2557_v45 = vadd.f32 %v9471_v13, %v2534_v9  ;;  %v12847_v31 = vld [vmem:[#allocation52_spill] sm:$0xff] }
 0x33b   :  { %v2622_v48 = vrot.slane %v9742_v56, 7  ;;  %12846 = vst [vmem:[#allocation164_spill] sm:$0xff] %v9757_v29  ;;  %v9763_v10 = vmul.f32 %v9742_v56, %v12847_v31  ;;  %v9768_v15 = vmul.f32 %v9750_v20, %v12849_v42  ;;  %v9772_v7 = vmul.f32 %v9750_v20, %v12851_v33  ;;  %v12856_v33 = vld [vmem:[#allocation53_spill] sm:$0xff] }
 0x33c   :  { %v12853_v50 = vrot.slane %v9640_v44, 7  ;;  %v9782_v9 = vsel %vm2575_vm4, %v2559_v18, %v2593_v39  ;;  %vm2573_vm5 = vcmp.ge.f32.partialorder %v2557_v45, 0.0  ;;  %v2591_v3 = vmul.f32 %v9474_v16, %v2557_v45 }
 0x33d   :  { %12848 = vst [vmem:[#allocation165_spill] sm:$0xff] %v9763_v10  ;;  %12850 = vst [vmem:[#allocation166_spill] sm:$0xff] %v9768_v15  ;;  %v2625_v31 = vrot.slane %v9782_v9, 7  ;;  %v2670_v47 = vmul.f32 %v9782_v9, %v12856_v33  ;;  %v9792_v20 = vmul.f32 %v9740_v22, %v12857_v27  ;;  %v12861_v39 = vrot.slane %v9645_v24, 7  ;;  %v12862_v33 = vld [vmem:[#allocation7_spill] sm:$0xff]  ;;  %v12871_v15 = vld [vmem:[#allocation29_spill] sm:$0xff] }
 0x33e   :  { %12852 = vst [vmem:[#allocation167_spill] sm:$0xff] %v9772_v7  ;;  %v9780_v13 = vsel %vm118_vm2, %v12854_v8, %v12853_v50  ;;  %v9796_v18 = vsel %vm2573_vm5, %v2557_v45, %v2591_v3  ;;  %v12860_v50 = vmov %v12854_v8  ;;  %v12864_v8 = vld [vmem:[#allocation58_spill] sm:$0xff] }
 0x33f   :  { %12855 = vst [vmem:[#allocation168_spill] sm:$0xff] %v9780_v13  ;;  %12858 = vst [vmem:[#allocation169_spill] sm:$0xff] %v9792_v20  ;;  %v9806_v42 = vsel %vm118_vm2, %v12861_v39, %v12860_v50  ;;  %v9810_v27 = vmul.f32 %v9780_v13, %v12862_v33  ;;  %v2623_v45 = vrot.slane %v9796_v18, 7  ;;  %v2690_v3 = vpack.c.bf16 %v9607_v19, %v2670_v47  ;;  %v12867_v33 = vld [vmem:[#allocation76_spill] sm:$0xff] }
 0x340   :  { %12859 = vst [vmem:[#allocation170_spill] sm:$0xff] %v9796_v18  ;;  %v9817_v16 = vmul.f32 %v9796_v18, %v12864_v8  ;;  %v9824_v50 = vsel %vm118_vm2, %v2624_v61, %v2625_v31  ;;  %v12866_v39 = vrot.slane %v9490_v43, 7  ;;  %v9834_v47 = vmul.f32 %v9806_v42, %v12867_v33 }
 0x341   :  { %12863 = vst [vmem:[#allocation171_spill] sm:$0xff] %v9810_v27  ;;  %v12869_v19 = vrot.slane %v9700_v63, 7  ;;  %v12870_v8 = vrot.slane %v9655_v34, 7  ;;  %6835 = vmatprep.mubr.msk.bf16.mxu1 %vm427_vm0, %v2690_v3  ;;  %v12876_v13 = vrot.slane %v9640_v44, 7  ;;  %v12877_v3 = vpack.c.bf16 %v9509_v6, %v9518_v26  ;;  %v12893_v27 = vld [vmem:[#allocation8_spill] sm:$0xff] }
 0x342   :  { %12865 = vst [vmem:[#allocation172_spill] sm:$0xff] %v9817_v16  ;;  %v9830_v29 = vsel %vm118_vm2, %v2625_v31, %v12866_v39  ;;  %12868 = vst [vmem:[#allocation173_spill] sm:$0xff] %v9834_v47  ;;  %v9849_v31 = vmul.f32 %v9824_v50, %v12871_v15  ;;  %v12873_v39 = vld [vmem:[#allocation72_spill] sm:$0xff]  ;;  %v12882_v20 = vrot.slane %v9685_v59, 7  ;;  %v2977_v6 = vrot.slane %v9796_v18, 1 }
 0x343   :  { %v9842_v7 = vsel %vm118_vm2, %v12870_v8, %v12869_v19  ;;  %v9853_v33 = vmul.f32 %v9830_v29, %v12873_v39  ;;  %v12875_v10 = vmov %v12870_v8  ;;  %6836 = vmatmul.mubr.msk.bf16.vlgmr.msra.gmra.mrb[16].mxu1 %vm427_vm0, %v12877_v3  ;;  %v12880_v15 = vld [vmem:[#allocation40_spill] sm:$0xff] }
 0x344   :  { %12872 = vst [vmem:[#allocation174_spill] sm:$0xff] %v9849_v31  ;;  %v9861_v8 = vsel %vm118_vm2, %v12876_v13, %v12875_v10  ;;  %v9875_v16 = vmul.f32 %v9842_v7, %v12880_v15  ;;  %v12883_v10 = vrot.slane %v9708_v23, 7  ;;  %6852 = vmatpush3.bf16.msra.mxu1 %v9452_v25  ;;  %v12884_v13 = vpack.c.bf16 %v9669_v21, %v9611_v30  ;;  %v9908_v25 = vld [vmem:[%s12112_s5 + $0x20] sm:$0xff]  }
 0x345   :  { %12874 = vst [vmem:[#allocation175_spill] sm:$0xff] %v9853_v33  ;;  %v9871_v39 = vmul.f32 %v9861_v8, %v12878_v12  ;;  %v12886_v12 = vrot.slane %v9700_v63, 7  ;;  %6853 = vmatprep.subr.bf16.mxu1 %v7692_v46  ;;  %v12888_v30 = vld [vmem:[#allocation25_spill] sm:$0xff] }
 0x346   :  { %12881 = vst [vmem:[#allocation177_spill] sm:$0xff] %v9875_v16  ;;  %v9883_v26 = vsel %vm118_vm2, %v12883_v10, %v12882_v20  ;;  %6839 = vmatprep.mubr.msk.bf16.mxu1 %vm427_vm0, %v12884_v13  ;;  %v12885_v19 = vmov %v12883_v10  ;;  %v12887_v10 = vld [vmem:[#allocation77_spill] sm:$0xff]  ;;  %v9944_v16 = vsel %vm118_vm2, %v2622_v48, %v2623_v45  ;;  %v12944_v5 = vld [vmem:[#allocation168_spill] sm:$0xff] }
 0x347   :  { %12879 = vst [vmem:[#allocation176_spill] sm:$0xff] %v9871_v39  ;;  %v9899_v20 = vsel %vm118_vm2, %v12886_v12, %v12885_v19  ;;  %v9903_v15 = vmul.f32 %v9883_v26, %v12887_v10  ;;  %v12890_v12 = vrot.slane %v9706_v14, 7  ;;  %v12892_v10 = vrot.slane %v9685_v59, 7 }
 0x348   :  { %v9914_v13 = vmul.f32 %v9899_v20, %v12888_v30  ;;  %v12894_v30 = vld [vmem:[#allocation80_spill] sm:$0xff]  ;;  %6854 = vmatpush3.bf16.msra.mxu1 %v7692_v46 }
 0x349   :  { %v9920_v19 = vsel %vm118_vm2, %v12890_v12, %v2622_v48  ;;  %v12891_v3 = vmov %v12890_v12  ;;  %v9940_v12 = vsel %vm118_vm2, %v2623_v45, %v2624_v61  ;;  %v12898_v61 = vrot.slane %v9782_v9, 1  ;;  %v12899_v45 = vld [vmem:[#allocation9_spill] sm:$0xff]  ;;  %6871 = vmatprep.subr.bf16.mxu1 %v9908_v25 }
 0x34a   :  { %12889 = vst [vmem:[#allocation178_spill] sm:$0xff] %v9914_v13  ;;  %v9928_v47 = vsel %vm118_vm2, %v12892_v10, %v12891_v3  ;;  %v9936_v39 = vmul.f32 %v9920_v19, %v12894_v30  ;;  %v12895_v10 = vld [vmem:[#allocation84_spill] sm:$0xff]  ;;  %v12897_v30 = vrot.slane %v9490_v43, 1 }
 0x34b   :  { %v9932_v21 = vmul.f32 %v9928_v47, %v12893_v27  ;;  %v9950_v31 = vmul.f32 %v9944_v16, %v12895_v10  ;;  %v12896_v27 = vld [vmem:[#allocation86_spill] sm:$0xff]  ;;  %v12901_v10 = vrot.slane %v9664_v28, 1 }
 0x34c   :  { %v9954_v33 = vmul.f32 %v9940_v12, %v12896_v27  ;;  %v9962_v18 = vsel %vm698_vm1, %v12898_v61, %v12897_v30  ;;  %v12902_v27 = vrot.slane %v9645_v24, 1  ;;  %v12904_v30 = vrot.slane %v9492_v35, 1  ;;  %v12972_v24 = vld [vmem:[#allocation54_spill] sm:$0xff] }
 0x34d   :  { %v9968_v3 = vmul.f32 %v9962_v18, %v12899_v45  ;;  %v12909_v61 = vrot.slane %v9655_v34, 1 }
 0x34e   :  { %v9976_v43 = vsel %vm698_vm1, %v12902_v27, %v12901_v10  ;;  %v12903_v13 = vmov %v12902_v27  ;;  %v12905_v27 = vld [vmem:[#allocation47_spill] sm:$0xff] }
 0x34f   :  { %12900 = vst [vmem:[#allocation179_spill] sm:$0xff] %v9968_v3  ;;  %v2991_v46 = vsel %vm698_vm1, %v12904_v30, %v12903_v13  ;;  %v9992_v45 = vmul.f32 %v9976_v43, %v9118_v32  ;;  %v10004_v30 = vmul.f32 %v9976_v43, %v9353_v49 }
 0x350   :  { %v9988_v48 = vmul.f32 %v2991_v46, %v8962_v0  ;;  %v9995_v10 = vmul.f32 %v2991_v46, %v12905_v27  ;;  %v10000_v13 = vmul.f32 %v2991_v46, %v9351_v37  ;;  %v12910_v0 = vrot.slane %v9640_v44, 1 }
 0x351   :  { %12908 = vst [vmem:[#allocation182_spill] sm:$0xff] %v10004_v30  ;;  %v12911_v27 = vpack.c.bf16 %v9676_v57, %v9690_v58  ;;  %v12913_v37 = vrot.slane %v9664_v28, 1  ;;  %v12915_v57 = vpack.c.bf16 %v9721_v1, %v9696_v51  ;;  %v12920_v51 = vrot.slane %v9655_v34, 1 }
 0x352   :  { %12906 = vst [vmem:[#allocation180_spill] sm:$0xff] %v9995_v10  ;;  %12907 = vst [vmem:[#allocation181_spill] sm:$0xff] %v10000_v13  ;;  %v10012_v32 = vsel %vm698_vm1, %v12910_v0, %v12909_v61  ;;  %v12912_v49 = vmov %v12910_v0  ;;  %v12923_v46 = vrot.slane %v9706_v14, 1  ;;  %v12933_v13 = vrot.slane %v9782_v9, 1  ;;  %v12941_v10 = vld [vmem:[#allocation66_spill] sm:$0xff] }
 0x353   :  { %6840 = vmatmul.mubr.msk.bf16.gmra.mrb[20].mxu1 %vm427_vm0, %v12911_v27  ;;  %v10028_v3 = vsel %vm698_vm1, %v12913_v37, %v12912_v49  ;;  %v10032_v0 = vmul.f32 %v10012_v32, %v9154_v52  ;;  %v12917_v27 = vrot.slane %v9708_v23, 1  ;;  %v12918_v37 = vrot.slane %v9700_v63, 1 }
 0x354   :  { %6843 = vmatprep.mubr.msk.bf16.mxu1 %vm427_vm0, %v12915_v57  ;;  %v10042_v61 = vmul.f32 %v10028_v3, %v9149_v60 }
 0x355   :  { %12914 = vst [vmem:[#allocation183_spill] sm:$0xff] %v10032_v0  ;;  %v10050_v49 = vsel %vm698_vm1, %v12918_v37, %v12917_v27  ;;  %v12919_v35 = vmov %v12918_v37  ;;  %v12924_v27 = vrot.slane %v9685_v59, 1 }
 0x356   :  { %12916 = vst [vmem:[#allocation184_spill] sm:$0xff] %v10042_v61  ;;  %v10058_v1 = vsel %vm698_vm1, %v12920_v51, %v12919_v35  ;;  %v10066_v58 = vmul.f32 %v10050_v49, %v9173_v17  ;;  %v12926_v35 = vrot.slane %v9708_v23, 1  ;;  %v12931_v17 = vrot.slane %v9706_v14, 1  ;;  %v12957_v61 = vld [vmem:[#allocation164_spill] sm:$0xff] }
 0x357   :  { %v10062_v57 = vmul.f32 %v10058_v1, %v8980_v2  ;;  %v10074_v37 = vsel %vm698_vm1, %v12924_v27, %v12923_v46  ;;  %v12925_v52 = vmov %v12924_v27  ;;  %v12929_v46 = vrot.slane %v9742_v56, 1 }
 0x358   :  { %12922 = vst [vmem:[#allocation186_spill] sm:$0xff] %v10066_v58  ;;  %v10082_v51 = vsel %vm698_vm1, %v12926_v35, %v12925_v52  ;;  %v10092_v60 = vmul.f32 %v10074_v37, %v9197_v4  ;;  %v12939_v52 = vld [vmem:[#allocation163_spill] sm:$0xff] }
 0x359   :  { %12921 = vst [vmem:[#allocation185_spill] sm:$0xff] %v10062_v57  ;;  %v10088_v2 = vmul.f32 %v10082_v51, %v9192_v41  ;;  %v10098_v27 = vsel %vm698_vm1, %v12929_v46, %v2977_v6  ;;  %v12930_v35 = vmov %v12929_v46  ;;  %v12934_v46 = vrot.slane %v9740_v22, 1 }
 0x35a   :  { %12928 = vst [vmem:[#allocation188_spill] sm:$0xff] %v10092_v60  ;;  %v10108_v41 = vsel %vm698_vm1, %v12931_v17, %v12930_v35  ;;  %v10112_v4 = vmul.f32 %v10098_v27, %v9217_v40 }
 0x35b   :  { %12927 = vst [vmem:[#allocation187_spill] sm:$0xff] %v10088_v2  ;;  %v10120_v30 = vsel %vm698_vm1, %v12934_v46, %v12933_v13  ;;  %v10126_v53 = vmul.f32 %v10108_v41, %v8995_v36  ;;  %v12936_v17 = vmov %v12934_v46  ;;  %v10144_v46 = vmul.f32 %v9830_v29, %v12740_v55  ;;  %v12948_v55 = vld [vmem:[#allocation87_spill] sm:$0xff] }
 0x35c   :  { %12932 = vst [vmem:[#allocation189_spill] sm:$0xff] %v10112_v4  ;;  %v10132_v35 = vsel %vm698_vm1, %v2977_v6, %v12936_v17  ;;  %v10136_v40 = vmul.f32 %v10120_v30, %v9239_v62  ;;  %v10148_v36 = vmul.f32 %v12939_v52, %v12752_v38  ;;  %v10152_v6 = vmul.f32 %v9806_v42, %v12941_v10  ;;  %v12943_v62 = vld [vmem:[#allocation71_spill] sm:$0xff]  ;;  %v12950_v52 = vld [vmem:[#allocation162_spill] sm:$0xff]  ;;  %v12951_v38 = vld [vmem:[#allocation161_spill] sm:$0xff] }
 0x35d   :  { %12935 = vst [vmem:[#allocation190_spill] sm:$0xff] %v10126_v53  ;;  %v10140_v13 = vmul.f32 %v10132_v35, %v9236_v11  ;;  %12938 = vst [vmem:[#allocation192_spill] sm:$0xff] %v10144_v46  ;;  %v10158_v2 = vmul.f32 %v12944_v5, %v12943_v62  ;;  %v12946_v11 = vld [vmem:[#allocation23_spill] sm:$0xff]  ;;  %v10166_v57 = vmul.f32 %v9842_v7, %v12948_v55  ;;  %v12956_v55 = vld [vmem:[#allocation165_spill] sm:$0xff] }
 0x35e   :  { %12940 = vst [vmem:[#allocation163_spill] sm:$0xff] %v10148_v36  ;;  %12942 = vst [vmem:[#allocation193_spill] sm:$0xff] %v10152_v6  ;;  %v10162_v60 = vmul.f32 %v9861_v8, %v12946_v11  ;;  %v12952_v58 = vpack.c.bf16 %v12950_v52, %v12951_v38  ;;  %v12954_v11 = vld [vmem:[#allocation51_spill] sm:$0xff]  ;;  %v12958_v0 = vpack.c.bf16 %v12956_v55, %v12957_v61  ;;  %v12963_v53 = vld [vmem:[#allocation89_spill] sm:$0xff] }
 0x35f   :  { %12937 = vst [vmem:[#allocation191_spill] sm:$0xff] %v10140_v13  ;;  %12945 = vst [vmem:[#allocation168_spill] sm:$0xff] %v10158_v2  ;;  %v10180_v4 = vmul.f32 %v9899_v20, %v12954_v11  ;;  %v12961_v62 = vld [vmem:[#allocation119_spill] sm:$0xff]  ;;  %v10198_v11 = vmul.f32 %v9920_v19, %v12963_v53  ;;  %v12965_v61 = vld [vmem:[#allocation122_spill] sm:$0xff]  ;;  %v10234_v55 = vmul.f32 %v9976_v43, %v12972_v24 }
 0x360   :  { %12947 = vst [vmem:[#allocation194_spill] sm:$0xff] %v10162_v60  ;;  %12949 = vst [vmem:[#allocation195_spill] sm:$0xff] %v10166_v57  ;;  %6844 = vmatmul.mubr.msk.bf16.gmra.mrb[24].mxu1 %vm427_vm0, %v12952_v58  ;;  %v12959_v58 = vld [vmem:[#allocation118_spill] sm:$0xff]  ;;  %v10194_v17 = vmul.f32 %v9928_v47, %v12961_v62  ;;  %v12979_v53 = vld [vmem:[#allocation44_spill] sm:$0xff] }
 0x361   :  { %12955 = vst [vmem:[#allocation162_spill] sm:$0xff] %v10180_v4  ;;  %6847 = vmatprep.mubr.msk.bf16.mxu1 %vm427_vm0, %v12958_v0  ;;  %v10190_v52 = vmul.f32 %v9883_v26, %v12959_v58  ;;  %12964 = vst [vmem:[#allocation164_spill] sm:$0xff] %v10198_v11  ;;  %v10204_v0 = vmul.f32 %v9944_v16, %v12965_v61  ;;  %v12967_v38 = vld [vmem:[#allocation126_spill] sm:$0xff]  ;;  %v12969_v58 = vld [vmem:[#allocation127_spill] sm:$0xff]  ;;  %v10254_v43 = vmul.f32 %v10082_v51, %v12979_v53 }
 0x362   :  { %12962 = vst [vmem:[#allocation165_spill] sm:$0xff] %v10194_v17  ;;  %v10208_v2 = vmul.f32 %v9940_v12, %v12967_v38  ;;  %v10212_v60 = vmul.f32 %v9824_v50, %v12969_v58  ;;  %v12971_v62 = vld [vmem:[#allocation170_spill] sm:$0xff]  ;;  %v12974_v61 = vld [vmem:[#allocation33_spill] sm:$0xff]  ;;  %v12976_v38 = vld [vmem:[#allocation36_spill] sm:$0xff] }
 0x363   :  { %12960 = vst [vmem:[#allocation161_spill] sm:$0xff] %v10190_v52  ;;  %12966 = vst [vmem:[#allocation196_spill] sm:$0xff] %v10204_v0  ;;  %v10238_v17 = vmul.f32 %v10028_v3, %v12974_v61  ;;  %v10242_v57 = vmul.f32 %v10012_v32, %v12976_v38  ;;  %v12978_v52 = vld [vmem:[#allocation26_spill] sm:$0xff]  ;;  %v12980_v24 = vld [vmem:[#allocation48_spill] sm:$0xff] }
 0x364   :  { %12968 = vst [vmem:[#allocation197_spill] sm:$0xff] %v10208_v2  ;;  %12970 = vst [vmem:[#allocation198_spill] sm:$0xff] %v10212_v60  ;;  %v12977_v2 = vld [vmem:[#allocation68_spill] sm:$0xff]  ;;  %v10250_v60 = vmul.f32 %v10050_v49, %v12978_v52  ;;  %v10258_v61 = vmul.f32 %v10074_v37, %v12980_v24  ;;  %v12981_v11 = vld [vmem:[#allocation73_spill] sm:$0xff] }
 0x365   :  { %12973 = vst [vmem:[#allocation170_spill] sm:$0xff] %v10234_v55  ;;  %12975 = vst [vmem:[#allocation199_spill] sm:$0xff] %v10238_v17  ;;  %v10246_v58 = vmul.f32 %v10058_v1, %v12977_v2  ;;  %v10264_v0 = vmul.f32 %v10108_v41, %v12981_v11  ;;  %v12982_v2 = vld [vmem:[#allocation30_spill] sm:$0xff]  ;;  %v12984_v52 = vld [vmem:[#allocation49_spill] sm:$0xff] }
 0x366   :  { %v10268_v4 = vmul.f32 %v10098_v27, %v12982_v2  ;;  %v10272_v36 = vmul.f32 %v10132_v35, %v12984_v52  ;;  %v12985_v53 = vld [vmem:[#allocation169_spill] sm:$0xff]  ;;  %v12986_v6 = vld [vmem:[#allocation172_spill] sm:$0xff]  ;;  %v12988_v24 = vld [vmem:[#allocation50_spill] sm:$0xff] }
 0x367   :  { %v12987_v46 = vpack.c.bf16 %v12985_v53, %v12986_v6  ;;  %v10284_v55 = vmul.f32 %v10120_v30, %v12988_v24  ;;  %v12989_v2 = vld [vmem:[#allocation10_spill] sm:$0xff]  ;;  %v12990_v52 = vld [vmem:[#allocation175_spill] sm:$0xff] }
 0x368   :  { %12983 = vst [vmem:[#allocation200_spill] sm:$0xff] %v10268_v4  ;;  %v10288_v17 = vmul.f32 %v9962_v18, %v12989_v2  ;;  %v12991_v10 = vld [vmem:[#allocation174_spill] sm:$0xff]  ;;  %v12994_v38 = vld [vmem:[#allocation95_spill] sm:$0xff]  ;;  %v13000_v2 = vld [vmem:[#allocation5_spill] sm:$0xff] }
 0x369   :  { %6848 = vmatmul.mubr.msk.bf16.gmra.mrb[28].mxu1 %vm427_vm0, %v12987_v46  ;;  %v12992_v13 = vpack.c.bf16 %v12990_v52, %v12991_v10  ;;  %v12993_v6 = vld [vmem:[#allocation82_spill] sm:$0xff]  ;;  %v10304_v24 = vmul.f32 %v12944_v5, %v12994_v38  ;;  %v12996_v52 = vld [vmem:[#allocation88_spill] sm:$0xff]  ;;  %v12999_v5 = vld [vmem:[#allocation43_spill] sm:$0xff] }
 0x36a   :  { %v10300_v11 = vmul.f32 %v9806_v42, %v12993_v6  ;;  %v12995_v10 = vld [vmem:[#allocation34_spill] sm:$0xff]  ;;  %v10314_v53 = vmul.f32 %v9842_v7, %v12996_v52  ;;  %v12997_v46 = vld [vmem:[#allocation92_spill] sm:$0xff]  ;;  %v10324_v38 = vmul.f32 %v9883_v26, %v12999_v5  ;;  %v10328_v6 = vmul.f32 %v9928_v47, %v13000_v2  ;;  %v13006_v42 = vld [vmem:[#allocation45_spill] sm:$0xff] }
 0x36b   :  { %6855 = vmatprep.mubr.msk.bf16.mxu1 %vm427_vm0, %v12992_v13  ;;  %v10310_v13 = vmul.f32 %v9861_v8, %v12995_v10  ;;  %v10318_v4 = vmul.f32 %v9899_v20, %v12997_v46  ;;  %v13002_v8 = vld [vmem:[#allocation97_spill] sm:$0xff]  ;;  %v13004_v20 = vld [vmem:[#allocation99_spill] sm:$0xff]  ;;  %v10342_v52 = vmul.f32 %v9940_v12, %v13006_v42  ;;  %v7694_v12 = vld [vmem:[%s12112_s5 + $0x28] sm:$0xff]  }
 0x36c   :  { %13001 = vst [vmem:[#allocation172_spill] sm:$0xff] %v10328_v6  ;;  %v10332_v10 = vmul.f32 %v9920_v19, %v13002_v8  ;;  %v10338_v46 = vmul.f32 %v9944_v16, %v13004_v20  ;;  %v13008_v26 = vld [vmem:[#allocation101_spill] sm:$0xff]  ;;  %v13010_v8 = vld [vmem:[#allocation102_spill] sm:$0xff]  ;;  %v13019_v2 = vld [vmem:[#allocation64_spill] sm:$0xff] }
 0x36d   :  { %12998 = vst [vmem:[#allocation169_spill] sm:$0xff] %v10318_v4  ;;  %13007 = vst [vmem:[#allocation201_spill] sm:$0xff] %v10342_v52  ;;  %v10346_v5 = vmul.f32 %v9824_v50, %v13008_v26  ;;  %v10354_v7 = vmul.f32 %v9830_v29, %v13010_v8  ;;  %v13012_v16 = vld [vmem:[#allocation46_spill] sm:$0xff]  ;;  %v13014_v26 = vld [vmem:[#allocation37_spill] sm:$0xff]  ;;  %v10381_v6 = vmul.f32 %v9708_v23, %v13019_v2 }
 0x36e   :  { %13003 = vst [vmem:[#allocation175_spill] sm:$0xff] %v10332_v10  ;;  %13005 = vst [vmem:[#allocation174_spill] sm:$0xff] %v10338_v46  ;;  %v10358_v20 = vmul.f32 %v9664_v28, %v13012_v16  ;;  %v10367_v47 = vmul.f32 %v9640_v44, %v13014_v26  ;;  %v13015_v19 = vld [vmem:[#allocation109_spill] sm:$0xff]  ;;  %v13017_v29 = vld [vmem:[#allocation56_spill] sm:$0xff] }
 0x36f   :  { %13009 = vst [vmem:[#allocation202_spill] sm:$0xff] %v10346_v5  ;;  %13011 = vst [vmem:[#allocation203_spill] sm:$0xff] %v10354_v7  ;;  %v10371_v42 = vmul.f32 %v9655_v34, %v13015_v19  ;;  %v10375_v8 = vmul.f32 %v9700_v63, %v13017_v29  ;;  %v13021_v50 = vld [vmem:[#allocation110_spill] sm:$0xff]  ;;  %v13023_v26 = vld [vmem:[#allocation112_spill] sm:$0xff] }
 0x370   :  { %13013 = vst [vmem:[#allocation204_spill] sm:$0xff] %v10358_v20  ;;  %13020 = vst [vmem:[#allocation207_spill] sm:$0xff] %v10381_v6  ;;  %v10385_v46 = vmul.f32 %v9685_v59, %v13021_v50  ;;  %v10389_v52 = vmul.f32 %v9706_v14, %v13023_v26  ;;  %v13024_v19 = vld [vmem:[#allocation142_spill] sm:$0xff]  ;;  %v13025_v10 = vld [vmem:[#allocation141_spill] sm:$0xff] }
 0x371   :  { %13016 = vst [vmem:[#allocation205_spill] sm:$0xff] %v10371_v42  ;;  %13018 = vst [vmem:[#allocation206_spill] sm:$0xff] %v10375_v8  ;;  %v13026_v4 = vpack.c.bf16 %v13024_v19, %v13025_v10  ;;  %v13027_v29 = vld [vmem:[#allocation113_spill] sm:$0xff]  ;;  %v13028_v50 = vld [vmem:[#allocation114_spill] sm:$0xff] }
 0x372   :  { %13022 = vst [vmem:[#allocation208_spill] sm:$0xff] %v10385_v46  ;;  %v10401_v5 = vmul.f32 %v9742_v56, %v13027_v29  ;;  %v10405_v7 = vmul.f32 %v12971_v62, %v13028_v50  ;;  %v13029_v26 = vld [vmem:[#allocation166_spill] sm:$0xff]  ;;  %v13030_v10 = vld [vmem:[#allocation153_spill] sm:$0xff]  ;;  %v13032_v16 = vld [vmem:[#allocation67_spill] sm:$0xff] }
 0x373   :  { %6856 = vmatmul.mubr.msk.bf16.vlgmr.msra.gmra.mrb[16].mxu1 %vm427_vm0, %v13026_v4  ;;  %v13031_v19 = vpack.c.bf16 %v13029_v26, %v13030_v10  ;;  %v10416_v2 = vmul.f32 %v9740_v22, %v13032_v16  ;;  %v13033_v29 = vld [vmem:[#allocation115_spill] sm:$0xff]  ;;  %v13035_v10 = vld [vmem:[#allocation124_spill] sm:$0xff]  ;;  %v13037_v50 = vld [vmem:[#allocation125_spill] sm:$0xff] }
 0x374   :  { %6872 = vmatpush3.bf16.msra.mxu1 %v9908_v25  ;;  %v10420_v42 = vmul.f32 %v9782_v9, %v13033_v29  ;;  %v7695_v25 = vld [vmem:[%s12112_s5 + $0x30] sm:$0xff]   ;;  %v10437_v29 = vmul.f32 %v10058_v1, %v13037_v50  ;;  %v13038_v46 = vld [vmem:[#allocation154_spill] sm:$0xff]  ;;  %v13039_v20 = vld [vmem:[#allocation129_spill] sm:$0xff] }
 0x375   :  { %6859 = vmatprep.mubr.msk.bf16.mxu1 %vm427_vm0, %v13031_v19  ;;  %6873 = vmatprep.subr.bf16.mxu1 %v7694_v12  ;;  %v10429_v19 = vmul.f32 %v10028_v3, %v13035_v10  ;;  %v13036_v4 = vld [vmem:[#allocation123_spill] sm:$0xff]  ;;  %v10445_v26 = vmul.f32 %v10050_v49, %v13039_v20  ;;  %v13040_v3 = vld [vmem:[#allocation128_spill] sm:$0xff]  ;;  %v13042_v50 = vld [vmem:[#allocation130_spill] sm:$0xff]  ;;  %v13056_v49 = vpack.c.bf16 %v9936_v39, %v9932_v21 }
 0x376   :  { %13034 = vst [vmem:[#allocation142_spill] sm:$0xff] %v10420_v42  ;;  %v10433_v16 = vmul.f32 %v10012_v32, %v13036_v4  ;;  %v10449_v10 = vmul.f32 %v10082_v51, %v13040_v3  ;;  %v13041_v4 = vld [vmem:[#allocation131_spill] sm:$0xff]  ;;  %v10459_v6 = vmul.f32 %v10108_v41, %v13042_v50  ;;  %v13043_v8 = vld [vmem:[#allocation133_spill] sm:$0xff]  ;;  %v13044_v51 = vld [vmem:[#allocation132_spill] sm:$0xff] }
 0x377   :  { %v10455_v1 = vmul.f32 %v10074_v37, %v13041_v4  ;;  %v10463_v42 = vmul.f32 %v10098_v27, %v13043_v8  ;;  %v10469_v3 = vmul.f32 %v10132_v35, %v13044_v51  ;;  %v13045_v32 = vld [vmem:[#allocation62_spill] sm:$0xff]  ;;  %v13046_v4 = vld [vmem:[#allocation63_spill] sm:$0xff]  ;;  %v13065_v39 = vld [vmem:[#allocation184_spill] sm:$0xff] }
 0x378   :  { %6874 = vmatpush3.bf16.msra.mxu1 %v7694_v12  ;;  %v10473_v37 = vmul.f32 %v10120_v30, %v13045_v32  ;;  %v10477_v41 = vmul.f32 %v9962_v18, %v13046_v4  ;;  %v13047_v35 = vld [vmem:[#allocation159_spill] sm:$0xff]  ;;  %v13049_v30 = vld [vmem:[#allocation173_spill] sm:$0xff]  ;;  %v13052_v4 = vld [vmem:[#allocation176_spill] sm:$0xff] }
 0x379   :  { %6891 = vmatprep.subr.bf16.mxu1 %v7695_v25  ;;  %v4067_v12 = vpack.c.bf16 %v10463_v42, %v10459_v6  ;;  %v13048_v8 = vld [vmem:[#allocation171_spill] sm:$0xff]  ;;  %v13051_v18 = vld [vmem:[#allocation177_spill] sm:$0xff]  ;;  %v13054_v27 = vld [vmem:[#allocation178_spill] sm:$0xff] }
 0x37a   :  { %v4069_v51 = vpack.c.bf16 %v13047_v35, %v10477_v41  ;;  %v13050_v32 = vpack.c.bf16 %v13048_v8, %v13049_v30  ;;  %v13053_v50 = vpack.c.bf16 %v13051_v18, %v13052_v4  ;;  %v13055_v20 = vpack.c.bf16 %v9903_v15, %v13054_v27  ;;  %v7696_v15 = vld [vmem:[%s12112_s5 + $0x38] sm:$0xff]   ;;  %v13068_v30 = vld [vmem:[#allocation185_spill] sm:$0xff] }
 0x37b   :  { %v13057_v8 = vpack.c.bf16 %v9954_v33, %v9950_v31  ;;  %v13063_v33 = vpack.c.bf16 %v9992_v45, %v9988_v48  ;;  %v13064_v31 = vld [vmem:[#allocation183_spill] sm:$0xff]  ;;  %v13070_v48 = vld [vmem:[#allocation188_spill] sm:$0xff]  ;;  %v10773_v42 = vld [vmem:[%s12115_s8] sm:$0xff]   ;;  %v10789_v41 = vstv %s6289_s2 }
 0x37c   :  { %6860 = vmatmul.mubr.msk.bf16.gmra.mrb[20].mxu1 %vm427_vm0, %v13050_v32  ;;  %v13058_v32 = vld [vmem:[#allocation179_spill] sm:$0xff]  ;;  %v13066_v21 = vpack.c.bf16 %v13064_v31, %v13065_v39  ;;  %v7698_v31 = vld [vmem:[%s12112_s5 + $0x48] sm:$0xff]   ;;  %v7708_v6 = vld [vmem:[%s12115_s8 + $0x18] sm:$0xff]  }
 0x37d   :  { %6863 = vmatprep.mubr.msk.bf16.mxu1 %vm427_vm0, %v13053_v50  ;;  %v13059_v4 = vpack.c.bf16 %v9633_v54, %v13058_v32  ;;  %v13061_v50 = vld [vmem:[#allocation144_spill] sm:$0xff]  ;;  %v7697_v54 = vld [vmem:[%s12112_s5 + $0x40] sm:$0xff]   ;;  %v13071_v45 = vld [vmem:[#allocation187_spill] sm:$0xff] }
 0x37e   :  { %v13072_v18 = vpack.c.bf16 %v13070_v48, %v13071_v45  ;;  %v13074_v32 = vld [vmem:[#allocation190_spill] sm:$0xff]  ;;  %v7699_v48 = vld [vmem:[%s12112_s5 + $0x50] sm:$0xff]  }
 0x37f   :  { %v13081_v39 = vld [vmem:[#allocation138_spill] sm:$0xff] }
 0x380   :  { %v13087_v45 = vld [vmem:[#allocation194_spill] sm:$0xff] }
 0x384   :  { %6864 = vmatmul.mubr.msk.bf16.gmra.mrb[24].mxu1 %vm427_vm0, %v13055_v20  ;;  %v13060_v20 = vld [vmem:[#allocation139_spill] sm:$0xff] }
 0x385   :  { %6867 = vmatprep.mubr.msk.bf16.mxu1 %vm427_vm0, %v13056_v49  ;;  %v13062_v27 = vpack.c.bf16 %v13060_v20, %v13061_v50  ;;  %v13067_v49 = vld [vmem:[#allocation186_spill] sm:$0xff]  ;;  %v13078_v50 = vld [vmem:[#allocation157_spill] sm:$0xff] }
 0x38c   :  { %6868 = vmatmul.mubr.msk.bf16.gmra.mrb[28].mxu1 %vm427_vm0, %v13057_v8  ;;  %v13073_v8 = vld [vmem:[#allocation189_spill] sm:$0xff] }
 0x38d   :  { %6875 = vmatprep.mubr.msk.bf16.mxu1 %vm427_vm0, %v13059_v4  ;;  %v13075_v4 = vpack.c.bf16 %v13073_v8, %v13074_v32  ;;  %v13090_v32 = vld [vmem:[#allocation162_spill] sm:$0xff] }
 0x394   :  { %6876 = vmatmul.mubr.msk.bf16.vlgmr.msra.gmra.mrb[16].mxu1 %vm427_vm0, %v13062_v27  ;;  %v13079_v27 = vld [vmem:[#allocation192_spill] sm:$0xff] }
 0x395   :  { %6892 = vmatpush3.bf16.msra.mxu1 %v7695_v25  ;;  %6879 = vmatprep.mubr.msk.bf16.mxu1 %vm427_vm0, %v13063_v33  ;;  %v13069_v25 = vpack.c.bf16 %v13067_v49, %v13068_v30  ;;  %v13080_v33 = vpack.c.bf16 %v13078_v50, %v13079_v27  ;;  %v13084_v30 = vld [vmem:[#allocation193_spill] sm:$0xff]  ;;  %v13096_v27 = vld [vmem:[#allocation196_spill] sm:$0xff] }
 0x396   :  { %6893 = vmatprep.subr.bf16.mxu1 %v7696_v15 }
 0x399   :  { %6894 = vmatpush3.bf16.msra.mxu1 %v7696_v15  ;;  %v13076_v15 = vld [vmem:[#allocation191_spill] sm:$0xff] }
 0x39a   :  { %6911 = vmatprep.subr.bf16.mxu1 %v7697_v54  ;;  %v13077_v20 = vpack.c.bf16 %v10136_v40, %v13076_v15  ;;  %v13093_v15 = vld [vmem:[#allocation165_spill] sm:$0xff] }
 0x39c   :  { %6880 = vmatmul.mubr.msk.bf16.gmra.mrb[20].mxu1 %vm427_vm0, %v13066_v21  ;;  %v13082_v21 = vld [vmem:[#allocation143_spill] sm:$0xff] }
 0x39d   :  { %6883 = vmatprep.mubr.msk.bf16.mxu1 %vm427_vm0, %v13069_v25  ;;  %v13083_v49 = vpack.c.bf16 %v13081_v39, %v13082_v21  ;;  %v13085_v25 = vld [vmem:[#allocation163_spill] sm:$0xff]  ;;  %v13100_v21 = vld [vmem:[#allocation197_spill] sm:$0xff] }
 0x39e   :  { %v13086_v40 = vpack.c.bf16 %v13084_v30, %v13085_v25  ;;  %v13102_v30 = vld [vmem:[#allocation137_spill] sm:$0xff]  ;;  %v13103_v25 = vld [vmem:[#allocation135_spill] sm:$0xff] }
 0x3a4   :  { %6884 = vmatmul.mubr.msk.bf16.gmra.mrb[24].mxu1 %vm427_vm0, %v13072_v18  ;;  %v13088_v18 = vld [vmem:[#allocation168_spill] sm:$0xff] }
 0x3a5   :  { %6887 = vmatprep.mubr.msk.bf16.mxu1 %vm427_vm0, %v13075_v4  ;;  %v13089_v8 = vpack.c.bf16 %v13087_v45, %v13088_v18  ;;  %v13091_v4 = vld [vmem:[#allocation195_spill] sm:$0xff]  ;;  %v7700_v45 = vld [vmem:[%s12112_s5 + $0x58] sm:$0xff]  }
 0x3a6   :  { %v13105_v18 = vld [vmem:[#allocation136_spill] sm:$0xff] }
 0x3ac   :  { %6888 = vmatmul.mubr.msk.bf16.gmra.mrb[28].mxu1 %vm427_vm0, %v13077_v20  ;;  %v13094_v20 = vld [vmem:[#allocation161_spill] sm:$0xff] }
 0x3ad   :  { %6895 = vmatprep.mubr.msk.bf16.mxu1 %vm427_vm0, %v13080_v33  ;;  %v13095_v50 = vpack.c.bf16 %v13093_v15, %v13094_v20  ;;  %v13097_v33 = vld [vmem:[#allocation164_spill] sm:$0xff]  ;;  %v7701_v15 = vld [vmem:[%s12112_s5 + $0x60] sm:$0xff]   ;;  %v13110_v20 = vpack.c.bf16 %v9655_v34, %v9640_v44  ;;  %v13114_v44 = vpack.c.bf16 %v9782_v9, %v9740_v22  ;;  %v7703_v9 = vld [vmem:[%s12112_s5 + $0x70] sm:$0xff]  }
 0x3ae   :  { %v13098_v39 = vpack.c.bf16 %v13096_v27, %v13097_v33  ;;  %v13115_v34 = vld [vmem:[#allocation148_spill] sm:$0xff]  ;;  %v13116_v27 = vld [vmem:[#allocation145_spill] sm:$0xff] }
 0x3b4   :  { %6896 = vmatmul.mubr.msk.bf16.vlgmr.msra.gmra.mrb[16].mxu1 %vm427_vm0, %v13083_v49 }
 0x3b5   :  { %6912 = vmatpush3.bf16.msra.mxu1 %v7697_v54  ;;  %6899 = vmatprep.mubr.msk.bf16.mxu1 %vm427_vm0, %v13086_v40  ;;  %v13092_v54 = vpack.c.bf16 %v13090_v32, %v13091_v4  ;;  %v13104_v40 = vpack.c.bf16 %v13102_v30, %v13103_v25  ;;  %v13108_v4 = vld [vmem:[#allocation158_spill] sm:$0xff]  ;;  %v13131_v25 = vld [vmem:[#allocation149_spill] sm:$0xff] }
 0x3b6   :  { %6913 = vmatprep.subr.bf16.mxu1 %v7698_v31 }
 0x3b9   :  { %6914 = vmatpush3.bf16.msra.mxu1 %v7698_v31  ;;  %v13099_v31 = vld [vmem:[#allocation198_spill] sm:$0xff] }
 0x3ba   :  { %6931 = vmatprep.subr.bf16.mxu1 %v7699_v48  ;;  %v13101_v49 = vpack.c.bf16 %v13099_v31, %v13100_v21  ;;  %v13125_v31 = vpack.c.bf16 %v10254_v43, %v10250_v60  ;;  %v13126_v21 = vpack.c.bf16 %v10264_v0, %v10258_v61  ;;  %v7704_v61 = vld [vmem:[%s12112_s5 + $0x78] sm:$0xff]   ;;  %v13133_v0 = vld [vmem:[#allocation167_spill] sm:$0xff] }
 0x3bb   :  { %v13134_v43 = vld [vmem:[#allocation155_spill] sm:$0xff] }
 0x3bc   :  { %6900 = vmatmul.mubr.msk.bf16.gmra.mrb[20].mxu1 %vm427_vm0, %v13089_v8  ;;  %v13106_v8 = vld [vmem:[#allocation35_spill] sm:$0xff] }
 0x3bd   :  { %6903 = vmatprep.mubr.msk.bf16.mxu1 %vm427_vm0, %v13092_v54  ;;  %v13107_v32 = vpack.c.bf16 %v13105_v18, %v13106_v8  ;;  %v13109_v54 = vpack.c.bf16 %v9664_v28, %v13108_v4  ;;  %v13112_v28 = vpack.c.bf16 %v9706_v14, %v9685_v59  ;;  %v7702_v14 = vld [vmem:[%s12112_s5 + $0x68] sm:$0xff]   ;;  %v13118_v59 = vld [vmem:[#allocation180_spill] sm:$0xff] }
 0x3be   :  { %v13144_v4 = vld [vmem:[#allocation174_spill] sm:$0xff] }
 0x3c4   :  { %6904 = vmatmul.mubr.msk.bf16.gmra.mrb[24].mxu1 %vm427_vm0, %v13095_v50  ;;  %v13113_v50 = vpack.c.bf16 %v12971_v62, %v9742_v56  ;;  %v13121_v62 = vld [vmem:[#allocation199_spill] sm:$0xff]  ;;  %v13122_v56 = vld [vmem:[#allocation170_spill] sm:$0xff] }
 0x3c5   :  { %6907 = vmatprep.mubr.msk.bf16.mxu1 %vm427_vm0, %v13098_v39  ;;  %v13123_v22 = vpack.c.bf16 %v13121_v62, %v13122_v56  ;;  %v13124_v39 = vpack.c.bf16 %v10246_v58, %v10242_v57  ;;  %v13129_v57 = vpack.c.bf16 %v10288_v17, %v10284_v55  ;;  %v13130_v58 = vld [vmem:[#allocation150_spill] sm:$0xff]  ;;  %v7705_v17 = vld [vmem:[%s12112_s5 + $0x80] sm:$0xff]   ;;  %v13137_v55 = vpack.c.bf16 %v10314_v53, %v10310_v13  ;;  %v13161_v62 = vld [vmem:[#allocation207_spill] sm:$0xff] }
 0x3c6   :  { %v13132_v60 = vpack.c.bf16 %v13130_v58, %v13131_v25  ;;  %v13149_v13 = vld [vmem:[#allocation146_spill] sm:$0xff] }
 0x3cc   :  { %6908 = vmatmul.mubr.msk.bf16.gmra.mrb[28].mxu1 %vm427_vm0, %v13101_v49  ;;  %v13127_v49 = vld [vmem:[#allocation200_spill] sm:$0xff] }
 0x3cd   :  { %6915 = vmatprep.mubr.msk.bf16.mxu1 %vm427_vm0, %v13104_v40  ;;  %v13128_v30 = vpack.c.bf16 %v10272_v36, %v13127_v49  ;;  %v13135_v40 = vpack.c.bf16 %v13133_v0, %v13134_v43  ;;  %v13136_v36 = vpack.c.bf16 %v10304_v24, %v10300_v11  ;;  %v13140_v11 = vld [vmem:[#allocation175_spill] sm:$0xff]  ;;  %v13141_v24 = vld [vmem:[#allocation172_spill] sm:$0xff] }
 0x3ce   :  { %v13142_v8 = vpack.c.bf16 %v13140_v11, %v13141_v24 }
 0x3d4   :  { %6916 = vmatmul.mubr.msk.bf16.vlgmr.msra.gmra.mrb[16].mxu1 %vm427_vm0, %v13107_v32  ;;  %v13143_v32 = vld [vmem:[#allocation201_spill] sm:$0xff] }
 0x3d5   :  { %6932 = vmatpush3.bf16.msra.mxu1 %v7699_v48  ;;  %6919 = vmatprep.mubr.msk.bf16.mxu1 %vm427_vm0, %v13109_v54  ;;  %v13111_v48 = vpack.c.bf16 %v9708_v23, %v9700_v63  ;;  %v13117_v23 = vpack.c.bf16 %v13115_v34, %v13116_v27  ;;  %v13119_v63 = vld [vmem:[#allocation156_spill] sm:$0xff]  ;;  %v13145_v54 = vpack.c.bf16 %v13143_v32, %v13144_v4 }
 0x3d6   :  { %6933 = vmatprep.subr.bf16.mxu1 %v7700_v45  ;;  %v13120_v33 = vpack.c.bf16 %v13118_v59, %v13119_v63  ;;  %v13155_v27 = vld [vmem:[#allocation204_spill] sm:$0xff]  ;;  %v13158_v59 = vld [vmem:[#allocation205_spill] sm:$0xff] }
 0x3d9   :  { %6934 = vmatpush3.bf16.msra.mxu1 %v7700_v45  ;;  %v13138_v45 = vld [vmem:[#allocation169_spill] sm:$0xff] }
 0x3da   :  { %6951 = vmatprep.subr.bf16.mxu1 %v7701_v15  ;;  %v13139_v18 = vpack.c.bf16 %v10324_v38, %v13138_v45 }
 0x3dc   :  { %6920 = vmatmul.mubr.msk.bf16.gmra.mrb[20].mxu1 %vm427_vm0, %v13110_v20  ;;  %v13147_v20 = vld [vmem:[#allocation202_spill] sm:$0xff] }
 0x3dd   :  { %6923 = vmatprep.mubr.msk.bf16.mxu1 %vm427_vm0, %v13111_v48  ;;  %v13150_v48 = vld [vmem:[#allocation140_spill] sm:$0xff] }
 0x3de   :  { %v13151_v38 = vpack.c.bf16 %v13149_v13, %v13150_v48 }
 0x3e4   :  { %6924 = vmatmul.mubr.msk.bf16.gmra.mrb[24].mxu1 %vm427_vm0, %v13112_v28  ;;  %v7706_v28 = vld [vmem:[%s12112_s5 + $0x88] sm:$0xff]  }
 0x3e5   :  { %6927 = vmatprep.mubr.msk.bf16.mxu1 %vm427_vm0, %v13113_v50  ;;  %v13152_v50 = vld [vmem:[#allocation160_spill] sm:$0xff] }
 0x3ec   :  { %6928 = vmatmul.mubr.msk.bf16.gmra.mrb[28].mxu1 %vm427_vm0, %v13114_v44  ;;  %v13153_v44 = vld [vmem:[#allocation152_spill] sm:$0xff] }
 0x3ed   :  { %6935 = vmatprep.mubr.msk.bf16.mxu1 %vm427_vm0, %v13117_v23  ;;  %v13154_v34 = vpack.c.bf16 %v13152_v50, %v13153_v44  ;;  %v13156_v23 = vpack.c.bf16 %v10367_v47, %v13155_v27  ;;  %v13164_v47 = vpack.c.bf16 %v10416_v2, %v10405_v7  ;;  %v13173_v2 = vpack.c.bf16 %v10433_v16, %v10429_v19  ;;  %v7707_v16 = vld [vmem:[%s12115_s8 + $0x10] sm:$0xff]  }
 0x3ee   :  { %v13176_v7 = vpack.c.bf16 %v10473_v37, %v10469_v3  ;;  %7011 = vmatprep.subr.bf16.mxu0 %v7707_v16 }
 0x3ef   :  { %7012 = vmatpush3.bf16.msra.mxu0 %v7707_v16 }
 0x3f0   :  { %7013 = vmatprep.subr.bf16.mxu0 %v7708_v6 }
 0x3f3   :  { %7014 = vmatpush3.bf16.msra.mxu0 %v7708_v6 }
 0x3f4   :  { %6936 = vmatmul.mubr.msk.bf16.vlgmr.msra.gmra.mrb[16].mxu1 %vm427_vm0, %v13120_v33  ;;  %v13160_v33 = vld [vmem:[#allocation208_spill] sm:$0xff]  ;;  %7031 = vmatprep.subr.bf16.mxu0 %v10773_v42 }
 0x3f5   :  { %6952 = vmatpush3.bf16.msra.mxu1 %v7701_v15  ;;  %6939 = vmatprep.mubr.msk.bf16.mxu1 %vm427_vm0, %v13123_v22  ;;  %v13146_v15 = vld [vmem:[#allocation203_spill] sm:$0xff]  ;;  %v13162_v56 = vpack.c.bf16 %v13160_v33, %v13161_v62  ;;  %v13163_v22 = vpack.c.bf16 %v10401_v5, %v10389_v52  ;;  %v13175_v5 = vpack.c.bf16 %v10455_v1, %v10449_v10  ;;  %v10784_v10 = vld [vmem:[%s12114_s7] ss:$0 sm:$0xff] }
 0x3f6   :  { %6953 = vmatprep.subr.bf16.mxu1 %v7702_v14  ;;  %v13148_v53 = vpack.c.bf16 %v13146_v15, %v13147_v20 }
 0x3f9   :  { %6954 = vmatpush3.bf16.msra.mxu1 %v7702_v14  ;;  %v13157_v14 = vld [vmem:[#allocation206_spill] sm:$0xff] }
 0x3fa   :  { %6971 = vmatprep.subr.bf16.mxu1 %v7703_v9  ;;  %v13159_v63 = vpack.c.bf16 %v13157_v14, %v13158_v59 }
 0x3fc   :  { %6940 = vmatmul.mubr.msk.bf16.gmra.mrb[20].mxu1 %vm427_vm0, %v13124_v39 }
 0x3fd   :  { %6943 = vmatprep.mubr.msk.bf16.mxu1 %vm427_vm0, %v13125_v31  ;;  %v13167_v31 = vld [vmem:[#allocation147_spill] sm:$0xff] }
 0x404   :  { %6944 = vmatmul.mubr.msk.bf16.gmra.mrb[24].mxu1 %vm427_vm0, %v13126_v21  ;;  %v13168_v21 = vld [vmem:[#allocation151_spill] sm:$0xff] }
 0x405   :  { %6947 = vmatprep.mubr.msk.bf16.mxu1 %vm427_vm0, %v13128_v30  ;;  %v13169_v49 = vpack.c.bf16 %v13167_v31, %v13168_v21  ;;  %v13170_v30 = vld [vmem:[#allocation182_spill] sm:$0xff] }
 0x40c   :  { %6948 = vmatmul.mubr.msk.bf16.gmra.mrb[28].mxu1 %vm427_vm0, %v13129_v57  ;;  %v13171_v57 = vld [vmem:[#allocation181_spill] sm:$0xff] }
 0x40d   :  { %6955 = vmatprep.mubr.msk.bf16.mxu1 %vm427_vm0, %v13132_v60  ;;  %v13172_v52 = vpack.c.bf16 %v13170_v30, %v13171_v57 }
 0x414   :  { %6956 = vmatmul.mubr.msk.bf16.vlgmr.msra.gmra.mrb[16].mxu1 %vm427_vm0, %v13135_v40 }
 0x415   :  { %6972 = vmatpush3.bf16.msra.mxu1 %v7703_v9  ;;  %6959 = vmatprep.mubr.msk.bf16.mxu1 %vm427_vm0, %v13136_v36  ;;  %v13165_v9 = vld [vmem:[#allocation142_spill] sm:$0xff] }
 0x416   :  { %6973 = vmatprep.subr.bf16.mxu1 %v7704_v61  ;;  %v13166_v39 = vpack.c.bf16 %v13038_v46, %v13165_v9  ;;  %v13174_v46 = vpack.c.bf16 %v10445_v26, %v10437_v29  ;;  %v10779_v29 = vld [vmem:[%s12113_s6] ss:$0 sm:$0xff] }
 0x417   :  { %v13183_v9 = vld [vmem:[#allocation21_spill] sm:$0xff] }
 0x419   :  { %6974 = vmatpush3.bf16.msra.mxu1 %v7704_v61 }
 0x41a   :  { %6991 = vmatprep.subr.bf16.mxu1 %v7705_v17 }
 0x41c   :  { %6960 = vmatmul.mubr.msk.bf16.gmra.mrb[20].mxu1 %vm427_vm0, %v13137_v55 }
 0x41d   :  { %6963 = vmatprep.mubr.msk.bf16.mxu1 %vm427_vm0, %v13139_v18 }
 0x424   :  { %6964 = vmatmul.mubr.msk.bf16.gmra.mrb[24].mxu1 %vm427_vm0, %v13142_v8 }
 0x425   :  { %6967 = vmatprep.mubr.msk.bf16.mxu1 %vm427_vm0, %v13145_v54 }
 0x42c   :  { %6968 = vmatmul.mubr.msk.bf16.gmra.mrb[28].mxu1 %vm427_vm0, %v13148_v53 }
 0x42d   :  { %6975 = vmatprep.mubr.msk.bf16.mxu1 %vm427_vm0, %v13151_v38 }
 0x434   :  { %6976 = vmatmul.mubr.msk.bf16.vlgmr.msra.gmra.mrb[16].mxu1 %vm427_vm0, %v13154_v34 }
 0x435   :  { %6992 = vmatpush3.bf16.msra.mxu1 %v7705_v17  ;;  %6979 = vmatprep.mubr.msk.bf16.mxu1 %vm427_vm0, %v13156_v23 }
 0x436   :  { %6993 = vmatprep.subr.bf16.mxu1 %v7706_v28 }
 0x439   :  { %6994 = vmatpush3.bf16.msra.mxu1 %v7706_v28  ;;  %v13180_v28 = vld [vmem:[#allocation55_spill] sm:$0xff] }
 0x43c   :  { %6980 = vmatmul.mubr.msk.bf16.gmra.mrb[20].mxu1 %vm427_vm0, %v13159_v63 }
 0x43d   :  { %6983 = vmatprep.mubr.msk.bf16.mxu1 %vm427_vm0, %v13162_v56 }
 0x444   :  { %6984 = vmatmul.mubr.msk.bf16.gmra.mrb[24].mxu1 %vm427_vm0, %v13163_v22 }
 0x445   :  { %6987 = vmatprep.mubr.msk.bf16.mxu1 %vm427_vm0, %v13164_v47 }
 0x44c   :  { %6988 = vmatmul.mubr.msk.bf16.gmra.mrb[28].mxu1 %vm427_vm0, %v13166_v39 }
 0x44d   :  { %6995 = vmatprep.mubr.msk.bf16.mxu1 %vm427_vm0, %v13169_v49  ;;  %v13186_v49 = vld [vmem:[#allocation13_spill] sm:$0xff] }
 0x454   :  { %6996 = vmatmul.mubr.msk.bf16.vlgmr.msra.gmra.mrb[16].mxu1 %vm427_vm0, %v13172_v52 }
 0x455   :  { %6999 = vmatprep.mubr.msk.bf16.mxu1 %vm427_vm0, %v13173_v2  ;;  %v13187_v2 = vld [vmem:[#allocation12_spill] sm:$0xff] }
 0x45c   :  { %7000 = vmatmul.mubr.msk.bf16.gmra.mrb[20].mxu1 %vm427_vm0, %v13174_v46 }
 0x45d   :  { %7003 = vmatprep.mubr.msk.bf16.mxu1 %vm427_vm0, %v13175_v5  ;;  %v13188_v5 = vld [vmem:[#allocation18_spill] sm:$0xff] }
 0x464   :  { %7004 = vmatmul.mubr.msk.bf16.gmra.mrb[24].mxu1 %vm427_vm0, %v4067_v12 }
 0x465   :  { %7007 = vmatprep.mubr.msk.bf16.mxu1 %vm427_vm0, %v13176_v7 }
 0x46c   :  { %7008 = vmatmul.mubr.msk.bf16.gmra.mrb[28].mxu1 %vm427_vm0, %v4069_v51 }
 0x527   :  { %v6997_v26 = vpop.f32.mrb[16].mxu1 }
 0x528   :  { %v4228_v19 = vmul.f32 %v6997_v26, %v10779_v29  ;;  %v4140_v3 = vpop.f32.mrb[17].mxu1  ;;  %v13190_v26 = vld [vmem:[#allocation106_spill] sm:$0xff] }
 0x529   :  { %v4226_v1 = vmul.f32 %v10779_v29, %v4140_v3  ;;  %v6998_v51 = vpop.f32.mrb[18].mxu1 }
 0x52a   :  { %v4251_v37 = vadd.f32 %v10784_v10, %v4228_v19  ;;  %v4229_v12 = vmul.f32 %v6998_v51, %v10779_v29  ;;  %v4143_v35 = vpop.f32.mrb[19].mxu1 }
 0x52b   :  { %v4249_v58 = vadd.f32 %v10784_v10, %v4226_v1  ;;  %v4227_v25 = vmul.f32 %v10779_v29, %v4143_v35 }
 0x52c   :  { %v4252_v60 = vadd.f32 %v10784_v10, %v4229_v12  ;;  %v4285_v61 = vmul.f32 %v10789_v41, %v4251_v37  ;;  %vm4267_vm6 = vcmp.ge.f32.partialorder %v4251_v37, 0.0 }
 0x52d   :  { %v4250_v0 = vadd.f32 %v10784_v10, %v4227_v25  ;;  %v4283_v40 = vmul.f32 %v10789_v41, %v4249_v58  ;;  %vm4265_vm8 = vcmp.ge.f32.partialorder %v4249_v58, 0.0 }
 0x52e   :  { %vm4268_vm7 = vcmp.ge.f32.partialorder %v4252_v60, 0.0  ;;  %v4286_v43 = vmul.f32 %v10789_v41, %v4252_v60  ;;  %v10799_v55 = vsel %vm4267_vm6, %v4251_v37, %v4285_v61  ;;  %v13218_v61 = vld [vmem:[#allocation78_spill] sm:$0xff] }
 0x52f   :  { %v7001_v36 = vpop.f32.mrb[20].mxu1  ;;  %13177 = vst [vmem:[#allocation141_spill] sm:$0xff] %v10799_v55  ;;  %vm4266_vm9 = vcmp.ge.f32.partialorder %v4250_v0, 0.0  ;;  %v4284_v11 = vmul.f32 %v10789_v41, %v4250_v0  ;;  %v10807_v54 = vsel %vm4265_vm8, %v4249_v58, %v4283_v40  ;;  %v4317_v38 = vrot.slane %v10799_v55, 7 }
 0x530   :  { %v4156_v17 = vpop.f32.mrb[21].mxu1  ;;  %v10801_v45 = vsel %vm4268_vm7, %v4252_v60, %v4286_v43  ;;  %v4232_v24 = vmul.f32 %v7001_v36, %v10779_v29  ;;  %v10818_v50 = vmul.f32 %v10799_v55, %v13180_v28  ;;  %v12487_v44 = vrot.slane %v10799_v55, 1 }
 0x531   :  { %13178 = vst [vmem:[#allocation166_spill] sm:$0xff] %v10801_v45  ;;  %v7002_v18 = vpop.f32.mrb[22].mxu1  ;;  %v4230_v8 = vmul.f32 %v10779_v29, %v4156_v17  ;;  %v12488_v20 = vrot.slane %v10801_v45, 1  ;;  %v10811_v53 = vsel %vm4266_vm9, %v4250_v0, %v4284_v11  ;;  %v4315_v59 = vrot.slane %v10807_v54, 7 }
 0x532   :  { %v4233_v32 = vmul.f32 %v7002_v18, %v10779_v29  ;;  %v4159_v4 = vpop.f32.mrb[23].mxu1  ;;  %13179 = vst [vmem:[#allocation153_spill] sm:$0xff] %v10811_v53  ;;  %v4255_v13 = vadd.f32 %v10784_v10, %v4232_v24  ;;  %v4316_v27 = vrot.slane %v10811_v53, 7  ;;  %v4318_v56 = vrot.slane %v10801_v45, 7 }
 0x533   :  { %v4231_v15 = vmul.f32 %v10779_v29, %v4159_v4  ;;  %v4253_v48 = vadd.f32 %v10784_v10, %v4230_v8  ;;  %v10835_v47 = vsel %vm698_vm1, %v12487_v44, %v12488_v20  ;;  %v10839_v39 = vmul.f32 %v10801_v45, %v13183_v9  ;;  %v13202_v44 = vld [vmem:[#allocation60_spill] sm:$0xff]  ;;  %v13208_v20 = vld [vmem:[#allocation75_spill] sm:$0xff] }
 0x534   :  { %v4256_v34 = vadd.f32 %v10784_v10, %v4233_v32  ;;  %v4289_v23 = vmul.f32 %v10789_v41, %v4255_v13  ;;  %vm4271_vm11 = vcmp.ge.f32.partialorder %v4255_v13, 0.0  ;;  %13182 = vst [vmem:[#allocation154_spill] sm:$0xff] %v10835_v47  ;;  %v10845_v30 = vmul.f32 %v10811_v53, %v13186_v49 }
 0x535   :  { %vm4269_vm10 = vcmp.ge.f32.partialorder %v4253_v48, 0.0  ;;  %v4287_v14 = vmul.f32 %v10789_v41, %v4253_v48  ;;  %v4254_v33 = vadd.f32 %v10784_v10, %v4231_v15  ;;  %13184 = vst [vmem:[#allocation159_spill] sm:$0xff] %v10839_v39  ;;  %v10850_v46 = vmul.f32 %v10807_v54, %v13187_v2 }
 0x536   :  { %v10854_v7 = vmul.f32 %v10801_v45, %v13188_v5  ;;  %v10860_v16 = vsel %vm118_vm2, %v4316_v27, %v4317_v38  ;;  %v10862_v6 = vsel %vm4271_vm11, %v4255_v13, %v4289_v23  ;;  %vm4272_vm12 = vcmp.ge.f32.partialorder %v4256_v34, 0.0 }
 0x537   :  { %v7005_v62 = vpop.f32.mrb[24].mxu1  ;;  %v10841_v31 = vsel %vm4269_vm10, %v4253_v48, %v4287_v14  ;;  %13189 = vst [vmem:[#allocation173_spill] sm:$0xff] %v10860_v16  ;;  %v4290_v1 = vmul.f32 %v10789_v41, %v4256_v34  ;;  %v4288_v51 = vmul.f32 %v10789_v41, %v4254_v33  ;;  %vm4270_vm13 = vcmp.ge.f32.partialorder %v4254_v33, 0.0 }
 0x538   :  { %13185 = vst [vmem:[#allocation171_spill] sm:$0xff] %v10841_v31  ;;  %v4172_v21 = vpop.f32.mrb[25].mxu1  ;;  %v10866_v19 = vmul.f32 %v10841_v31, %v13190_v26  ;;  %v4236_v37 = vmul.f32 %v7005_v62, %v10779_v29  ;;  %v10880_v60 = vsel %vm118_vm2, %v4315_v59, %v4316_v27  ;;  %v12490_v40 = vrot.slane %v10862_v6, 7 }
 0x539   :  { %v7006_v52 = vpop.f32.mrb[26].mxu1  ;;  %v4234_v12 = vmul.f32 %v10779_v29, %v4172_v21  ;;  %v12489_v11 = vrot.slane %v10841_v31, 7  ;;  %v10893_v8 = vsel %vm4272_vm12, %v4256_v34, %v4290_v1  ;;  %v10895_v32 = vsel %vm4270_vm13, %v4254_v33, %v4288_v51  ;;  %v13192_v21 = vld [vmem:[#allocation59_spill] sm:$0xff]  ;;  %v13193_v51 = vld [vmem:[#allocation20_spill] sm:$0xff] }
 0x53a   :  { %13191 = vst [vmem:[#allocation177_spill] sm:$0xff] %v10866_v19  ;;  %v4175_v3 = vpop.f32.mrb[27].mxu1  ;;  %v4237_v58 = vmul.f32 %v7006_v52, %v10779_v29  ;;  %v4259_v0 = vadd.f32 %v10784_v10, %v4236_v37  ;;  %v10907_v49 = vmul.f32 %v10841_v31, %v13192_v21  ;;  %v4320_v52 = vrot.slane %v10895_v32, 7  ;;  %v13235_v19 = vld [vmem:[#allocation25_spill] sm:$0xff] }
 0x53b   :  { %v4235_v25 = vmul.f32 %v10779_v29, %v4175_v3  ;;  %v4257_v43 = vadd.f32 %v10784_v10, %v4234_v12  ;;  %v10921_v37 = vmul.f32 %v10895_v32, %v13193_v51  ;;  %v4343_v33 = vsel %vm118_vm2, %v4317_v38, %v4318_v56 }
 0x53c   :  { %v4260_v17 = vadd.f32 %v10784_v10, %v4237_v58  ;;  %vm4275_vm14 = vcmp.ge.f32.partialorder %v4259_v0, 0.0  ;;  %v4293_v15 = vmul.f32 %v10789_v41, %v4259_v0  ;;  %v13226_v39 = vrot.slane %v10893_v8, 7 }
 0x53d   :  { %v4258_v18 = vadd.f32 %v10784_v10, %v4235_v25  ;;  %v4291_v13 = vmul.f32 %v10789_v41, %v4257_v43  ;;  %vm4273_vm15 = vcmp.ge.f32.partialorder %v4257_v43, 0.0 }
 0x53e   :  { %v4294_v48 = vmul.f32 %v10789_v41, %v4260_v17  ;;  %vm4276_vm3 = vcmp.ge.f32.partialorder %v4260_v17, 0.0  ;;  %v10913_v26 = vsel %vm4275_vm14, %v4259_v0, %v4293_v15  ;;  %v13194_v15 = vld [vmem:[#allocation61_spill] sm:$0xff] }
 0x53f   :  { %v7009_v4 = vpop.f32.mrb[28].mxu1  ;;  %v4292_v62 = vmul.f32 %v10789_v41, %v4258_v18  ;;  %vm4274_vm4 = vcmp.ge.f32.partialorder %v4258_v18, 0.0  ;;  %v10915_v3 = vsel %vm4273_vm15, %v4257_v43, %v4291_v13  ;;  %v4397_v43 = vpack.c.bf16 %v10907_v49, %v10854_v7  ;;  %v13204_v7 = vld [vmem:[#allocation58_spill] sm:$0xff] }
 0x540   :  { %v4188_v28 = vpop.f32.mrb[29].mxu1  ;;  %v4240_v27 = vmul.f32 %v7009_v4, %v10779_v29  ;;  %v10917_v1 = vsel %vm4276_vm3, %v4260_v17, %v4294_v48  ;;  %v10935_v13 = vmul.f32 %v10862_v6, %v13194_v15  ;;  %v13195_v48 = vld [vmem:[#allocation32_spill] sm:$0xff]  ;;  %v13206_v49 = vld [vmem:[#allocation74_spill] sm:$0xff] }
 0x541   :  { %v4238_v23 = vmul.f32 %v10779_v29, %v4188_v28  ;;  %v7010_v14 = vpop.f32.mrb[30].mxu1  ;;  %v10925_v25 = vsel %vm4274_vm4, %v4258_v18, %v4292_v62  ;;  %v10939_v28 = vmul.f32 %v10893_v8, %v13195_v48 }
 0x542   :  { %v4191_v9 = vpop.f32.mrb[31].mxu1  ;;  %v4263_v2 = vadd.f32 %v10784_v10, %v4240_v27  ;;  %v4241_v4 = vmul.f32 %v7010_v14, %v10779_v29  ;;  %v13196_v27 = vld [vmem:[#allocation65_spill] sm:$0xff]  ;;  %v4324_v35 = vrot.slane %v10925_v25, 7 }
 0x543   :  { %v4261_v5 = vadd.f32 %v10784_v10, %v4238_v23  ;;  %v4239_v0 = vmul.f32 %v10779_v29, %v4191_v9  ;;  %v10943_v18 = vmul.f32 %v10915_v3, %v13196_v27  ;;  %v4323_v27 = vrot.slane %v10915_v3, 7  ;;  %v13211_v29 = vld [vmem:[#allocation72_spill] sm:$0xff] }
 0x544   :  { %vm4279_vm5 = vcmp.ge.f32.partialorder %v4263_v2, 0.0  ;;  %v4297_v12 = vmul.f32 %v10789_v41, %v4263_v2  ;;  %v4264_v62 = vadd.f32 %v10784_v10, %v4241_v4  ;;  %v13200_v4 = vld [vmem:[#allocation52_spill] sm:$0xff] }
 0x545   :  { %vm4277_vm6 = vcmp.ge.f32.partialorder %v4261_v5, 0.0  ;;  %v4295_v58 = vmul.f32 %v10789_v41, %v4261_v5  ;;  %v4262_v9 = vadd.f32 %v10784_v10, %v4239_v0 }
 0x546   :  { %v10948_v14 = vsel %vm4279_vm5, %v4263_v2, %v4297_v12  ;;  %v13199_v2 = vld [vmem:[#allocation70_spill] sm:$0xff]  ;;  %vm4280_vm7 = vcmp.ge.f32.partialorder %v4264_v62, 0.0  ;;  %v4298_v0 = vmul.f32 %v10789_v41, %v4264_v62 }
 0x547   :  { %v10931_v17 = vsel %vm4277_vm6, %v4261_v5, %v4295_v58  ;;  %v13197_v5 = vld [vmem:[#allocation39_spill] sm:$0xff]  ;;  %v13198_v58 = vld [vmem:[#allocation42_spill] sm:$0xff]  ;;  %v10966_v12 = vmul.f32 %v10917_v1, %v13199_v2  ;;  %vm4278_vm8 = vcmp.ge.f32.partialorder %v4262_v9, 0.0  ;;  %v4296_v48 = vmul.f32 %v10789_v41, %v4262_v9 }
 0x548   :  { %v10958_v51 = vmul.f32 %v10925_v25, %v13197_v5  ;;  %v10962_v15 = vmul.f32 %v10913_v26, %v13198_v58  ;;  %v10970_v10 = vmul.f32 %v10931_v17, %v13200_v4  ;;  %v4326_v5 = vrot.slane %v10917_v1, 7 }
 0x549   :  { %v10981_v4 = vsel %vm4280_vm7, %v4264_v62, %v4298_v0  ;;  %v10983_v63 = vsel %vm4278_vm8, %v4262_v9, %v4296_v48  ;;  %v10991_v41 = vsel %vm118_vm2, %v4318_v56, %v12489_v11  ;;  %v4329_v57 = vrot.slane %v10948_v14, 7  ;;  %v13203_v0 = vld [vmem:[#allocation53_spill] sm:$0xff] }
 0x54a   :  { %13201 = vst [vmem:[#allocation176_spill] sm:$0xff] %v10981_v4  ;;  %v4327_v58 = vrot.slane %v10931_v17, 7  ;;  %v4330_v2 = vrot.slane %v10981_v4, 7  ;;  %v10998_v62 = vmul.f32 %v10948_v14, %v13202_v44  ;;  %v4328_v9 = vrot.slane %v10983_v63, 7  ;;  %v13210_v56 = vld [vmem:[#allocation29_spill] sm:$0xff] }
 0x54b   :  { %v4375_v48 = vmul.f32 %v10981_v4, %v13203_v0  ;;  %v11005_v36 = vmul.f32 %v10983_v63, %v13204_v7  ;;  %v11024_v7 = vmul.f32 %v4343_v33, %v13206_v49  ;;  %v11028_v21 = vmul.f32 %v10991_v41, %v13208_v20  ;;  %v7710_v49 = vld [vmem:[%s12115_s8 + $0x8] sm:$0xff]  }
 0x54c   :  { %v11015_v44 = vsel %vm118_vm2, %v4329_v57, %v4330_v2  ;;  %v11021_v0 = vsel %vm118_vm2, %v4330_v2, %v4315_v59  ;;  %v13212_v2 = vld [vmem:[#allocation69_spill] sm:$0xff]  ;;  %v11061_v11 = vmul.f32 %v10991_v41, %v13218_v61  ;;  %v13221_v61 = vpack.c.bf16 %v10818_v50, %v10845_v30  ;;  %v13232_v30 = vld [vmem:[#allocation14_spill] sm:$0xff] }
 0x54d   :  { %13205 = vst [vmem:[#allocation178_spill] sm:$0xff] %v11021_v0  ;;  %13207 = vst [vmem:[#allocation179_spill] sm:$0xff] %v11024_v7  ;;  %v4395_v24 = vpack.c.bf16 %v10850_v46, %v4375_v48  ;;  %v11035_v23 = vmul.f32 %v11015_v44, %v13210_v56  ;;  %v11039_v59 = vmul.f32 %v11021_v0, %v13211_v29  ;;  %v13214_v48 = vld [vmem:[#allocation111_spill] sm:$0xff]  ;;  %v13216_v56 = vld [vmem:[#allocation93_spill] sm:$0xff]  ;;  %v4677_v50 = vrot.slane %v10915_v3, 1 }
 0x54e   :  { %13209 = vst [vmem:[#allocation139_spill] sm:$0xff] %v11028_v21  ;;  %v11048_v46 = vmul.f32 %v10860_v16, %v13212_v2  ;;  %v11051_v38 = vmul.f32 %v4343_v33, %v13214_v48  ;;  %v11054_v34 = vmul.f32 %v4343_v33, %v13216_v56  ;;  %13219 = vst [vmem:[#allocation186_spill] sm:$0xff] %v11061_v11  ;;  %v13220_v33 = vrot.slane %v10841_v31, 7  ;;  %v13222_v56 = vld [vmem:[#allocation76_spill] sm:$0xff]  ;;  %v13224_v29 = vld [vmem:[#allocation7_spill] sm:$0xff] }
 0x54f   :  { %7015 = vmatprep.mubr.msk.bf16.mxu0 %vm427_vm0, %v4395_v24  ;;  %v11069_v2 = vsel %vm118_vm2, %v4320_v52, %v12490_v40  ;;  %v13237_v11 = vld [vmem:[#allocation77_spill] sm:$0xff]  ;;  %v13251_v0 = vrot.slane %v10841_v31, 1  ;;  %v13255_v21 = vld [vmem:[#allocation98_spill] sm:$0xff] }
 0x550   :  { %13213 = vst [vmem:[#allocation144_spill] sm:$0xff] %v11048_v46  ;;  %13215 = vst [vmem:[#allocation183_spill] sm:$0xff] %v11051_v38  ;;  %v11077_v24 = vsel %vm118_vm2, %v13220_v33, %v4320_v52  ;;  %7016 = vmatmul.mubr.msk.bf16.vlgmr.msra.gmra.mrb[16].mxu0 %vm427_vm0, %v13221_v61  ;;  %v11091_v40 = vmul.f32 %v11069_v2, %v13224_v29  ;;  %v11097_v52 = vsel %vm118_vm2, %v13226_v39, %v4323_v27  ;;  %v13242_v38 = vld [vmem:[#allocation80_spill] sm:$0xff] }
 0x551   :  { %13217 = vst [vmem:[#allocation184_spill] sm:$0xff] %v11054_v34  ;;  %v11087_v20 = vmul.f32 %v11077_v24, %v13222_v56  ;;  %7032 = vmatpush3.bf16.msra.mxu0 %v10773_v42  ;;  %7019 = vmatprep.mubr.msk.bf16.mxu0 %vm427_vm0, %v4397_v43  ;;  %v13227_v33 = vmov %v13226_v39  ;;  %v13228_v29 = vrot.slane %v10862_v6, 7  ;;  %v13229_v56 = vld [vmem:[#allocation40_spill] sm:$0xff]  ;;  %v11119_v42 = vld [vmem:[%s12115_s8 + $0x20] sm:$0xff]  }
 0x552   :  { %13225 = vst [vmem:[#allocation188_spill] sm:$0xff] %v11091_v40  ;;  %v11114_v39 = vmul.f32 %v11097_v52, %v13229_v56  ;;  %7033 = vmatprep.subr.bf16.mxu0 %v7710_v49  ;;  %13231 = vst [vmem:[#allocation189_spill] sm:$0xff] %v11119_v42  ;;  %v11135_v56 = vsel %vm118_vm2, %v4323_v27, %v4324_v35  ;;  %v13240_v27 = vld [vmem:[#allocation8_spill] sm:$0xff]  ;;  %v4680_v40 = vrot.slane %v10917_v1, 1 }
 0x553   :  { %13223 = vst [vmem:[#allocation185_spill] sm:$0xff] %v11087_v20  ;;  %v11110_v61 = vsel %vm118_vm2, %v13228_v29, %v13227_v33  ;;  %v13234_v33 = vrot.slane %v10913_v26, 7  ;;  %v11139_v34 = vmul.f32 %v11135_v56, %v13235_v19  ;;  %v11167_v20 = vsel %vm118_vm2, %v4328_v9, %v4329_v57 }
 0x554   :  { %13230 = vst [vmem:[#allocation187_spill] sm:$0xff] %v11114_v39  ;;  %v11125_v48 = vmul.f32 %v11110_v61, %v13232_v30  ;;  %v11147_v30 = vsel %vm118_vm2, %v4326_v5, %v4327_v58  ;;  %v13250_v39 = vrot.slane %v10895_v32, 1 }
 0x555   :  { %v11131_v29 = vsel %vm118_vm2, %v4324_v35, %v13234_v33  ;;  %13236 = vst [vmem:[#allocation191_spill] sm:$0xff] %v11139_v34  ;;  %v13239_v46 = vmov %v13234_v33  ;;  %7034 = vmatpush3.bf16.msra.mxu0 %v7710_v49  ;;  %v13246_v49 = vld [vmem:[#allocation84_spill] sm:$0xff] }
 0x556   :  { %13233 = vst [vmem:[#allocation190_spill] sm:$0xff] %v11125_v48  ;;  %v11143_v43 = vmul.f32 %v11131_v29, %v13237_v11  ;;  %v11153_v33 = vsel %vm118_vm2, %v13239_v46, %v4326_v5  ;;  %v11163_v11 = vmul.f32 %v11147_v30, %v13242_v38  ;;  %v11174_v46 = vsel %vm118_vm2, %v4327_v58, %v4328_v9  ;;  %v13248_v9 = vld [vmem:[#allocation17_spill] sm:$0xff] }
 0x557   :  { %v11159_v19 = vmul.f32 %v11153_v33, %v13240_v27  ;;  %v13244_v27 = vld [vmem:[#allocation86_spill] sm:$0xff]  ;;  %v4678_v38 = vrot.slane %v10925_v25, 1  ;;  %v4683_v48 = vrot.slane %v10948_v14, 1  ;;  %7051 = vmatprep.subr.bf16.mxu0 %v11119_v42  ;;  %v11187_v5 = vmul.f32 %v11174_v46, %v13246_v49 }
 0x558   :  { %13238 = vst [vmem:[#allocation157_spill] sm:$0xff] %v11143_v43  ;;  %13243 = vst [vmem:[#allocation138_spill] sm:$0xff] %v11163_v11  ;;  %v11178_v35 = vmul.f32 %v11167_v20, %v13244_v27  ;;  %v4681_v58 = vrot.slane %v10931_v17, 1  ;;  %v11192_v34 = vmul.f32 %v10880_v60, %v13248_v9  ;;  %v13249_v27 = vld [vmem:[#allocation19_spill] sm:$0xff]  ;;  %v11204_v57 = vsel %vm698_vm1, %v13251_v0, %v13250_v39  ;;  %v13260_v9 = vld [vmem:[#allocation24_spill] sm:$0xff] }
 0x559   :  { %13241 = vst [vmem:[#allocation192_spill] sm:$0xff] %v11159_v19  ;;  %13247 = vst [vmem:[#allocation193_spill] sm:$0xff] %v11187_v5  ;;  %v11196_v43 = vmul.f32 %v10860_v16, %v13249_v27  ;;  %v4684_v49 = vrot.slane %v10981_v4, 1  ;;  %v13252_v19 = vpack.c.bf16 %v10935_v13, %v10921_v37  ;;  %v13253_v27 = vmov %v13251_v0  ;;  %v13258_v13 = vld [vmem:[#allocation41_spill] sm:$0xff]  ;;  %v13262_v5 = vld [vmem:[#allocation47_spill] sm:$0xff] }
 0x55a   :  { %13245 = vst [vmem:[#allocation143_spill] sm:$0xff] %v11178_v35  ;;  %v13254_v11 = vrot.slane %v10801_v45, 1  ;;  %v11221_v0 = vmul.f32 %v11204_v57, %v13255_v21  ;;  %v4682_v39 = vrot.slane %v10983_v63, 1  ;;  %v13257_v37 = vpack.c.bf16 %v10943_v18, %v10939_v28  ;;  %v13266_v35 = vld [vmem:[#allocation121_spill] sm:$0xff]  ;;  %v13278_v16 = vld [vmem:[#allocation79_spill] sm:$0xff]  ;;  %v13329_v4 = vld [vmem:[#allocation68_spill] sm:$0xff] }
 0x55b   :  { %7020 = vmatmul.mubr.msk.bf16.gmra.mrb[20].mxu0 %vm427_vm0, %v13252_v19  ;;  %v11233_v45 = vmul.f32 %v10835_v47, %v13260_v9  ;;  %v11243_v42 = vmul.f32 %v11204_v57, %v13266_v35  ;;  %v13268_v28 = vrot.slane %v10893_v8, 1  ;;  %v13269_v18 = vrot.slane %v10862_v6, 1 }
 0x55c   :  { %v4696_v7 = vsel %vm698_vm1, %v13254_v11, %v13253_v27  ;;  %13256 = vst [vmem:[#allocation163_spill] sm:$0xff] %v11221_v0  ;;  %7023 = vmatprep.mubr.msk.bf16.mxu0 %vm427_vm0, %v13257_v37  ;;  %v13264_v27 = vld [vmem:[#allocation120_spill] sm:$0xff]  ;;  %v13290_v0 = vrot.slane %v10799_v55, 1 }
 0x55d   :  { %v11229_v19 = vmul.f32 %v4696_v7, %v13258_v13  ;;  %13261 = vst [vmem:[#allocation168_spill] sm:$0xff] %v11233_v45  ;;  %v11236_v11 = vmul.f32 %v4696_v7, %v13262_v5  ;;  %v11239_v21 = vmul.f32 %v4696_v7, %v13264_v27  ;;  %13267 = vst [vmem:[#allocation165_spill] sm:$0xff] %v11243_v42  ;;  %v13270_v9 = vmov %v13269_v18  ;;  %v13272_v27 = vld [vmem:[#allocation100_spill] sm:$0xff]  ;;  %v13280_v42 = vld [vmem:[#allocation6_spill] sm:$0xff] }
 0x55e   :  { %v11251_v37 = vsel %vm698_vm1, %v13269_v18, %v13268_v28  ;;  %v13271_v5 = vrot.slane %v10895_v32, 1  ;;  %v13274_v28 = vld [vmem:[#allocation11_spill] sm:$0xff] }
 0x55f   :  { %13259 = vst [vmem:[#allocation194_spill] sm:$0xff] %v11229_v19  ;;  %13263 = vst [vmem:[#allocation162_spill] sm:$0xff] %v11236_v11  ;;  %v11271_v18 = vmul.f32 %v11251_v37, %v13274_v28  ;;  %v13282_v11 = vld [vmem:[#allocation105_spill] sm:$0xff]  ;;  %v13284_v19 = vld [vmem:[#allocation16_spill] sm:$0xff] }
 0x560   :  { %13265 = vst [vmem:[#allocation195_spill] sm:$0xff] %v11239_v21  ;;  %v11259_v7 = vsel %vm698_vm1, %v13271_v5, %v13270_v9  ;;  %v11277_v9 = vsel %vm698_vm1, %v4677_v50, %v4678_v38  ;;  %v13276_v5 = vrot.slane %v10893_v8, 1 }
 0x561   :  { %v11267_v47 = vmul.f32 %v11259_v7, %v13272_v27  ;;  %13275 = vst [vmem:[#allocation196_spill] sm:$0xff] %v11271_v18  ;;  %v13277_v27 = vrot.slane %v10913_v26, 1  ;;  %v11299_v45 = vmul.f32 %v11277_v9, %v13280_v42  ;;  %v11321_v42 = vsel %vm698_vm1, %v4680_v40, %v4681_v58 }
 0x562   :  { %v11283_v13 = vsel %vm698_vm1, %v13276_v5, %v4677_v50 }
 0x563   :  { %13273 = vst [vmem:[#allocation161_spill] sm:$0xff] %v11267_v47  ;;  %v11289_v35 = vsel %vm698_vm1, %v13277_v27, %v4680_v40  ;;  %v11295_v21 = vmul.f32 %v11283_v13, %v13278_v16  ;;  %v13281_v50 = vmov %v13277_v27  ;;  %v11317_v16 = vsel %vm698_vm1, %v4681_v58, %v4682_v39 }
 0x564   :  { %v11305_v5 = vsel %vm698_vm1, %v4678_v38, %v13281_v50  ;;  %v11313_v28 = vmul.f32 %v11289_v35, %v13284_v19  ;;  %v13286_v50 = vld [vmem:[#allocation81_spill] sm:$0xff]  ;;  %v11335_v19 = vsel %vm698_vm1, %v4683_v48, %v4684_v49  ;;  %v13291_v40 = vrot.slane %v10811_v53, 1 }
 0x565   :  { %13279 = vst [vmem:[#allocation164_spill] sm:$0xff] %v11295_v21  ;;  %v11309_v27 = vmul.f32 %v11305_v5, %v13282_v11  ;;  %v11327_v47 = vmul.f32 %v11321_v42, %v13286_v50  ;;  %v13288_v11 = vld [vmem:[#allocation28_spill] sm:$0xff]  ;;  %v13292_v50 = vpack.c.bf16 %v10962_v15, %v10958_v51  ;;  %v11353_v38 = vsel %vm698_vm1, %v4682_v39, %v4683_v48  ;;  %v13302_v51 = vld [vmem:[#allocation71_spill] sm:$0xff] }
 0x566   :  { %13285 = vst [vmem:[#allocation197_spill] sm:$0xff] %v11313_v28  ;;  %v11331_v18 = vmul.f32 %v11317_v16, %v13288_v11  ;;  %v11343_v58 = vsel %vm698_vm1, %v13291_v40, %v13290_v0  ;;  %v13293_v21 = vld [vmem:[#allocation108_spill] sm:$0xff]  ;;  %v13295_v0 = vpack.c.bf16 %v10970_v10, %v10966_v12  ;;  %v13296_v15 = vmov %v13291_v40  ;;  %v13300_v12 = vld [vmem:[#allocation85_spill] sm:$0xff]  ;;  %v13305_v39 = vld [vmem:[#allocation87_spill] sm:$0xff] }
 0x567   :  { %13283 = vst [vmem:[#allocation198_spill] sm:$0xff] %v11309_v27  ;;  %13287 = vst [vmem:[#allocation137_spill] sm:$0xff] %v11327_v47  ;;  %7024 = vmatmul.mubr.msk.bf16.gmra.mrb[24].mxu0 %vm427_vm0, %v13292_v50  ;;  %v11357_v55 = vmul.f32 %v11335_v19, %v13293_v21  ;;  %v13297_v40 = vrot.slane %v10807_v54, 1  ;;  %v13298_v21 = vld [vmem:[#allocation107_spill] sm:$0xff]  ;;  %v11381_v10 = vmul.f32 %v10991_v41, %v13300_v12  ;;  %v13312_v28 = vld [vmem:[#allocation126_spill] sm:$0xff] }
 0x568   :  { %13289 = vst [vmem:[#allocation135_spill] sm:$0xff] %v11331_v18  ;;  %7027 = vmatprep.mubr.msk.bf16.mxu0 %vm427_vm0, %v13295_v0  ;;  %v11377_v50 = vmul.f32 %v11353_v38, %v13298_v21  ;;  %v13301_v0 = vld [vmem:[#allocation66_spill] sm:$0xff]  ;;  %v11389_v53 = vmul.f32 %v11069_v2, %v13302_v51  ;;  %v11399_v47 = vmul.f32 %v11097_v52, %v13305_v39  ;;  %v13307_v41 = vld [vmem:[#allocation51_spill] sm:$0xff]  ;;  %v13310_v39 = vld [vmem:[#allocation89_spill] sm:$0xff] }
 0x569   :  { %13294 = vst [vmem:[#allocation136_spill] sm:$0xff] %v11357_v55  ;;  %v11371_v48 = vsel %vm698_vm1, %v13297_v40, %v13296_v15  ;;  %v11385_v11 = vmul.f32 %v11077_v24, %v13301_v0  ;;  %v13304_v15 = vld [vmem:[#allocation23_spill] sm:$0xff]  ;;  %v11403_v12 = vmul.f32 %v11135_v56, %v13307_v41  ;;  %v13308_v0 = vld [vmem:[#allocation118_spill] sm:$0xff]  ;;  %v11429_v51 = vmul.f32 %v11167_v20, %v13312_v28  ;;  %v13327_v28 = vld [vmem:[#allocation36_spill] sm:$0xff] }
 0x56a   :  { %13299 = vst [vmem:[#allocation35_spill] sm:$0xff] %v11377_v50  ;;  %13303 = vst [vmem:[#allocation158_spill] sm:$0xff] %v11389_v53  ;;  %v11393_v40 = vmul.f32 %v11110_v61, %v13304_v15  ;;  %v11407_v18 = vmul.f32 %v11131_v29, %v13308_v0  ;;  %v13309_v27 = vld [vmem:[#allocation119_spill] sm:$0xff]  ;;  %v11419_v50 = vmul.f32 %v11147_v30, %v13310_v39  ;;  %v13311_v55 = vld [vmem:[#allocation122_spill] sm:$0xff] }
 0x56b   :  { %13306 = vst [vmem:[#allocation148_spill] sm:$0xff] %v11399_v47  ;;  %v11415_v21 = vmul.f32 %v11153_v33, %v13309_v27  ;;  %v11425_v0 = vmul.f32 %v11174_v46, %v13311_v55  ;;  %13313 = vst [vmem:[#allocation145_spill] sm:$0xff] %v11429_v51  ;;  %v13314_v15 = vld [vmem:[#allocation127_spill] sm:$0xff]  ;;  %v13316_v27 = vrot.slane %v10807_v54, 1  ;;  %v13318_v47 = vld [vmem:[#allocation38_spill] sm:$0xff] }
 0x56c   :  { %v11433_v53 = vmul.f32 %v11015_v44, %v13314_v15  ;;  %v11465_v15 = vmul.f32 %v11371_v48, %v13318_v47  ;;  %v13320_v41 = vld [vmem:[#allocation22_spill] sm:$0xff]  ;;  %v11485_v47 = vmul.f32 %v11251_v37, %v13327_v28  ;;  %v13337_v51 = vld [vmem:[#allocation73_spill] sm:$0xff] }
 0x56d   :  { %v11439_v39 = vsel %vm698_vm1, %v4684_v49, %v13316_v27  ;;  %v13317_v27 = vpack.c.bf16 %v10998_v62, %v11005_v36  ;;  %v11469_v22 = vmul.f32 %v11343_v58, %v13320_v41  ;;  %v13322_v49 = vpack.c.bf16 %v11039_v59, %v11035_v23  ;;  %v13323_v36 = vld [vmem:[#allocation54_spill] sm:$0xff] }
 0x56e   :  { %13315 = vst [vmem:[#allocation180_spill] sm:$0xff] %v11433_v53  ;;  %13319 = vst [vmem:[#allocation156_spill] sm:$0xff] %v11465_v15  ;;  %v11477_v62 = vmul.f32 %v11204_v57, %v13323_v36  ;;  %v11489_v41 = vmul.f32 %v11283_v13, %v13329_v4  ;;  %v13331_v59 = vld [vmem:[#allocation26_spill] sm:$0xff]  ;;  %v13333_v57 = vld [vmem:[#allocation44_spill] sm:$0xff]  ;;  %v11511_v23 = vmul.f32 %v11321_v42, %v13337_v51 }
 0x56f   :  { %7028 = vmatmul.mubr.msk.bf16.gmra.mrb[28].mxu0 %vm427_vm0, %v13317_v27  ;;  %13321 = vst [vmem:[#allocation199_spill] sm:$0xff] %v11469_v22  ;;  %v13325_v27 = vld [vmem:[#allocation33_spill] sm:$0xff]  ;;  %13328 = vst [vmem:[#allocation150_spill] sm:$0xff] %v11485_v47  ;;  %v11499_v36 = vmul.f32 %v11305_v5, %v13333_v57  ;;  %v13341_v53 = vld [vmem:[#allocation50_spill] sm:$0xff] }
 0x570   :  { %7035 = vmatprep.mubr.msk.bf16.mxu0 %vm427_vm0, %v13322_v49  ;;  %13324 = vst [vmem:[#allocation170_spill] sm:$0xff] %v11477_v62  ;;  %v11481_v55 = vmul.f32 %v11259_v7, %v13325_v27  ;;  %13330 = vst [vmem:[#allocation149_spill] sm:$0xff] %v11489_v41  ;;  %v11495_v49 = vmul.f32 %v11277_v9, %v13331_v59  ;;  %v13335_v27 = vld [vmem:[#allocation48_spill] sm:$0xff]  ;;  %v13339_v59 = vld [vmem:[#allocation30_spill] sm:$0xff]  ;;  %v11525_v28 = vmul.f32 %v11335_v19, %v13341_v53 }
 0x571   :  { %13334 = vst [vmem:[#allocation155_spill] sm:$0xff] %v11499_v36  ;;  %v11503_v31 = vmul.f32 %v11289_v35, %v13335_v27  ;;  %13338 = vst [vmem:[#allocation175_spill] sm:$0xff] %v11511_v23  ;;  %v11515_v15 = vmul.f32 %v11317_v16, %v13339_v59  ;;  %v13340_v22 = vld [vmem:[#allocation49_spill] sm:$0xff]  ;;  %v13343_v4 = vld [vmem:[#allocation10_spill] sm:$0xff] }
 0x572   :  { %13326 = vst [vmem:[#allocation200_spill] sm:$0xff] %v11481_v55  ;;  %13332 = vst [vmem:[#allocation167_spill] sm:$0xff] %v11495_v49  ;;  %v11521_v27 = vmul.f32 %v11353_v38, %v13340_v22  ;;  %v11529_v47 = vmul.f32 %v11439_v39, %v13343_v4  ;;  %v13344_v59 = vld [vmem:[#allocation15_spill] sm:$0xff]  ;;  %v13346_v49 = vld [vmem:[#allocation173_spill] sm:$0xff] }
 0x573   :  { %13336 = vst [vmem:[#allocation169_spill] sm:$0xff] %v11503_v31  ;;  %13342 = vst [vmem:[#allocation172_spill] sm:$0xff] %v11525_v28  ;;  %v11535_v41 = vmul.f32 %v10880_v60, %v13344_v59  ;;  %v13345_v57 = vld [vmem:[#allocation91_spill] sm:$0xff]  ;;  %v13347_v22 = vld [vmem:[#allocation82_spill] sm:$0xff] }
 0x574   :  { %v11539_v36 = vmul.f32 %v13346_v49, %v13345_v57  ;;  %v11543_v62 = vmul.f32 %v11077_v24, %v13347_v22  ;;  %v7712_v53 = vld [vmem:[%s12115_s8 + $0x28] sm:$0xff]   ;;  %v13348_v59 = vld [vmem:[#allocation95_spill] sm:$0xff]  ;;  %v13350_v22 = vld [vmem:[#allocation88_spill] sm:$0xff] }
 0x575   :  { %v11554_v31 = vmul.f32 %v11069_v2, %v13348_v59  ;;  %v13349_v49 = vld [vmem:[#allocation34_spill] sm:$0xff]  ;;  %v11564_v23 = vmul.f32 %v11097_v52, %v13350_v22  ;;  %v13351_v55 = vld [vmem:[#allocation92_spill] sm:$0xff]  ;;  %v13353_v51 = vld [vmem:[#allocation43_spill] sm:$0xff]  ;;  %v13354_v2 = vpack.c.bf16 %v11196_v43, %v11192_v34 }
 0x576   :  { %v11558_v57 = vmul.f32 %v11110_v61, %v13349_v49  ;;  %v11568_v4 = vmul.f32 %v11135_v56, %v13351_v55  ;;  %v11572_v28 = vmul.f32 %v11131_v29, %v13353_v51  ;;  %v13355_v59 = vld [vmem:[#allocation5_spill] sm:$0xff]  ;;  %v13359_v55 = vld [vmem:[#allocation99_spill] sm:$0xff] }
 0x577   :  { %7036 = vmatmul.mubr.msk.bf16.vlgmr.msra.gmra.mrb[16].mxu0 %vm427_vm0, %v13354_v2  ;;  %v11582_v52 = vmul.f32 %v11153_v33, %v13355_v59  ;;  %v13357_v49 = vld [vmem:[#allocation97_spill] sm:$0xff]  ;;  %v11590_v29 = vmul.f32 %v11174_v46, %v13359_v55  ;;  %v13362_v34 = vld [vmem:[#allocation139_spill] sm:$0xff] }
 0x578   :  { %13352 = vst [vmem:[#allocation201_spill] sm:$0xff] %v11568_v4  ;;  %v11586_v56 = vmul.f32 %v11147_v30, %v13357_v49  ;;  %v13361_v51 = vld [vmem:[#allocation189_spill] sm:$0xff]  ;;  %v13363_v43 = vld [vmem:[#allocation179_spill] sm:$0xff]  ;;  %v13384_v49 = vld [vmem:[#allocation112_spill] sm:$0xff] }
 0x579   :  { %13356 = vst [vmem:[#allocation174_spill] sm:$0xff] %v11582_v52  ;;  %13360 = vst [vmem:[#allocation202_spill] sm:$0xff] %v11590_v29  ;;  %7052 = vmatpush3.bf16.msra.mxu0 %v13361_v51  ;;  %v13364_v22 = vpack.c.bf16 %v13362_v34, %v13363_v43  ;;  %v13365_v59 = vld [vmem:[#allocation45_spill] sm:$0xff]  ;;  %v7713_v46 = vld [vmem:[%s12115_s8 + $0x30] sm:$0xff]  }
 0x57a   :  { %13358 = vst [vmem:[#allocation203_spill] sm:$0xff] %v11586_v56  ;;  %v11603_v30 = vmul.f32 %v11167_v20, %v13365_v59  ;;  %7053 = vmatprep.subr.bf16.mxu0 %v7712_v53  ;;  %v13367_v55 = vld [vmem:[#allocation101_spill] sm:$0xff]  ;;  %v13369_v34 = vld [vmem:[#allocation102_spill] sm:$0xff]  ;;  %v13380_v20 = vld [vmem:[#allocation64_spill] sm:$0xff] }
 0x57b   :  { %7039 = vmatprep.mubr.msk.bf16.mxu0 %vm427_vm0, %v13364_v22  ;;  %v11612_v51 = vmul.f32 %v11015_v44, %v13367_v55  ;;  %v13370_v43 = vld [vmem:[#allocation178_spill] sm:$0xff]  ;;  %v13374_v2 = vld [vmem:[#allocation37_spill] sm:$0xff]  ;;  %v11640_v29 = vmul.f32 %v10925_v25, %v13380_v20 }
 0x57c   :  { %13366 = vst [vmem:[#allocation146_spill] sm:$0xff] %v11603_v30  ;;  %v11616_v22 = vmul.f32 %v13370_v43, %v13369_v34  ;;  %v13372_v59 = vld [vmem:[#allocation46_spill] sm:$0xff]  ;;  %v11626_v61 = vmul.f32 %v10862_v6, %v13374_v2  ;;  %v13376_v44 = vld [vmem:[#allocation109_spill] sm:$0xff]  ;;  %v13378_v34 = vld [vmem:[#allocation56_spill] sm:$0xff] }
 0x57d   :  { %13368 = vst [vmem:[#allocation140_spill] sm:$0xff] %v11612_v51  ;;  %v11622_v33 = vmul.f32 %v10895_v32, %v13372_v59  ;;  %v11632_v55 = vmul.f32 %v10893_v8, %v13376_v44  ;;  %v11636_v24 = vmul.f32 %v10915_v3, %v13378_v34  ;;  %13381 = vst [vmem:[#allocation208_spill] sm:$0xff] %v11640_v29  ;;  %7054 = vmatpush3.bf16.msra.mxu0 %v7712_v53  ;;  %v13382_v59 = vld [vmem:[#allocation110_spill] sm:$0xff]  ;;  %v13385_v51 = vld [vmem:[#allocation113_spill] sm:$0xff] }
 0x57e   :  { %13371 = vst [vmem:[#allocation160_spill] sm:$0xff] %v11616_v22  ;;  %13375 = vst [vmem:[#allocation204_spill] sm:$0xff] %v11626_v61  ;;  %v11646_v30 = vmul.f32 %v10913_v26, %v13382_v59  ;;  %v11650_v44 = vmul.f32 %v10917_v1, %v13384_v49  ;;  %7071 = vmatprep.subr.bf16.mxu0 %v7713_v46  ;;  %v11656_v20 = vmul.f32 %v10931_v17, %v13385_v51  ;;  %v13386_v53 = vld [vmem:[#allocation114_spill] sm:$0xff]  ;;  %v13387_v2 = vld [vmem:[#allocation67_spill] sm:$0xff] }
 0x57f   :  { %13373 = vst [vmem:[#allocation152_spill] sm:$0xff] %v11622_v33  ;;  %13377 = vst [vmem:[#allocation206_spill] sm:$0xff] %v11632_v55  ;;  %v11660_v22 = vmul.f32 %v10983_v63, %v13386_v53  ;;  %v11664_v59 = vmul.f32 %v10948_v14, %v13387_v2  ;;  %v13388_v33 = vld [vmem:[#allocation117_spill] sm:$0xff]  ;;  %v13389_v34 = vld [vmem:[#allocation188_spill] sm:$0xff] }
 0x580   :  { %13379 = vst [vmem:[#allocation205_spill] sm:$0xff] %v11636_v24  ;;  %13383 = vst [vmem:[#allocation207_spill] sm:$0xff] %v11646_v30  ;;  %v11670_v61 = vmul.f32 %v11343_v58, %v13388_v33  ;;  %v13390_v55 = vld [vmem:[#allocation185_spill] sm:$0xff]  ;;  %v13392_v2 = vld [vmem:[#allocation31_spill] sm:$0xff] }
 0x581   :  { %v13391_v24 = vpack.c.bf16 %v13389_v34, %v13390_v55  ;;  %v13393_v52 = vld [vmem:[#allocation154_spill] sm:$0xff]  ;;  %v13394_v49 = vld [vmem:[#allocation124_spill] sm:$0xff]  ;;  %v13395_v33 = vld [vmem:[#allocation187_spill] sm:$0xff] }
 0x582   :  { %v11682_v56 = vmul.f32 %v13393_v52, %v13392_v2  ;;  %v11686_v29 = vmul.f32 %v11259_v7, %v13394_v49  ;;  %v13396_v30 = vld [vmem:[#allocation190_spill] sm:$0xff]  ;;  %v13399_v34 = vld [vmem:[#allocation125_spill] sm:$0xff]  ;;  %v13401_v49 = vld [vmem:[#allocation128_spill] sm:$0xff] }
 0x583   :  { %7040 = vmatmul.mubr.msk.bf16.gmra.mrb[20].mxu0 %vm427_vm0, %v13391_v24  ;;  %v13397_v4 = vpack.c.bf16 %v13395_v33, %v13396_v30  ;;  %v13398_v24 = vld [vmem:[#allocation123_spill] sm:$0xff]  ;;  %v11698_v53 = vmul.f32 %v11283_v13, %v13399_v34  ;;  %v13400_v51 = vld [vmem:[#allocation129_spill] sm:$0xff]  ;;  %v11708_v30 = vmul.f32 %v11305_v5, %v13401_v49  ;;  %v13408_v5 = vld [vmem:[#allocation132_spill] sm:$0xff] }
 0x584   :  { %v11694_v55 = vmul.f32 %v11251_v37, %v13398_v24  ;;  %v11702_v2 = vmul.f32 %v11277_v9, %v13400_v51  ;;  %v13405_v37 = vld [vmem:[#allocation130_spill] sm:$0xff]  ;;  %v13407_v51 = vld [vmem:[#allocation133_spill] sm:$0xff]  ;;  %v11728_v49 = vmul.f32 %v11353_v38, %v13408_v5 }
 0x585   :  { %7043 = vmatprep.mubr.msk.bf16.mxu0 %vm427_vm0, %v13397_v4  ;;  %13402 = vst [vmem:[#allocation142_spill] sm:$0xff] %v11708_v30  ;;  %v13403_v4 = vld [vmem:[#allocation131_spill] sm:$0xff]  ;;  %v11716_v24 = vmul.f32 %v11321_v42, %v13405_v37  ;;  %v11724_v34 = vmul.f32 %v11317_v16, %v13407_v51  ;;  %v13413_v9 = vld [vmem:[#allocation134_spill] sm:$0xff]  ;;  %v13414_v5 = vld [vmem:[#allocation157_spill] sm:$0xff] }
 0x586   :  { %v11712_v33 = vmul.f32 %v11289_v35, %v13403_v4  ;;  %13409 = vst [vmem:[#allocation182_spill] sm:$0xff] %v11728_v49  ;;  %v13410_v4 = vld [vmem:[#allocation62_spill] sm:$0xff]  ;;  %v13412_v37 = vld [vmem:[#allocation63_spill] sm:$0xff]  ;;  %v11742_v7 = vmul.f32 %v11371_v48, %v13413_v9  ;;  %v13418_v35 = vld [vmem:[#allocation192_spill] sm:$0xff] }
 0x587   :  { %13406 = vst [vmem:[#allocation151_spill] sm:$0xff] %v11716_v24  ;;  %v11734_v42 = vmul.f32 %v11335_v19, %v13410_v4  ;;  %v11738_v13 = vmul.f32 %v11439_v39, %v13412_v37  ;;  %v13415_v19 = vld [vmem:[#allocation191_spill] sm:$0xff]  ;;  %v13417_v37 = vld [vmem:[#allocation138_spill] sm:$0xff]  ;;  %v13420_v9 = vld [vmem:[#allocation9_spill] sm:$0xff] }
 0x588   :  { %13404 = vst [vmem:[#allocation147_spill] sm:$0xff] %v11712_v33  ;;  %v13416_v4 = vpack.c.bf16 %v13414_v5, %v13415_v19  ;;  %v13419_v30 = vpack.c.bf16 %v13417_v37, %v13418_v35  ;;  %v4701_v33 = vmul.f32 %v11439_v39, %v13420_v9  ;;  %v13421_v16 = vld [vmem:[#allocation90_spill] sm:$0xff]  ;;  %v13422_v49 = vld [vmem:[#allocation143_spill] sm:$0xff]  ;;  %v13426_v35 = vld [vmem:[#allocation96_spill] sm:$0xff] }
 0x589   :  { %13411 = vst [vmem:[#allocation181_spill] sm:$0xff] %v11734_v42  ;;  %v4702_v24 = vmul.f32 %v11371_v48, %v13421_v16  ;;  %v13423_v42 = vld [vmem:[#allocation193_spill] sm:$0xff]  ;;  %v13425_v5 = vld [vmem:[#allocation94_spill] sm:$0xff]  ;;  %v7714_v39 = vld [vmem:[%s12115_s8 + $0x38] sm:$0xff]  }
 0x58a   :  { %v13424_v51 = vpack.c.bf16 %v13422_v49, %v13423_v42  ;;  %v4703_v19 = vmul.f32 %v11343_v58, %v13425_v5  ;;  %v13427_v48 = vld [vmem:[#allocation163_spill] sm:$0xff]  ;;  %v7715_v58 = vld [vmem:[%s12115_s8 + $0x40] sm:$0xff]   ;;  %v13433_v16 = vld [vmem:[#allocation164_spill] sm:$0xff] }
 0x58b   :  { %7044 = vmatmul.mubr.msk.bf16.gmra.mrb[24].mxu0 %vm427_vm0, %v13416_v4  ;;  %v4721_v38 = vpack.c.bf16 %v4702_v24, %v4701_v33  ;;  %v13428_v33 = vld [vmem:[#allocation194_spill] sm:$0xff]  ;;  %v13431_v49 = vld [vmem:[#allocation161_spill] sm:$0xff]  ;;  %v13438_v9 = vld [vmem:[#allocation135_spill] sm:$0xff] }
 0x58c   :  { %7047 = vmatprep.mubr.msk.bf16.mxu0 %vm427_vm0, %v13419_v30  ;;  %v4704_v30 = vmul.f32 %v13393_v52, %v13426_v35  ;;  %v13429_v24 = vpack.c.bf16 %v13427_v48, %v13428_v33  ;;  %v13430_v52 = vld [vmem:[#allocation196_spill] sm:$0xff]  ;;  %v13439_v5 = vld [vmem:[#allocation137_spill] sm:$0xff]  ;;  %v13441_v35 = vld [vmem:[#allocation83_spill] sm:$0xff] }
 0x58d   :  { %v13432_v42 = vpack.c.bf16 %v13430_v52, %v13431_v49  ;;  %v13444_v33 = vld [vmem:[#allocation35_spill] sm:$0xff]  ;;  %v7716_v52 = vld [vmem:[%s12115_s8 + $0x48] sm:$0xff]  }
 0x58e   :  { %v4722_v4 = vpack.c.bf16 %v4704_v30, %v4703_v19  ;;  %v13440_v19 = vpack.c.bf16 %v13438_v9, %v13439_v5  ;;  %v4878_v30 = vmul.f32 %v13370_v43, %v13441_v35  ;;  %v13446_v49 = vld [vmem:[#allocation183_spill] sm:$0xff]  ;;  %v13457_v9 = vld [vmem:[#allocation180_spill] sm:$0xff]  ;;  %v13458_v5 = vld [vmem:[#allocation145_spill] sm:$0xff] }
 0x58f   :  { %v7717_v43 = vld [vmem:[%s12115_s8 + $0x50] sm:$0xff]   ;;  %v13461_v35 = vld [vmem:[#allocation166_spill] sm:$0xff] }
 0x593   :  { %7048 = vmatmul.mubr.msk.bf16.gmra.mrb[28].mxu0 %vm427_vm0, %v13424_v51  ;;  %v13436_v51 = vld [vmem:[#allocation198_spill] sm:$0xff] }
 0x594   :  { %7055 = vmatprep.mubr.msk.bf16.mxu0 %vm427_vm0, %v4721_v38  ;;  %v13435_v38 = vld [vmem:[#allocation197_spill] sm:$0xff] }
 0x595   :  { %v13437_v37 = vpack.c.bf16 %v13435_v38, %v13436_v51  ;;  %v13452_v51 = vld [vmem:[#allocation148_spill] sm:$0xff] }
 0x59b   :  { %7056 = vmatmul.mubr.msk.bf16.vlgmr.msra.gmra.mrb[16].mxu0 %vm427_vm0, %v4722_v4  ;;  %v13442_v4 = vld [vmem:[#allocation57_spill] sm:$0xff] }
 0x59c   :  { %7072 = vmatpush3.bf16.msra.mxu0 %v7713_v46  ;;  %7059 = vmatprep.mubr.msk.bf16.mxu0 %vm427_vm0, %v13429_v24  ;;  %v13434_v46 = vpack.c.bf16 %v11299_v45, %v13433_v16  ;;  %v13443_v45 = vld [vmem:[#allocation136_spill] sm:$0xff] }
 0x59d   :  { %7073 = vmatprep.subr.bf16.mxu0 %v7714_v39  ;;  %v13445_v24 = vpack.c.bf16 %v13443_v45, %v13444_v33  ;;  %v13468_v45 = vld [vmem:[#allocation176_spill] sm:$0xff] }
 0x59e   :  { %v13471_v33 = vld [vmem:[#allocation156_spill] sm:$0xff] }
 0x5a0   :  { %7074 = vmatpush3.bf16.msra.mxu0 %v7714_v39  ;;  %v4879_v39 = vmul.f32 %v10880_v60, %v13442_v4  ;;  %v13449_v60 = vpack.c.bf16 %v11385_v11, %v11381_v10  ;;  %v13454_v11 = vpack.c.bf16 %v11415_v21, %v11407_v18  ;;  %v13455_v10 = vpack.c.bf16 %v11425_v0, %v11419_v50  ;;  %v7718_v21 = vld [vmem:[%s12115_s8 + $0x58] sm:$0xff]   ;;  %v13462_v50 = vld [vmem:[#allocation171_spill] sm:$0xff] }
 0x5a1   :  { %7091 = vmatprep.subr.bf16.mxu0 %v7715_v58  ;;  %v13463_v0 = vpack.c.bf16 %v10895_v32, %v13462_v50  ;;  %v13464_v4 = vpack.c.bf16 %v10893_v8, %v10862_v6  ;;  %v13466_v32 = vpack.c.bf16 %v10917_v1, %v10913_v26  ;;  %v13469_v6 = vpack.c.bf16 %v13468_v45, %v10948_v14  ;;  %v13470_v8 = vld [vmem:[#allocation199_spill] sm:$0xff]  ;;  %v7720_v26 = vld [vmem:[%s12115_s8 + $0x68] sm:$0xff]  }
 0x5a2   :  { %v4898_v48 = vpack.c.bf16 %v4879_v39, %v4878_v30  ;;  %v7719_v30 = vld [vmem:[%s12115_s8 + $0x60] sm:$0xff]   ;;  %v13465_v39 = vpack.c.bf16 %v10925_v25, %v10915_v3  ;;  %v13472_v3 = vpack.c.bf16 %v13470_v8, %v13471_v33  ;;  %v13473_v1 = vld [vmem:[#allocation162_spill] sm:$0xff]  ;;  %v13474_v25 = vld [vmem:[#allocation168_spill] sm:$0xff] }
 0x5a3   :  { %7060 = vmatmul.mubr.msk.bf16.gmra.mrb[20].mxu0 %vm427_vm0, %v13432_v42  ;;  %v13447_v42 = vld [vmem:[#allocation144_spill] sm:$0xff]  ;;  %v13502_v50 = vld [vmem:[#allocation146_spill] sm:$0xff]  ;;  %v13510_v33 = vld [vmem:[#allocation177_spill] sm:$0xff] }
 0x5a4   :  { %7063 = vmatprep.mubr.msk.bf16.mxu0 %vm427_vm0, %v13434_v46  ;;  %v13448_v16 = vpack.c.bf16 %v13446_v49, %v13447_v42  ;;  %v13450_v46 = vld [vmem:[#allocation158_spill] sm:$0xff]  ;;  %v13479_v49 = vld [vmem:[#allocation149_spill] sm:$0xff] }
 0x5a5   :  { %v13451_v38 = vpack.c.bf16 %v11393_v40, %v13450_v46  ;;  %v13480_v42 = vld [vmem:[#allocation150_spill] sm:$0xff] }
 0x5a6   :  { %v7724_v8 = vld [vmem:[%s12115_s8 + $0x88] sm:$0xff]  }
 0x5ab   :  { %7064 = vmatmul.mubr.msk.bf16.gmra.mrb[24].mxu0 %vm427_vm0, %v13437_v37  ;;  %v13456_v37 = vld [vmem:[#allocation153_spill] sm:$0xff] }
 0x5ac   :  { %7067 = vmatprep.mubr.msk.bf16.mxu0 %vm427_vm0, %v13440_v19  ;;  %v5059_v40 = vpack.c.bf16 %v13456_v37, %v10807_v54  ;;  %v13459_v19 = vpack.c.bf16 %v13457_v9, %v13458_v5  ;;  %v13491_v9 = vpack.c.bf16 %v11539_v36, %v11535_v41  ;;  %v7722_v5 = vld [vmem:[%s12115_s8 + $0x78] sm:$0xff]   ;;  %v13496_v41 = vpack.c.bf16 %v11564_v23, %v11558_v57  ;;  %v13497_v36 = vld [vmem:[#allocation201_spill] sm:$0xff]  ;;  %v13506_v57 = vld [vmem:[#allocation103_spill] sm:$0xff] }
 0x5b3   :  { %7068 = vmatmul.mubr.msk.bf16.gmra.mrb[28].mxu0 %vm427_vm0, %v13445_v24  ;;  %v13475_v24 = vpack.c.bf16 %v13473_v1, %v13474_v25  ;;  %v13516_v25 = vld [vmem:[#allocation205_spill] sm:$0xff] }
 0x5b4   :  { %7075 = vmatprep.mubr.msk.bf16.mxu0 %vm427_vm0, %v4898_v48  ;;  %v13467_v48 = vpack.c.bf16 %v10983_v63, %v10931_v17  ;;  %v13476_v63 = vld [vmem:[#allocation200_spill] sm:$0xff]  ;;  %v13477_v17 = vld [vmem:[#allocation170_spill] sm:$0xff] }
 0x5b5   :  { %v13478_v14 = vpack.c.bf16 %v13476_v63, %v13477_v17  ;;  %v13519_v17 = vld [vmem:[#allocation207_spill] sm:$0xff] }
 0x5bb   :  { %7076 = vmatmul.mubr.msk.bf16.vlgmr.msra.gmra.mrb[16].mxu0 %vm427_vm0, %v13448_v16  ;;  %v13481_v16 = vpack.c.bf16 %v13479_v49, %v13480_v42  ;;  %v13522_v49 = vpack.c.bf16 %v11656_v20, %v11650_v44  ;;  %v13523_v42 = vpack.c.bf16 %v11664_v59, %v11660_v22  ;;  %v13527_v44 = vld [vmem:[#allocation165_spill] sm:$0xff]  ;;  %v13528_v20 = vld [vmem:[#allocation195_spill] sm:$0xff]  ;;  %v13530_v22 = vpack.c.bf16 %v11694_v55, %v11686_v29 }
 0x5bc   :  { %7092 = vmatpush3.bf16.msra.mxu0 %v7715_v58  ;;  %7079 = vmatprep.mubr.msk.bf16.mxu0 %vm427_vm0, %v13449_v60  ;;  %v13453_v58 = vpack.c.bf16 %v11403_v12, %v13452_v51  ;;  %v13460_v12 = vld [vmem:[#allocation141_spill] sm:$0xff]  ;;  %v13482_v60 = vld [vmem:[#allocation155_spill] sm:$0xff] }
 0x5bd   :  { %7093 = vmatprep.subr.bf16.mxu0 %v7716_v52  ;;  %v5060_v18 = vpack.c.bf16 %v13461_v35, %v13460_v12  ;;  %v13486_v51 = vld [vmem:[#allocation169_spill] sm:$0xff]  ;;  %v13493_v35 = vld [vmem:[#allocation184_spill] sm:$0xff]  ;;  %v13532_v59 = vld [vmem:[#allocation147_spill] sm:$0xff] }
 0x5be   :  { %v12025_v55 = vld [vmem:[%s12116_s9] ss:$0 sm:$0xff] }
 0x5c0   :  { %7094 = vmatpush3.bf16.msra.mxu0 %v7716_v52  ;;  %v7721_v52 = vld [vmem:[%s12115_s8 + $0x70] sm:$0xff]  }
 0x5c1   :  { %7111 = vmatprep.subr.bf16.mxu0 %v7717_v43 }
 0x5c3   :  { %7080 = vmatmul.mubr.msk.bf16.gmra.mrb[20].mxu0 %vm427_vm0, %v13451_v38  ;;  %v13485_v38 = vld [vmem:[#allocation175_spill] sm:$0xff] }
 0x5c4   :  { %7083 = vmatprep.mubr.msk.bf16.mxu0 %vm427_vm0, %v13453_v58  ;;  %v13487_v58 = vpack.c.bf16 %v13485_v38, %v13486_v51  ;;  %v13526_v51 = vpack.c.bf16 %v11682_v56, %v11670_v61  ;;  %v13535_v56 = vld [vmem:[#allocation151_spill] sm:$0xff] }
 0x5cb   :  { %7084 = vmatmul.mubr.msk.bf16.gmra.mrb[24].mxu0 %vm427_vm0, %v13454_v11  ;;  %v13488_v11 = vpack.c.bf16 %v11521_v27, %v11515_v15  ;;  %v13495_v15 = vpack.c.bf16 %v11554_v31, %v11543_v62  ;;  %v13498_v27 = vpack.c.bf16 %v11572_v28, %v13497_v36  ;;  %v13499_v31 = vld [vmem:[#allocation203_spill] sm:$0xff]  ;;  %v13500_v62 = vld [vmem:[#allocation174_spill] sm:$0xff]  ;;  %v13507_v28 = vld [vmem:[#allocation160_spill] sm:$0xff] }
 0x5cc   :  { %7087 = vmatprep.mubr.msk.bf16.mxu0 %vm427_vm0, %v13455_v10  ;;  %v13489_v10 = vld [vmem:[#allocation172_spill] sm:$0xff] }
 0x5d3   :  { %7088 = vmatmul.mubr.msk.bf16.gmra.mrb[28].mxu0 %vm427_vm0, %v13459_v19  ;;  %v13492_v19 = vld [vmem:[#allocation186_spill] sm:$0xff] }
 0x5d4   :  { %7095 = vmatprep.mubr.msk.bf16.mxu0 %vm427_vm0, %v5059_v40  ;;  %v13490_v40 = vpack.c.bf16 %v11529_v47, %v13489_v10  ;;  %v7723_v47 = vld [vmem:[%s12115_s8 + $0x80] sm:$0xff]  }
 0x5d5   :  { %v13537_v10 = vld [vmem:[#allocation181_spill] sm:$0xff] }
 0x5db   :  { %7096 = vmatmul.mubr.msk.bf16.vlgmr.msra.gmra.mrb[16].mxu0 %vm427_vm0, %v5060_v18  ;;  %v13494_v18 = vpack.c.bf16 %v13492_v19, %v13493_v35 }
 0x5dc   :  { %7112 = vmatpush3.bf16.msra.mxu0 %v7717_v43  ;;  %7099 = vmatprep.mubr.msk.bf16.mxu0 %vm427_vm0, %v13463_v0  ;;  %v13483_v43 = vld [vmem:[#allocation167_spill] sm:$0xff]  ;;  %v13503_v0 = vld [vmem:[#allocation202_spill] sm:$0xff] }
 0x5dd   :  { %7113 = vmatprep.subr.bf16.mxu0 %v7718_v21  ;;  %v13484_v46 = vpack.c.bf16 %v13482_v60, %v13483_v43  ;;  %v13525_v43 = vld [vmem:[#allocation116_spill] sm:$0xff] }
 0x5e0   :  { %7114 = vmatpush3.bf16.msra.mxu0 %v7718_v21  ;;  %v13501_v21 = vpack.c.bf16 %v13499_v31, %v13500_v62 }
 0x5e1   :  { %7131 = vmatprep.subr.bf16.mxu0 %v7719_v30 }
 0x5e3   :  { %7100 = vmatmul.mubr.msk.bf16.gmra.mrb[20].mxu0 %vm427_vm0, %v13464_v4  ;;  %v13505_v4 = vld [vmem:[#allocation104_spill] sm:$0xff] }
 0x5e4   :  { %7103 = vmatprep.mubr.msk.bf16.mxu0 %vm427_vm0, %v13465_v39  ;;  %v5570_v23 = vmul.f32 %v13456_v37, %v13505_v4  ;;  %v5571_v39 = vmul.f32 %v13460_v12, %v13506_v57  ;;  %v13513_v37 = vld [vmem:[#allocation204_spill] sm:$0xff] }
 0x5e5   :  { %v13514_v12 = vld [vmem:[#allocation152_spill] sm:$0xff] }
 0x5e6   :  { %v13515_v1 = vpack.c.bf16 %v13513_v37, %v13514_v12 }
 0x5eb   :  { %7104 = vmatmul.mubr.msk.bf16.gmra.mrb[24].mxu0 %vm427_vm0, %v13466_v32  ;;  %v5590_v32 = vpack.c.bf16 %v5571_v39, %v5570_v23 }
 0x5ec   :  { %7107 = vmatprep.mubr.msk.bf16.mxu0 %vm427_vm0, %v13467_v48  ;;  %v13508_v48 = vld [vmem:[#allocation140_spill] sm:$0xff] }
 0x5f3   :  { %7108 = vmatmul.mubr.msk.bf16.gmra.mrb[28].mxu0 %vm427_vm0, %v13469_v6  ;;  %v13509_v6 = vpack.c.bf16 %v13507_v28, %v13508_v48 }
 0x5f4   :  { %7115 = vmatprep.mubr.msk.bf16.mxu0 %vm427_vm0, %v13472_v3  ;;  %v13511_v3 = vld [vmem:[#allocation159_spill] sm:$0xff] }
 0x5fb   :  { %7116 = vmatmul.mubr.msk.bf16.vlgmr.msra.gmra.mrb[16].mxu0 %vm427_vm0, %v13475_v24  ;;  %v13517_v24 = vld [vmem:[#allocation206_spill] sm:$0xff] }
 0x5fc   :  { %7132 = vmatpush3.bf16.msra.mxu0 %v7719_v30  ;;  %7119 = vmatprep.mubr.msk.bf16.mxu0 %vm427_vm0, %v13478_v14  ;;  %v13504_v30 = vpack.c.bf16 %v13502_v50, %v13503_v0  ;;  %v13518_v63 = vpack.c.bf16 %v13516_v25, %v13517_v24  ;;  %v13520_v14 = vld [vmem:[#allocation208_spill] sm:$0xff] }
 0x5fd   :  { %7133 = vmatprep.subr.bf16.mxu0 %v7720_v26 }
 0x600   :  { %7134 = vmatpush3.bf16.msra.mxu0 %v7720_v26  ;;  %v13512_v26 = vpack.c.bf16 %v13510_v33, %v13511_v3 }
 0x601   :  { %7151 = vmatprep.subr.bf16.mxu0 %v7721_v52 }
 0x603   :  { %7120 = vmatmul.mubr.msk.bf16.gmra.mrb[20].mxu0 %vm427_vm0, %v13481_v16  ;;  %v13524_v16 = vld [vmem:[#allocation115_spill] sm:$0xff] }
 0x604   :  { %7123 = vmatprep.mubr.msk.bf16.mxu0 %vm427_vm0, %v13484_v46  ;;  %v5584_v60 = vmul.f32 %v13468_v45, %v13524_v16  ;;  %v5585_v46 = vmul.f32 %v10807_v54, %v13525_v43  ;;  %v13531_v54 = vpack.c.bf16 %v11702_v2, %v11698_v53  ;;  %v13533_v45 = vld [vmem:[#allocation142_spill] sm:$0xff]  ;;  %v13540_v53 = vpack.c.bf16 %v11742_v7, %v11738_v13 }
 0x605   :  { %v13534_v61 = vpack.c.bf16 %v13532_v59, %v13533_v45 }
 0x606   :  { %v5597_v38 = vpack.c.bf16 %v5585_v46, %v5584_v60 }
 0x60b   :  { %7124 = vmatmul.mubr.msk.bf16.gmra.mrb[24].mxu0 %vm427_vm0, %v13487_v58  ;;  %v13529_v58 = vpack.c.bf16 %v13527_v44, %v13528_v20 }
 0x60c   :  { %7127 = vmatprep.mubr.msk.bf16.mxu0 %vm427_vm0, %v13488_v11  ;;  %v13536_v11 = vpack.c.bf16 %v11724_v34, %v13535_v56 }
 0x613   :  { %7128 = vmatmul.mubr.msk.bf16.gmra.mrb[28].mxu0 %vm427_vm0, %v13490_v40  ;;  %v13538_v40 = vld [vmem:[#allocation182_spill] sm:$0xff] }
 0x614   :  { %7135 = vmatprep.mubr.msk.bf16.mxu0 %vm427_vm0, %v13491_v9  ;;  %v13539_v29 = vpack.c.bf16 %v13537_v10, %v13538_v40 }
 0x61b   :  { %7136 = vmatmul.mubr.msk.bf16.vlgmr.msra.gmra.mrb[16].mxu0 %vm427_vm0, %v13494_v18 }
 0x61c   :  { %7152 = vmatpush3.bf16.msra.mxu0 %v7721_v52  ;;  %7139 = vmatprep.mubr.msk.bf16.mxu0 %vm427_vm0, %v13495_v15  ;;  %v13521_v52 = vpack.c.bf16 %v13519_v17, %v13520_v14 }
 0x61d   :  { %7153 = vmatprep.subr.bf16.mxu0 %v7722_v5 }
 0x620   :  { %7154 = vmatpush3.bf16.msra.mxu0 %v7722_v5 }
 0x621   :  { %7171 = vmatprep.subr.bf16.mxu0 %v7723_v47 }
 0x623   :  { %7140 = vmatmul.mubr.msk.bf16.gmra.mrb[20].mxu0 %vm427_vm0, %v13496_v41 }
 0x624   :  { %7143 = vmatprep.mubr.msk.bf16.mxu0 %vm427_vm0, %v13498_v27 }
 0x62b   :  { %7144 = vmatmul.mubr.msk.bf16.gmra.mrb[24].mxu0 %vm427_vm0, %v13501_v21 }
 0x62c   :  { %7147 = vmatprep.mubr.msk.bf16.mxu0 %vm427_vm0, %v13504_v30 }
 0x633   :  { %7148 = vmatmul.mubr.msk.bf16.gmra.mrb[28].mxu0 %vm427_vm0, %v13509_v6 }
 0x634   :  { %7155 = vmatprep.mubr.msk.bf16.mxu0 %vm427_vm0, %v5590_v32 }
 0x63b   :  { %7156 = vmatmul.mubr.msk.bf16.vlgmr.msra.gmra.mrb[16].mxu0 %vm427_vm0, %v13512_v26 }
 0x63c   :  { %7172 = vmatpush3.bf16.msra.mxu0 %v7723_v47  ;;  %7159 = vmatprep.mubr.msk.bf16.mxu0 %vm427_vm0, %v13515_v1 }
 0x63d   :  { %7173 = vmatprep.subr.bf16.mxu0 %v7724_v8 }
 0x640   :  { %7174 = vmatpush3.bf16.msra.mxu0 %v7724_v8 }
 0x643   :  { %7160 = vmatmul.mubr.msk.bf16.gmra.mrb[20].mxu0 %vm427_vm0, %v13518_v63 }
 0x644   :  { %7163 = vmatprep.mubr.msk.bf16.mxu0 %vm427_vm0, %v13521_v52 }
 0x64b   :  { %7164 = vmatmul.mubr.msk.bf16.gmra.mrb[24].mxu0 %vm427_vm0, %v13522_v49 }
 0x64c   :  { %7167 = vmatprep.mubr.msk.bf16.mxu0 %vm427_vm0, %v13523_v42 }
 0x653   :  { %7168 = vmatmul.mubr.msk.bf16.gmra.mrb[28].mxu0 %vm427_vm0, %v5597_v38 }
 0x654   :  { %7175 = vmatprep.mubr.msk.bf16.mxu0 %vm427_vm0, %v13526_v51 }
 0x65b   :  { %7176 = vmatmul.mubr.msk.bf16.vlgmr.msra.gmra.mrb[16].mxu0 %vm427_vm0, %v13529_v58 }
 0x65c   :  { %7179 = vmatprep.mubr.msk.bf16.mxu0 %vm427_vm0, %v13530_v22 }
 0x663   :  { %7180 = vmatmul.mubr.msk.bf16.gmra.mrb[20].mxu0 %vm427_vm0, %v13531_v54 }
 0x664   :  { %7183 = vmatprep.mubr.msk.bf16.mxu0 %vm427_vm0, %v13534_v61 }
 0x66b   :  { %7184 = vmatmul.mubr.msk.bf16.gmra.mrb[24].mxu0 %vm427_vm0, %v13536_v11 }
 0x66c   :  { %7187 = vmatprep.mubr.msk.bf16.mxu0 %vm427_vm0, %v13539_v29 }
 0x673   :  { %7188 = vmatmul.mubr.msk.bf16.gmra.mrb[28].mxu0 %vm427_vm0, %v13540_v53  ;;  %vm6075_vm0 = vcmask 31744  }
 0x72e   :  { %v7177_v2 = vpop.f32.mrb[16].mxu0 }
 0x72f   :  { %v5933_v34 = vadd.f32 %v7177_v2, %v12025_v55  ;;  %v5845_v9 = vpop.f32.mrb[17].mxu0 }
 0x730   :  { %v5931_v5 = vadd.f32 %v12025_v55, %v5845_v9  ;;  %v7178_v19 = vpop.f32.mrb[18].mxu0 }
 0x731   :  { %v5949_v35 = vsub.f32 0.0, %v5933_v34  ;;  %v5934_v18 = vadd.f32 %v7178_v19, %v12025_v55  ;;  %v5848_v15 = vpop.f32.mrb[19].mxu0 }
 0x732   :  { %v5947_v47 = vsub.f32 0.0, %v5931_v5  ;;  %v5932_v7 = vadd.f32 %v12025_v55, %v5848_v15 }
 0x733   :  { %v5967_v13 = vmul.f32 1.442695, %v5949_v35  ;;  %v5950_v41 = vsub.f32 0.0, %v5934_v18 }
 0x734   :  { %v5963_v36 = vmul.f32 1.442695, %v5947_v47  ;;  %v5948_v27 = vsub.f32 0.0, %v5932_v7 }
 0x735   :  { %7733 = vpow2.f32 %v5967_v13  ;;  %v5969_v31 = vmul.f32 1.442695, %v5950_v41 }
 0x736   :  { %7735 = vpow2.f32 %v5963_v36  ;;  %v5965_v62 = vmul.f32 1.442695, %v5948_v27  ;;  %v7181_v21 = vpop.f32.mrb[20].mxu0 }
 0x737   :  { %7737 = vpow2.f32 %v5969_v31  ;;  %v5937_v50 = vadd.f32 %v7181_v21, %v12025_v55  ;;  %v5861_v0 = vpop.f32.mrb[21].mxu0 }
 0x738   :  { %7739 = vpow2.f32 %v5965_v62  ;;  %v5935_v30 = vadd.f32 %v12025_v55, %v5861_v0  ;;  %v7182_v4 = vpop.f32.mrb[22].mxu0 }
 0x739   :  { %v5953_v23 = vsub.f32 0.0, %v5937_v50  ;;  %v5938_v57 = vadd.f32 %v7182_v4, %v12025_v55  ;;  %v5864_v39 = vpop.f32.mrb[23].mxu0 }
 0x73a   :  { %v5951_v32 = vsub.f32 0.0, %v5935_v30  ;;  %v5936_v28 = vadd.f32 %v12025_v55, %v5864_v39 }
 0x73b   :  { %v5975_v48 = vmul.f32 1.442695, %v5953_v23  ;;  %v5954_v6 = vsub.f32 0.0, %v5938_v57 }
 0x73c   :  { %v5971_v8 = vmul.f32 1.442695, %v5951_v32  ;;  %v5952_v33 = vsub.f32 0.0, %v5936_v28 }
 0x73d   :  { %7741 = vpow2.f32 %v5975_v48  ;;  %v5977_v3 = vmul.f32 1.442695, %v5954_v6 }
 0x73e   :  { %7743 = vpow2.f32 %v5971_v8  ;;  %v5973_v26 = vmul.f32 1.442695, %v5952_v33  ;;  %v7185_v37 = vpop.f32.mrb[24].mxu0 }
 0x73f   :  { %v7734_v12 = vpop.eup %7733  ;;  %7745 = vpow2.f32 %v5977_v3  ;;  %v5941_v1 = vadd.f32 %v7185_v37, %v12025_v55  ;;  %v5877_v25 = vpop.f32.mrb[25].mxu0 }
 0x740   :  { %v7736_v24 = vpop.eup %7735  ;;  %v5997_v63 = vadd.f32 1.0, %v7734_v12  ;;  %7747 = vpow2.f32 %v5973_v26  ;;  %v5939_v17 = vadd.f32 %v12025_v55, %v5877_v25  ;;  %v7186_v14 = vpop.f32.mrb[26].mxu0 }
 0x741   :  { %v7738_v52 = vpop.eup %7737  ;;  %v5995_v49 = vadd.f32 1.0, %v7736_v24  ;;  %v5957_v42 = vsub.f32 0.0, %v5941_v1  ;;  %v5942_v16 = vadd.f32 %v7186_v14, %v12025_v55  ;;  %v5880_v60 = vpop.f32.mrb[27].mxu0 }
 0x742   :  { %v7740_v43 = vpop.eup %7739  ;;  %7749 = vrcp.f32 %v5997_v63  ;;  %v5998_v46 = vadd.f32 1.0, %v7738_v52  ;;  %v5955_v38 = vsub.f32 0.0, %v5939_v17  ;;  %v5940_v51 = vadd.f32 %v12025_v55, %v5880_v60 }
 0x743   :  { %7751 = vrcp.f32 %v5995_v49  ;;  %v5996_v44 = vadd.f32 1.0, %v7740_v43  ;;  %v5983_v20 = vmul.f32 1.442695, %v5957_v42  ;;  %v5958_v58 = vsub.f32 0.0, %v5942_v16 }
 0x744   :  { %7753 = vrcp.f32 %v5998_v46  ;;  %v5979_v22 = vmul.f32 1.442695, %v5955_v38  ;;  %v5956_v54 = vsub.f32 0.0, %v5940_v51 }
 0x745   :  { %7755 = vrcp.f32 %v5996_v44  ;;  %v5985_v59 = vmul.f32 1.442695, %v5958_v58 }
 0x746   :  { %7757 = vpow2.f32 %v5983_v20  ;;  %v5981_v45 = vmul.f32 1.442695, %v5956_v54  ;;  %v7189_v61 = vpop.f32.mrb[28].mxu0 }
 0x747   :  { %v7742_v56 = vpop.eup %7741  ;;  %7759 = vpow2.f32 %v5979_v22  ;;  %v5945_v11 = vadd.f32 %v7189_v61, %v12025_v55  ;;  %v5893_v10 = vpop.f32.mrb[29].mxu0 }
 0x748   :  { %v7744_v40 = vpop.eup %7743  ;;  %v6001_v29 = vadd.f32 1.0, %v7742_v56  ;;  %7761 = vpow2.f32 %v5985_v59  ;;  %v5943_v53 = vadd.f32 %v12025_v55, %v5893_v10  ;;  %v7190_v2 = vpop.f32.mrb[30].mxu0 }
 0x749   :  { %v7746_v34 = vpop.eup %7745  ;;  %v5999_v9 = vadd.f32 1.0, %v7744_v40  ;;  %7763 = vpow2.f32 %v5981_v45  ;;  %v5961_v5 = vsub.f32 0.0, %v5945_v11  ;;  %v5946_v19 = vadd.f32 %v7190_v2, %v12025_v55  ;;  %v5896_v35 = vpop.f32.mrb[31].mxu0 }
 0x74a   :  { %v7748_v18 = vpop.eup %7747  ;;  %7765 = vrcp.f32 %v6001_v29  ;;  %v6002_v15 = vadd.f32 1.0, %v7746_v34  ;;  %v5959_v47 = vsub.f32 0.0, %v5943_v53  ;;  %v5944_v7 = vadd.f32 %v12025_v55, %v5896_v35 }
 0x74b   :  { %7767 = vrcp.f32 %v5999_v9  ;;  %v6000_v13 = vadd.f32 1.0, %v7748_v18  ;;  %v5991_v41 = vmul.f32 1.442695, %v5961_v5  ;;  %v5962_v36 = vsub.f32 0.0, %v5946_v19 }
 0x74c   :  { %v7750_v27 = vpop.eup %7749  ;;  %7769 = vrcp.f32 %v6002_v15  ;;  %v5987_v31 = vmul.f32 1.442695, %v5959_v47  ;;  %v5960_v62 = vsub.f32 0.0, %v5944_v7 }
 0x74d   :  { %v7752_v21 = vpop.eup %7751  ;;  %v6045_v50 = vmul.f32 3.0, %v7750_v27  ;;  %7771 = vrcp.f32 %v6000_v13  ;;  %v5993_v0 = vmul.f32 1.442695, %v5962_v36 }
 0x74e   :  { %v7754_v30 = vpop.eup %7753  ;;  %v6043_v4 = vmul.f32 3.0, %v7752_v21  ;;  %7773 = vpow2.f32 %v5991_v41  ;;  %v5989_v23 = vmul.f32 1.442695, %v5960_v62 }
 0x74f   :  { %v7756_v57 = vpop.eup %7755  ;;  %v7581_v39 = vround.rtne.f32 %v6045_v50  ;;  %v6046_v55 = vmul.f32 3.0, %v7754_v30  ;;  %7775 = vpow2.f32 %v5987_v31 }
 0x750   :  { %v7758_v32 = vpop.eup %7757  ;;  %v7579_v28 = vround.rtne.f32 %v6043_v4  ;;  %v6044_v48 = vmul.f32 3.0, %v7756_v57  ;;  %7777 = vpow2.f32 %v5993_v0 }
 0x751   :  { %v7760_v6 = vpop.eup %7759  ;;  %6078 = vst.msk [vmem:[%s12118_s11 + $0x10] sm:$0xff] %vm6075_vm0, %v7581_v39  ;;  %v7582_v8 = vround.rtne.f32 %v6046_v55  ;;  %v6005_v33 = vadd.f32 1.0, %v7758_v32  ;;  %7779 = vpow2.f32 %v5989_v23 }
 0x752   :  { %v7762_v3 = vpop.eup %7761  ;;  %6076 = vst.msk [vmem:[%s12118_s11] sm:$0xff] %vm6075_vm0, %v7579_v28  ;;  %v7580_v26 = vround.rtne.f32 %v6044_v48  ;;  %v6003_v37 = vadd.f32 1.0, %v7760_v6 }
 0x753   :  { %v7764_v12 = vpop.eup %7763  ;;  %6079 = vst.msk [vmem:[%s12118_s11 + $0x18] sm:$0xff] %vm6075_vm0, %v7582_v8  ;;  %7781 = vrcp.f32 %v6005_v33  ;;  %v6006_v1 = vadd.f32 1.0, %v7762_v3 }
 0x754   :  { %v7766_v25 = vpop.eup %7765  ;;  %6077 = vst.msk [vmem:[%s12118_s11 + $0x8] sm:$0xff] %vm6075_vm0, %v7580_v26  ;;  %7783 = vrcp.f32 %v6003_v37  ;;  %v6004_v24 = vadd.f32 1.0, %v7764_v12 }
 0x755   :  { %v7768_v63 = vpop.eup %7767  ;;  %v6049_v17 = vmul.f32 3.0, %v7766_v25  ;;  %7785 = vrcp.f32 %v6006_v1 }
 0x756   :  { %v7770_v14 = vpop.eup %7769  ;;  %v6047_v52 = vmul.f32 3.0, %v7768_v63  ;;  %7787 = vrcp.f32 %v6004_v24 }
 0x757   :  { %v7772_v49 = vpop.eup %7771  ;;  %v7585_v42 = vround.rtne.f32 %v6049_v17  ;;  %v6050_v16 = vmul.f32 3.0, %v7770_v14 }
 0x758   :  { %v7774_v60 = vpop.eup %7773  ;;  %v7583_v43 = vround.rtne.f32 %v6047_v52  ;;  %v6048_v46 = vmul.f32 3.0, %v7772_v49 }
 0x759   :  { %v7776_v38 = vpop.eup %7775  ;;  %6082 = vst.msk [vmem:[%s12118_s11 + $0x30] sm:$0xff] %vm6075_vm0, %v7585_v42  ;;  %v7586_v51 = vround.rtne.f32 %v6050_v16  ;;  %v6009_v44 = vadd.f32 1.0, %v7774_v60 }
 0x75a   :  { %v7778_v20 = vpop.eup %7777  ;;  %6080 = vst.msk [vmem:[%s12118_s11 + $0x20] sm:$0xff] %vm6075_vm0, %v7583_v43  ;;  %v7584_v58 = vround.rtne.f32 %v6048_v46  ;;  %v6007_v22 = vadd.f32 1.0, %v7776_v38 }
 0x75b   :  { %v7780_v54 = vpop.eup %7779  ;;  %6083 = vst.msk [vmem:[%s12118_s11 + $0x38] sm:$0xff] %vm6075_vm0, %v7586_v51  ;;  %7789 = vrcp.f32 %v6009_v44  ;;  %v6010_v59 = vadd.f32 1.0, %v7778_v20 }
 0x75c   :  { %6081 = vst.msk [vmem:[%s12118_s11 + $0x28] sm:$0xff] %vm6075_vm0, %v7584_v58  ;;  %7791 = vrcp.f32 %v6007_v22  ;;  %v6008_v45 = vadd.f32 1.0, %v7780_v54 }
 0x75d   :  { %v7782_v61 = vpop.eup %7781  ;;  %7793 = vrcp.f32 %v6010_v59 }
 0x75e   :  { %v7784_v56 = vpop.eup %7783  ;;  %v6053_v11 = vmul.f32 3.0, %v7782_v61  ;;  %7795 = vrcp.f32 %v6008_v45 }
 0x75f   :  { %v7786_v10 = vpop.eup %7785  ;;  %v6051_v40 = vmul.f32 3.0, %v7784_v56 }
 0x760   :  { %v7788_v29 = vpop.eup %7787  ;;  %v7589_v53 = vround.rtne.f32 %v6053_v11  ;;  %v6054_v2 = vmul.f32 3.0, %v7786_v10 }
 0x761   :  { %v7587_v34 = vround.rtne.f32 %v6051_v40  ;;  %v6052_v9 = vmul.f32 3.0, %v7788_v29 }
 0x762   :  { %6086 = vst.msk [vmem:[%s12118_s11 + $0x50] sm:$0xff] %vm6075_vm0, %v7589_v53  ;;  %v7590_v5 = vround.rtne.f32 %v6054_v2 }
 0x763   :  { %6084 = vst.msk [vmem:[%s12118_s11 + $0x40] sm:$0xff] %vm6075_vm0, %v7587_v34  ;;  %v7588_v19 = vround.rtne.f32 %v6052_v9 }
 0x764   :  { %6087 = vst.msk [vmem:[%s12118_s11 + $0x58] sm:$0xff] %vm6075_vm0, %v7590_v5 }
 0x765   :  { %v7790_v35 = vpop.eup %7789  ;;  %6085 = vst.msk [vmem:[%s12118_s11 + $0x48] sm:$0xff] %vm6075_vm0, %v7588_v19 }
 0x766   :  { %v7792_v18 = vpop.eup %7791  ;;  %v6057_v15 = vmul.f32 3.0, %v7790_v35 }
 0x767   :  { %v7794_v47 = vpop.eup %7793  ;;  %v6055_v7 = vmul.f32 3.0, %v7792_v18 }
 0x768   :  { %v7796_v13 = vpop.eup %7795  ;;  %v7593_v41 = vround.rtne.f32 %v6057_v15  ;;  %v6058_v36 = vmul.f32 3.0, %v7794_v47 }
 0x769   :  { %v7591_v27 = vround.rtne.f32 %v6055_v7  ;;  %v6056_v31 = vmul.f32 3.0, %v7796_v13 }
 0x76a   :  { %6090 = vst.msk [vmem:[%s12118_s11 + $0x70] sm:$0xff] %vm6075_vm0, %v7593_v41  ;;  %v7594_v62 = vround.rtne.f32 %v6058_v36 }
 0x76b   :  { %6088 = vst.msk [vmem:[%s12118_s11 + $0x60] sm:$0xff] %vm6075_vm0, %v7591_v27  ;;  %v7592_v21 = vround.rtne.f32 %v6056_v31 }
 0x76c   :  { %6091 = vst.msk [vmem:[%s12118_s11 + $0x78] sm:$0xff] %vm6075_vm0, %v7594_v62 }
 0x76d   :  { %6089 = vst.msk [vmem:[%s12118_s11 + $0x68] sm:$0xff] %vm6075_vm0, %v7592_v21 }
 0x76e   :  { %6096 = vsyncpa [#allocation3], 1 }

</bundles_post_ra>
